<compile_context>
chip_gen: v7x
topology: tpu7x:2x2x1
jax: 0.10.0
libtpu: 0.0.40
codegen_flags: <defaults>
</compile_context>

<pallas_src>
import math

import jax
import jax.numpy as jnp
from jax.experimental import pallas as pl
from jax.experimental.pallas import tpu as pltpu

LANE = 128
SUBLANE = 8


def _round_up(x, m):
    return ((x + m - 1) // m) * m


# ----------------------------------------------------------------------------
# Pallas kernels
# ----------------------------------------------------------------------------
def gru_seq_kernel(x_ref, h0_ref, wih_ref, whh_ref, bih_ref, bhh_ref,
                   y_ref, hT_ref, gi_scr):
    """One GRU layer over a full sequence inside a single kernel.

    x_ref  : (T, B, I)   time-major input sequence (VMEM resident)
    h0_ref : (B, H)      initial hidden state
    wih_ref: (I, 3H)     input->gate weights (transposed, gate-padded)
    whh_ref: (H, 3H)     hidden->gate weights (transposed, gate-padded)
    bih/bhh: (1, 3H)
    y_ref  : (T, B, H)   all hidden states (layer output)
    hT_ref : (B, H)      final hidden state
    gi_scr : (T, B, 3H)  scratch for the hoisted input projection
    """
    T, B, I = x_ref.shape
    H = h0_ref.shape[-1]

    # Input projection has no dependence on h -> hoist it out of the serial
    # recurrence as one big MXU matmul over all T*B rows.
    x_all = x_ref[...].reshape(T * B, I)
    gi_all = jnp.dot(x_all, wih_ref[...], preferred_element_type=jnp.float32)
    gi_scr[...] = (gi_all + bih_ref[...]).reshape(T, B, 3 * H)

    whh = whh_ref[...]
    bhh = bhh_ref[...]

    def step(t, h):
        gi = gi_scr[t]                                             # (B, 3H)
        gh = jnp.dot(h, whh, preferred_element_type=jnp.float32) + bhh
        r = jax.nn.sigmoid(gi[:, 0:H] + gh[:, 0:H])
        z = jax.nn.sigmoid(gi[:, H:2 * H] + gh[:, H:2 * H])
        n = jnp.tanh(gi[:, 2 * H:] + r * gh[:, 2 * H:])
        h_new = (1.0 - z) * n + z * h
        y_ref[t] = h_new                          # lane-dense (B, H) VMEM store
        return h_new

    hT_ref[...] = jax.lax.fori_loop(0, T, step, h0_ref[...], unroll=True)


def decoder_kernel(x0_ref, h0_ref, wih_ref, whh_ref, bih_ref, bhh_ref,
                   wout_ref, bout_ref, out_ref, h_scr, y_scr):
    """Entire autoregressive decoder (S steps x L layers) + fused Linear head.

    x0_ref  : (B, H)      initial decoder input (last encoder output)
    h0_ref  : (L, B, H)   initial hidden states (encoder final hiddens)
    wih_ref : (L, H, 3H)  stacked per-layer input->gate weights
    whh_ref : (L, H, 3H)
    bih/bhh : (L, 1, 3H)
    wout_ref: (H, O)      output head weights (transposed, padded)
    bout_ref: (1, O)
    out_ref : (S*B, O)    projected decoder outputs for all S steps
    h_scr   : (L, B, H)   hidden-state carry (VMEM)
    y_scr   : (S, B, H)   pre-head decoder outputs, consumed by one matmul
    """
    L, B, H = h0_ref.shape
    S = y_scr.shape[0]

    h_scr[...] = h0_ref[...]

    def step(s, x):
        for layer in range(L):                    # static unroll over layers
            h = h_scr[layer]
            gi = jnp.dot(x, wih_ref[layer],
                         preferred_element_type=jnp.float32) + bih_ref[layer]
            gh = jnp.dot(h, whh_ref[layer],
                         preferred_element_type=jnp.float32) + bhh_ref[layer]
            r = jax.nn.sigmoid(gi[:, 0:H] + gh[:, 0:H])
            z = jax.nn.sigmoid(gi[:, H:2 * H] + gh[:, H:2 * H])
            n = jnp.tanh(gi[:, 2 * H:] + r * gh[:, 2 * H:])
            h_new = (1.0 - z) * n + z * h
            h_scr[layer] = h_new
            x = h_new
        y_scr[s] = x                              # fed-back (pre-head) output
        return x

    jax.lax.fori_loop(0, S, step, x0_ref[...], unroll=True)

    # Fused output head: one (S*B, H) x (H, O) matmul, single slab store.
    y = y_scr[...].reshape(S * B, H)
    out_ref[...] = (jnp.dot(y, wout_ref[...],
                            preferred_element_type=jnp.float32) + bout_ref[...])


# ----------------------------------------------------------------------------
# pallas_call wrappers
# ----------------------------------------------------------------------------
def gru_layer_seq(x_tbi, h0, w_ih_t, w_hh_t, b_ih, b_hh):
    """x_tbi: (T, B, I) time-major.  Returns (y (T, B, H), h_T (B, H))."""
    T, B, _ = x_tbi.shape
    H = h0.shape[-1]
    return pl.pallas_call(
        gru_seq_kernel,
        out_shape=(
            jax.ShapeDtypeStruct((T, B, H), jnp.float32),
            jax.ShapeDtypeStruct((B, H), jnp.float32),
        ),
        scratch_shapes=[pltpu.VMEM((T, B, 3 * H), jnp.float32)],
    )(x_tbi, h0, w_ih_t, w_hh_t, b_ih, b_hh)


def decoder_rollout(x0, h0, wih, whh, bih, bhh, w_out_t, b_out, num_steps):
    """Run all decoder steps/layers + output head in one fused kernel."""
    L, B, H = h0.shape
    O = w_out_t.shape[-1]
    return pl.pallas_call(
        decoder_kernel,
        out_shape=jax.ShapeDtypeStruct((num_steps * B, O), jnp.float32),
        scratch_shapes=[
            pltpu.VMEM((L, B, H), jnp.float32),
            pltpu.VMEM((num_steps, B, H), jnp.float32),
        ],
    )(x0, h0, wih, whh, bih, bhh, w_out_t, b_out)


# ----------------------------------------------------------------------------
# Module
# ----------------------------------------------------------------------------
class RnnPredictorPallas:
    def __init__(self, input_size, hidden_size, output_size, num_layers,
                 dropout, key):
        self.I = input_size
        self.H = hidden_size
        self.O = output_size
        self.L = num_layers
        self.dropout = dropout                      # eval-mode semantics only
        self.Hp = _round_up(hidden_size, LANE)      # lane-dense hidden
        self.Op = _round_up(output_size, LANE)      # lane-dense head output

        k = 1.0 / math.sqrt(hidden_size)

        def uniform(key, shape):
            return jax.random.uniform(key, shape, jnp.float32, -k, k)

        H, Hp = self.H, self.Hp

        def pack_w(w, in_dim, in_pad):
            # w: (3H, in_dim) PyTorch layout -> (in_pad, 3*Hp), gate-aware pad so
            # each [r, z, n] block lands on its own 128-lane-aligned slot.
            out = jnp.zeros((in_pad, 3 * Hp), jnp.float32)
            for g in range(3):
                blk = w[g * H:(g + 1) * H, :].T                    # (in_dim, H)
                out = out.at[:in_dim, g * Hp:g * Hp + H].set(blk)
            return out

        def pack_b(b):
            out = jnp.zeros((1, 3 * Hp), jnp.float32)
            for g in range(3):
                out = out.at[0, g * Hp:g * Hp + H].set(b[g * H:(g + 1) * H])
            return out

        def make_gru_params(key, in_size, in_pad0):
            params = []
            for layer in range(num_layers):
                li = in_size if layer == 0 else hidden_size
                lp = in_pad0 if layer == 0 else Hp
                key, k1, k2, k3, k4 = jax.random.split(key, 5)
                w_ih = uniform(k1, (3 * hidden_size, li))
                w_hh = uniform(k2, (3 * hidden_size, hidden_size))
                b_ih = uniform(k3, (3 * hidden_size,))
                b_hh = uniform(k4, (3 * hidden_size,))
                params.append((pack_w(w_ih, li, lp),
                               pack_w(w_hh, hidden_size, Hp),
                               pack_b(b_ih), pack_b(b_hh)))
            return key, params

        # Encoder: layer 0 consumes the raw input (feature dim only ever a
        # matmul K-dim, never a stored lane dim -> no need to pad it).
        key, self.enc_params = make_gru_params(key, input_size, input_size)
        # Decoder: all layers consume the (padded) hidden state; stack weights
        # so one pallas_call holds every decoder layer resident in VMEM.
        key, dec_params = make_gru_params(key, hidden_size, Hp)
        self.dec_wih = jnp.stack([p[0] for p in dec_params])      # (L, Hp, 3Hp)
        self.dec_whh = jnp.stack([p[1] for p in dec_params])      # (L, Hp, 3Hp)
        self.dec_bih = jnp.stack([p[2] for p in dec_params])      # (L, 1, 3Hp)
        self.dec_bhh = jnp.stack([p[3] for p in dec_params])      # (L, 1, 3Hp)

        key, k1, k2 = jax.random.split(key, 3)
        w_out = uniform(k1, (output_size, hidden_size))            # PyTorch (O, H)
        b_out = uniform(k2, (output_size,))
        self.w_out_t = (jnp.zeros((Hp, self.Op), jnp.float32)
                        .at[:hidden_size, :output_size].set(w_out.T))
        self.b_out = (jnp.zeros((1, self.Op), jnp.float32)
                      .at[0, :output_size].set(b_out))

    def __call__(self, input_seq, max_output_len):
        """input_seq: (B, T, input_size) batch_first. Returns (B, S, output_size)."""
        B, T, _ = input_seq.shape
        Bp = _round_up(B, SUBLANE)                 # sublane-pad the batch

        x = jnp.transpose(input_seq.astype(jnp.float32), (1, 0, 2))   # (T, B, I)
        x = jnp.pad(x, ((0, 0), (0, Bp - B), (0, 0)))

        # --------------- encoder: one fused kernel per GRU layer ---------------
        h0 = jnp.zeros((Bp, self.Hp), jnp.float32)
        enc_hidden = []
        for layer in range(self.L):
            x, hT = gru_layer_seq(x, h0, *self.enc_params[layer])
            enc_hidden.append(hT)

        dec_x0 = x[-1]                             # (Bp, Hp) == encoder_out[:, -1, :]
        dec_h0 = jnp.stack(enc_hidden, axis=0)     # (L, Bp, Hp)

        # ---------- decoder roll-out + output head: single fused kernel ----------
        out_flat = decoder_rollout(dec_x0, dec_h0, self.dec_wih, self.dec_whh,
                                   self.dec_bih, self.dec_bhh,
                                   self.w_out_t, self.b_out, max_output_len)

        out = out_flat.reshape(max_output_len, Bp, self.Op)
        out = out[:, :B, :self.O]                  # strip batch / output padding
        return jnp.transpose(out, (1, 0, 2))       # (B, S, O)


# ----------------------------------------------------------------------------
# Demo
# ----------------------------------------------------------------------------
if __name__ == "__main__":
    key = jax.random.PRNGKey(0)
    key, pkey, xkey = jax.random.split(key, 3)

    batch = 2
    seq_len = 8
    input_size = 4
    hidden_size = 32
    output_size = 8
    num_layers = 2
    max_output_len = 4

    model = RnnPredictorPallas(
        input_size=input_size,
        hidden_size=hidden_size,
        output_size=output_size,
        num_layers=num_layers,
        dropout=0.0,
        key=pkey,
    )

    input_seq = jax.random.normal(xkey, (batch, seq_len, input_size), jnp.float32)

    fwd = jax.jit(model.__call__, static_argnums=1)
    out = fwd(input_seq, max_output_len)
    jax.block_until_ready(out)

    assert out.shape == (batch, max_output_len, output_size), out.shape
    assert out.dtype == jnp.float32
    print("KERNEL_OK")
</pallas_src>

<mosaic_0001>
module attributes {stable_mosaic.version = 11 : i64} {
  func.func @gru_seq_kernel(%arg0: memref<8x8x4xf32, #tpu.memory_space<vmem>>, %arg1: memref<8x128xf32, #tpu.memory_space<vmem>>, %arg2: memref<4x384xf32, #tpu.memory_space<vmem>>, %arg3: memref<128x384xf32, #tpu.memory_space<vmem>>, %arg4: memref<1x384xf32, #tpu.memory_space<vmem>>, %arg5: memref<1x384xf32, #tpu.memory_space<vmem>>, %arg6: memref<8x8x128xf32, #tpu.memory_space<vmem>>, %arg7: memref<8x128xf32, #tpu.memory_space<vmem>>, %arg8: memref<8x8x384xf32, #tpu.memory_space<vmem>>) attributes {dimension_semantics = [], scalar_prefetch = 0 : i64, scratch_operands = 1 : i64, tpu.core_type = #tpu.core_type<tc>} {
    %c0 = arith.constant 0 : index
    %c0_0 = arith.constant 0 : index
    %c0_1 = arith.constant 0 : index
    %0 = vector.load %arg0[%c0, %c0_0, %c0_1] : memref<8x8x4xf32, #tpu.memory_space<vmem>>, vector<8x8x4xf32>
    %1 = vector.shape_cast %0 : vector<8x8x4xf32> to vector<64x4xf32>
    %c0_2 = arith.constant 0 : index
    %c0_3 = arith.constant 0 : index
    %2 = vector.load %arg2[%c0_2, %c0_3] : memref<4x384xf32, #tpu.memory_space<vmem>>, vector<4x384xf32>
    %cst = arith.constant dense<0.000000e+00> : vector<64x384xf32>
    %3 = tpu.matmul %1, %2, %cst {dimension_numbers = #tpu.dot_dimension_numbers<[1], [0], [0], [1], [0, 0, 1, 1], [], []>} : vector<64x4xf32>, vector<4x384xf32>, vector<64x384xf32> -> vector<64x384xf32>
    %c0_4 = arith.constant 0 : index
    %c0_5 = arith.constant 0 : index
    %4 = vector.load %arg4[%c0_4, %c0_5] : memref<1x384xf32, #tpu.memory_space<vmem>>, vector<1x384xf32>
    %5 = vector.broadcast %4 : vector<1x384xf32> to vector<64x384xf32>
    %6 = arith.addf %3, %5 : vector<64x384xf32>
    %7 = vector.shape_cast %6 : vector<64x384xf32> to vector<8x8x384xf32>
    %c0_6 = arith.constant 0 : index
    %c0_7 = arith.constant 0 : index
    %c0_8 = arith.constant 0 : index
    %8 = vector.load %arg8[%c0_6, %c0_7, %c0_8] : memref<8x8x384xf32, #tpu.memory_space<vmem>>, vector<8x8x384xf32>
    tpu.vector_store %arg8[%c0_6, %c0_7, %c0_8], %7 {strides = array<i32>} : memref<8x8x384xf32, #tpu.memory_space<vmem>>, vector<8x8x384xf32>,
    %c0_9 = arith.constant 0 : index
    %c0_10 = arith.constant 0 : index
    %9 = vector.load %arg3[%c0_9, %c0_10] : memref<128x384xf32, #tpu.memory_space<vmem>>, vector<128x384xf32>
    %c0_11 = arith.constant 0 : index
    %c0_12 = arith.constant 0 : index
    %10 = vector.load %arg5[%c0_11, %c0_12] : memref<1x384xf32, #tpu.memory_space<vmem>>, vector<1x384xf32>
    %c0_13 = arith.constant 0 : index
    %c0_14 = arith.constant 0 : index
    %11 = vector.load %arg1[%c0_13, %c0_14] : memref<8x128xf32, #tpu.memory_space<vmem>>, vector<8x128xf32>
    %c0_i32 = arith.constant 0 : i32
    %12 = arith.index_cast %c0_i32 : i32 to index
    %c0_15 = arith.constant 0 : index
    %c0_16 = arith.constant 0 : index
    %13 = vector.load %arg8[%12, %c0_15, %c0_16] : memref<8x8x384xf32, #tpu.memory_space<vmem>>, vector<1x8x384xf32>
    %14 = vector.shape_cast %13 : vector<1x8x384xf32> to vector<8x384xf32>
    %cst_17 = arith.constant dense<0.000000e+00> : vector<8x384xf32>
    %15 = tpu.matmul %11, %9, %cst_17 {dimension_numbers = #tpu.dot_dimension_numbers<[1], [0], [0], [1], [0, 0, 1, 1], [], []>} : vector<8x128xf32>, vector<128x384xf32>, vector<8x384xf32> -> vector<8x384xf32>
    %16 = vector.broadcast %10 : vector<1x384xf32> to vector<8x384xf32>
    %17 = arith.addf %15, %16 : vector<8x384xf32>
    %18 = vector.extract_strided_slice %14 {offsets = [0, 0], sizes = [8, 128], strides = [1, 1]} : vector<8x384xf32> to vector<8x128xf32>
    %19 = vector.extract_strided_slice %17 {offsets = [0, 0], sizes = [8, 128], strides = [1, 1]} : vector<8x384xf32> to vector<8x128xf32>
    %20 = arith.addf %18, %19 : vector<8x128xf32>
    %21 = arith.negf %20 : vector<8x128xf32>
    %22 = math.exp %21 : vector<8x128xf32>
    %cst_18 = arith.constant 1.000000e+00 : f32
    %23 = vector.broadcast %cst_18 : f32 to vector<8x128xf32>
    %24 = arith.addf %23, %22 : vector<8x128xf32>
    %25 = arith.divf %23, %24 : vector<8x128xf32>
    %26 = vector.extract_strided_slice %14 {offsets = [0, 128], sizes = [8, 128], strides = [1, 1]} : vector<8x384xf32> to vector<8x128xf32>
    %27 = vector.extract_strided_slice %17 {offsets = [0, 128], sizes = [8, 128], strides = [1, 1]} : vector<8x384xf32> to vector<8x128xf32>
    %28 = arith.addf %26, %27 : vector<8x128xf32>
    %29 = arith.negf %28 : vector<8x128xf32>
    %30 = math.exp %29 : vector<8x128xf32>
    %cst_19 = arith.constant 1.000000e+00 : f32
    %31 = vector.broadcast %cst_19 : f32 to vector<8x128xf32>
    %32 = arith.addf %31, %30 : vector<8x128xf32>
    %33 = arith.divf %31, %32 : vector<8x128xf32>
    %34 = vector.extract_strided_slice %14 {offsets = [0, 256], sizes = [8, 128], strides = [1, 1]} : vector<8x384xf32> to vector<8x128xf32>
    %35 = vector.extract_strided_slice %17 {offsets = [0, 256], sizes = [8, 128], strides = [1, 1]} : vector<8x384xf32> to vector<8x128xf32>
    %36 = arith.mulf %25, %35 : vector<8x128xf32>
    %37 = arith.addf %34, %36 : vector<8x128xf32>
    %38 = math.tanh %37 : vector<8x128xf32>
    %cst_20 = arith.constant 1.000000e+00 : f32
    %39 = vector.broadcast %cst_20 : f32 to vector<8x128xf32>
    %40 = arith.subf %39, %33 : vector<8x128xf32>
    %41 = arith.mulf %40, %38 : vector<8x128xf32>
    %42 = arith.mulf %33, %11 : vector<8x128xf32>
    %43 = arith.addf %41, %42 : vector<8x128xf32>
    %44 = arith.index_cast %c0_i32 : i32 to index
    %c0_21 = arith.constant 0 : index
    %c0_22 = arith.constant 0 : index
    %45 = vector.load %arg6[%44, %c0_21, %c0_22] : memref<8x8x128xf32, #tpu.memory_space<vmem>>, vector<1x8x128xf32>
    %46 = vector.shape_cast %45 : vector<1x8x128xf32> to vector<8x128xf32>
    %47 = vector.shape_cast %43 : vector<8x128xf32> to vector<1x8x128xf32>
    tpu.vector_store %arg6[%44, %c0_21, %c0_22], %47 {strides = array<i32>} : memref<8x8x128xf32, #tpu.memory_space<vmem>>, vector<1x8x128xf32>,
    %c1_i32 = arith.constant 1 : i32
    %48 = arith.index_cast %c1_i32 : i32 to index
    %c0_23 = arith.constant 0 : index
    %c0_24 = arith.constant 0 : index
    %49 = vector.load %arg8[%48, %c0_23, %c0_24] : memref<8x8x384xf32, #tpu.memory_space<vmem>>, vector<1x8x384xf32>
    %50 = vector.shape_cast %49 : vector<1x8x384xf32> to vector<8x384xf32>
    %cst_25 = arith.constant dense<0.000000e+00> : vector<8x384xf32>
    %51 = tpu.matmul %43, %9, %cst_25 {dimension_numbers = #tpu.dot_dimension_numbers<[1], [0], [0], [1], [0, 0, 1, 1], [], []>} : vector<8x128xf32>, vector<128x384xf32>, vector<8x384xf32> -> vector<8x384xf32>
    %52 = vector.broadcast %10 : vector<1x384xf32> to vector<8x384xf32>
    %53 = arith.addf %51, %52 : vector<8x384xf32>
    %54 = vector.extract_strided_slice %50 {offsets = [0, 0], sizes = [8, 128], strides = [1, 1]} : vector<8x384xf32> to vector<8x128xf32>
    %55 = vector.extract_strided_slice %53 {offsets = [0, 0], sizes = [8, 128], strides = [1, 1]} : vector<8x384xf32> to vector<8x128xf32>
    %56 = arith.addf %54, %55 : vector<8x128xf32>
    %57 = arith.negf %56 : vector<8x128xf32>
    %58 = math.exp %57 : vector<8x128xf32>
    %cst_26 = arith.constant 1.000000e+00 : f32
    %59 = vector.broadcast %cst_26 : f32 to vector<8x128xf32>
    %60 = arith.addf %59, %58 : vector<8x128xf32>
    %61 = arith.divf %59, %60 : vector<8x128xf32>
    %62 = vector.extract_strided_slice %50 {offsets = [0, 128], sizes = [8, 128], strides = [1, 1]} : vector<8x384xf32> to vector<8x128xf32>
    %63 = vector.extract_strided_slice %53 {offsets = [0, 128], sizes = [8, 128], strides = [1, 1]} : vector<8x384xf32> to vector<8x128xf32>
    %64 = arith.addf %62, %63 : vector<8x128xf32>
    %65 = arith.negf %64 : vector<8x128xf32>
    %66 = math.exp %65 : vector<8x128xf32>
    %cst_27 = arith.constant 1.000000e+00 : f32
    %67 = vector.broadcast %cst_27 : f32 to vector<8x128xf32>
    %68 = arith.addf %67, %66 : vector<8x128xf32>
    %69 = arith.divf %67, %68 : vector<8x128xf32>
    %70 = vector.extract_strided_slice %50 {offsets = [0, 256], sizes = [8, 128], strides = [1, 1]} : vector<8x384xf32> to vector<8x128xf32>
    %71 = vector.extract_strided_slice %53 {offsets = [0, 256], sizes = [8, 128], strides = [1, 1]} : vector<8x384xf32> to vector<8x128xf32>
    %72 = arith.mulf %61, %71 : vector<8x128xf32>
    %73 = arith.addf %70, %72 : vector<8x128xf32>
    %74 = math.tanh %73 : vector<8x128xf32>
    %cst_28 = arith.constant 1.000000e+00 : f32
    %75 = vector.broadcast %cst_28 : f32 to vector<8x128xf32>
    %76 = arith.subf %75, %69 : vector<8x128xf32>
    %77 = arith.mulf %76, %74 : vector<8x128xf32>
    %78 = arith.mulf %69, %43 : vector<8x128xf32>
    %79 = arith.addf %77, %78 : vector<8x128xf32>
    %80 = arith.index_cast %c1_i32 : i32 to index
    %c0_29 = arith.constant 0 : index
    %c0_30 = arith.constant 0 : index
    %81 = vector.load %arg6[%80, %c0_29, %c0_30] : memref<8x8x128xf32, #tpu.memory_space<vmem>>, vector<1x8x128xf32>
    %82 = vector.shape_cast %81 : vector<1x8x128xf32> to vector<8x128xf32>
    %83 = vector.shape_cast %79 : vector<8x128xf32> to vector<1x8x128xf32>
    tpu.vector_store %arg6[%80, %c0_29, %c0_30], %83 {strides = array<i32>} : memref<8x8x128xf32, #tpu.memory_space<vmem>>, vector<1x8x128xf32>,
    %c2_i32 = arith.constant 2 : i32
    %84 = arith.index_cast %c2_i32 : i32 to index
    %c0_31 = arith.constant 0 : index
    %c0_32 = arith.constant 0 : index
    %85 = vector.load %arg8[%84, %c0_31, %c0_32] : memref<8x8x384xf32, #tpu.memory_space<vmem>>, vector<1x8x384xf32>
    %86 = vector.shape_cast %85 : vector<1x8x384xf32> to vector<8x384xf32>
    %cst_33 = arith.constant dense<0.000000e+00> : vector<8x384xf32>
    %87 = tpu.matmul %79, %9, %cst_33 {dimension_numbers = #tpu.dot_dimension_numbers<[1], [0], [0], [1], [0, 0, 1, 1], [], []>} : vector<8x128xf32>, vector<128x384xf32>, vector<8x384xf32> -> vector<8x384xf32>
    %88 = vector.broadcast %10 : vector<1x384xf32> to vector<8x384xf32>
    %89 = arith.addf %87, %88 : vector<8x384xf32>
    %90 = vector.extract_strided_slice %86 {offsets = [0, 0], sizes = [8, 128], strides = [1, 1]} : vector<8x384xf32> to vector<8x128xf32>
    %91 = vector.extract_strided_slice %89 {offsets = [0, 0], sizes = [8, 128], strides = [1, 1]} : vector<8x384xf32> to vector<8x128xf32>
    %92 = arith.addf %90, %91 : vector<8x128xf32>
    %93 = arith.negf %92 : vector<8x128xf32>
    %94 = math.exp %93 : vector<8x128xf32>
    %cst_34 = arith.constant 1.000000e+00 : f32
    %95 = vector.broadcast %cst_34 : f32 to vector<8x128xf32>
    %96 = arith.addf %95, %94 : vector<8x128xf32>
    %97 = arith.divf %95, %96 : vector<8x128xf32>
    %98 = vector.extract_strided_slice %86 {offsets = [0, 128], sizes = [8, 128], strides = [1, 1]} : vector<8x384xf32> to vector<8x128xf32>
    %99 = vector.extract_strided_slice %89 {offsets = [0, 128], sizes = [8, 128], strides = [1, 1]} : vector<8x384xf32> to vector<8x128xf32>
    %100 = arith.addf %98, %99 : vector<8x128xf32>
    %101 = arith.negf %100 : vector<8x128xf32>
    %102 = math.exp %101 : vector<8x128xf32>
    %cst_35 = arith.constant 1.000000e+00 : f32
    %103 = vector.broadcast %cst_35 : f32 to vector<8x128xf32>
    %104 = arith.addf %103, %102 : vector<8x128xf32>
    %105 = arith.divf %103, %104 : vector<8x128xf32>
    %106 = vector.extract_strided_slice %86 {offsets = [0, 256], sizes = [8, 128], strides = [1, 1]} : vector<8x384xf32> to vector<8x128xf32>
    %107 = vector.extract_strided_slice %89 {offsets = [0, 256], sizes = [8, 128], strides = [1, 1]} : vector<8x384xf32> to vector<8x128xf32>
    %108 = arith.mulf %97, %107 : vector<8x128xf32>
    %109 = arith.addf %106, %108 : vector<8x128xf32>
    %110 = math.tanh %109 : vector<8x128xf32>
    %cst_36 = arith.constant 1.000000e+00 : f32
    %111 = vector.broadcast %cst_36 : f32 to vector<8x128xf32>
    %112 = arith.subf %111, %105 : vector<8x128xf32>
    %113 = arith.mulf %112, %110 : vector<8x128xf32>
    %114 = arith.mulf %105, %79 : vector<8x128xf32>
    %115 = arith.addf %113, %114 : vector<8x128xf32>
    %116 = arith.index_cast %c2_i32 : i32 to index
    %c0_37 = arith.constant 0 : index
    %c0_38 = arith.constant 0 : index
    %117 = vector.load %arg6[%116, %c0_37, %c0_38] : memref<8x8x128xf32, #tpu.memory_space<vmem>>, vector<1x8x128xf32>
    %118 = vector.shape_cast %117 : vector<1x8x128xf32> to vector<8x128xf32>
    %119 = vector.shape_cast %115 : vector<8x128xf32> to vector<1x8x128xf32>
    tpu.vector_store %arg6[%116, %c0_37, %c0_38], %119 {strides = array<i32>} : memref<8x8x128xf32, #tpu.memory_space<vmem>>, vector<1x8x128xf32>,
    %c3_i32 = arith.constant 3 : i32
    %120 = arith.index_cast %c3_i32 : i32 to index
    %c0_39 = arith.constant 0 : index
    %c0_40 = arith.constant 0 : index
    %121 = vector.load %arg8[%120, %c0_39, %c0_40] : memref<8x8x384xf32, #tpu.memory_space<vmem>>, vector<1x8x384xf32>
    %122 = vector.shape_cast %121 : vector<1x8x384xf32> to vector<8x384xf32>
    %cst_41 = arith.constant dense<0.000000e+00> : vector<8x384xf32>
    %123 = tpu.matmul %115, %9, %cst_41 {dimension_numbers = #tpu.dot_dimension_numbers<[1], [0], [0], [1], [0, 0, 1, 1], [], []>} : vector<8x128xf32>, vector<128x384xf32>, vector<8x384xf32> -> vector<8x384xf32>
    %124 = vector.broadcast %10 : vector<1x384xf32> to vector<8x384xf32>
    %125 = arith.addf %123, %124 : vector<8x384xf32>
    %126 = vector.extract_strided_slice %122 {offsets = [0, 0], sizes = [8, 128], strides = [1, 1]} : vector<8x384xf32> to vector<8x128xf32>
    %127 = vector.extract_strided_slice %125 {offsets = [0, 0], sizes = [8, 128], strides = [1, 1]} : vector<8x384xf32> to vector<8x128xf32>
    %128 = arith.addf %126, %127 : vector<8x128xf32>
    %129 = arith.negf %128 : vector<8x128xf32>
    %130 = math.exp %129 : vector<8x128xf32>
    %cst_42 = arith.constant 1.000000e+00 : f32
    %131 = vector.broadcast %cst_42 : f32 to vector<8x128xf32>
    %132 = arith.addf %131, %130 : vector<8x128xf32>
    %133 = arith.divf %131, %132 : vector<8x128xf32>
    %134 = vector.extract_strided_slice %122 {offsets = [0, 128], sizes = [8, 128], strides = [1, 1]} : vector<8x384xf32> to vector<8x128xf32>
    %135 = vector.extract_strided_slice %125 {offsets = [0, 128], sizes = [8, 128], strides = [1, 1]} : vector<8x384xf32> to vector<8x128xf32>
    %136 = arith.addf %134, %135 : vector<8x128xf32>
    %137 = arith.negf %136 : vector<8x128xf32>
    %138 = math.exp %137 : vector<8x128xf32>
    %cst_43 = arith.constant 1.000000e+00 : f32
    %139 = vector.broadcast %cst_43 : f32 to vector<8x128xf32>
    %140 = arith.addf %139, %138 : vector<8x128xf32>
    %141 = arith.divf %139, %140 : vector<8x128xf32>
    %142 = vector.extract_strided_slice %122 {offsets = [0, 256], sizes = [8, 128], strides = [1, 1]} : vector<8x384xf32> to vector<8x128xf32>
    %143 = vector.extract_strided_slice %125 {offsets = [0, 256], sizes = [8, 128], strides = [1, 1]} : vector<8x384xf32> to vector<8x128xf32>
    %144 = arith.mulf %133, %143 : vector<8x128xf32>
    %145 = arith.addf %142, %144 : vector<8x128xf32>
    %146 = math.tanh %145 : vector<8x128xf32>
    %cst_44 = arith.constant 1.000000e+00 : f32
    %147 = vector.broadcast %cst_44 : f32 to vector<8x128xf32>
    %148 = arith.subf %147, %141 : vector<8x128xf32>
    %149 = arith.mulf %148, %146 : vector<8x128xf32>
    %150 = arith.mulf %141, %115 : vector<8x128xf32>
    %151 = arith.addf %149, %150 : vector<8x128xf32>
    %152 = arith.index_cast %c3_i32 : i32 to index
    %c0_45 = arith.constant 0 : index
    %c0_46 = arith.constant 0 : index
    %153 = vector.load %arg6[%152, %c0_45, %c0_46] : memref<8x8x128xf32, #tpu.memory_space<vmem>>, vector<1x8x128xf32>
    %154 = vector.shape_cast %153 : vector<1x8x128xf32> to vector<8x128xf32>
    %155 = vector.shape_cast %151 : vector<8x128xf32> to vector<1x8x128xf32>
    tpu.vector_store %arg6[%152, %c0_45, %c0_46], %155 {strides = array<i32>} : memref<8x8x128xf32, #tpu.memory_space<vmem>>, vector<1x8x128xf32>,
    %c4_i32 = arith.constant 4 : i32
    %156 = arith.index_cast %c4_i32 : i32 to index
    %c0_47 = arith.constant 0 : index
    %c0_48 = arith.constant 0 : index
    %157 = vector.load %arg8[%156, %c0_47, %c0_48] : memref<8x8x384xf32, #tpu.memory_space<vmem>>, vector<1x8x384xf32>
    %158 = vector.shape_cast %157 : vector<1x8x384xf32> to vector<8x384xf32>
    %cst_49 = arith.constant dense<0.000000e+00> : vector<8x384xf32>
    %159 = tpu.matmul %151, %9, %cst_49 {dimension_numbers = #tpu.dot_dimension_numbers<[1], [0], [0], [1], [0, 0, 1, 1], [], []>} : vector<8x128xf32>, vector<128x384xf32>, vector<8x384xf32> -> vector<8x384xf32>
    %160 = vector.broadcast %10 : vector<1x384xf32> to vector<8x384xf32>
    %161 = arith.addf %159, %160 : vector<8x384xf32>
    %162 = vector.extract_strided_slice %158 {offsets = [0, 0], sizes = [8, 128], strides = [1, 1]} : vector<8x384xf32> to vector<8x128xf32>
    %163 = vector.extract_strided_slice %161 {offsets = [0, 0], sizes = [8, 128], strides = [1, 1]} : vector<8x384xf32> to vector<8x128xf32>
    %164 = arith.addf %162, %163 : vector<8x128xf32>
    %165 = arith.negf %164 : vector<8x128xf32>
    %166 = math.exp %165 : vector<8x128xf32>
    %cst_50 = arith.constant 1.000000e+00 : f32
    %167 = vector.broadcast %cst_50 : f32 to vector<8x128xf32>
    %168 = arith.addf %167, %166 : vector<8x128xf32>
    %169 = arith.divf %167, %168 : vector<8x128xf32>
    %170 = vector.extract_strided_slice %158 {offsets = [0, 128], sizes = [8, 128], strides = [1, 1]} : vector<8x384xf32> to vector<8x128xf32>
    %171 = vector.extract_strided_slice %161 {offsets = [0, 128], sizes = [8, 128], strides = [1, 1]} : vector<8x384xf32> to vector<8x128xf32>
    %172 = arith.addf %170, %171 : vector<8x128xf32>
    %173 = arith.negf %172 : vector<8x128xf32>
    %174 = math.exp %173 : vector<8x128xf32>
    %cst_51 = arith.constant 1.000000e+00 : f32
    %175 = vector.broadcast %cst_51 : f32 to vector<8x128xf32>
    %176 = arith.addf %175, %174 : vector<8x128xf32>
    %177 = arith.divf %175, %176 : vector<8x128xf32>
    %178 = vector.extract_strided_slice %158 {offsets = [0, 256], sizes = [8, 128], strides = [1, 1]} : vector<8x384xf32> to vector<8x128xf32>
    %179 = vector.extract_strided_slice %161 {offsets = [0, 256], sizes = [8, 128], strides = [1, 1]} : vector<8x384xf32> to vector<8x128xf32>
    %180 = arith.mulf %169, %179 : vector<8x128xf32>
    %181 = arith.addf %178, %180 : vector<8x128xf32>
    %182 = math.tanh %181 : vector<8x128xf32>
    %cst_52 = arith.constant 1.000000e+00 : f32
    %183 = vector.broadcast %cst_52 : f32 to vector<8x128xf32>
    %184 = arith.subf %183, %177 : vector<8x128xf32>
    %185 = arith.mulf %184, %182 : vector<8x128xf32>
    %186 = arith.mulf %177, %151 : vector<8x128xf32>
    %187 = arith.addf %185, %186 : vector<8x128xf32>
    %188 = arith.index_cast %c4_i32 : i32 to index
    %c0_53 = arith.constant 0 : index
    %c0_54 = arith.constant 0 : index
    %189 = vector.load %arg6[%188, %c0_53, %c0_54] : memref<8x8x128xf32, #tpu.memory_space<vmem>>, vector<1x8x128xf32>
    %190 = vector.shape_cast %189 : vector<1x8x128xf32> to vector<8x128xf32>
    %191 = vector.shape_cast %187 : vector<8x128xf32> to vector<1x8x128xf32>
    tpu.vector_store %arg6[%188, %c0_53, %c0_54], %191 {strides = array<i32>} : memref<8x8x128xf32, #tpu.memory_space<vmem>>, vector<1x8x128xf32>,
    %c5_i32 = arith.constant 5 : i32
    %192 = arith.index_cast %c5_i32 : i32 to index
    %c0_55 = arith.constant 0 : index
    %c0_56 = arith.constant 0 : index
    %193 = vector.load %arg8[%192, %c0_55, %c0_56] : memref<8x8x384xf32, #tpu.memory_space<vmem>>, vector<1x8x384xf32>
    %194 = vector.shape_cast %193 : vector<1x8x384xf32> to vector<8x384xf32>
    %cst_57 = arith.constant dense<0.000000e+00> : vector<8x384xf32>
    %195 = tpu.matmul %187, %9, %cst_57 {dimension_numbers = #tpu.dot_dimension_numbers<[1], [0], [0], [1], [0, 0, 1, 1], [], []>} : vector<8x128xf32>, vector<128x384xf32>, vector<8x384xf32> -> vector<8x384xf32>
    %196 = vector.broadcast %10 : vector<1x384xf32> to vector<8x384xf32>
    %197 = arith.addf %195, %196 : vector<8x384xf32>
    %198 = vector.extract_strided_slice %194 {offsets = [0, 0], sizes = [8, 128], strides = [1, 1]} : vector<8x384xf32> to vector<8x128xf32>
    %199 = vector.extract_strided_slice %197 {offsets = [0, 0], sizes = [8, 128], strides = [1, 1]} : vector<8x384xf32> to vector<8x128xf32>
    %200 = arith.addf %198, %199 : vector<8x128xf32>
    %201 = arith.negf %200 : vector<8x128xf32>
    %202 = math.exp %201 : vector<8x128xf32>
    %cst_58 = arith.constant 1.000000e+00 : f32
    %203 = vector.broadcast %cst_58 : f32 to vector<8x128xf32>
    %204 = arith.addf %203, %202 : vector<8x128xf32>
    %205 = arith.divf %203, %204 : vector<8x128xf32>
    %206 = vector.extract_strided_slice %194 {offsets = [0, 128], sizes = [8, 128], strides = [1, 1]} : vector<8x384xf32> to vector<8x128xf32>
    %207 = vector.extract_strided_slice %197 {offsets = [0, 128], sizes = [8, 128], strides = [1, 1]} : vector<8x384xf32> to vector<8x128xf32>
    %208 = arith.addf %206, %207 : vector<8x128xf32>
    %209 = arith.negf %208 : vector<8x128xf32>
    %210 = math.exp %209 : vector<8x128xf32>
    %cst_59 = arith.constant 1.000000e+00 : f32
    %211 = vector.broadcast %cst_59 : f32 to vector<8x128xf32>
    %212 = arith.addf %211, %210 : vector<8x128xf32>
    %213 = arith.divf %211, %212 : vector<8x128xf32>
    %214 = vector.extract_strided_slice %194 {offsets = [0, 256], sizes = [8, 128], strides = [1, 1]} : vector<8x384xf32> to vector<8x128xf32>
    %215 = vector.extract_strided_slice %197 {offsets = [0, 256], sizes = [8, 128], strides = [1, 1]} : vector<8x384xf32> to vector<8x128xf32>
    %216 = arith.mulf %205, %215 : vector<8x128xf32>
    %217 = arith.addf %214, %216 : vector<8x128xf32>
    %218 = math.tanh %217 : vector<8x128xf32>
    %cst_60 = arith.constant 1.000000e+00 : f32
    %219 = vector.broadcast %cst_60 : f32 to vector<8x128xf32>
    %220 = arith.subf %219, %213 : vector<8x128xf32>
    %221 = arith.mulf %220, %218 : vector<8x128xf32>
    %222 = arith.mulf %213, %187 : vector<8x128xf32>
    %223 = arith.addf %221, %222 : vector<8x128xf32>
    %224 = arith.index_cast %c5_i32 : i32 to index
    %c0_61 = arith.constant 0 : index
    %c0_62 = arith.constant 0 : index
    %225 = vector.load %arg6[%224, %c0_61, %c0_62] : memref<8x8x128xf32, #tpu.memory_space<vmem>>, vector<1x8x128xf32>
    %226 = vector.shape_cast %225 : vector<1x8x128xf32> to vector<8x128xf32>
    %227 = vector.shape_cast %223 : vector<8x128xf32> to vector<1x8x128xf32>
    tpu.vector_store %arg6[%224, %c0_61, %c0_62], %227 {strides = array<i32>} : memref<8x8x128xf32, #tpu.memory_space<vmem>>, vector<1x8x128xf32>,
    %c6_i32 = arith.constant 6 : i32
    %228 = arith.index_cast %c6_i32 : i32 to index
    %c0_63 = arith.constant 0 : index
    %c0_64 = arith.constant 0 : index
    %229 = vector.load %arg8[%228, %c0_63, %c0_64] : memref<8x8x384xf32, #tpu.memory_space<vmem>>, vector<1x8x384xf32>
    %230 = vector.shape_cast %229 : vector<1x8x384xf32> to vector<8x384xf32>
    %cst_65 = arith.constant dense<0.000000e+00> : vector<8x384xf32>
    %231 = tpu.matmul %223, %9, %cst_65 {dimension_numbers = #tpu.dot_dimension_numbers<[1], [0], [0], [1], [0, 0, 1, 1], [], []>} : vector<8x128xf32>, vector<128x384xf32>, vector<8x384xf32> -> vector<8x384xf32>
    %232 = vector.broadcast %10 : vector<1x384xf32> to vector<8x384xf32>
    %233 = arith.addf %231, %232 : vector<8x384xf32>
    %234 = vector.extract_strided_slice %230 {offsets = [0, 0], sizes = [8, 128], strides = [1, 1]} : vector<8x384xf32> to vector<8x128xf32>
    %235 = vector.extract_strided_slice %233 {offsets = [0, 0], sizes = [8, 128], strides = [1, 1]} : vector<8x384xf32> to vector<8x128xf32>
    %236 = arith.addf %234, %235 : vector<8x128xf32>
    %237 = arith.negf %236 : vector<8x128xf32>
    %238 = math.exp %237 : vector<8x128xf32>
    %cst_66 = arith.constant 1.000000e+00 : f32
    %239 = vector.broadcast %cst_66 : f32 to vector<8x128xf32>
    %240 = arith.addf %239, %238 : vector<8x128xf32>
    %241 = arith.divf %239, %240 : vector<8x128xf32>
    %242 = vector.extract_strided_slice %230 {offsets = [0, 128], sizes = [8, 128], strides = [1, 1]} : vector<8x384xf32> to vector<8x128xf32>
    %243 = vector.extract_strided_slice %233 {offsets = [0, 128], sizes = [8, 128], strides = [1, 1]} : vector<8x384xf32> to vector<8x128xf32>
    %244 = arith.addf %242, %243 : vector<8x128xf32>
    %245 = arith.negf %244 : vector<8x128xf32>
    %246 = math.exp %245 : vector<8x128xf32>
    %cst_67 = arith.constant 1.000000e+00 : f32
    %247 = vector.broadcast %cst_67 : f32 to vector<8x128xf32>
    %248 = arith.addf %247, %246 : vector<8x128xf32>
    %249 = arith.divf %247, %248 : vector<8x128xf32>
    %250 = vector.extract_strided_slice %230 {offsets = [0, 256], sizes = [8, 128], strides = [1, 1]} : vector<8x384xf32> to vector<8x128xf32>
    %251 = vector.extract_strided_slice %233 {offsets = [0, 256], sizes = [8, 128], strides = [1, 1]} : vector<8x384xf32> to vector<8x128xf32>
    %252 = arith.mulf %241, %251 : vector<8x128xf32>
    %253 = arith.addf %250, %252 : vector<8x128xf32>
    %254 = math.tanh %253 : vector<8x128xf32>
    %cst_68 = arith.constant 1.000000e+00 : f32
    %255 = vector.broadcast %cst_68 : f32 to vector<8x128xf32>
    %256 = arith.subf %255, %249 : vector<8x128xf32>
    %257 = arith.mulf %256, %254 : vector<8x128xf32>
    %258 = arith.mulf %249, %223 : vector<8x128xf32>
    %259 = arith.addf %257, %258 : vector<8x128xf32>
    %260 = arith.index_cast %c6_i32 : i32 to index
    %c0_69 = arith.constant 0 : index
    %c0_70 = arith.constant 0 : index
    %261 = vector.load %arg6[%260, %c0_69, %c0_70] : memref<8x8x128xf32, #tpu.memory_space<vmem>>, vector<1x8x128xf32>
    %262 = vector.shape_cast %261 : vector<1x8x128xf32> to vector<8x128xf32>
    %263 = vector.shape_cast %259 : vector<8x128xf32> to vector<1x8x128xf32>
    tpu.vector_store %arg6[%260, %c0_69, %c0_70], %263 {strides = array<i32>} : memref<8x8x128xf32, #tpu.memory_space<vmem>>, vector<1x8x128xf32>,
    %c7_i32 = arith.constant 7 : i32
    %264 = arith.index_cast %c7_i32 : i32 to index
    %c0_71 = arith.constant 0 : index
    %c0_72 = arith.constant 0 : index
    %265 = vector.load %arg8[%264, %c0_71, %c0_72] : memref<8x8x384xf32, #tpu.memory_space<vmem>>, vector<1x8x384xf32>
    %266 = vector.shape_cast %265 : vector<1x8x384xf32> to vector<8x384xf32>
    %cst_73 = arith.constant dense<0.000000e+00> : vector<8x384xf32>
    %267 = tpu.matmul %259, %9, %cst_73 {dimension_numbers = #tpu.dot_dimension_numbers<[1], [0], [0], [1], [0, 0, 1, 1], [], []>} : vector<8x128xf32>, vector<128x384xf32>, vector<8x384xf32> -> vector<8x384xf32>
    %268 = vector.broadcast %10 : vector<1x384xf32> to vector<8x384xf32>
    %269 = arith.addf %267, %268 : vector<8x384xf32>
    %270 = vector.extract_strided_slice %266 {offsets = [0, 0], sizes = [8, 128], strides = [1, 1]} : vector<8x384xf32> to vector<8x128xf32>
    %271 = vector.extract_strided_slice %269 {offsets = [0, 0], sizes = [8, 128], strides = [1, 1]} : vector<8x384xf32> to vector<8x128xf32>
    %272 = arith.addf %270, %271 : vector<8x128xf32>
    %273 = arith.negf %272 : vector<8x128xf32>
    %274 = math.exp %273 : vector<8x128xf32>
    %cst_74 = arith.constant 1.000000e+00 : f32
    %275 = vector.broadcast %cst_74 : f32 to vector<8x128xf32>
    %276 = arith.addf %275, %274 : vector<8x128xf32>
    %277 = arith.divf %275, %276 : vector<8x128xf32>
    %278 = vector.extract_strided_slice %266 {offsets = [0, 128], sizes = [8, 128], strides = [1, 1]} : vector<8x384xf32> to vector<8x128xf32>
    %279 = vector.extract_strided_slice %269 {offsets = [0, 128], sizes = [8, 128], strides = [1, 1]} : vector<8x384xf32> to vector<8x128xf32>
    %280 = arith.addf %278, %279 : vector<8x128xf32>
    %281 = arith.negf %280 : vector<8x128xf32>
    %282 = math.exp %281 : vector<8x128xf32>
    %cst_75 = arith.constant 1.000000e+00 : f32
    %283 = vector.broadcast %cst_75 : f32 to vector<8x128xf32>
    %284 = arith.addf %283, %282 : vector<8x128xf32>
    %285 = arith.divf %283, %284 : vector<8x128xf32>
    %286 = vector.extract_strided_slice %266 {offsets = [0, 256], sizes = [8, 128], strides = [1, 1]} : vector<8x384xf32> to vector<8x128xf32>
    %287 = vector.extract_strided_slice %269 {offsets = [0, 256], sizes = [8, 128], strides = [1, 1]} : vector<8x384xf32> to vector<8x128xf32>
    %288 = arith.mulf %277, %287 : vector<8x128xf32>
    %289 = arith.addf %286, %288 : vector<8x128xf32>
    %290 = math.tanh %289 : vector<8x128xf32>
    %cst_76 = arith.constant 1.000000e+00 : f32
    %291 = vector.broadcast %cst_76 : f32 to vector<8x128xf32>
    %292 = arith.subf %291, %285 : vector<8x128xf32>
    %293 = arith.mulf %292, %290 : vector<8x128xf32>
    %294 = arith.mulf %285, %259 : vector<8x128xf32>
    %295 = arith.addf %293, %294 : vector<8x128xf32>
    %296 = arith.index_cast %c7_i32 : i32 to index
    %c0_77 = arith.constant 0 : index
    %c0_78 = arith.constant 0 : index
    %297 = vector.load %arg6[%296, %c0_77, %c0_78] : memref<8x8x128xf32, #tpu.memory_space<vmem>>, vector<1x8x128xf32>
    %298 = vector.shape_cast %297 : vector<1x8x128xf32> to vector<8x128xf32>
    %299 = vector.shape_cast %295 : vector<8x128xf32> to vector<1x8x128xf32>
    tpu.vector_store %arg6[%296, %c0_77, %c0_78], %299 {strides = array<i32>} : memref<8x8x128xf32, #tpu.memory_space<vmem>>, vector<1x8x128xf32>,
    %c8_i32 = arith.constant 8 : i32
    %c0_79 = arith.constant 0 : index
    %c0_80 = arith.constant 0 : index
    %300 = vector.load %arg7[%c0_79, %c0_80] : memref<8x128xf32, #tpu.memory_space<vmem>>, vector<8x128xf32>
    tpu.vector_store %arg7[%c0_79, %c0_80], %295 {strides = array<i32>} : memref<8x128xf32, #tpu.memory_space<vmem>>, vector<8x128xf32>,
    return
  }
}

module attributes {stable_mosaic.version = 11 : i64} {
  func.func @gru_seq_kernel(%arg0: memref<8x8x128xf32, #tpu.memory_space<vmem>>, %arg1: memref<8x128xf32, #tpu.memory_space<vmem>>, %arg2: memref<128x384xf32, #tpu.memory_space<vmem>>, %arg3: memref<128x384xf32, #tpu.memory_space<vmem>>, %arg4: memref<1x384xf32, #tpu.memory_space<vmem>>, %arg5: memref<1x384xf32, #tpu.memory_space<vmem>>, %arg6: memref<8x8x128xf32, #tpu.memory_space<vmem>>, %arg7: memref<8x128xf32, #tpu.memory_space<vmem>>, %arg8: memref<8x8x384xf32, #tpu.memory_space<vmem>>) attributes {dimension_semantics = [], scalar_prefetch = 0 : i64, scratch_operands = 1 : i64, tpu.core_type = #tpu.core_type<tc>} {
    %c0 = arith.constant 0 : index
    %c0_0 = arith.constant 0 : index
    %c0_1 = arith.constant 0 : index
    %0 = vector.load %arg0[%c0, %c0_0, %c0_1] : memref<8x8x128xf32, #tpu.memory_space<vmem>>, vector<8x8x128xf32>
    %1 = vector.shape_cast %0 : vector<8x8x128xf32> to vector<64x128xf32>
    %c0_2 = arith.constant 0 : index
    %c0_3 = arith.constant 0 : index
    %2 = vector.load %arg2[%c0_2, %c0_3] : memref<128x384xf32, #tpu.memory_space<vmem>>, vector<128x384xf32>
    %cst = arith.constant dense<0.000000e+00> : vector<64x384xf32>
    %3 = tpu.matmul %1, %2, %cst {dimension_numbers = #tpu.dot_dimension_numbers<[1], [0], [0], [1], [0, 0, 1, 1], [], []>} : vector<64x128xf32>, vector<128x384xf32>, vector<64x384xf32> -> vector<64x384xf32>
    %c0_4 = arith.constant 0 : index
    %c0_5 = arith.constant 0 : index
    %4 = vector.load %arg4[%c0_4, %c0_5] : memref<1x384xf32, #tpu.memory_space<vmem>>, vector<1x384xf32>
    %5 = vector.broadcast %4 : vector<1x384xf32> to vector<64x384xf32>
    %6 = arith.addf %3, %5 : vector<64x384xf32>
    %7 = vector.shape_cast %6 : vector<64x384xf32> to vector<8x8x384xf32>
    %c0_6 = arith.constant 0 : index
    %c0_7 = arith.constant 0 : index
    %c0_8 = arith.constant 0 : index
    %8 = vector.load %arg8[%c0_6, %c0_7, %c0_8] : memref<8x8x384xf32, #tpu.memory_space<vmem>>, vector<8x8x384xf32>
    tpu.vector_store %arg8[%c0_6, %c0_7, %c0_8], %7 {strides = array<i32>} : memref<8x8x384xf32, #tpu.memory_space<vmem>>, vector<8x8x384xf32>,
    %c0_9 = arith.constant 0 : index
    %c0_10 = arith.constant 0 : index
    %9 = vector.load %arg3[%c0_9, %c0_10] : memref<128x384xf32, #tpu.memory_space<vmem>>, vector<128x384xf32>
    %c0_11 = arith.constant 0 : index
    %c0_12 = arith.constant 0 : index
    %10 = vector.load %arg5[%c0_11, %c0_12] : memref<1x384xf32, #tpu.memory_space<vmem>>, vector<1x384xf32>
    %c0_13 = arith.constant 0 : index
    %c0_14 = arith.constant 0 : index
    %11 = vector.load %arg1[%c0_13, %c0_14] : memref<8x128xf32, #tpu.memory_space<vmem>>, vector<8x128xf32>
    %c0_i32 = arith.constant 0 : i32
    %12 = arith.index_cast %c0_i32 : i32 to index
    %c0_15 = arith.constant 0 : index
    %c0_16 = arith.constant 0 : index
    %13 = vector.load %arg8[%12, %c0_15, %c0_16] : memref<8x8x384xf32, #tpu.memory_space<vmem>>, vector<1x8x384xf32>
    %14 = vector.shape_cast %13 : vector<1x8x384xf32> to vector<8x384xf32>
    %cst_17 = arith.constant dense<0.000000e+00> : vector<8x384xf32>
    %15 = tpu.matmul %11, %9, %cst_17 {dimension_numbers = #tpu.dot_dimension_numbers<[1], [0], [0], [1], [0, 0, 1, 1], [], []>} : vector<8x128xf32>, vector<128x384xf32>, vector<8x384xf32> -> vector<8x384xf32>
    %16 = vector.broadcast %10 : vector<1x384xf32> to vector<8x384xf32>
    %17 = arith.addf %15, %16 : vector<8x384xf32>
    %18 = vector.extract_strided_slice %14 {offsets = [0, 0], sizes = [8, 128], strides = [1, 1]} : vector<8x384xf32> to vector<8x128xf32>
    %19 = vector.extract_strided_slice %17 {offsets = [0, 0], sizes = [8, 128], strides = [1, 1]} : vector<8x384xf32> to vector<8x128xf32>
    %20 = arith.addf %18, %19 : vector<8x128xf32>
    %21 = arith.negf %20 : vector<8x128xf32>
    %22 = math.exp %21 : vector<8x128xf32>
    %cst_18 = arith.constant 1.000000e+00 : f32
    %23 = vector.broadcast %cst_18 : f32 to vector<8x128xf32>
    %24 = arith.addf %23, %22 : vector<8x128xf32>
    %25 = arith.divf %23, %24 : vector<8x128xf32>
    %26 = vector.extract_strided_slice %14 {offsets = [0, 128], sizes = [8, 128], strides = [1, 1]} : vector<8x384xf32> to vector<8x128xf32>
    %27 = vector.extract_strided_slice %17 {offsets = [0, 128], sizes = [8, 128], strides = [1, 1]} : vector<8x384xf32> to vector<8x128xf32>
    %28 = arith.addf %26, %27 : vector<8x128xf32>
    %29 = arith.negf %28 : vector<8x128xf32>
    %30 = math.exp %29 : vector<8x128xf32>
    %cst_19 = arith.constant 1.000000e+00 : f32
    %31 = vector.broadcast %cst_19 : f32 to vector<8x128xf32>
    %32 = arith.addf %31, %30 : vector<8x128xf32>
    %33 = arith.divf %31, %32 : vector<8x128xf32>
    %34 = vector.extract_strided_slice %14 {offsets = [0, 256], sizes = [8, 128], strides = [1, 1]} : vector<8x384xf32> to vector<8x128xf32>
    %35 = vector.extract_strided_slice %17 {offsets = [0, 256], sizes = [8, 128], strides = [1, 1]} : vector<8x384xf32> to vector<8x128xf32>
    %36 = arith.mulf %25, %35 : vector<8x128xf32>
    %37 = arith.addf %34, %36 : vector<8x128xf32>
    %38 = math.tanh %37 : vector<8x128xf32>
    %cst_20 = arith.constant 1.000000e+00 : f32
    %39 = vector.broadcast %cst_20 : f32 to vector<8x128xf32>
    %40 = arith.subf %39, %33 : vector<8x128xf32>
    %41 = arith.mulf %40, %38 : vector<8x128xf32>
    %42 = arith.mulf %33, %11 : vector<8x128xf32>
    %43 = arith.addf %41, %42 : vector<8x128xf32>
    %44 = arith.index_cast %c0_i32 : i32 to index
    %c0_21 = arith.constant 0 : index
    %c0_22 = arith.constant 0 : index
    %45 = vector.load %arg6[%44, %c0_21, %c0_22] : memref<8x8x128xf32, #tpu.memory_space<vmem>>, vector<1x8x128xf32>
    %46 = vector.shape_cast %45 : vector<1x8x128xf32> to vector<8x128xf32>
    %47 = vector.shape_cast %43 : vector<8x128xf32> to vector<1x8x128xf32>
    tpu.vector_store %arg6[%44, %c0_21, %c0_22], %47 {strides = array<i32>} : memref<8x8x128xf32, #tpu.memory_space<vmem>>, vector<1x8x128xf32>,
    %c1_i32 = arith.constant 1 : i32
    %48 = arith.index_cast %c1_i32 : i32 to index
    %c0_23 = arith.constant 0 : index
    %c0_24 = arith.constant 0 : index
    %49 = vector.load %arg8[%48, %c0_23, %c0_24] : memref<8x8x384xf32, #tpu.memory_space<vmem>>, vector<1x8x384xf32>
    %50 = vector.shape_cast %49 : vector<1x8x384xf32> to vector<8x384xf32>
    %cst_25 = arith.constant dense<0.000000e+00> : vector<8x384xf32>
    %51 = tpu.matmul %43, %9, %cst_25 {dimension_numbers = #tpu.dot_dimension_numbers<[1], [0], [0], [1], [0, 0, 1, 1], [], []>} : vector<8x128xf32>, vector<128x384xf32>, vector<8x384xf32> -> vector<8x384xf32>
    %52 = vector.broadcast %10 : vector<1x384xf32> to vector<8x384xf32>
    %53 = arith.addf %51, %52 : vector<8x384xf32>
    %54 = vector.extract_strided_slice %50 {offsets = [0, 0], sizes = [8, 128], strides = [1, 1]} : vector<8x384xf32> to vector<8x128xf32>
    %55 = vector.extract_strided_slice %53 {offsets = [0, 0], sizes = [8, 128], strides = [1, 1]} : vector<8x384xf32> to vector<8x128xf32>
    %56 = arith.addf %54, %55 : vector<8x128xf32>
    %57 = arith.negf %56 : vector<8x128xf32>
    %58 = math.exp %57 : vector<8x128xf32>
    %cst_26 = arith.constant 1.000000e+00 : f32
    %59 = vector.broadcast %cst_26 : f32 to vector<8x128xf32>
    %60 = arith.addf %59, %58 : vector<8x128xf32>
    %61 = arith.divf %59, %60 : vector<8x128xf32>
    %62 = vector.extract_strided_slice %50 {offsets = [0, 128], sizes = [8, 128], strides = [1, 1]} : vector<8x384xf32> to vector<8x128xf32>
    %63 = vector.extract_strided_slice %53 {offsets = [0, 128], sizes = [8, 128], strides = [1, 1]} : vector<8x384xf32> to vector<8x128xf32>
    %64 = arith.addf %62, %63 : vector<8x128xf32>
    %65 = arith.negf %64 : vector<8x128xf32>
    %66 = math.exp %65 : vector<8x128xf32>
    %cst_27 = arith.constant 1.000000e+00 : f32
    %67 = vector.broadcast %cst_27 : f32 to vector<8x128xf32>
    %68 = arith.addf %67, %66 : vector<8x128xf32>
    %69 = arith.divf %67, %68 : vector<8x128xf32>
    %70 = vector.extract_strided_slice %50 {offsets = [0, 256], sizes = [8, 128], strides = [1, 1]} : vector<8x384xf32> to vector<8x128xf32>
    %71 = vector.extract_strided_slice %53 {offsets = [0, 256], sizes = [8, 128], strides = [1, 1]} : vector<8x384xf32> to vector<8x128xf32>
    %72 = arith.mulf %61, %71 : vector<8x128xf32>
    %73 = arith.addf %70, %72 : vector<8x128xf32>
    %74 = math.tanh %73 : vector<8x128xf32>
    %cst_28 = arith.constant 1.000000e+00 : f32
    %75 = vector.broadcast %cst_28 : f32 to vector<8x128xf32>
    %76 = arith.subf %75, %69 : vector<8x128xf32>
    %77 = arith.mulf %76, %74 : vector<8x128xf32>
    %78 = arith.mulf %69, %43 : vector<8x128xf32>
    %79 = arith.addf %77, %78 : vector<8x128xf32>
    %80 = arith.index_cast %c1_i32 : i32 to index
    %c0_29 = arith.constant 0 : index
    %c0_30 = arith.constant 0 : index
    %81 = vector.load %arg6[%80, %c0_29, %c0_30] : memref<8x8x128xf32, #tpu.memory_space<vmem>>, vector<1x8x128xf32>
    %82 = vector.shape_cast %81 : vector<1x8x128xf32> to vector<8x128xf32>
    %83 = vector.shape_cast %79 : vector<8x128xf32> to vector<1x8x128xf32>
    tpu.vector_store %arg6[%80, %c0_29, %c0_30], %83 {strides = array<i32>} : memref<8x8x128xf32, #tpu.memory_space<vmem>>, vector<1x8x128xf32>,
    %c2_i32 = arith.constant 2 : i32
    %84 = arith.index_cast %c2_i32 : i32 to index
    %c0_31 = arith.constant 0 : index
    %c0_32 = arith.constant 0 : index
    %85 = vector.load %arg8[%84, %c0_31, %c0_32] : memref<8x8x384xf32, #tpu.memory_space<vmem>>, vector<1x8x384xf32>
    %86 = vector.shape_cast %85 : vector<1x8x384xf32> to vector<8x384xf32>
    %cst_33 = arith.constant dense<0.000000e+00> : vector<8x384xf32>
    %87 = tpu.matmul %79, %9, %cst_33 {dimension_numbers = #tpu.dot_dimension_numbers<[1], [0], [0], [1], [0, 0, 1, 1], [], []>} : vector<8x128xf32>, vector<128x384xf32>, vector<8x384xf32> -> vector<8x384xf32>
    %88 = vector.broadcast %10 : vector<1x384xf32> to vector<8x384xf32>
    %89 = arith.addf %87, %88 : vector<8x384xf32>
    %90 = vector.extract_strided_slice %86 {offsets = [0, 0], sizes = [8, 128], strides = [1, 1]} : vector<8x384xf32> to vector<8x128xf32>
    %91 = vector.extract_strided_slice %89 {offsets = [0, 0], sizes = [8, 128], strides = [1, 1]} : vector<8x384xf32> to vector<8x128xf32>
    %92 = arith.addf %90, %91 : vector<8x128xf32>
    %93 = arith.negf %92 : vector<8x128xf32>
    %94 = math.exp %93 : vector<8x128xf32>
    %cst_34 = arith.constant 1.000000e+00 : f32
    %95 = vector.broadcast %cst_34 : f32 to vector<8x128xf32>
    %96 = arith.addf %95, %94 : vector<8x128xf32>
    %97 = arith.divf %95, %96 : vector<8x128xf32>
    %98 = vector.extract_strided_slice %86 {offsets = [0, 128], sizes = [8, 128], strides = [1, 1]} : vector<8x384xf32> to vector<8x128xf32>
    %99 = vector.extract_strided_slice %89 {offsets = [0, 128], sizes = [8, 128], strides = [1, 1]} : vector<8x384xf32> to vector<8x128xf32>
    %100 = arith.addf %98, %99 : vector<8x128xf32>
    %101 = arith.negf %100 : vector<8x128xf32>
    %102 = math.exp %101 : vector<8x128xf32>
    %cst_35 = arith.constant 1.000000e+00 : f32
    %103 = vector.broadcast %cst_35 : f32 to vector<8x128xf32>
    %104 = arith.addf %103, %102 : vector<8x128xf32>
    %105 = arith.divf %103, %104 : vector<8x128xf32>
    %106 = vector.extract_strided_slice %86 {offsets = [0, 256], sizes = [8, 128], strides = [1, 1]} : vector<8x384xf32> to vector<8x128xf32>
    %107 = vector.extract_strided_slice %89 {offsets = [0, 256], sizes = [8, 128], strides = [1, 1]} : vector<8x384xf32> to vector<8x128xf32>
    %108 = arith.mulf %97, %107 : vector<8x128xf32>
    %109 = arith.addf %106, %108 : vector<8x128xf32>
    %110 = math.tanh %109 : vector<8x128xf32>
    %cst_36 = arith.constant 1.000000e+00 : f32
    %111 = vector.broadcast %cst_36 : f32 to vector<8x128xf32>
    %112 = arith.subf %111, %105 : vector<8x128xf32>
    %113 = arith.mulf %112, %110 : vector<8x128xf32>
    %114 = arith.mulf %105, %79 : vector<8x128xf32>
    %115 = arith.addf %113, %114 : vector<8x128xf32>
    %116 = arith.index_cast %c2_i32 : i32 to index
    %c0_37 = arith.constant 0 : index
    %c0_38 = arith.constant 0 : index
    %117 = vector.load %arg6[%116, %c0_37, %c0_38] : memref<8x8x128xf32, #tpu.memory_space<vmem>>, vector<1x8x128xf32>
    %118 = vector.shape_cast %117 : vector<1x8x128xf32> to vector<8x128xf32>
    %119 = vector.shape_cast %115 : vector<8x128xf32> to vector<1x8x128xf32>
    tpu.vector_store %arg6[%116, %c0_37, %c0_38], %119 {strides = array<i32>} : memref<8x8x128xf32, #tpu.memory_space<vmem>>, vector<1x8x128xf32>,
    %c3_i32 = arith.constant 3 : i32
    %120 = arith.index_cast %c3_i32 : i32 to index
    %c0_39 = arith.constant 0 : index
    %c0_40 = arith.constant 0 : index
    %121 = vector.load %arg8[%120, %c0_39, %c0_40] : memref<8x8x384xf32, #tpu.memory_space<vmem>>, vector<1x8x384xf32>
    %122 = vector.shape_cast %121 : vector<1x8x384xf32> to vector<8x384xf32>
    %cst_41 = arith.constant dense<0.000000e+00> : vector<8x384xf32>
    %123 = tpu.matmul %115, %9, %cst_41 {dimension_numbers = #tpu.dot_dimension_numbers<[1], [0], [0], [1], [0, 0, 1, 1], [], []>} : vector<8x128xf32>, vector<128x384xf32>, vector<8x384xf32> -> vector<8x384xf32>
    %124 = vector.broadcast %10 : vector<1x384xf32> to vector<8x384xf32>
    %125 = arith.addf %123, %124 : vector<8x384xf32>
    %126 = vector.extract_strided_slice %122 {offsets = [0, 0], sizes = [8, 128], strides = [1, 1]} : vector<8x384xf32> to vector<8x128xf32>
    %127 = vector.extract_strided_slice %125 {offsets = [0, 0], sizes = [8, 128], strides = [1, 1]} : vector<8x384xf32> to vector<8x128xf32>
    %128 = arith.addf %126, %127 : vector<8x128xf32>
    %129 = arith.negf %128 : vector<8x128xf32>
    %130 = math.exp %129 : vector<8x128xf32>
    %cst_42 = arith.constant 1.000000e+00 : f32
    %131 = vector.broadcast %cst_42 : f32 to vector<8x128xf32>
    %132 = arith.addf %131, %130 : vector<8x128xf32>
    %133 = arith.divf %131, %132 : vector<8x128xf32>
    %134 = vector.extract_strided_slice %122 {offsets = [0, 128], sizes = [8, 128], strides = [1, 1]} : vector<8x384xf32> to vector<8x128xf32>
    %135 = vector.extract_strided_slice %125 {offsets = [0, 128], sizes = [8, 128], strides = [1, 1]} : vector<8x384xf32> to vector<8x128xf32>
    %136 = arith.addf %134, %135 : vector<8x128xf32>
    %137 = arith.negf %136 : vector<8x128xf32>
    %138 = math.exp %137 : vector<8x128xf32>
    %cst_43 = arith.constant 1.000000e+00 : f32
    %139 = vector.broadcast %cst_43 : f32 to vector<8x128xf32>
    %140 = arith.addf %139, %138 : vector<8x128xf32>
    %141 = arith.divf %139, %140 : vector<8x128xf32>
    %142 = vector.extract_strided_slice %122 {offsets = [0, 256], sizes = [8, 128], strides = [1, 1]} : vector<8x384xf32> to vector<8x128xf32>
    %143 = vector.extract_strided_slice %125 {offsets = [0, 256], sizes = [8, 128], strides = [1, 1]} : vector<8x384xf32> to vector<8x128xf32>
    %144 = arith.mulf %133, %143 : vector<8x128xf32>
    %145 = arith.addf %142, %144 : vector<8x128xf32>
    %146 = math.tanh %145 : vector<8x128xf32>
    %cst_44 = arith.constant 1.000000e+00 : f32
    %147 = vector.broadcast %cst_44 : f32 to vector<8x128xf32>
    %148 = arith.subf %147, %141 : vector<8x128xf32>
    %149 = arith.mulf %148, %146 : vector<8x128xf32>
    %150 = arith.mulf %141, %115 : vector<8x128xf32>
    %151 = arith.addf %149, %150 : vector<8x128xf32>
    %152 = arith.index_cast %c3_i32 : i32 to index
    %c0_45 = arith.constant 0 : index
    %c0_46 = arith.constant 0 : index
    %153 = vector.load %arg6[%152, %c0_45, %c0_46] : memref<8x8x128xf32, #tpu.memory_space<vmem>>, vector<1x8x128xf32>
    %154 = vector.shape_cast %153 : vector<1x8x128xf32> to vector<8x128xf32>
    %155 = vector.shape_cast %151 : vector<8x128xf32> to vector<1x8x128xf32>
    tpu.vector_store %arg6[%152, %c0_45, %c0_46], %155 {strides = array<i32>} : memref<8x8x128xf32, #tpu.memory_space<vmem>>, vector<1x8x128xf32>,
    %c4_i32 = arith.constant 4 : i32
    %156 = arith.index_cast %c4_i32 : i32 to index
    %c0_47 = arith.constant 0 : index
    %c0_48 = arith.constant 0 : index
    %157 = vector.load %arg8[%156, %c0_47, %c0_48] : memref<8x8x384xf32, #tpu.memory_space<vmem>>, vector<1x8x384xf32>
    %158 = vector.shape_cast %157 : vector<1x8x384xf32> to vector<8x384xf32>
    %cst_49 = arith.constant dense<0.000000e+00> : vector<8x384xf32>
    %159 = tpu.matmul %151, %9, %cst_49 {dimension_numbers = #tpu.dot_dimension_numbers<[1], [0], [0], [1], [0, 0, 1, 1], [], []>} : vector<8x128xf32>, vector<128x384xf32>, vector<8x384xf32> -> vector<8x384xf32>
    %160 = vector.broadcast %10 : vector<1x384xf32> to vector<8x384xf32>
    %161 = arith.addf %159, %160 : vector<8x384xf32>
    %162 = vector.extract_strided_slice %158 {offsets = [0, 0], sizes = [8, 128], strides = [1, 1]} : vector<8x384xf32> to vector<8x128xf32>
    %163 = vector.extract_strided_slice %161 {offsets = [0, 0], sizes = [8, 128], strides = [1, 1]} : vector<8x384xf32> to vector<8x128xf32>
    %164 = arith.addf %162, %163 : vector<8x128xf32>
    %165 = arith.negf %164 : vector<8x128xf32>
    %166 = math.exp %165 : vector<8x128xf32>
    %cst_50 = arith.constant 1.000000e+00 : f32
    %167 = vector.broadcast %cst_50 : f32 to vector<8x128xf32>
    %168 = arith.addf %167, %166 : vector<8x128xf32>
    %169 = arith.divf %167, %168 : vector<8x128xf32>
    %170 = vector.extract_strided_slice %158 {offsets = [0, 128], sizes = [8, 128], strides = [1, 1]} : vector<8x384xf32> to vector<8x128xf32>
    %171 = vector.extract_strided_slice %161 {offsets = [0, 128], sizes = [8, 128], strides = [1, 1]} : vector<8x384xf32> to vector<8x128xf32>
    %172 = arith.addf %170, %171 : vector<8x128xf32>
    %173 = arith.negf %172 : vector<8x128xf32>
    %174 = math.exp %173 : vector<8x128xf32>
    %cst_51 = arith.constant 1.000000e+00 : f32
    %175 = vector.broadcast %cst_51 : f32 to vector<8x128xf32>
    %176 = arith.addf %175, %174 : vector<8x128xf32>
    %177 = arith.divf %175, %176 : vector<8x128xf32>
    %178 = vector.extract_strided_slice %158 {offsets = [0, 256], sizes = [8, 128], strides = [1, 1]} : vector<8x384xf32> to vector<8x128xf32>
    %179 = vector.extract_strided_slice %161 {offsets = [0, 256], sizes = [8, 128], strides = [1, 1]} : vector<8x384xf32> to vector<8x128xf32>
    %180 = arith.mulf %169, %179 : vector<8x128xf32>
    %181 = arith.addf %178, %180 : vector<8x128xf32>
    %182 = math.tanh %181 : vector<8x128xf32>
    %cst_52 = arith.constant 1.000000e+00 : f32
    %183 = vector.broadcast %cst_52 : f32 to vector<8x128xf32>
    %184 = arith.subf %183, %177 : vector<8x128xf32>
    %185 = arith.mulf %184, %182 : vector<8x128xf32>
    %186 = arith.mulf %177, %151 : vector<8x128xf32>
    %187 = arith.addf %185, %186 : vector<8x128xf32>
    %188 = arith.index_cast %c4_i32 : i32 to index
    %c0_53 = arith.constant 0 : index
    %c0_54 = arith.constant 0 : index
    %189 = vector.load %arg6[%188, %c0_53, %c0_54] : memref<8x8x128xf32, #tpu.memory_space<vmem>>, vector<1x8x128xf32>
    %190 = vector.shape_cast %189 : vector<1x8x128xf32> to vector<8x128xf32>
    %191 = vector.shape_cast %187 : vector<8x128xf32> to vector<1x8x128xf32>
    tpu.vector_store %arg6[%188, %c0_53, %c0_54], %191 {strides = array<i32>} : memref<8x8x128xf32, #tpu.memory_space<vmem>>, vector<1x8x128xf32>,
    %c5_i32 = arith.constant 5 : i32
    %192 = arith.index_cast %c5_i32 : i32 to index
    %c0_55 = arith.constant 0 : index
    %c0_56 = arith.constant 0 : index
    %193 = vector.load %arg8[%192, %c0_55, %c0_56] : memref<8x8x384xf32, #tpu.memory_space<vmem>>, vector<1x8x384xf32>
    %194 = vector.shape_cast %193 : vector<1x8x384xf32> to vector<8x384xf32>
    %cst_57 = arith.constant dense<0.000000e+00> : vector<8x384xf32>
    %195 = tpu.matmul %187, %9, %cst_57 {dimension_numbers = #tpu.dot_dimension_numbers<[1], [0], [0], [1], [0, 0, 1, 1], [], []>} : vector<8x128xf32>, vector<128x384xf32>, vector<8x384xf32> -> vector<8x384xf32>
    %196 = vector.broadcast %10 : vector<1x384xf32> to vector<8x384xf32>
    %197 = arith.addf %195, %196 : vector<8x384xf32>
    %198 = vector.extract_strided_slice %194 {offsets = [0, 0], sizes = [8, 128], strides = [1, 1]} : vector<8x384xf32> to vector<8x128xf32>
    %199 = vector.extract_strided_slice %197 {offsets = [0, 0], sizes = [8, 128], strides = [1, 1]} : vector<8x384xf32> to vector<8x128xf32>
    %200 = arith.addf %198, %199 : vector<8x128xf32>
    %201 = arith.negf %200 : vector<8x128xf32>
    %202 = math.exp %201 : vector<8x128xf32>
    %cst_58 = arith.constant 1.000000e+00 : f32
    %203 = vector.broadcast %cst_58 : f32 to vector<8x128xf32>
    %204 = arith.addf %203, %202 : vector<8x128xf32>
    %205 = arith.divf %203, %204 : vector<8x128xf32>
    %206 = vector.extract_strided_slice %194 {offsets = [0, 128], sizes = [8, 128], strides = [1, 1]} : vector<8x384xf32> to vector<8x128xf32>
    %207 = vector.extract_strided_slice %197 {offsets = [0, 128], sizes = [8, 128], strides = [1, 1]} : vector<8x384xf32> to vector<8x128xf32>
    %208 = arith.addf %206, %207 : vector<8x128xf32>
    %209 = arith.negf %208 : vector<8x128xf32>
    %210 = math.exp %209 : vector<8x128xf32>
    %cst_59 = arith.constant 1.000000e+00 : f32
    %211 = vector.broadcast %cst_59 : f32 to vector<8x128xf32>
    %212 = arith.addf %211, %210 : vector<8x128xf32>
    %213 = arith.divf %211, %212 : vector<8x128xf32>
    %214 = vector.extract_strided_slice %194 {offsets = [0, 256], sizes = [8, 128], strides = [1, 1]} : vector<8x384xf32> to vector<8x128xf32>
    %215 = vector.extract_strided_slice %197 {offsets = [0, 256], sizes = [8, 128], strides = [1, 1]} : vector<8x384xf32> to vector<8x128xf32>
    %216 = arith.mulf %205, %215 : vector<8x128xf32>
    %217 = arith.addf %214, %216 : vector<8x128xf32>
    %218 = math.tanh %217 : vector<8x128xf32>
    %cst_60 = arith.constant 1.000000e+00 : f32
    %219 = vector.broadcast %cst_60 : f32 to vector<8x128xf32>
    %220 = arith.subf %219, %213 : vector<8x128xf32>
    %221 = arith.mulf %220, %218 : vector<8x128xf32>
    %222 = arith.mulf %213, %187 : vector<8x128xf32>
    %223 = arith.addf %221, %222 : vector<8x128xf32>
    %224 = arith.index_cast %c5_i32 : i32 to index
    %c0_61 = arith.constant 0 : index
    %c0_62 = arith.constant 0 : index
    %225 = vector.load %arg6[%224, %c0_61, %c0_62] : memref<8x8x128xf32, #tpu.memory_space<vmem>>, vector<1x8x128xf32>
    %226 = vector.shape_cast %225 : vector<1x8x128xf32> to vector<8x128xf32>
    %227 = vector.shape_cast %223 : vector<8x128xf32> to vector<1x8x128xf32>
    tpu.vector_store %arg6[%224, %c0_61, %c0_62], %227 {strides = array<i32>} : memref<8x8x128xf32, #tpu.memory_space<vmem>>, vector<1x8x128xf32>,
    %c6_i32 = arith.constant 6 : i32
    %228 = arith.index_cast %c6_i32 : i32 to index
    %c0_63 = arith.constant 0 : index
    %c0_64 = arith.constant 0 : index
    %229 = vector.load %arg8[%228, %c0_63, %c0_64] : memref<8x8x384xf32, #tpu.memory_space<vmem>>, vector<1x8x384xf32>
    %230 = vector.shape_cast %229 : vector<1x8x384xf32> to vector<8x384xf32>
    %cst_65 = arith.constant dense<0.000000e+00> : vector<8x384xf32>
    %231 = tpu.matmul %223, %9, %cst_65 {dimension_numbers = #tpu.dot_dimension_numbers<[1], [0], [0], [1], [0, 0, 1, 1], [], []>} : vector<8x128xf32>, vector<128x384xf32>, vector<8x384xf32> -> vector<8x384xf32>
    %232 = vector.broadcast %10 : vector<1x384xf32> to vector<8x384xf32>
    %233 = arith.addf %231, %232 : vector<8x384xf32>
    %234 = vector.extract_strided_slice %230 {offsets = [0, 0], sizes = [8, 128], strides = [1, 1]} : vector<8x384xf32> to vector<8x128xf32>
    %235 = vector.extract_strided_slice %233 {offsets = [0, 0], sizes = [8, 128], strides = [1, 1]} : vector<8x384xf32> to vector<8x128xf32>
    %236 = arith.addf %234, %235 : vector<8x128xf32>
    %237 = arith.negf %236 : vector<8x128xf32>
    %238 = math.exp %237 : vector<8x128xf32>
    %cst_66 = arith.constant 1.000000e+00 : f32
    %239 = vector.broadcast %cst_66 : f32 to vector<8x128xf32>
    %240 = arith.addf %239, %238 : vector<8x128xf32>
    %241 = arith.divf %239, %240 : vector<8x128xf32>
    %242 = vector.extract_strided_slice %230 {offsets = [0, 128], sizes = [8, 128], strides = [1, 1]} : vector<8x384xf32> to vector<8x128xf32>
    %243 = vector.extract_strided_slice %233 {offsets = [0, 128], sizes = [8, 128], strides = [1, 1]} : vector<8x384xf32> to vector<8x128xf32>
    %244 = arith.addf %242, %243 : vector<8x128xf32>
    %245 = arith.negf %244 : vector<8x128xf32>
    %246 = math.exp %245 : vector<8x128xf32>
    %cst_67 = arith.constant 1.000000e+00 : f32
    %247 = vector.broadcast %cst_67 : f32 to vector<8x128xf32>
    %248 = arith.addf %247, %246 : vector<8x128xf32>
    %249 = arith.divf %247, %248 : vector<8x128xf32>
    %250 = vector.extract_strided_slice %230 {offsets = [0, 256], sizes = [8, 128], strides = [1, 1]} : vector<8x384xf32> to vector<8x128xf32>
    %251 = vector.extract_strided_slice %233 {offsets = [0, 256], sizes = [8, 128], strides = [1, 1]} : vector<8x384xf32> to vector<8x128xf32>
    %252 = arith.mulf %241, %251 : vector<8x128xf32>
    %253 = arith.addf %250, %252 : vector<8x128xf32>
    %254 = math.tanh %253 : vector<8x128xf32>
    %cst_68 = arith.constant 1.000000e+00 : f32
    %255 = vector.broadcast %cst_68 : f32 to vector<8x128xf32>
    %256 = arith.subf %255, %249 : vector<8x128xf32>
    %257 = arith.mulf %256, %254 : vector<8x128xf32>
    %258 = arith.mulf %249, %223 : vector<8x128xf32>
    %259 = arith.addf %257, %258 : vector<8x128xf32>
    %260 = arith.index_cast %c6_i32 : i32 to index
    %c0_69 = arith.constant 0 : index
    %c0_70 = arith.constant 0 : index
    %261 = vector.load %arg6[%260, %c0_69, %c0_70] : memref<8x8x128xf32, #tpu.memory_space<vmem>>, vector<1x8x128xf32>
    %262 = vector.shape_cast %261 : vector<1x8x128xf32> to vector<8x128xf32>
    %263 = vector.shape_cast %259 : vector<8x128xf32> to vector<1x8x128xf32>
    tpu.vector_store %arg6[%260, %c0_69, %c0_70], %263 {strides = array<i32>} : memref<8x8x128xf32, #tpu.memory_space<vmem>>, vector<1x8x128xf32>,
    %c7_i32 = arith.constant 7 : i32
    %264 = arith.index_cast %c7_i32 : i32 to index
    %c0_71 = arith.constant 0 : index
    %c0_72 = arith.constant 0 : index
    %265 = vector.load %arg8[%264, %c0_71, %c0_72] : memref<8x8x384xf32, #tpu.memory_space<vmem>>, vector<1x8x384xf32>
    %266 = vector.shape_cast %265 : vector<1x8x384xf32> to vector<8x384xf32>
    %cst_73 = arith.constant dense<0.000000e+00> : vector<8x384xf32>
    %267 = tpu.matmul %259, %9, %cst_73 {dimension_numbers = #tpu.dot_dimension_numbers<[1], [0], [0], [1], [0, 0, 1, 1], [], []>} : vector<8x128xf32>, vector<128x384xf32>, vector<8x384xf32> -> vector<8x384xf32>
    %268 = vector.broadcast %10 : vector<1x384xf32> to vector<8x384xf32>
    %269 = arith.addf %267, %268 : vector<8x384xf32>
    %270 = vector.extract_strided_slice %266 {offsets = [0, 0], sizes = [8, 128], strides = [1, 1]} : vector<8x384xf32> to vector<8x128xf32>
    %271 = vector.extract_strided_slice %269 {offsets = [0, 0], sizes = [8, 128], strides = [1, 1]} : vector<8x384xf32> to vector<8x128xf32>
    %272 = arith.addf %270, %271 : vector<8x128xf32>
    %273 = arith.negf %272 : vector<8x128xf32>
    %274 = math.exp %273 : vector<8x128xf32>
    %cst_74 = arith.constant 1.000000e+00 : f32
    %275 = vector.broadcast %cst_74 : f32 to vector<8x128xf32>
    %276 = arith.addf %275, %274 : vector<8x128xf32>
    %277 = arith.divf %275, %276 : vector<8x128xf32>
    %278 = vector.extract_strided_slice %266 {offsets = [0, 128], sizes = [8, 128], strides = [1, 1]} : vector<8x384xf32> to vector<8x128xf32>
    %279 = vector.extract_strided_slice %269 {offsets = [0, 128], sizes = [8, 128], strides = [1, 1]} : vector<8x384xf32> to vector<8x128xf32>
    %280 = arith.addf %278, %279 : vector<8x128xf32>
    %281 = arith.negf %280 : vector<8x128xf32>
    %282 = math.exp %281 : vector<8x128xf32>
    %cst_75 = arith.constant 1.000000e+00 : f32
    %283 = vector.broadcast %cst_75 : f32 to vector<8x128xf32>
    %284 = arith.addf %283, %282 : vector<8x128xf32>
    %285 = arith.divf %283, %284 : vector<8x128xf32>
    %286 = vector.extract_strided_slice %266 {offsets = [0, 256], sizes = [8, 128], strides = [1, 1]} : vector<8x384xf32> to vector<8x128xf32>
    %287 = vector.extract_strided_slice %269 {offsets = [0, 256], sizes = [8, 128], strides = [1, 1]} : vector<8x384xf32> to vector<8x128xf32>
    %288 = arith.mulf %277, %287 : vector<8x128xf32>
    %289 = arith.addf %286, %288 : vector<8x128xf32>
    %290 = math.tanh %289 : vector<8x128xf32>
    %cst_76 = arith.constant 1.000000e+00 : f32
    %291 = vector.broadcast %cst_76 : f32 to vector<8x128xf32>
    %292 = arith.subf %291, %285 : vector<8x128xf32>
    %293 = arith.mulf %292, %290 : vector<8x128xf32>
    %294 = arith.mulf %285, %259 : vector<8x128xf32>
    %295 = arith.addf %293, %294 : vector<8x128xf32>
    %296 = arith.index_cast %c7_i32 : i32 to index
    %c0_77 = arith.constant 0 : index
    %c0_78 = arith.constant 0 : index
    %297 = vector.load %arg6[%296, %c0_77, %c0_78] : memref<8x8x128xf32, #tpu.memory_space<vmem>>, vector<1x8x128xf32>
    %298 = vector.shape_cast %297 : vector<1x8x128xf32> to vector<8x128xf32>
    %299 = vector.shape_cast %295 : vector<8x128xf32> to vector<1x8x128xf32>
    tpu.vector_store %arg6[%296, %c0_77, %c0_78], %299 {strides = array<i32>} : memref<8x8x128xf32, #tpu.memory_space<vmem>>, vector<1x8x128xf32>,
    %c8_i32 = arith.constant 8 : i32
    %c0_79 = arith.constant 0 : index
    %c0_80 = arith.constant 0 : index
    %300 = vector.load %arg7[%c0_79, %c0_80] : memref<8x128xf32, #tpu.memory_space<vmem>>, vector<8x128xf32>
    tpu.vector_store %arg7[%c0_79, %c0_80], %295 {strides = array<i32>} : memref<8x128xf32, #tpu.memory_space<vmem>>, vector<8x128xf32>,
    return
  }
}

module attributes {stable_mosaic.version = 11 : i64} {
  func.func @decoder_kernel(%arg0: memref<8x128xf32, #tpu.memory_space<vmem>>, %arg1: memref<2x8x128xf32, #tpu.memory_space<vmem>>, %arg2: memref<2x128x384xf32, #tpu.memory_space<vmem>>, %arg3: memref<2x128x384xf32, #tpu.memory_space<vmem>>, %arg4: memref<2x1x384xf32, #tpu.memory_space<vmem>>, %arg5: memref<2x1x384xf32, #tpu.memory_space<vmem>>, %arg6: memref<128x128xf32, #tpu.memory_space<vmem>>, %arg7: memref<1x128xf32, #tpu.memory_space<vmem>>, %arg8: memref<32x128xf32, #tpu.memory_space<vmem>>, %arg9: memref<2x8x128xf32, #tpu.memory_space<vmem>>, %arg10: memref<4x8x128xf32, #tpu.memory_space<vmem>>) attributes {dimension_semantics = [], scalar_prefetch = 0 : i64, scratch_operands = 2 : i64, tpu.core_type = #tpu.core_type<tc>} {
    %c0 = arith.constant 0 : index
    %c0_0 = arith.constant 0 : index
    %c0_1 = arith.constant 0 : index
    %0 = vector.load %arg1[%c0, %c0_0, %c0_1] : memref<2x8x128xf32, #tpu.memory_space<vmem>>, vector<2x8x128xf32>
    %c0_2 = arith.constant 0 : index
    %c0_3 = arith.constant 0 : index
    %c0_4 = arith.constant 0 : index
    %1 = vector.load %arg9[%c0_2, %c0_3, %c0_4] : memref<2x8x128xf32, #tpu.memory_space<vmem>>, vector<2x8x128xf32>
    tpu.vector_store %arg9[%c0_2, %c0_3, %c0_4], %0 {strides = array<i32>} : memref<2x8x128xf32, #tpu.memory_space<vmem>>, vector<2x8x128xf32>,
    %c0_5 = arith.constant 0 : index
    %c0_6 = arith.constant 0 : index
    %2 = vector.load %arg0[%c0_5, %c0_6] : memref<8x128xf32, #tpu.memory_space<vmem>>, vector<8x128xf32>
    %c0_i32 = arith.constant 0 : i32
    %c0_7 = arith.constant 0 : index
    %c0_8 = arith.constant 0 : index
    %c0_9 = arith.constant 0 : index
    %3 = vector.load %arg9[%c0_7, %c0_8, %c0_9] : memref<2x8x128xf32, #tpu.memory_space<vmem>>, vector<1x8x128xf32>
    %4 = vector.shape_cast %3 : vector<1x8x128xf32> to vector<8x128xf32>
    %c0_10 = arith.constant 0 : index
    %c0_11 = arith.constant 0 : index
    %c0_12 = arith.constant 0 : index
    %5 = vector.load %arg2[%c0_10, %c0_11, %c0_12] : memref<2x128x384xf32, #tpu.memory_space<vmem>>, vector<1x128x384xf32>
    %6 = vector.shape_cast %5 : vector<1x128x384xf32> to vector<128x384xf32>
    %cst = arith.constant dense<0.000000e+00> : vector<8x384xf32>
    %7 = tpu.matmul %2, %6, %cst {dimension_numbers = #tpu.dot_dimension_numbers<[1], [0], [0], [1], [0, 0, 1, 1], [], []>} : vector<8x128xf32>, vector<128x384xf32>, vector<8x384xf32> -> vector<8x384xf32>
    %c0_13 = arith.constant 0 : index
    %c0_14 = arith.constant 0 : index
    %c0_15 = arith.constant 0 : index
    %8 = vector.load %arg4[%c0_13, %c0_14, %c0_15] : memref<2x1x384xf32, #tpu.memory_space<vmem>>, vector<1x1x384xf32>
    %9 = vector.shape_cast %8 : vector<1x1x384xf32> to vector<1x384xf32>
    %10 = vector.broadcast %9 : vector<1x384xf32> to vector<8x384xf32>
    %11 = arith.addf %7, %10 : vector<8x384xf32>
    %c0_16 = arith.constant 0 : index
    %c0_17 = arith.constant 0 : index
    %c0_18 = arith.constant 0 : index
    %12 = vector.load %arg3[%c0_16, %c0_17, %c0_18] : memref<2x128x384xf32, #tpu.memory_space<vmem>>, vector<1x128x384xf32>
    %13 = vector.shape_cast %12 : vector<1x128x384xf32> to vector<128x384xf32>
    %cst_19 = arith.constant dense<0.000000e+00> : vector<8x384xf32>
    %14 = tpu.matmul %4, %13, %cst_19 {dimension_numbers = #tpu.dot_dimension_numbers<[1], [0], [0], [1], [0, 0, 1, 1], [], []>} : vector<8x128xf32>, vector<128x384xf32>, vector<8x384xf32> -> vector<8x384xf32>
    %c0_20 = arith.constant 0 : index
    %c0_21 = arith.constant 0 : index
    %c0_22 = arith.constant 0 : index
    %15 = vector.load %arg5[%c0_20, %c0_21, %c0_22] : memref<2x1x384xf32, #tpu.memory_space<vmem>>, vector<1x1x384xf32>
    %16 = vector.shape_cast %15 : vector<1x1x384xf32> to vector<1x384xf32>
    %17 = vector.broadcast %16 : vector<1x384xf32> to vector<8x384xf32>
    %18 = arith.addf %14, %17 : vector<8x384xf32>
    %19 = vector.extract_strided_slice %11 {offsets = [0, 0], sizes = [8, 128], strides = [1, 1]} : vector<8x384xf32> to vector<8x128xf32>
    %20 = vector.extract_strided_slice %18 {offsets = [0, 0], sizes = [8, 128], strides = [1, 1]} : vector<8x384xf32> to vector<8x128xf32>
    %21 = arith.addf %19, %20 : vector<8x128xf32>
    %22 = arith.negf %21 : vector<8x128xf32>
    %23 = math.exp %22 : vector<8x128xf32>
    %cst_23 = arith.constant 1.000000e+00 : f32
    %24 = vector.broadcast %cst_23 : f32 to vector<8x128xf32>
    %25 = arith.addf %24, %23 : vector<8x128xf32>
    %26 = arith.divf %24, %25 : vector<8x128xf32>
    %27 = vector.extract_strided_slice %11 {offsets = [0, 128], sizes = [8, 128], strides = [1, 1]} : vector<8x384xf32> to vector<8x128xf32>
    %28 = vector.extract_strided_slice %18 {offsets = [0, 128], sizes = [8, 128], strides = [1, 1]} : vector<8x384xf32> to vector<8x128xf32>
    %29 = arith.addf %27, %28 : vector<8x128xf32>
    %30 = arith.negf %29 : vector<8x128xf32>
    %31 = math.exp %30 : vector<8x128xf32>
    %cst_24 = arith.constant 1.000000e+00 : f32
    %32 = vector.broadcast %cst_24 : f32 to vector<8x128xf32>
    %33 = arith.addf %32, %31 : vector<8x128xf32>
    %34 = arith.divf %32, %33 : vector<8x128xf32>
    %35 = vector.extract_strided_slice %11 {offsets = [0, 256], sizes = [8, 128], strides = [1, 1]} : vector<8x384xf32> to vector<8x128xf32>
    %36 = vector.extract_strided_slice %18 {offsets = [0, 256], sizes = [8, 128], strides = [1, 1]} : vector<8x384xf32> to vector<8x128xf32>
    %37 = arith.mulf %26, %36 : vector<8x128xf32>
    %38 = arith.addf %35, %37 : vector<8x128xf32>
    %39 = math.tanh %38 : vector<8x128xf32>
    %cst_25 = arith.constant 1.000000e+00 : f32
    %40 = vector.broadcast %cst_25 : f32 to vector<8x128xf32>
    %41 = arith.subf %40, %34 : vector<8x128xf32>
    %42 = arith.mulf %41, %39 : vector<8x128xf32>
    %43 = arith.mulf %34, %4 : vector<8x128xf32>
    %44 = arith.addf %42, %43 : vector<8x128xf32>
    %c0_26 = arith.constant 0 : index
    %c0_27 = arith.constant 0 : index
    %c0_28 = arith.constant 0 : index
    %45 = vector.load %arg9[%c0_26, %c0_27, %c0_28] : memref<2x8x128xf32, #tpu.memory_space<vmem>>, vector<1x8x128xf32>
    %46 = vector.shape_cast %45 : vector<1x8x128xf32> to vector<8x128xf32>
    %47 = vector.shape_cast %44 : vector<8x128xf32> to vector<1x8x128xf32>
    tpu.vector_store %arg9[%c0_26, %c0_27, %c0_28], %47 {strides = array<i32>} : memref<2x8x128xf32, #tpu.memory_space<vmem>>, vector<1x8x128xf32>,
    %c1 = arith.constant 1 : index
    %c0_29 = arith.constant 0 : index
    %c0_30 = arith.constant 0 : index
    %48 = vector.load %arg9[%c1, %c0_29, %c0_30] : memref<2x8x128xf32, #tpu.memory_space<vmem>>, vector<1x8x128xf32>
    %49 = vector.shape_cast %48 : vector<1x8x128xf32> to vector<8x128xf32>
    %c1_31 = arith.constant 1 : index
    %c0_32 = arith.constant 0 : index
    %c0_33 = arith.constant 0 : index
    %50 = vector.load %arg2[%c1_31, %c0_32, %c0_33] : memref<2x128x384xf32, #tpu.memory_space<vmem>>, vector<1x128x384xf32>
    %51 = vector.shape_cast %50 : vector<1x128x384xf32> to vector<128x384xf32>
    %cst_34 = arith.constant dense<0.000000e+00> : vector<8x384xf32>
    %52 = tpu.matmul %44, %51, %cst_34 {dimension_numbers = #tpu.dot_dimension_numbers<[1], [0], [0], [1], [0, 0, 1, 1], [], []>} : vector<8x128xf32>, vector<128x384xf32>, vector<8x384xf32> -> vector<8x384xf32>
    %c1_35 = arith.constant 1 : index
    %c0_36 = arith.constant 0 : index
    %c0_37 = arith.constant 0 : index
    %53 = vector.load %arg4[%c1_35, %c0_36, %c0_37] : memref<2x1x384xf32, #tpu.memory_space<vmem>>, vector<1x1x384xf32>
    %54 = vector.shape_cast %53 : vector<1x1x384xf32> to vector<1x384xf32>
    %55 = vector.broadcast %54 : vector<1x384xf32> to vector<8x384xf32>
    %56 = arith.addf %52, %55 : vector<8x384xf32>
    %c1_38 = arith.constant 1 : index
    %c0_39 = arith.constant 0 : index
    %c0_40 = arith.constant 0 : index
    %57 = vector.load %arg3[%c1_38, %c0_39, %c0_40] : memref<2x128x384xf32, #tpu.memory_space<vmem>>, vector<1x128x384xf32>
    %58 = vector.shape_cast %57 : vector<1x128x384xf32> to vector<128x384xf32>
    %cst_41 = arith.constant dense<0.000000e+00> : vector<8x384xf32>
    %59 = tpu.matmul %49, %58, %cst_41 {dimension_numbers = #tpu.dot_dimension_numbers<[1], [0], [0], [1], [0, 0, 1, 1], [], []>} : vector<8x128xf32>, vector<128x384xf32>, vector<8x384xf32> -> vector<8x384xf32>
    %c1_42 = arith.constant 1 : index
    %c0_43 = arith.constant 0 : index
    %c0_44 = arith.constant 0 : index
    %60 = vector.load %arg5[%c1_42, %c0_43, %c0_44] : memref<2x1x384xf32, #tpu.memory_space<vmem>>, vector<1x1x384xf32>
    %61 = vector.shape_cast %60 : vector<1x1x384xf32> to vector<1x384xf32>
    %62 = vector.broadcast %61 : vector<1x384xf32> to vector<8x384xf32>
    %63 = arith.addf %59, %62 : vector<8x384xf32>
    %64 = vector.extract_strided_slice %56 {offsets = [0, 0], sizes = [8, 128], strides = [1, 1]} : vector<8x384xf32> to vector<8x128xf32>
    %65 = vector.extract_strided_slice %63 {offsets = [0, 0], sizes = [8, 128], strides = [1, 1]} : vector<8x384xf32> to vector<8x128xf32>
    %66 = arith.addf %64, %65 : vector<8x128xf32>
    %67 = arith.negf %66 : vector<8x128xf32>
    %68 = math.exp %67 : vector<8x128xf32>
    %cst_45 = arith.constant 1.000000e+00 : f32
    %69 = vector.broadcast %cst_45 : f32 to vector<8x128xf32>
    %70 = arith.addf %69, %68 : vector<8x128xf32>
    %71 = arith.divf %69, %70 : vector<8x128xf32>
    %72 = vector.extract_strided_slice %56 {offsets = [0, 128], sizes = [8, 128], strides = [1, 1]} : vector<8x384xf32> to vector<8x128xf32>
    %73 = vector.extract_strided_slice %63 {offsets = [0, 128], sizes = [8, 128], strides = [1, 1]} : vector<8x384xf32> to vector<8x128xf32>
    %74 = arith.addf %72, %73 : vector<8x128xf32>
    %75 = arith.negf %74 : vector<8x128xf32>
    %76 = math.exp %75 : vector<8x128xf32>
    %cst_46 = arith.constant 1.000000e+00 : f32
    %77 = vector.broadcast %cst_46 : f32 to vector<8x128xf32>
    %78 = arith.addf %77, %76 : vector<8x128xf32>
    %79 = arith.divf %77, %78 : vector<8x128xf32>
    %80 = vector.extract_strided_slice %56 {offsets = [0, 256], sizes = [8, 128], strides = [1, 1]} : vector<8x384xf32> to vector<8x128xf32>
    %81 = vector.extract_strided_slice %63 {offsets = [0, 256], sizes = [8, 128], strides = [1, 1]} : vector<8x384xf32> to vector<8x128xf32>
    %82 = arith.mulf %71, %81 : vector<8x128xf32>
    %83 = arith.addf %80, %82 : vector<8x128xf32>
    %84 = math.tanh %83 : vector<8x128xf32>
    %cst_47 = arith.constant 1.000000e+00 : f32
    %85 = vector.broadcast %cst_47 : f32 to vector<8x128xf32>
    %86 = arith.subf %85, %79 : vector<8x128xf32>
    %87 = arith.mulf %86, %84 : vector<8x128xf32>
    %88 = arith.mulf %79, %49 : vector<8x128xf32>
    %89 = arith.addf %87, %88 : vector<8x128xf32>
    %c1_48 = arith.constant 1 : index
    %c0_49 = arith.constant 0 : index
    %c0_50 = arith.constant 0 : index
    %90 = vector.load %arg9[%c1_48, %c0_49, %c0_50] : memref<2x8x128xf32, #tpu.memory_space<vmem>>, vector<1x8x128xf32>
    %91 = vector.shape_cast %90 : vector<1x8x128xf32> to vector<8x128xf32>
    %92 = vector.shape_cast %89 : vector<8x128xf32> to vector<1x8x128xf32>
    tpu.vector_store %arg9[%c1_48, %c0_49, %c0_50], %92 {strides = array<i32>} : memref<2x8x128xf32, #tpu.memory_space<vmem>>, vector<1x8x128xf32>,
    %93 = arith.index_cast %c0_i32 : i32 to index
    %c0_51 = arith.constant 0 : index
    %c0_52 = arith.constant 0 : index
    %94 = vector.load %arg10[%93, %c0_51, %c0_52] : memref<4x8x128xf32, #tpu.memory_space<vmem>>, vector<1x8x128xf32>
    %95 = vector.shape_cast %94 : vector<1x8x128xf32> to vector<8x128xf32>
    %96 = vector.shape_cast %89 : vector<8x128xf32> to vector<1x8x128xf32>
    tpu.vector_store %arg10[%93, %c0_51, %c0_52], %96 {strides = array<i32>} : memref<4x8x128xf32, #tpu.memory_space<vmem>>, vector<1x8x128xf32>,
    %c1_i32 = arith.constant 1 : i32
    %c0_53 = arith.constant 0 : index
    %c0_54 = arith.constant 0 : index
    %c0_55 = arith.constant 0 : index
    %97 = vector.load %arg9[%c0_53, %c0_54, %c0_55] : memref<2x8x128xf32, #tpu.memory_space<vmem>>, vector<1x8x128xf32>
    %98 = vector.shape_cast %97 : vector<1x8x128xf32> to vector<8x128xf32>
    %c0_56 = arith.constant 0 : index
    %c0_57 = arith.constant 0 : index
    %c0_58 = arith.constant 0 : index
    %99 = vector.load %arg2[%c0_56, %c0_57, %c0_58] : memref<2x128x384xf32, #tpu.memory_space<vmem>>, vector<1x128x384xf32>
    %100 = vector.shape_cast %99 : vector<1x128x384xf32> to vector<128x384xf32>
    %cst_59 = arith.constant dense<0.000000e+00> : vector<8x384xf32>
    %101 = tpu.matmul %89, %100, %cst_59 {dimension_numbers = #tpu.dot_dimension_numbers<[1], [0], [0], [1], [0, 0, 1, 1], [], []>} : vector<8x128xf32>, vector<128x384xf32>, vector<8x384xf32> -> vector<8x384xf32>
    %c0_60 = arith.constant 0 : index
    %c0_61 = arith.constant 0 : index
    %c0_62 = arith.constant 0 : index
    %102 = vector.load %arg4[%c0_60, %c0_61, %c0_62] : memref<2x1x384xf32, #tpu.memory_space<vmem>>, vector<1x1x384xf32>
    %103 = vector.shape_cast %102 : vector<1x1x384xf32> to vector<1x384xf32>
    %104 = vector.broadcast %103 : vector<1x384xf32> to vector<8x384xf32>
    %105 = arith.addf %101, %104 : vector<8x384xf32>
    %c0_63 = arith.constant 0 : index
    %c0_64 = arith.constant 0 : index
    %c0_65 = arith.constant 0 : index
    %106 = vector.load %arg3[%c0_63, %c0_64, %c0_65] : memref<2x128x384xf32, #tpu.memory_space<vmem>>, vector<1x128x384xf32>
    %107 = vector.shape_cast %106 : vector<1x128x384xf32> to vector<128x384xf32>
    %cst_66 = arith.constant dense<0.000000e+00> : vector<8x384xf32>
    %108 = tpu.matmul %98, %107, %cst_66 {dimension_numbers = #tpu.dot_dimension_numbers<[1], [0], [0], [1], [0, 0, 1, 1], [], []>} : vector<8x128xf32>, vector<128x384xf32>, vector<8x384xf32> -> vector<8x384xf32>
    %c0_67 = arith.constant 0 : index
    %c0_68 = arith.constant 0 : index
    %c0_69 = arith.constant 0 : index
    %109 = vector.load %arg5[%c0_67, %c0_68, %c0_69] : memref<2x1x384xf32, #tpu.memory_space<vmem>>, vector<1x1x384xf32>
    %110 = vector.shape_cast %109 : vector<1x1x384xf32> to vector<1x384xf32>
    %111 = vector.broadcast %110 : vector<1x384xf32> to vector<8x384xf32>
    %112 = arith.addf %108, %111 : vector<8x384xf32>
    %113 = vector.extract_strided_slice %105 {offsets = [0, 0], sizes = [8, 128], strides = [1, 1]} : vector<8x384xf32> to vector<8x128xf32>
    %114 = vector.extract_strided_slice %112 {offsets = [0, 0], sizes = [8, 128], strides = [1, 1]} : vector<8x384xf32> to vector<8x128xf32>
    %115 = arith.addf %113, %114 : vector<8x128xf32>
    %116 = arith.negf %115 : vector<8x128xf32>
    %117 = math.exp %116 : vector<8x128xf32>
    %cst_70 = arith.constant 1.000000e+00 : f32
    %118 = vector.broadcast %cst_70 : f32 to vector<8x128xf32>
    %119 = arith.addf %118, %117 : vector<8x128xf32>
    %120 = arith.divf %118, %119 : vector<8x128xf32>
    %121 = vector.extract_strided_slice %105 {offsets = [0, 128], sizes = [8, 128], strides = [1, 1]} : vector<8x384xf32> to vector<8x128xf32>
    %122 = vector.extract_strided_slice %112 {offsets = [0, 128], sizes = [8, 128], strides = [1, 1]} : vector<8x384xf32> to vector<8x128xf32>
    %123 = arith.addf %121, %122 : vector<8x128xf32>
    %124 = arith.negf %123 : vector<8x128xf32>
    %125 = math.exp %124 : vector<8x128xf32>
    %cst_71 = arith.constant 1.000000e+00 : f32
    %126 = vector.broadcast %cst_71 : f32 to vector<8x128xf32>
    %127 = arith.addf %126, %125 : vector<8x128xf32>
    %128 = arith.divf %126, %127 : vector<8x128xf32>
    %129 = vector.extract_strided_slice %105 {offsets = [0, 256], sizes = [8, 128], strides = [1, 1]} : vector<8x384xf32> to vector<8x128xf32>
    %130 = vector.extract_strided_slice %112 {offsets = [0, 256], sizes = [8, 128], strides = [1, 1]} : vector<8x384xf32> to vector<8x128xf32>
    %131 = arith.mulf %120, %130 : vector<8x128xf32>
    %132 = arith.addf %129, %131 : vector<8x128xf32>
    %133 = math.tanh %132 : vector<8x128xf32>
    %cst_72 = arith.constant 1.000000e+00 : f32
    %134 = vector.broadcast %cst_72 : f32 to vector<8x128xf32>
    %135 = arith.subf %134, %128 : vector<8x128xf32>
    %136 = arith.mulf %135, %133 : vector<8x128xf32>
    %137 = arith.mulf %128, %98 : vector<8x128xf32>
    %138 = arith.addf %136, %137 : vector<8x128xf32>
    %c0_73 = arith.constant 0 : index
    %c0_74 = arith.constant 0 : index
    %c0_75 = arith.constant 0 : index
    %139 = vector.load %arg9[%c0_73, %c0_74, %c0_75] : memref<2x8x128xf32, #tpu.memory_space<vmem>>, vector<1x8x128xf32>
    %140 = vector.shape_cast %139 : vector<1x8x128xf32> to vector<8x128xf32>
    %141 = vector.shape_cast %138 : vector<8x128xf32> to vector<1x8x128xf32>
    tpu.vector_store %arg9[%c0_73, %c0_74, %c0_75], %141 {strides = array<i32>} : memref<2x8x128xf32, #tpu.memory_space<vmem>>, vector<1x8x128xf32>,
    %c1_76 = arith.constant 1 : index
    %c0_77 = arith.constant 0 : index
    %c0_78 = arith.constant 0 : index
    %142 = vector.load %arg9[%c1_76, %c0_77, %c0_78] : memref<2x8x128xf32, #tpu.memory_space<vmem>>, vector<1x8x128xf32>
    %143 = vector.shape_cast %142 : vector<1x8x128xf32> to vector<8x128xf32>
    %c1_79 = arith.constant 1 : index
    %c0_80 = arith.constant 0 : index
    %c0_81 = arith.constant 0 : index
    %144 = vector.load %arg2[%c1_79, %c0_80, %c0_81] : memref<2x128x384xf32, #tpu.memory_space<vmem>>, vector<1x128x384xf32>
    %145 = vector.shape_cast %144 : vector<1x128x384xf32> to vector<128x384xf32>
    %cst_82 = arith.constant dense<0.000000e+00> : vector<8x384xf32>
    %146 = tpu.matmul %138, %145, %cst_82 {dimension_numbers = #tpu.dot_dimension_numbers<[1], [0], [0], [1], [0, 0, 1, 1], [], []>} : vector<8x128xf32>, vector<128x384xf32>, vector<8x384xf32> -> vector<8x384xf32>
    %c1_83 = arith.constant 1 : index
    %c0_84 = arith.constant 0 : index
    %c0_85 = arith.constant 0 : index
    %147 = vector.load %arg4[%c1_83, %c0_84, %c0_85] : memref<2x1x384xf32, #tpu.memory_space<vmem>>, vector<1x1x384xf32>
    %148 = vector.shape_cast %147 : vector<1x1x384xf32> to vector<1x384xf32>
    %149 = vector.broadcast %148 : vector<1x384xf32> to vector<8x384xf32>
    %150 = arith.addf %146, %149 : vector<8x384xf32>
    %c1_86 = arith.constant 1 : index
    %c0_87 = arith.constant 0 : index
    %c0_88 = arith.constant 0 : index
    %151 = vector.load %arg3[%c1_86, %c0_87, %c0_88] : memref<2x128x384xf32, #tpu.memory_space<vmem>>, vector<1x128x384xf32>
    %152 = vector.shape_cast %151 : vector<1x128x384xf32> to vector<128x384xf32>
    %cst_89 = arith.constant dense<0.000000e+00> : vector<8x384xf32>
    %153 = tpu.matmul %143, %152, %cst_89 {dimension_numbers = #tpu.dot_dimension_numbers<[1], [0], [0], [1], [0, 0, 1, 1], [], []>} : vector<8x128xf32>, vector<128x384xf32>, vector<8x384xf32> -> vector<8x384xf32>
    %c1_90 = arith.constant 1 : index
    %c0_91 = arith.constant 0 : index
    %c0_92 = arith.constant 0 : index
    %154 = vector.load %arg5[%c1_90, %c0_91, %c0_92] : memref<2x1x384xf32, #tpu.memory_space<vmem>>, vector<1x1x384xf32>
    %155 = vector.shape_cast %154 : vector<1x1x384xf32> to vector<1x384xf32>
    %156 = vector.broadcast %155 : vector<1x384xf32> to vector<8x384xf32>
    %157 = arith.addf %153, %156 : vector<8x384xf32>
    %158 = vector.extract_strided_slice %150 {offsets = [0, 0], sizes = [8, 128], strides = [1, 1]} : vector<8x384xf32> to vector<8x128xf32>
    %159 = vector.extract_strided_slice %157 {offsets = [0, 0], sizes = [8, 128], strides = [1, 1]} : vector<8x384xf32> to vector<8x128xf32>
    %160 = arith.addf %158, %159 : vector<8x128xf32>
    %161 = arith.negf %160 : vector<8x128xf32>
    %162 = math.exp %161 : vector<8x128xf32>
    %cst_93 = arith.constant 1.000000e+00 : f32
    %163 = vector.broadcast %cst_93 : f32 to vector<8x128xf32>
    %164 = arith.addf %163, %162 : vector<8x128xf32>
    %165 = arith.divf %163, %164 : vector<8x128xf32>
    %166 = vector.extract_strided_slice %150 {offsets = [0, 128], sizes = [8, 128], strides = [1, 1]} : vector<8x384xf32> to vector<8x128xf32>
    %167 = vector.extract_strided_slice %157 {offsets = [0, 128], sizes = [8, 128], strides = [1, 1]} : vector<8x384xf32> to vector<8x128xf32>
    %168 = arith.addf %166, %167 : vector<8x128xf32>
    %169 = arith.negf %168 : vector<8x128xf32>
    %170 = math.exp %169 : vector<8x128xf32>
    %cst_94 = arith.constant 1.000000e+00 : f32
    %171 = vector.broadcast %cst_94 : f32 to vector<8x128xf32>
    %172 = arith.addf %171, %170 : vector<8x128xf32>
    %173 = arith.divf %171, %172 : vector<8x128xf32>
    %174 = vector.extract_strided_slice %150 {offsets = [0, 256], sizes = [8, 128], strides = [1, 1]} : vector<8x384xf32> to vector<8x128xf32>
    %175 = vector.extract_strided_slice %157 {offsets = [0, 256], sizes = [8, 128], strides = [1, 1]} : vector<8x384xf32> to vector<8x128xf32>
    %176 = arith.mulf %165, %175 : vector<8x128xf32>
    %177 = arith.addf %174, %176 : vector<8x128xf32>
    %178 = math.tanh %177 : vector<8x128xf32>
    %cst_95 = arith.constant 1.000000e+00 : f32
    %179 = vector.broadcast %cst_95 : f32 to vector<8x128xf32>
    %180 = arith.subf %179, %173 : vector<8x128xf32>
    %181 = arith.mulf %180, %178 : vector<8x128xf32>
    %182 = arith.mulf %173, %143 : vector<8x128xf32>
    %183 = arith.addf %181, %182 : vector<8x128xf32>
    %c1_96 = arith.constant 1 : index
    %c0_97 = arith.constant 0 : index
    %c0_98 = arith.constant 0 : index
    %184 = vector.load %arg9[%c1_96, %c0_97, %c0_98] : memref<2x8x128xf32, #tpu.memory_space<vmem>>, vector<1x8x128xf32>
    %185 = vector.shape_cast %184 : vector<1x8x128xf32> to vector<8x128xf32>
    %186 = vector.shape_cast %183 : vector<8x128xf32> to vector<1x8x128xf32>
    tpu.vector_store %arg9[%c1_96, %c0_97, %c0_98], %186 {strides = array<i32>} : memref<2x8x128xf32, #tpu.memory_space<vmem>>, vector<1x8x128xf32>,
    %187 = arith.index_cast %c1_i32 : i32 to index
    %c0_99 = arith.constant 0 : index
    %c0_100 = arith.constant 0 : index
    %188 = vector.load %arg10[%187, %c0_99, %c0_100] : memref<4x8x128xf32, #tpu.memory_space<vmem>>, vector<1x8x128xf32>
    %189 = vector.shape_cast %188 : vector<1x8x128xf32> to vector<8x128xf32>
    %190 = vector.shape_cast %183 : vector<8x128xf32> to vector<1x8x128xf32>
    tpu.vector_store %arg10[%187, %c0_99, %c0_100], %190 {strides = array<i32>} : memref<4x8x128xf32, #tpu.memory_space<vmem>>, vector<1x8x128xf32>,
    %c2_i32 = arith.constant 2 : i32
    %c0_101 = arith.constant 0 : index
    %c0_102 = arith.constant 0 : index
    %c0_103 = arith.constant 0 : index
    %191 = vector.load %arg9[%c0_101, %c0_102, %c0_103] : memref<2x8x128xf32, #tpu.memory_space<vmem>>, vector<1x8x128xf32>
    %192 = vector.shape_cast %191 : vector<1x8x128xf32> to vector<8x128xf32>
    %c0_104 = arith.constant 0 : index
    %c0_105 = arith.constant 0 : index
    %c0_106 = arith.constant 0 : index
    %193 = vector.load %arg2[%c0_104, %c0_105, %c0_106] : memref<2x128x384xf32, #tpu.memory_space<vmem>>, vector<1x128x384xf32>
    %194 = vector.shape_cast %193 : vector<1x128x384xf32> to vector<128x384xf32>
    %cst_107 = arith.constant dense<0.000000e+00> : vector<8x384xf32>
    %195 = tpu.matmul %183, %194, %cst_107 {dimension_numbers = #tpu.dot_dimension_numbers<[1], [0], [0], [1], [0, 0, 1, 1], [], []>} : vector<8x128xf32>, vector<128x384xf32>, vector<8x384xf32> -> vector<8x384xf32>
    %c0_108 = arith.constant 0 : index
    %c0_109 = arith.constant 0 : index
    %c0_110 = arith.constant 0 : index
    %196 = vector.load %arg4[%c0_108, %c0_109, %c0_110] : memref<2x1x384xf32, #tpu.memory_space<vmem>>, vector<1x1x384xf32>
    %197 = vector.shape_cast %196 : vector<1x1x384xf32> to vector<1x384xf32>
    %198 = vector.broadcast %197 : vector<1x384xf32> to vector<8x384xf32>
    %199 = arith.addf %195, %198 : vector<8x384xf32>
    %c0_111 = arith.constant 0 : index
    %c0_112 = arith.constant 0 : index
    %c0_113 = arith.constant 0 : index
    %200 = vector.load %arg3[%c0_111, %c0_112, %c0_113] : memref<2x128x384xf32, #tpu.memory_space<vmem>>, vector<1x128x384xf32>
    %201 = vector.shape_cast %200 : vector<1x128x384xf32> to vector<128x384xf32>
    %cst_114 = arith.constant dense<0.000000e+00> : vector<8x384xf32>
    %202 = tpu.matmul %192, %201, %cst_114 {dimension_numbers = #tpu.dot_dimension_numbers<[1], [0], [0], [1], [0, 0, 1, 1], [], []>} : vector<8x128xf32>, vector<128x384xf32>, vector<8x384xf32> -> vector<8x384xf32>
    %c0_115 = arith.constant 0 : index
    %c0_116 = arith.constant 0 : index
    %c0_117 = arith.constant 0 : index
    %203 = vector.load %arg5[%c0_115, %c0_116, %c0_117] : memref<2x1x384xf32, #tpu.memory_space<vmem>>, vector<1x1x384xf32>
    %204 = vector.shape_cast %203 : vector<1x1x384xf32> to vector<1x384xf32>
    %205 = vector.broadcast %204 : vector<1x384xf32> to vector<8x384xf32>
    %206 = arith.addf %202, %205 : vector<8x384xf32>
    %207 = vector.extract_strided_slice %199 {offsets = [0, 0], sizes = [8, 128], strides = [1, 1]} : vector<8x384xf32> to vector<8x128xf32>
    %208 = vector.extract_strided_slice %206 {offsets = [0, 0], sizes = [8, 128], strides = [1, 1]} : vector<8x384xf32> to vector<8x128xf32>
    %209 = arith.addf %207, %208 : vector<8x128xf32>
    %210 = arith.negf %209 : vector<8x128xf32>
    %211 = math.exp %210 : vector<8x128xf32>
    %cst_118 = arith.constant 1.000000e+00 : f32
    %212 = vector.broadcast %cst_118 : f32 to vector<8x128xf32>
    %213 = arith.addf %212, %211 : vector<8x128xf32>
    %214 = arith.divf %212, %213 : vector<8x128xf32>
    %215 = vector.extract_strided_slice %199 {offsets = [0, 128], sizes = [8, 128], strides = [1, 1]} : vector<8x384xf32> to vector<8x128xf32>
    %216 = vector.extract_strided_slice %206 {offsets = [0, 128], sizes = [8, 128], strides = [1, 1]} : vector<8x384xf32> to vector<8x128xf32>
    %217 = arith.addf %215, %216 : vector<8x128xf32>
    %218 = arith.negf %217 : vector<8x128xf32>
    %219 = math.exp %218 : vector<8x128xf32>
    %cst_119 = arith.constant 1.000000e+00 : f32
    %220 = vector.broadcast %cst_119 : f32 to vector<8x128xf32>
    %221 = arith.addf %220, %219 : vector<8x128xf32>
    %222 = arith.divf %220, %221 : vector<8x128xf32>
    %223 = vector.extract_strided_slice %199 {offsets = [0, 256], sizes = [8, 128], strides = [1, 1]} : vector<8x384xf32> to vector<8x128xf32>
    %224 = vector.extract_strided_slice %206 {offsets = [0, 256], sizes = [8, 128], strides = [1, 1]} : vector<8x384xf32> to vector<8x128xf32>
    %225 = arith.mulf %214, %224 : vector<8x128xf32>
    %226 = arith.addf %223, %225 : vector<8x128xf32>
    %227 = math.tanh %226 : vector<8x128xf32>
    %cst_120 = arith.constant 1.000000e+00 : f32
    %228 = vector.broadcast %cst_120 : f32 to vector<8x128xf32>
    %229 = arith.subf %228, %222 : vector<8x128xf32>
    %230 = arith.mulf %229, %227 : vector<8x128xf32>
    %231 = arith.mulf %222, %192 : vector<8x128xf32>
    %232 = arith.addf %230, %231 : vector<8x128xf32>
    %c0_121 = arith.constant 0 : index
    %c0_122 = arith.constant 0 : index
    %c0_123 = arith.constant 0 : index
    %233 = vector.load %arg9[%c0_121, %c0_122, %c0_123] : memref<2x8x128xf32, #tpu.memory_space<vmem>>, vector<1x8x128xf32>
    %234 = vector.shape_cast %233 : vector<1x8x128xf32> to vector<8x128xf32>
    %235 = vector.shape_cast %232 : vector<8x128xf32> to vector<1x8x128xf32>
    tpu.vector_store %arg9[%c0_121, %c0_122, %c0_123], %235 {strides = array<i32>} : memref<2x8x128xf32, #tpu.memory_space<vmem>>, vector<1x8x128xf32>,
    %c1_124 = arith.constant 1 : index
    %c0_125 = arith.constant 0 : index
    %c0_126 = arith.constant 0 : index
    %236 = vector.load %arg9[%c1_124, %c0_125, %c0_126] : memref<2x8x128xf32, #tpu.memory_space<vmem>>, vector<1x8x128xf32>
    %237 = vector.shape_cast %236 : vector<1x8x128xf32> to vector<8x128xf32>
    %c1_127 = arith.constant 1 : index
    %c0_128 = arith.constant 0 : index
    %c0_129 = arith.constant 0 : index
    %238 = vector.load %arg2[%c1_127, %c0_128, %c0_129] : memref<2x128x384xf32, #tpu.memory_space<vmem>>, vector<1x128x384xf32>
    %239 = vector.shape_cast %238 : vector<1x128x384xf32> to vector<128x384xf32>
    %cst_130 = arith.constant dense<0.000000e+00> : vector<8x384xf32>
    %240 = tpu.matmul %232, %239, %cst_130 {dimension_numbers = #tpu.dot_dimension_numbers<[1], [0], [0], [1], [0, 0, 1, 1], [], []>} : vector<8x128xf32>, vector<128x384xf32>, vector<8x384xf32> -> vector<8x384xf32>
    %c1_131 = arith.constant 1 : index
    %c0_132 = arith.constant 0 : index
    %c0_133 = arith.constant 0 : index
    %241 = vector.load %arg4[%c1_131, %c0_132, %c0_133] : memref<2x1x384xf32, #tpu.memory_space<vmem>>, vector<1x1x384xf32>
    %242 = vector.shape_cast %241 : vector<1x1x384xf32> to vector<1x384xf32>
    %243 = vector.broadcast %242 : vector<1x384xf32> to vector<8x384xf32>
    %244 = arith.addf %240, %243 : vector<8x384xf32>
    %c1_134 = arith.constant 1 : index
    %c0_135 = arith.constant 0 : index
    %c0_136 = arith.constant 0 : index
    %245 = vector.load %arg3[%c1_134, %c0_135, %c0_136] : memref<2x128x384xf32, #tpu.memory_space<vmem>>, vector<1x128x384xf32>
    %246 = vector.shape_cast %245 : vector<1x128x384xf32> to vector<128x384xf32>
    %cst_137 = arith.constant dense<0.000000e+00> : vector<8x384xf32>
    %247 = tpu.matmul %237, %246, %cst_137 {dimension_numbers = #tpu.dot_dimension_numbers<[1], [0], [0], [1], [0, 0, 1, 1], [], []>} : vector<8x128xf32>, vector<128x384xf32>, vector<8x384xf32> -> vector<8x384xf32>
    %c1_138 = arith.constant 1 : index
    %c0_139 = arith.constant 0 : index
    %c0_140 = arith.constant 0 : index
    %248 = vector.load %arg5[%c1_138, %c0_139, %c0_140] : memref<2x1x384xf32, #tpu.memory_space<vmem>>, vector<1x1x384xf32>
    %249 = vector.shape_cast %248 : vector<1x1x384xf32> to vector<1x384xf32>
    %250 = vector.broadcast %249 : vector<1x384xf32> to vector<8x384xf32>
    %251 = arith.addf %247, %250 : vector<8x384xf32>
    %252 = vector.extract_strided_slice %244 {offsets = [0, 0], sizes = [8, 128], strides = [1, 1]} : vector<8x384xf32> to vector<8x128xf32>
    %253 = vector.extract_strided_slice %251 {offsets = [0, 0], sizes = [8, 128], strides = [1, 1]} : vector<8x384xf32> to vector<8x128xf32>
    %254 = arith.addf %252, %253 : vector<8x128xf32>
    %255 = arith.negf %254 : vector<8x128xf32>
    %256 = math.exp %255 : vector<8x128xf32>
    %cst_141 = arith.constant 1.000000e+00 : f32
    %257 = vector.broadcast %cst_141 : f32 to vector<8x128xf32>
    %258 = arith.addf %257, %256 : vector<8x128xf32>
    %259 = arith.divf %257, %258 : vector<8x128xf32>
    %260 = vector.extract_strided_slice %244 {offsets = [0, 128], sizes = [8, 128], strides = [1, 1]} : vector<8x384xf32> to vector<8x128xf32>
    %261 = vector.extract_strided_slice %251 {offsets = [0, 128], sizes = [8, 128], strides = [1, 1]} : vector<8x384xf32> to vector<8x128xf32>
    %262 = arith.addf %260, %261 : vector<8x128xf32>
    %263 = arith.negf %262 : vector<8x128xf32>
    %264 = math.exp %263 : vector<8x128xf32>
    %cst_142 = arith.constant 1.000000e+00 : f32
    %265 = vector.broadcast %cst_142 : f32 to vector<8x128xf32>
    %266 = arith.addf %265, %264 : vector<8x128xf32>
    %267 = arith.divf %265, %266 : vector<8x128xf32>
    %268 = vector.extract_strided_slice %244 {offsets = [0, 256], sizes = [8, 128], strides = [1, 1]} : vector<8x384xf32> to vector<8x128xf32>
    %269 = vector.extract_strided_slice %251 {offsets = [0, 256], sizes = [8, 128], strides = [1, 1]} : vector<8x384xf32> to vector<8x128xf32>
    %270 = arith.mulf %259, %269 : vector<8x128xf32>
    %271 = arith.addf %268, %270 : vector<8x128xf32>
    %272 = math.tanh %271 : vector<8x128xf32>
    %cst_143 = arith.constant 1.000000e+00 : f32
    %273 = vector.broadcast %cst_143 : f32 to vector<8x128xf32>
    %274 = arith.subf %273, %267 : vector<8x128xf32>
    %275 = arith.mulf %274, %272 : vector<8x128xf32>
    %276 = arith.mulf %267, %237 : vector<8x128xf32>
    %277 = arith.addf %275, %276 : vector<8x128xf32>
    %c1_144 = arith.constant 1 : index
    %c0_145 = arith.constant 0 : index
    %c0_146 = arith.constant 0 : index
    %278 = vector.load %arg9[%c1_144, %c0_145, %c0_146] : memref<2x8x128xf32, #tpu.memory_space<vmem>>, vector<1x8x128xf32>
    %279 = vector.shape_cast %278 : vector<1x8x128xf32> to vector<8x128xf32>
    %280 = vector.shape_cast %277 : vector<8x128xf32> to vector<1x8x128xf32>
    tpu.vector_store %arg9[%c1_144, %c0_145, %c0_146], %280 {strides = array<i32>} : memref<2x8x128xf32, #tpu.memory_space<vmem>>, vector<1x8x128xf32>,
    %281 = arith.index_cast %c2_i32 : i32 to index
    %c0_147 = arith.constant 0 : index
    %c0_148 = arith.constant 0 : index
    %282 = vector.load %arg10[%281, %c0_147, %c0_148] : memref<4x8x128xf32, #tpu.memory_space<vmem>>, vector<1x8x128xf32>
    %283 = vector.shape_cast %282 : vector<1x8x128xf32> to vector<8x128xf32>
    %284 = vector.shape_cast %277 : vector<8x128xf32> to vector<1x8x128xf32>
    tpu.vector_store %arg10[%281, %c0_147, %c0_148], %284 {strides = array<i32>} : memref<4x8x128xf32, #tpu.memory_space<vmem>>, vector<1x8x128xf32>,
    %c3_i32 = arith.constant 3 : i32
    %c0_149 = arith.constant 0 : index
    %c0_150 = arith.constant 0 : index
    %c0_151 = arith.constant 0 : index
    %285 = vector.load %arg9[%c0_149, %c0_150, %c0_151] : memref<2x8x128xf32, #tpu.memory_space<vmem>>, vector<1x8x128xf32>
    %286 = vector.shape_cast %285 : vector<1x8x128xf32> to vector<8x128xf32>
    %c0_152 = arith.constant 0 : index
    %c0_153 = arith.constant 0 : index
    %c0_154 = arith.constant 0 : index
    %287 = vector.load %arg2[%c0_152, %c0_153, %c0_154] : memref<2x128x384xf32, #tpu.memory_space<vmem>>, vector<1x128x384xf32>
    %288 = vector.shape_cast %287 : vector<1x128x384xf32> to vector<128x384xf32>
    %cst_155 = arith.constant dense<0.000000e+00> : vector<8x384xf32>
    %289 = tpu.matmul %277, %288, %cst_155 {dimension_numbers = #tpu.dot_dimension_numbers<[1], [0], [0], [1], [0, 0, 1, 1], [], []>} : vector<8x128xf32>, vector<128x384xf32>, vector<8x384xf32> -> vector<8x384xf32>
    %c0_156 = arith.constant 0 : index
    %c0_157 = arith.constant 0 : index
    %c0_158 = arith.constant 0 : index
    %290 = vector.load %arg4[%c0_156, %c0_157, %c0_158] : memref<2x1x384xf32, #tpu.memory_space<vmem>>, vector<1x1x384xf32>
    %291 = vector.shape_cast %290 : vector<1x1x384xf32> to vector<1x384xf32>
    %292 = vector.broadcast %291 : vector<1x384xf32> to vector<8x384xf32>
    %293 = arith.addf %289, %292 : vector<8x384xf32>
    %c0_159 = arith.constant 0 : index
    %c0_160 = arith.constant 0 : index
    %c0_161 = arith.constant 0 : index
    %294 = vector.load %arg3[%c0_159, %c0_160, %c0_161] : memref<2x128x384xf32, #tpu.memory_space<vmem>>, vector<1x128x384xf32>
    %295 = vector.shape_cast %294 : vector<1x128x384xf32> to vector<128x384xf32>
    %cst_162 = arith.constant dense<0.000000e+00> : vector<8x384xf32>
    %296 = tpu.matmul %286, %295, %cst_162 {dimension_numbers = #tpu.dot_dimension_numbers<[1], [0], [0], [1], [0, 0, 1, 1], [], []>} : vector<8x128xf32>, vector<128x384xf32>, vector<8x384xf32> -> vector<8x384xf32>
    %c0_163 = arith.constant 0 : index
    %c0_164 = arith.constant 0 : index
    %c0_165 = arith.constant 0 : index
    %297 = vector.load %arg5[%c0_163, %c0_164, %c0_165] : memref<2x1x384xf32, #tpu.memory_space<vmem>>, vector<1x1x384xf32>
    %298 = vector.shape_cast %297 : vector<1x1x384xf32> to vector<1x384xf32>
    %299 = vector.broadcast %298 : vector<1x384xf32> to vector<8x384xf32>
    %300 = arith.addf %296, %299 : vector<8x384xf32>
    %301 = vector.extract_strided_slice %293 {offsets = [0, 0], sizes = [8, 128], strides = [1, 1]} : vector<8x384xf32> to vector<8x128xf32>
    %302 = vector.extract_strided_slice %300 {offsets = [0, 0], sizes = [8, 128], strides = [1, 1]} : vector<8x384xf32> to vector<8x128xf32>
    %303 = arith.addf %301, %302 : vector<8x128xf32>
    %304 = arith.negf %303 : vector<8x128xf32>
    %305 = math.exp %304 : vector<8x128xf32>
    %cst_166 = arith.constant 1.000000e+00 : f32
    %306 = vector.broadcast %cst_166 : f32 to vector<8x128xf32>
    %307 = arith.addf %306, %305 : vector<8x128xf32>
    %308 = arith.divf %306, %307 : vector<8x128xf32>
    %309 = vector.extract_strided_slice %293 {offsets = [0, 128], sizes = [8, 128], strides = [1, 1]} : vector<8x384xf32> to vector<8x128xf32>
    %310 = vector.extract_strided_slice %300 {offsets = [0, 128], sizes = [8, 128], strides = [1, 1]} : vector<8x384xf32> to vector<8x128xf32>
    %311 = arith.addf %309, %310 : vector<8x128xf32>
    %312 = arith.negf %311 : vector<8x128xf32>
    %313 = math.exp %312 : vector<8x128xf32>
    %cst_167 = arith.constant 1.000000e+00 : f32
    %314 = vector.broadcast %cst_167 : f32 to vector<8x128xf32>
    %315 = arith.addf %314, %313 : vector<8x128xf32>
    %316 = arith.divf %314, %315 : vector<8x128xf32>
    %317 = vector.extract_strided_slice %293 {offsets = [0, 256], sizes = [8, 128], strides = [1, 1]} : vector<8x384xf32> to vector<8x128xf32>
    %318 = vector.extract_strided_slice %300 {offsets = [0, 256], sizes = [8, 128], strides = [1, 1]} : vector<8x384xf32> to vector<8x128xf32>
    %319 = arith.mulf %308, %318 : vector<8x128xf32>
    %320 = arith.addf %317, %319 : vector<8x128xf32>
    %321 = math.tanh %320 : vector<8x128xf32>
    %cst_168 = arith.constant 1.000000e+00 : f32
    %322 = vector.broadcast %cst_168 : f32 to vector<8x128xf32>
    %323 = arith.subf %322, %316 : vector<8x128xf32>
    %324 = arith.mulf %323, %321 : vector<8x128xf32>
    %325 = arith.mulf %316, %286 : vector<8x128xf32>
    %326 = arith.addf %324, %325 : vector<8x128xf32>
    %c0_169 = arith.constant 0 : index
    %c0_170 = arith.constant 0 : index
    %c0_171 = arith.constant 0 : index
    %327 = vector.load %arg9[%c0_169, %c0_170, %c0_171] : memref<2x8x128xf32, #tpu.memory_space<vmem>>, vector<1x8x128xf32>
    %328 = vector.shape_cast %327 : vector<1x8x128xf32> to vector<8x128xf32>
    %329 = vector.shape_cast %326 : vector<8x128xf32> to vector<1x8x128xf32>
    tpu.vector_store %arg9[%c0_169, %c0_170, %c0_171], %329 {strides = array<i32>} : memref<2x8x128xf32, #tpu.memory_space<vmem>>, vector<1x8x128xf32>,
    %c1_172 = arith.constant 1 : index
    %c0_173 = arith.constant 0 : index
    %c0_174 = arith.constant 0 : index
    %330 = vector.load %arg9[%c1_172, %c0_173, %c0_174] : memref<2x8x128xf32, #tpu.memory_space<vmem>>, vector<1x8x128xf32>
    %331 = vector.shape_cast %330 : vector<1x8x128xf32> to vector<8x128xf32>
    %c1_175 = arith.constant 1 : index
    %c0_176 = arith.constant 0 : index
    %c0_177 = arith.constant 0 : index
    %332 = vector.load %arg2[%c1_175, %c0_176, %c0_177] : memref<2x128x384xf32, #tpu.memory_space<vmem>>, vector<1x128x384xf32>
    %333 = vector.shape_cast %332 : vector<1x128x384xf32> to vector<128x384xf32>
    %cst_178 = arith.constant dense<0.000000e+00> : vector<8x384xf32>
    %334 = tpu.matmul %326, %333, %cst_178 {dimension_numbers = #tpu.dot_dimension_numbers<[1], [0], [0], [1], [0, 0, 1, 1], [], []>} : vector<8x128xf32>, vector<128x384xf32>, vector<8x384xf32> -> vector<8x384xf32>
    %c1_179 = arith.constant 1 : index
    %c0_180 = arith.constant 0 : index
    %c0_181 = arith.constant 0 : index
    %335 = vector.load %arg4[%c1_179, %c0_180, %c0_181] : memref<2x1x384xf32, #tpu.memory_space<vmem>>, vector<1x1x384xf32>
    %336 = vector.shape_cast %335 : vector<1x1x384xf32> to vector<1x384xf32>
    %337 = vector.broadcast %336 : vector<1x384xf32> to vector<8x384xf32>
    %338 = arith.addf %334, %337 : vector<8x384xf32>
    %c1_182 = arith.constant 1 : index
    %c0_183 = arith.constant 0 : index
    %c0_184 = arith.constant 0 : index
    %339 = vector.load %arg3[%c1_182, %c0_183, %c0_184] : memref<2x128x384xf32, #tpu.memory_space<vmem>>, vector<1x128x384xf32>
    %340 = vector.shape_cast %339 : vector<1x128x384xf32> to vector<128x384xf32>
    %cst_185 = arith.constant dense<0.000000e+00> : vector<8x384xf32>
    %341 = tpu.matmul %331, %340, %cst_185 {dimension_numbers = #tpu.dot_dimension_numbers<[1], [0], [0], [1], [0, 0, 1, 1], [], []>} : vector<8x128xf32>, vector<128x384xf32>, vector<8x384xf32> -> vector<8x384xf32>
    %c1_186 = arith.constant 1 : index
    %c0_187 = arith.constant 0 : index
    %c0_188 = arith.constant 0 : index
    %342 = vector.load %arg5[%c1_186, %c0_187, %c0_188] : memref<2x1x384xf32, #tpu.memory_space<vmem>>, vector<1x1x384xf32>
    %343 = vector.shape_cast %342 : vector<1x1x384xf32> to vector<1x384xf32>
    %344 = vector.broadcast %343 : vector<1x384xf32> to vector<8x384xf32>
    %345 = arith.addf %341, %344 : vector<8x384xf32>
    %346 = vector.extract_strided_slice %338 {offsets = [0, 0], sizes = [8, 128], strides = [1, 1]} : vector<8x384xf32> to vector<8x128xf32>
    %347 = vector.extract_strided_slice %345 {offsets = [0, 0], sizes = [8, 128], strides = [1, 1]} : vector<8x384xf32> to vector<8x128xf32>
    %348 = arith.addf %346, %347 : vector<8x128xf32>
    %349 = arith.negf %348 : vector<8x128xf32>
    %350 = math.exp %349 : vector<8x128xf32>
    %cst_189 = arith.constant 1.000000e+00 : f32
    %351 = vector.broadcast %cst_189 : f32 to vector<8x128xf32>
    %352 = arith.addf %351, %350 : vector<8x128xf32>
    %353 = arith.divf %351, %352 : vector<8x128xf32>
    %354 = vector.extract_strided_slice %338 {offsets = [0, 128], sizes = [8, 128], strides = [1, 1]} : vector<8x384xf32> to vector<8x128xf32>
    %355 = vector.extract_strided_slice %345 {offsets = [0, 128], sizes = [8, 128], strides = [1, 1]} : vector<8x384xf32> to vector<8x128xf32>
    %356 = arith.addf %354, %355 : vector<8x128xf32>
    %357 = arith.negf %356 : vector<8x128xf32>
    %358 = math.exp %357 : vector<8x128xf32>
    %cst_190 = arith.constant 1.000000e+00 : f32
    %359 = vector.broadcast %cst_190 : f32 to vector<8x128xf32>
    %360 = arith.addf %359, %358 : vector<8x128xf32>
    %361 = arith.divf %359, %360 : vector<8x128xf32>
    %362 = vector.extract_strided_slice %338 {offsets = [0, 256], sizes = [8, 128], strides = [1, 1]} : vector<8x384xf32> to vector<8x128xf32>
    %363 = vector.extract_strided_slice %345 {offsets = [0, 256], sizes = [8, 128], strides = [1, 1]} : vector<8x384xf32> to vector<8x128xf32>
    %364 = arith.mulf %353, %363 : vector<8x128xf32>
    %365 = arith.addf %362, %364 : vector<8x128xf32>
    %366 = math.tanh %365 : vector<8x128xf32>
    %cst_191 = arith.constant 1.000000e+00 : f32
    %367 = vector.broadcast %cst_191 : f32 to vector<8x128xf32>
    %368 = arith.subf %367, %361 : vector<8x128xf32>
    %369 = arith.mulf %368, %366 : vector<8x128xf32>
    %370 = arith.mulf %361, %331 : vector<8x128xf32>
    %371 = arith.addf %369, %370 : vector<8x128xf32>
    %c1_192 = arith.constant 1 : index
    %c0_193 = arith.constant 0 : index
    %c0_194 = arith.constant 0 : index
    %372 = vector.load %arg9[%c1_192, %c0_193, %c0_194] : memref<2x8x128xf32, #tpu.memory_space<vmem>>, vector<1x8x128xf32>
    %373 = vector.shape_cast %372 : vector<1x8x128xf32> to vector<8x128xf32>
    %374 = vector.shape_cast %371 : vector<8x128xf32> to vector<1x8x128xf32>
    tpu.vector_store %arg9[%c1_192, %c0_193, %c0_194], %374 {strides = array<i32>} : memref<2x8x128xf32, #tpu.memory_space<vmem>>, vector<1x8x128xf32>,
    %375 = arith.index_cast %c3_i32 : i32 to index
    %c0_195 = arith.constant 0 : index
    %c0_196 = arith.constant 0 : index
    %376 = vector.load %arg10[%375, %c0_195, %c0_196] : memref<4x8x128xf32, #tpu.memory_space<vmem>>, vector<1x8x128xf32>
    %377 = vector.shape_cast %376 : vector<1x8x128xf32> to vector<8x128xf32>
    %378 = vector.shape_cast %371 : vector<8x128xf32> to vector<1x8x128xf32>
    tpu.vector_store %arg10[%375, %c0_195, %c0_196], %378 {strides = array<i32>} : memref<4x8x128xf32, #tpu.memory_space<vmem>>, vector<1x8x128xf32>,
    %c4_i32 = arith.constant 4 : i32
    %c0_197 = arith.constant 0 : index
    %c0_198 = arith.constant 0 : index
    %c0_199 = arith.constant 0 : index
    %379 = vector.load %arg10[%c0_197, %c0_198, %c0_199] : memref<4x8x128xf32, #tpu.memory_space<vmem>>, vector<4x8x128xf32>
    %380 = vector.shape_cast %379 : vector<4x8x128xf32> to vector<32x128xf32>
    %c0_200 = arith.constant 0 : index
    %c0_201 = arith.constant 0 : index
    %381 = vector.load %arg6[%c0_200, %c0_201] : memref<128x128xf32, #tpu.memory_space<vmem>>, vector<128x128xf32>
    %cst_202 = arith.constant dense<0.000000e+00> : vector<32x128xf32>
    %382 = tpu.matmul %380, %381, %cst_202 {dimension_numbers = #tpu.dot_dimension_numbers<[1], [0], [0], [1], [0, 0, 1, 1], [], []>} : vector<32x128xf32>, vector<128x128xf32>, vector<32x128xf32> -> vector<32x128xf32>
    %c0_203 = arith.constant 0 : index
    %c0_204 = arith.constant 0 : index
    %383 = vector.load %arg7[%c0_203, %c0_204] : memref<1x128xf32, #tpu.memory_space<vmem>>, vector<1x128xf32>
    %384 = vector.broadcast %383 : vector<1x128xf32> to vector<32x128xf32>
    %385 = arith.addf %382, %384 : vector<32x128xf32>
    %c0_205 = arith.constant 0 : index
    %c0_206 = arith.constant 0 : index
    %386 = vector.load %arg8[%c0_205, %c0_206] : memref<32x128xf32, #tpu.memory_space<vmem>>, vector<32x128xf32>
    tpu.vector_store %arg8[%c0_205, %c0_206], %385 {strides = array<i32>} : memref<32x128xf32, #tpu.memory_space<vmem>>, vector<32x128xf32>,
    return
  }
}

</mosaic_0001>

<bundles_post_ra>
// kernel: a_call__.3
= control target key start
LH: loop header
LB: loop body
LE: loop exit
PB: predicated region body
PF: predicated region fallthrough
CT: control target
= control target key end

     0   :  { %13 = vsyncpa [#allocation4], 0  ;;  %s2849_s24 = smov [#allocation3]   ;;  %s3415_s0 = inlined_call_operand.vmem [shape: f32[8,8,4], index: 0, kind: input, shape index: {}]   ;;  %s3416_s1 = inlined_call_operand.vmem [shape: f32[8,128], index: 1, kind: input, shape index: {}]   ;;  %s3417_s2 = inlined_call_operand.vmem [shape: f32[4,384], index: 2, kind: input, shape index: {}]   ;;  %s3418_s3 = inlined_call_operand.hbm [shape: f32[128,384], index: 3, kind: input, shape index: {}]   ;;  %s3419_s4 = inlined_call_operand.vmem [shape: f32[1,384], index: 4, kind: input, shape index: {}]   ;;  %s3420_s5 = inlined_call_operand.vmem [shape: f32[1,384], index: 5, kind: input, shape index: {}]   ;;  %s3421_s6 = inlined_call_operand.vmem [shape: f32[8,8,128], index: 6, kind: output, shape index: {0}]   ;;  %s3422_s7 = inlined_call_operand.vmem [shape: f32[8,128], index: 7, kind: output, shape index: {1}]  }
   0x1   :  { %s25_s25 = sshll.u32 %s2849_s24, 4  ;;  %s2825_s28 = scalar_lea.hbm %s3418_s3, 6144  ;;  %s26_s25 = int_to_ptr.vmem [resolvable:$true] %s25_s25 }
   0x2   :  { %p2826_p0 = scmp.ne.s32.totalorder %s3418_s3, %s2825_s28  ;;  %p2829_p1 = scmp.lt.u32.totalorder %s2825_s28, %s3418_s3 }
   0x4   :  { %p2831_p2 = pnand %p2829_p1, %p2826_p0 }
   0x6   :  { %2834 = shalt.err (!%p2831_p2)
}
   0x7   :  { %s2835_s10 = scalar_lea.vmem %s26_s25, 6144  ;;  %p2840_p4 = scmp.lt.s32.totalorder %s26_s25, %s26_s25 }
   0x8   :  { %p2836_p3 = scmp.ne.s32.totalorder %s26_s25, %s2835_s10  ;;  %p2841_p5 = scmp.lt.s32.totalorder %s2835_s10, %s2835_s10 }
   0xa   :  { %p2842_p6 = por %p2841_p5, %p2840_p4 }
   0xc   :  { %p2843_p7 = pnand %p2842_p6, %p2836_p3 }
   0xe   :  { %2846 = shalt.err (!%p2843_p7)
}
   0xf   :  { %s2850_s11 = smov 384   ;;  %s2851_s12 = smov 24  }
  0x10   :  { %31 = dma.hbm_to_vmem [thread:$0]  %s3418_s3, 6144, %s26_s25, [#allocation4], %s2850_s11, %s2850_s11, %s2851_s12  }
  0x11   :  { %2847 = dma.done.wait [#allocation4], 6144  }
  0x12   :  { %2848 = vsyncadd [#allocation4], 4294961152  ;;  %v2852_v0 = vmov 0.0   ;;  %v47_v1 = vld [vmem:[%s3417_s2] sm:$0xff]  ;;  %vm94_vm0 = vcmask 1043456   ;;  %vm69_vm1 = vcmask 31744  }
  0x13   :  { %165 = vmatprep.mubr.f32.mxu0 %v2852_v0  ;;  %v39_v2 = vld [vmem:[%s3415_s0] sm:$0xff]  ;;  %v344_v3 = vld [vmem:[#allocation3 + $0x8] sm:$0xff]  ;;  %v68_v4 = vcombine.high %v47_v1, %v47_v1  ;;  %v347_v5 = vld [vmem:[#allocation3 + $0x20] sm:$0xff]  ;;  %v2853_v34 = vmov 0.0|0.0   ;;  %vm2854_vm2 = vmmov 0  }
  0x14   :  { %v343_v6 = vld [vmem:[#allocation3] sm:$0xff]  ;;  %v346_v7 = vld [vmem:[#allocation3 + $0x18] sm:$0xff]  ;;  %1950 = vmatprep.mubr.msk.f32.mxu1 %vm69_vm1, %v39_v2  ;;  %v2915_v8 = vpack.c.bf16 %v347_v5, %v344_v3  ;;  %v353_v11 = vld [vmem:[#allocation3 + $0x50] sm:$0xff] }
  0x15   :  { %v2917_v9 = vpack.c.bf16 %v346_v7, %v343_v6  ;;  %v350_v10 = vld [vmem:[#allocation3 + $0x38] sm:$0xff]  ;;  %1761 = vmatprep.subr.msk.mxu0 %vm94_vm0, %v68_v4  ;;  %v349_v13 = vld [vmem:[#allocation3 + $0x30] sm:$0xff]  ;;  %v352_v14 = vld [vmem:[#allocation3 + $0x48] sm:$0xff] }
  0x16   :  { %v2920_v12 = vpack.c.bf16 %v353_v11, %v350_v10  ;;  %1762 = vmatpush1.msk.msra.mxu0 %vm94_vm0, %v47_v1  ;;  %v356_v15 = vld [vmem:[#allocation3 + $0x68] sm:$0xff]  ;;  %v359_v16 = vld [vmem:[#allocation3 + $0x80] sm:$0xff]  ;;  %v2930_v18 = vpack.c.bf16 %v352_v14, %v349_v13  ;;  %v358_v21 = vld [vmem:[#allocation3 + $0x78] sm:$0xff] }
  0x17   :  { %1763 = vmatmul.mubr.msk.f32.vlgmr.msra.gmra.mrb[0].mxu0 %vm69_vm1, %v39_v2  ;;  %2243 = vmatprep.subr.bf16.mxu0 %v2915_v8  ;;  %v40_v17 = vld [vmem:[%s3415_s0 + $0x8] sm:$0xff]  ;;  %v2933_v19 = vpack.c.bf16 %v359_v16, %v356_v15  ;;  %v362_v22 = vld [vmem:[#allocation3 + $0x98] sm:$0xff]  ;;  %v365_v23 = vld [vmem:[#allocation3 + $0xb0] sm:$0xff] }
  0x18   :  { %2245 = vmatpush1.bf16.msra.mxu0 %v2917_v9  ;;  %171 = vmatprep.mubr.f32.mxu0 %v2852_v0  ;;  %v355_v20 = vld [vmem:[#allocation3 + $0x60] sm:$0xff]  ;;  %v41_v24 = vld [vmem:[%s3415_s0 + $0x10] sm:$0xff]  ;;  %v2947_v27 = vpack.c.bf16 %v365_v23, %v362_v22  ;;  %v361_v28 = vld [vmem:[#allocation3 + $0x90] sm:$0xff] }
  0x19   :  { %2247 = vmatprep.subr.bf16.mxu0 %v2920_v12  ;;  %v2941_v25 = vpack.c.bf16 %v358_v21, %v355_v20  ;;  %v48_v26 = vld [vmem:[%s3417_s2 + $0x8] sm:$0xf]  ;;  %v364_v29 = vld [vmem:[#allocation3 + $0xa8] sm:$0xff]  ;;  %v345_v32 = vld [vmem:[#allocation3 + $0x10] sm:$0xff] }
  0x1a   :  { %v368_v30 = vld [vmem:[#allocation3 + $0xc8] sm:$0xff]  ;;  %1948 = vmatprep.subr.msk.mxu1 %vm94_vm0, %v48_v26  ;;  %v371_v31 = vld [vmem:[#allocation3 + $0xe0] sm:$0xff]  ;;  %v42_v36 = vld [vmem:[%s3415_s0 + $0x18] sm:$0xff]  ;;  %v2960_v37 = vpack.c.bf16 %v364_v29, %v361_v28 }
  0x1b   :  { %1764 = vmatmul.mubr.msk.f32.gmra.mrb[2].mxu0 %vm69_vm1, %v40_v17  ;;  %1949 = vmatpush3.msk.msra.mxu1 %vm94_vm0, %v48_v26  ;;  %v348_v33 = vld [vmem:[#allocation3 + $0x28] sm:$0xff]  ;;  %v351_v38 = vld [vmem:[#allocation3 + $0x40] sm:$0xff]  ;;  %v2963_v39 = vpack.c.bf16 %v371_v31, %v368_v30  ;;  %v370_v41 = vld [vmem:[#allocation3 + $0xd8] sm:$0xff]  ;;  %v51_v30 = vlaneseq }
  0x1c   :  { %2249 = vmatpush1.bf16.msra.mxu0 %v2930_v18  ;;  %177 = vmatprep.mubr.f32.mxu0 %v2852_v0  ;;  %v2953_v35 = vpack.c.bf16 %v348_v33, %v345_v32  ;;  %v367_v40 = vld [vmem:[#allocation3 + $0xc0] sm:$0xff]  ;;  %v354_v42 = vld [vmem:[#allocation3 + $0x58] sm:$0xff]  ;;  %v377_v44 = vld [vmem:[#allocation3 + $0x110] sm:$0xff] }
  0x1d   :  { %2251 = vmatprep.subr.bf16.mxu0 %v2933_v19  ;;  %2274 = vmatprep.subr.bf16.mxu1 %v2853_v34  ;;  %v374_v43 = vld [vmem:[#allocation3 + $0xf8] sm:$0xff]  ;;  %v2967_v45 = vpack.c.bf16 %v354_v42, %v351_v38  ;;  %v357_v46 = vld [vmem:[#allocation3 + $0x70] sm:$0xff]  ;;  %v360_v47 = vld [vmem:[#allocation3 + $0x88] sm:$0xff]  ;;  %v2977_v49 = vpack.c.bf16 %v370_v41, %v367_v40  ;;  %v52_v31 = vshrl.u32 %v51_v30, 7 }
  0x1e   :  { %1951 = vmatmul.mubr.msk.f32.vlgmr.msra.gmra.mrb[0].mxu1 %vm69_vm1, %v40_v17  ;;  %v43_v48 = vld [vmem:[%s3415_s0 + $0x20] sm:$0xff]  ;;  %v2980_v50 = vpack.c.bf16 %v377_v44, %v374_v43  ;;  %v373_v51 = vld [vmem:[#allocation3 + $0xf0] sm:$0xff]  ;;  %v376_v52 = vld [vmem:[#allocation3 + $0x108] sm:$0xff]  ;;  %v2984_v55 = vpack.c.bf16 %v360_v47, %v357_v46 }
  0x1f   :  { %1765 = vmatmul.mubr.msk.f32.gmra.mrb[4].mxu0 %vm69_vm1, %v41_v24  ;;  %2276 = vmatpush3.bf16.msra.mxu1 %v2953_v35  ;;  %v380_v53 = vld [vmem:[#allocation3 + $0x128] sm:$0xff]  ;;  %v383_v54 = vld [vmem:[#allocation3 + $0x140] sm:$0xff]  ;;  %v366_v57 = vld [vmem:[#allocation3 + $0xb8] sm:$0xff]  ;;  %v2994_v59 = vpack.c.bf16 %v376_v52, %v373_v51  ;;  %v61_v32 = vsub.s32 2, %v52_v31 }
  0x20   :  { %2253 = vmatpush1.bf16.msra.mxu0 %v2941_v25  ;;  %183 = vmatprep.mubr.f32.mxu0 %v2852_v0  ;;  %v363_v56 = vld [vmem:[#allocation3 + $0xa0] sm:$0xff]  ;;  %v45_v60 = vld [vmem:[%s3415_s0 + $0x30] sm:$0xff]  ;;  %v3000_v61 = vpack.c.bf16 %v383_v54, %v380_v53  ;;  %v382_v63 = vld [vmem:[#allocation3 + $0x138] sm:$0xff]  ;;  %v53_v53 = vsub.s32 0, %v52_v31 }
  0x21   :  { %2255 = vmatprep.subr.bf16.mxu0 %v2947_v27  ;;  %1953 = vmatprep.mubr.msk.f32.mxu1 %vm69_vm1, %v41_v24  ;;  %v44_v58 = vld [vmem:[%s3415_s0 + $0x28] sm:$0xff]  ;;  %v386_v1 = vld [vmem:[#allocation3 + $0x158] sm:$0xff]  ;;  %v389_v2 = vld [vmem:[#allocation3 + $0x170] sm:$0xff]  ;;  %v3004_v3 = vpack.c.bf16 %v366_v57, %v363_v56 }
  0x22   :  { %2277 = vmatprep.subr.bf16.mxu1 %v2853_v34  ;;  %1954 = vmatmul.mubr.msk.f32.gmra.mrb[2].mxu1 %vm69_vm1, %v42_v36  ;;  %v379_v62 = vld [vmem:[#allocation3 + $0x120] sm:$0xff]  ;;  %v369_v4 = vld [vmem:[#allocation3 + $0xd0] sm:$0xff]  ;;  %v372_v5 = vld [vmem:[#allocation3 + $0xe8] sm:$0xff]  ;;  %v3017_v10 = vpack.c.bf16 %v389_v2, %v386_v1 }
  0x23   :  { %1766 = vmatmul.mubr.msk.f32.gmra.mrb[6].mxu0 %vm69_vm1, %v42_v36  ;;  %2279 = vmatpush3.bf16.msra.mxu1 %v2967_v45  ;;  %v3011_v6 = vpack.c.bf16 %v382_v63, %v379_v62  ;;  %v46_v7 = vld [vmem:[%s3415_s0 + $0x38] sm:$0xff]  ;;  %v388_v13 = vld [vmem:[#allocation3 + $0x168] sm:$0xff]  ;;  %v3021_v14 = vpack.c.bf16 %v372_v5, %v369_v4  ;;  %v375_v15 = vld [vmem:[#allocation3 + $0x100] sm:$0xff] }
  0x24   :  { %2257 = vmatpush1.bf16.msra.mxu0 %v2960_v37  ;;  %189 = vmatprep.mubr.f32.mxu0 %v2852_v0  ;;  %v385_v11 = vld [vmem:[#allocation3 + $0x150] sm:$0xff]  ;;  %v378_v16 = vld [vmem:[#allocation3 + $0x118] sm:$0xff]  ;;  %v384_v22 = vld [vmem:[#allocation3 + $0x148] sm:$0xff] }
  0x25   :  { %2259 = vmatprep.subr.bf16.mxu0 %v2963_v39  ;;  %1956 = vmatprep.mubr.msk.f32.mxu1 %vm69_vm1, %v43_v48  ;;  %v3029_v17 = vpack.c.bf16 %v388_v13, %v385_v11  ;;  %v3033_v20 = vpack.c.bf16 %v378_v16, %v375_v15  ;;  %v381_v21 = vld [vmem:[#allocation3 + $0x130] sm:$0xff]  ;;  %v3042_v23 = vld [vmem:[%s3416_s1] sm:$0xff]  ;;  %v387_v26 = vld [vmem:[#allocation3 + $0x160] sm:$0xff] }
  0x26   :  { %2280 = vmatprep.subr.bf16.mxu1 %v2853_v34  ;;  %1957 = vmatmul.mubr.msk.f32.gmra.mrb[4].mxu1 %vm69_vm1, %v44_v58  ;;  %v3046_v24 = vpack.c.bf16 %v384_v22, %v381_v21  ;;  %v390_v28 = vld [vmem:[#allocation3 + $0x178] sm:$0xff] }
  0x27   :  { %1767 = vmatmul.mubr.msk.f32.gmra.mrb[8].mxu0 %vm69_vm1, %v43_v48  ;;  %2282 = vmatpush3.bf16.msra.mxu1 %v2984_v55  ;;  %v3054_v29 = vpack.c.bf16 %v390_v28, %v387_v26  ;;  %v49_v33 = vld [vmem:[%s3419_s4] sm:$0x7] }
  0x28   :  { %2261 = vmatpush1.bf16.msra.mxu0 %v2977_v49  ;;  %195 = vmatprep.mubr.f32.mxu0 %v2852_v0  ;;  %v62_v36 = vrot.slane %v49_v33, %v61_v32  ;;  %v391_v54 = vld [vmem:[%s3420_s5] sm:$0x7]  ;;  %v54_v63 = vrot.slane %v49_v33, %v53_v53 }
  0x29   :  { %2263 = vmatprep.subr.bf16.mxu0 %v2980_v50  ;;  %1959 = vmatprep.mubr.msk.f32.mxu1 %vm69_vm1, %v45_v60  ;;  %v400_v1 = vrot.slane %v391_v54, %v53_v53 }
  0x2a   :  { %2283 = vmatprep.subr.bf16.mxu1 %v2853_v34  ;;  %1960 = vmatmul.mubr.msk.f32.gmra.mrb[6].mxu1 %vm69_vm1, %v46_v7 }
  0x2b   :  { %1768 = vmatmul.mubr.msk.f32.gmra.mrb[10].mxu0 %vm69_vm1, %v44_v58  ;;  %2285 = vmatpush3.bf16.msra.mxu1 %v3004_v3  ;;  %v3112_v5 = vadd.f32 %v400_v1, %v54_v63 }
  0x2c   :  { %2265 = vmatpush1.bf16.msra.mxu0 %v2994_v59  ;;  %201 = vmatprep.mubr.f32.mxu0 %v2852_v0 }
  0x2d   :  { %2267 = vmatprep.subr.bf16.mxu0 %v3000_v61  ;;  %1994 = vmatprep.mubr.msk.f32.mxu1 %vm2854_vm2, %v2852_v0 }
  0x2e   :  { %2286 = vmatprep.subr.bf16.mxu1 %v2853_v34 }
  0x2f   :  { %1769 = vmatmul.mubr.msk.f32.gmra.mrb[12].mxu0 %vm69_vm1, %v45_v60  ;;  %2288 = vmatpush3.bf16.msra.mxu1 %v3021_v14  ;;  %v57_v60 = vsub.s32 1, %v52_v31 }
  0x30   :  { %2269 = vmatpush1.bf16.msra.mxu0 %v3011_v6  ;;  %207 = vmatprep.mubr.f32.mxu0 %v2852_v0 }
  0x31   :  { %2271 = vmatprep.subr.bf16.mxu0 %v3017_v10  ;;  %2289 = vmatprep.subr.bf16.mxu1 %v2853_v34  ;;  %v58_v2 = vrot.slane %v49_v33, %v57_v60  ;;  %v404_v4 = vrot.slane %v391_v54, %v57_v60  ;;  %v3118_v33 = vrot.slane %v391_v54, %v61_v32 }
  0x33   :  { %1770 = vmatmul.mubr.msk.f32.gmra.mrb[14].mxu0 %vm69_vm1, %v46_v7  ;;  %2291 = vmatpush3.bf16.msra.mxu1 %v3033_v20  ;;  %v3114_v11 = vadd.f32 %v404_v4, %v58_v2 }
  0x34   :  { %2273 = vmatpush1.bf16.msra.mxu0 %v3029_v17  ;;  %476 = vmatprep.mubr.f32.mxu0 %v2852_v0 }
  0x35   :  { %2299 = vmatprep.subr.bf16.mxu0 %v2915_v8  ;;  %2292 = vmatprep.subr.bf16.mxu1 %v2853_v34 }
  0x37   :  { %477 = vmatmul.mubr.f32.vlgmr.msra.gmra.mrb[0].mxu0 %v3042_v23  ;;  %2294 = vmatpush3.bf16.msra.mxu1 %v3046_v24 }
  0x38   :  { %2301 = vmatpush1.bf16.msra.mxu0 %v2917_v9  ;;  %643 = vmatprep.mubr.f32.mxu0 %v2852_v0 }
  0x39   :  { %2303 = vmatprep.subr.bf16.mxu0 %v2920_v12  ;;  %2295 = vmatprep.subr.bf16.mxu1 %v2853_v34 }
  0x3b   :  { %2297 = vmatpush3.bf16.msra.mxu1 %v3054_v29 }
  0x3c   :  { %2305 = vmatpush1.bf16.msra.mxu0 %v2930_v18  ;;  %2330 = vmatprep.subr.bf16.mxu1 %v2853_v34 }
  0x3d   :  { %2307 = vmatprep.subr.bf16.mxu0 %v2933_v19 }
  0x3e   :  { %1995 = vmatmul.mubr.f32.vlgmr.msra.gmra.mrb[8].mxu1 %v3042_v23 }
  0x3f   :  { %2332 = vmatpush3.bf16.msra.mxu1 %v2953_v35  ;;  %2029 = vmatprep.mubr.msk.f32.mxu1 %vm2854_vm2, %v2852_v0 }
  0x40   :  { %2309 = vmatpush1.bf16.msra.mxu0 %v2941_v25  ;;  %2333 = vmatprep.subr.bf16.mxu1 %v2853_v34 }
  0x41   :  { %2311 = vmatprep.subr.bf16.mxu0 %v2947_v27 }
  0x43   :  { %2335 = vmatpush3.bf16.msra.mxu1 %v2967_v45 }
  0x44   :  { %2313 = vmatpush1.bf16.msra.mxu0 %v2960_v37  ;;  %2336 = vmatprep.subr.bf16.mxu1 %v2853_v34 }
  0x45   :  { %2315 = vmatprep.subr.bf16.mxu0 %v2963_v39 }
  0x47   :  { %2338 = vmatpush3.bf16.msra.mxu1 %v2984_v55 }
  0x48   :  { %2317 = vmatpush1.bf16.msra.mxu0 %v2977_v49  ;;  %2339 = vmatprep.subr.bf16.mxu1 %v2853_v34 }
  0x49   :  { %2319 = vmatprep.subr.bf16.mxu0 %v2980_v50 }
  0x4b   :  { %2341 = vmatpush3.bf16.msra.mxu1 %v3004_v3 }
  0x4c   :  { %2321 = vmatpush1.bf16.msra.mxu0 %v2994_v59  ;;  %2342 = vmatprep.subr.bf16.mxu1 %v2853_v34 }
  0x4d   :  { %2323 = vmatprep.subr.bf16.mxu0 %v3000_v61 }
  0x4f   :  { %2344 = vmatpush3.bf16.msra.mxu1 %v3021_v14 }
  0x50   :  { %2325 = vmatpush1.bf16.msra.mxu0 %v3011_v6  ;;  %2345 = vmatprep.subr.bf16.mxu1 %v2853_v34 }
  0x51   :  { %2327 = vmatprep.subr.bf16.mxu0 %v3017_v10 }
  0x53   :  { %2347 = vmatpush3.bf16.msra.mxu1 %v3033_v20 }
  0x54   :  { %2329 = vmatpush1.bf16.msra.mxu0 %v3029_v17  ;;  %2348 = vmatprep.subr.bf16.mxu1 %v2853_v34 }
  0x55   :  { %2355 = vmatprep.subr.bf16.mxu0 %v2915_v8 }
  0x57   :  { %2350 = vmatpush3.bf16.msra.mxu1 %v3046_v24 }
  0x58   :  { %2351 = vmatprep.subr.bf16.mxu1 %v2853_v34 }
  0x5b   :  { %2353 = vmatpush3.bf16.msra.mxu1 %v3054_v29 }
  0x5c   :  { %2386 = vmatprep.subr.bf16.mxu1 %v2853_v34 }
  0xf1   :  { %v1952_v38 = vpop.f32.mrb[0].mxu1 }
  0xf2   :  { %v3095_v40 = vadd.f32 %v1952_v38, %v62_v36  ;;  %v280_v41 = vpop.f32.mrb[1].mxu1 }
  0xf5   :  { %v1955_v42 = vpop.f32.mrb[2].mxu1 }
  0xf6   :  { %v3097_v43 = vadd.f32 %v1955_v42, %v62_v36  ;;  %v290_v44 = vpop.f32.mrb[3].mxu1 }
  0xf7   :  { %v3099_v46 = vadd.f32 %v290_v44, %v62_v36 }
  0xf9   :  { %v1958_v47 = vpop.f32.mrb[4].mxu1 }
  0xfa   :  { %v3101_v48 = vadd.f32 %v1958_v47, %v62_v36  ;;  %v300_v51 = vpop.f32.mrb[5].mxu1 }
  0xfb   :  { %v3103_v52 = vadd.f32 %v300_v51, %v62_v36  ;;  %v281_v51 = vadd.f32 %v280_v41, %v62_v36 }
  0xfd   :  { %v1961_v56 = vpop.f32.mrb[6].mxu1 }
  0xfe   :  { %v3108_v57 = vadd.f32 %v1961_v56, %v62_v36  ;;  %v310_v58 = vpop.f32.mrb[7].mxu1 }
  0xff   :  { %v3110_v62 = vadd.f32 %v310_v58, %v62_v36 }
 0x10a   :  { %v478_v7 = vpop.f32.mrb[0].mxu0 }
 0x10b   :  { %v2691_v13 = vadd.f32 %v3112_v5, %v478_v7  ;;  %v480_v15 = vpop.f32.mrb[1].mxu0 }
 0x10c   :  { %v2693_v21 = vadd.f32 %v3114_v11, %v480_v15 }
 0x10d   :  { %v1780_v16 = vmul.f32 -1.442695, %v2691_v13 }
 0x10e   :  { %v1781_v22 = vmul.f32 -1.442695, %v2693_v21 }
 0x10f   :  { %2745 = vpow2.f32 %v1780_v16 }
 0x110   :  { %2747 = vpow2.f32 %v1781_v22 }
 0x111   :  { %v549_v26 = vpop.f32.mrb[8].mxu1 }
 0x112   :  { %v1996_v28 = vpop.f32.mrb[9].mxu1  ;;  %v550_v44 = vadd.f32 %v549_v26, %v3118_v33 }
 0x119   :  { %v2746_v30 = vpop.eup %2745 }
 0x11a   :  { %v557_v31 = vadd.f32 1.0, %v2746_v30  ;;  %v2748_v38 = vpop.eup %2747 }
 0x11b   :  { %v564_v42 = vadd.f32 1.0, %v2748_v38 }
 0x11c   :  { %2749 = vrcp.f32 %v557_v31 }
 0x11d   :  { %2751 = vrcp.f32 %v564_v42 }
 0x126   :  { %v2750_v47 = vpop.eup %2749 }
 0x127   :  { %v567_v53 = vmul.f32 %v2750_v47, %v550_v44  ;;  %v2752_v58 = vpop.eup %2751 }
 0x128   :  { %v570_v60 = vsub.f32 1.0, %v2752_v58  ;;  %v572_v2 = vmul.f32 %v2752_v58, %v3042_v23 }
 0x129   :  { %v568_v56 = vadd.f32 %v567_v53, %v281_v51 }
 0x12b   :  { %2753 = vtanh.f32 %v568_v56 }
 0x135   :  { %v2754_v63 = vpop.eup %2753 }
 0x136   :  { %v571_v1 = vmul.f32 %v2754_v63, %v570_v60 }
 0x138   :  { %v3122_v4 = vadd.f32 %v572_v2, %v571_v1 }
 0x13a   :  { %574 = vst [vmem:[%s3421_s6] sm:$0xff] %v3122_v4  ;;  %644 = vmatmul.mubr.f32.vlgmr.msra.gmra.mrb[2].mxu0 %v3122_v4  ;;  %2030 = vmatmul.mubr.f32.vlgmr.msra.gmra.mrb[10].mxu1 %v3122_v4 }
 0x13b   :  { %2357 = vmatpush1.bf16.msra.mxu0 %v2917_v9  ;;  %2388 = vmatpush3.bf16.msra.mxu1 %v2953_v35 }
 0x13c   :  { %2359 = vmatprep.subr.bf16.mxu0 %v2920_v12  ;;  %2389 = vmatprep.subr.bf16.mxu1 %v2853_v34 }
 0x13d   :  { %811 = vmatprep.mubr.f32.mxu0 %v2852_v0  ;;  %2064 = vmatprep.mubr.msk.f32.mxu1 %vm2854_vm2, %v2852_v0 }
 0x13f   :  { %2361 = vmatpush1.bf16.msra.mxu0 %v2930_v18  ;;  %2391 = vmatpush3.bf16.msra.mxu1 %v2967_v45 }
 0x140   :  { %2363 = vmatprep.subr.bf16.mxu0 %v2933_v19  ;;  %2392 = vmatprep.subr.bf16.mxu1 %v2853_v34 }
 0x143   :  { %2365 = vmatpush1.bf16.msra.mxu0 %v2941_v25  ;;  %2394 = vmatpush3.bf16.msra.mxu1 %v2984_v55 }
 0x144   :  { %2367 = vmatprep.subr.bf16.mxu0 %v2947_v27  ;;  %2395 = vmatprep.subr.bf16.mxu1 %v2853_v34 }
 0x147   :  { %2369 = vmatpush1.bf16.msra.mxu0 %v2960_v37  ;;  %2397 = vmatpush3.bf16.msra.mxu1 %v3004_v3 }
 0x148   :  { %2371 = vmatprep.subr.bf16.mxu0 %v2963_v39  ;;  %2398 = vmatprep.subr.bf16.mxu1 %v2853_v34 }
 0x14b   :  { %2373 = vmatpush1.bf16.msra.mxu0 %v2977_v49  ;;  %2400 = vmatpush3.bf16.msra.mxu1 %v3021_v14 }
 0x14c   :  { %2375 = vmatprep.subr.bf16.mxu0 %v2980_v50  ;;  %2401 = vmatprep.subr.bf16.mxu1 %v2853_v34 }
 0x14f   :  { %2377 = vmatpush1.bf16.msra.mxu0 %v2994_v59  ;;  %2403 = vmatpush3.bf16.msra.mxu1 %v3033_v20 }
 0x150   :  { %2379 = vmatprep.subr.bf16.mxu0 %v3000_v61  ;;  %2404 = vmatprep.subr.bf16.mxu1 %v2853_v34 }
 0x153   :  { %2381 = vmatpush1.bf16.msra.mxu0 %v3011_v6  ;;  %2406 = vmatpush3.bf16.msra.mxu1 %v3046_v24 }
 0x154   :  { %2383 = vmatprep.subr.bf16.mxu0 %v3017_v10  ;;  %2407 = vmatprep.subr.bf16.mxu1 %v2853_v34 }
 0x157   :  { %2385 = vmatpush1.bf16.msra.mxu0 %v3029_v17  ;;  %2409 = vmatpush3.bf16.msra.mxu1 %v3054_v29 }
 0x158   :  { %2411 = vmatprep.subr.bf16.mxu0 %v2915_v8  ;;  %2442 = vmatprep.subr.bf16.mxu1 %v2853_v34 }
 0x20d   :  { %v645_v23 = vpop.f32.mrb[2].mxu0  ;;  %v716_v32 = vpop.f32.mrb[10].mxu1 }
 0x20e   :  { %v2695_v36 = vadd.f32 %v3112_v5, %v645_v23  ;;  %v647_v41 = vpop.f32.mrb[3].mxu0  ;;  %v2031_v54 = vpop.f32.mrb[11].mxu1  ;;  %v717_v28 = vadd.f32 %v716_v32, %v3118_v33 }
 0x20f   :  { %v2697_v13 = vadd.f32 %v3114_v11, %v647_v41 }
 0x210   :  { %v1782_v7 = vmul.f32 -1.442695, %v2695_v36 }
 0x211   :  { %v1783_v15 = vmul.f32 -1.442695, %v2697_v13 }
 0x212   :  { %2755 = vpow2.f32 %v1782_v7 }
 0x213   :  { %2757 = vpow2.f32 %v1783_v15 }
 0x21c   :  { %v2756_v16 = vpop.eup %2755 }
 0x21d   :  { %v724_v21 = vadd.f32 1.0, %v2756_v16  ;;  %v2758_v22 = vpop.eup %2757 }
 0x21e   :  { %v731_v26 = vadd.f32 1.0, %v2758_v22 }
 0x21f   :  { %2759 = vrcp.f32 %v724_v21 }
 0x220   :  { %2761 = vrcp.f32 %v731_v26 }
 0x229   :  { %v2760_v30 = vpop.eup %2759 }
 0x22a   :  { %v734_v31 = vmul.f32 %v2760_v30, %v717_v28  ;;  %v2762_v42 = vpop.eup %2761 }
 0x22b   :  { %v737_v44 = vsub.f32 1.0, %v2762_v42  ;;  %v739_v53 = vmul.f32 %v2762_v42, %v3122_v4 }
 0x22c   :  { %v735_v38 = vadd.f32 %v734_v31, %v3095_v40 }
 0x22e   :  { %2763 = vtanh.f32 %v735_v38 }
 0x238   :  { %v2764_v47 = vpop.eup %2763 }
 0x239   :  { %v738_v51 = vmul.f32 %v2764_v47, %v737_v44 }
 0x23b   :  { %v3170_v56 = vadd.f32 %v739_v53, %v738_v51 }
 0x23d   :  { %1784 = vst [vmem:[%s3421_s6 + $0x8] sm:$0xff] %v3170_v56  ;;  %812 = vmatmul.mubr.f32.vlgmr.msra.gmra.mrb[4].mxu0 %v3170_v56  ;;  %2065 = vmatmul.mubr.f32.vlgmr.msra.gmra.mrb[12].mxu1 %v3170_v56 }
 0x23e   :  { %2413 = vmatpush1.bf16.msra.mxu0 %v2917_v9  ;;  %2444 = vmatpush3.bf16.msra.mxu1 %v2953_v35 }
 0x23f   :  { %2415 = vmatprep.subr.bf16.mxu0 %v2920_v12  ;;  %2445 = vmatprep.subr.bf16.mxu1 %v2853_v34 }
 0x240   :  { %979 = vmatprep.mubr.f32.mxu0 %v2852_v0  ;;  %2099 = vmatprep.mubr.msk.f32.mxu1 %vm2854_vm2, %v2852_v0 }
 0x242   :  { %2417 = vmatpush1.bf16.msra.mxu0 %v2930_v18  ;;  %2447 = vmatpush3.bf16.msra.mxu1 %v2967_v45 }
 0x243   :  { %2419 = vmatprep.subr.bf16.mxu0 %v2933_v19  ;;  %2448 = vmatprep.subr.bf16.mxu1 %v2853_v34 }
 0x246   :  { %2421 = vmatpush1.bf16.msra.mxu0 %v2941_v25  ;;  %2450 = vmatpush3.bf16.msra.mxu1 %v2984_v55 }
 0x247   :  { %2423 = vmatprep.subr.bf16.mxu0 %v2947_v27  ;;  %2451 = vmatprep.subr.bf16.mxu1 %v2853_v34 }
 0x24a   :  { %2425 = vmatpush1.bf16.msra.mxu0 %v2960_v37  ;;  %2453 = vmatpush3.bf16.msra.mxu1 %v3004_v3 }
 0x24b   :  { %2427 = vmatprep.subr.bf16.mxu0 %v2963_v39  ;;  %2454 = vmatprep.subr.bf16.mxu1 %v2853_v34 }
 0x24e   :  { %2429 = vmatpush1.bf16.msra.mxu0 %v2977_v49  ;;  %2456 = vmatpush3.bf16.msra.mxu1 %v3021_v14 }
 0x24f   :  { %2431 = vmatprep.subr.bf16.mxu0 %v2980_v50  ;;  %2457 = vmatprep.subr.bf16.mxu1 %v2853_v34 }
 0x252   :  { %2433 = vmatpush1.bf16.msra.mxu0 %v2994_v59  ;;  %2459 = vmatpush3.bf16.msra.mxu1 %v3033_v20 }
 0x253   :  { %2435 = vmatprep.subr.bf16.mxu0 %v3000_v61  ;;  %2460 = vmatprep.subr.bf16.mxu1 %v2853_v34 }
 0x256   :  { %2437 = vmatpush1.bf16.msra.mxu0 %v3011_v6  ;;  %2462 = vmatpush3.bf16.msra.mxu1 %v3046_v24 }
 0x257   :  { %2439 = vmatprep.subr.bf16.mxu0 %v3017_v10  ;;  %2463 = vmatprep.subr.bf16.mxu1 %v2853_v34 }
 0x25a   :  { %2441 = vmatpush1.bf16.msra.mxu0 %v3029_v17  ;;  %2465 = vmatpush3.bf16.msra.mxu1 %v3054_v29 }
 0x25b   :  { %2467 = vmatprep.subr.bf16.mxu0 %v2915_v8  ;;  %2498 = vmatprep.subr.bf16.mxu1 %v2853_v34 }
 0x310   :  { %v813_v40 = vpop.f32.mrb[4].mxu0  ;;  %v884_v58 = vpop.f32.mrb[12].mxu1 }
 0x311   :  { %v2699_v60 = vadd.f32 %v3112_v5, %v813_v40  ;;  %v815_v63 = vpop.f32.mrb[5].mxu0  ;;  %v2066_v1 = vpop.f32.mrb[13].mxu1  ;;  %v885_v7 = vadd.f32 %v884_v58, %v3118_v33 }
 0x312   :  { %v2701_v4 = vadd.f32 %v3114_v11, %v815_v63 }
 0x313   :  { %v1785_v2 = vmul.f32 -1.442695, %v2699_v60 }
 0x314   :  { %v1786_v23 = vmul.f32 -1.442695, %v2701_v4 }
 0x315   :  { %2765 = vpow2.f32 %v1785_v2 }
 0x316   :  { %2767 = vpow2.f32 %v1786_v23 }
 0x31f   :  { %v2766_v32 = vpop.eup %2765 }
 0x320   :  { %v892_v36 = vadd.f32 1.0, %v2766_v32  ;;  %v2768_v41 = vpop.eup %2767 }
 0x321   :  { %v899_v54 = vadd.f32 1.0, %v2768_v41 }
 0x322   :  { %2769 = vrcp.f32 %v892_v36 }
 0x323   :  { %2771 = vrcp.f32 %v899_v54 }
 0x32c   :  { %v2770_v13 = vpop.eup %2769 }
 0x32d   :  { %v902_v15 = vmul.f32 %v2770_v13, %v885_v7  ;;  %v2772_v21 = vpop.eup %2771 }
 0x32e   :  { %v905_v22 = vsub.f32 1.0, %v2772_v21  ;;  %v907_v30 = vmul.f32 %v2772_v21, %v3170_v56 }
 0x32f   :  { %v903_v16 = vadd.f32 %v902_v15, %v3099_v46 }
 0x331   :  { %2773 = vtanh.f32 %v903_v16 }
 0x33b   :  { %v2774_v26 = vpop.eup %2773 }
 0x33c   :  { %v906_v28 = vmul.f32 %v2774_v26, %v905_v22 }
 0x33e   :  { %v3218_v31 = vadd.f32 %v907_v30, %v906_v28 }
 0x340   :  { %1787 = vst [vmem:[%s3421_s6 + $0x10] sm:$0xff] %v3218_v31  ;;  %980 = vmatmul.mubr.f32.vlgmr.msra.gmra.mrb[6].mxu0 %v3218_v31  ;;  %2100 = vmatmul.mubr.f32.vlgmr.msra.gmra.mrb[14].mxu1 %v3218_v31 }
 0x341   :  { %2469 = vmatpush1.bf16.msra.mxu0 %v2917_v9  ;;  %2500 = vmatpush3.bf16.msra.mxu1 %v2953_v35 }
 0x342   :  { %2471 = vmatprep.subr.bf16.mxu0 %v2920_v12  ;;  %2501 = vmatprep.subr.bf16.mxu1 %v2853_v34 }
 0x343   :  { %1147 = vmatprep.mubr.f32.mxu0 %v2852_v0  ;;  %2134 = vmatprep.mubr.msk.f32.mxu1 %vm2854_vm2, %v2852_v0 }
 0x345   :  { %2473 = vmatpush1.bf16.msra.mxu0 %v2930_v18  ;;  %2503 = vmatpush3.bf16.msra.mxu1 %v2967_v45 }
 0x346   :  { %2475 = vmatprep.subr.bf16.mxu0 %v2933_v19  ;;  %2504 = vmatprep.subr.bf16.mxu1 %v2853_v34 }
 0x349   :  { %2477 = vmatpush1.bf16.msra.mxu0 %v2941_v25  ;;  %2506 = vmatpush3.bf16.msra.mxu1 %v2984_v55 }
 0x34a   :  { %2479 = vmatprep.subr.bf16.mxu0 %v2947_v27  ;;  %2507 = vmatprep.subr.bf16.mxu1 %v2853_v34 }
 0x34d   :  { %2481 = vmatpush1.bf16.msra.mxu0 %v2960_v37  ;;  %2509 = vmatpush3.bf16.msra.mxu1 %v3004_v3 }
 0x34e   :  { %2483 = vmatprep.subr.bf16.mxu0 %v2963_v39  ;;  %2510 = vmatprep.subr.bf16.mxu1 %v2853_v34 }
 0x351   :  { %2485 = vmatpush1.bf16.msra.mxu0 %v2977_v49  ;;  %2512 = vmatpush3.bf16.msra.mxu1 %v3021_v14 }
 0x352   :  { %2487 = vmatprep.subr.bf16.mxu0 %v2980_v50  ;;  %2513 = vmatprep.subr.bf16.mxu1 %v2853_v34 }
 0x355   :  { %2489 = vmatpush1.bf16.msra.mxu0 %v2994_v59  ;;  %2515 = vmatpush3.bf16.msra.mxu1 %v3033_v20 }
 0x356   :  { %2491 = vmatprep.subr.bf16.mxu0 %v3000_v61  ;;  %2516 = vmatprep.subr.bf16.mxu1 %v2853_v34 }
 0x359   :  { %2493 = vmatpush1.bf16.msra.mxu0 %v3011_v6  ;;  %2518 = vmatpush3.bf16.msra.mxu1 %v3046_v24 }
 0x35a   :  { %2495 = vmatprep.subr.bf16.mxu0 %v3017_v10  ;;  %2519 = vmatprep.subr.bf16.mxu1 %v2853_v34 }
 0x35d   :  { %2497 = vmatpush1.bf16.msra.mxu0 %v3029_v17  ;;  %2521 = vmatpush3.bf16.msra.mxu1 %v3054_v29 }
 0x35e   :  { %2523 = vmatprep.subr.bf16.mxu0 %v2915_v8  ;;  %2554 = vmatprep.subr.bf16.mxu1 %v2853_v34 }
 0x413   :  { %v981_v46 = vpop.f32.mrb[6].mxu0  ;;  %v1052_v38 = vpop.f32.mrb[14].mxu1 }
 0x414   :  { %v2703_v42 = vadd.f32 %v3112_v5, %v981_v46  ;;  %v983_v44 = vpop.f32.mrb[7].mxu0  ;;  %v2101_v47 = vpop.f32.mrb[15].mxu1  ;;  %v1053_v1 = vadd.f32 %v1052_v38, %v3118_v33 }
 0x415   :  { %v2705_v53 = vadd.f32 %v3114_v11, %v983_v44 }
 0x416   :  { %v1788_v51 = vmul.f32 -1.442695, %v2703_v42 }
 0x417   :  { %v1789_v56 = vmul.f32 -1.442695, %v2705_v53 }
 0x418   :  { %2775 = vpow2.f32 %v1788_v51 }
 0x419   :  { %2777 = vpow2.f32 %v1789_v56 }
 0x422   :  { %v2776_v40 = vpop.eup %2775 }
 0x423   :  { %v1060_v58 = vadd.f32 1.0, %v2776_v40  ;;  %v2778_v60 = vpop.eup %2777 }
 0x424   :  { %v1067_v63 = vadd.f32 1.0, %v2778_v60 }
 0x425   :  { %2779 = vrcp.f32 %v1060_v58 }
 0x426   :  { %2781 = vrcp.f32 %v1067_v63 }
 0x42f   :  { %v2780_v2 = vpop.eup %2779 }
 0x430   :  { %v1070_v4 = vmul.f32 %v2780_v2, %v1053_v1  ;;  %v2782_v32 = vpop.eup %2781 }
 0x431   :  { %v1073_v36 = vsub.f32 1.0, %v2782_v32  ;;  %v1075_v7 = vmul.f32 %v2782_v32, %v3218_v31 }
 0x432   :  { %v1071_v23 = vadd.f32 %v1070_v4, %v3097_v43 }
 0x434   :  { %2783 = vtanh.f32 %v1071_v23 }
 0x43e   :  { %v2784_v41 = vpop.eup %2783 }
 0x43f   :  { %v1074_v54 = vmul.f32 %v2784_v41, %v1073_v36 }
 0x441   :  { %v3266_v13 = vadd.f32 %v1075_v7, %v1074_v54 }
 0x443   :  { %1790 = vst [vmem:[%s3421_s6 + $0x18] sm:$0xff] %v3266_v13  ;;  %1148 = vmatmul.mubr.f32.vlgmr.msra.gmra.mrb[8].mxu0 %v3266_v13  ;;  %2135 = vmatmul.mubr.f32.vlgmr.msra.gmra.mrb[16].mxu1 %v3266_v13 }
 0x444   :  { %2525 = vmatpush1.bf16.msra.mxu0 %v2917_v9  ;;  %2556 = vmatpush3.bf16.msra.mxu1 %v2953_v35 }
 0x445   :  { %2527 = vmatprep.subr.bf16.mxu0 %v2920_v12  ;;  %2557 = vmatprep.subr.bf16.mxu1 %v2853_v34 }
 0x446   :  { %1315 = vmatprep.mubr.f32.mxu0 %v2852_v0  ;;  %2169 = vmatprep.mubr.msk.f32.mxu1 %vm2854_vm2, %v2852_v0 }
 0x448   :  { %2529 = vmatpush1.bf16.msra.mxu0 %v2930_v18  ;;  %2559 = vmatpush3.bf16.msra.mxu1 %v2967_v45 }
 0x449   :  { %2531 = vmatprep.subr.bf16.mxu0 %v2933_v19  ;;  %2560 = vmatprep.subr.bf16.mxu1 %v2853_v34 }
 0x44c   :  { %2533 = vmatpush1.bf16.msra.mxu0 %v2941_v25  ;;  %2562 = vmatpush3.bf16.msra.mxu1 %v2984_v55 }
 0x44d   :  { %2535 = vmatprep.subr.bf16.mxu0 %v2947_v27  ;;  %2563 = vmatprep.subr.bf16.mxu1 %v2853_v34 }
 0x450   :  { %2537 = vmatpush1.bf16.msra.mxu0 %v2960_v37  ;;  %2565 = vmatpush3.bf16.msra.mxu1 %v3004_v3 }
 0x451   :  { %2539 = vmatprep.subr.bf16.mxu0 %v2963_v39  ;;  %2566 = vmatprep.subr.bf16.mxu1 %v2853_v34 }
 0x454   :  { %2541 = vmatpush1.bf16.msra.mxu0 %v2977_v49  ;;  %2568 = vmatpush3.bf16.msra.mxu1 %v3021_v14 }
 0x455   :  { %2543 = vmatprep.subr.bf16.mxu0 %v2980_v50  ;;  %2569 = vmatprep.subr.bf16.mxu1 %v2853_v34 }
 0x458   :  { %2545 = vmatpush1.bf16.msra.mxu0 %v2994_v59  ;;  %2571 = vmatpush3.bf16.msra.mxu1 %v3033_v20 }
 0x459   :  { %2547 = vmatprep.subr.bf16.mxu0 %v3000_v61  ;;  %2572 = vmatprep.subr.bf16.mxu1 %v2853_v34 }
 0x45c   :  { %2549 = vmatpush1.bf16.msra.mxu0 %v3011_v6  ;;  %2574 = vmatpush3.bf16.msra.mxu1 %v3046_v24 }
 0x45d   :  { %2551 = vmatprep.subr.bf16.mxu0 %v3017_v10  ;;  %2575 = vmatprep.subr.bf16.mxu1 %v2853_v34 }
 0x460   :  { %2553 = vmatpush1.bf16.msra.mxu0 %v3029_v17  ;;  %2577 = vmatpush3.bf16.msra.mxu1 %v3054_v29 }
 0x461   :  { %2579 = vmatprep.subr.bf16.mxu0 %v2915_v8  ;;  %2610 = vmatprep.subr.bf16.mxu1 %v2853_v34 }
 0x516   :  { %v1149_v43 = vpop.f32.mrb[8].mxu0  ;;  %v1220_v15 = vpop.f32.mrb[16].mxu1 }
 0x517   :  { %v2707_v16 = vadd.f32 %v3112_v5, %v1149_v43  ;;  %v1151_v21 = vpop.f32.mrb[9].mxu0  ;;  %v2136_v22 = vpop.f32.mrb[17].mxu1  ;;  %v1221_v44 = vadd.f32 %v1220_v15, %v3118_v33 }
 0x518   :  { %v2709_v28 = vadd.f32 %v3114_v11, %v1151_v21 }
 0x519   :  { %v1791_v26 = vmul.f32 -1.442695, %v2707_v16 }
 0x51a   :  { %v1792_v30 = vmul.f32 -1.442695, %v2709_v28 }
 0x51b   :  { %2785 = vpow2.f32 %v1791_v26 }
 0x51c   :  { %2787 = vpow2.f32 %v1792_v30 }
 0x525   :  { %v2786_v31 = vpop.eup %2785 }
 0x526   :  { %v1228_v46 = vadd.f32 1.0, %v2786_v31  ;;  %v2788_v38 = vpop.eup %2787 }
 0x527   :  { %v1235_v42 = vadd.f32 1.0, %v2788_v38 }
 0x528   :  { %2789 = vrcp.f32 %v1228_v46 }
 0x529   :  { %2791 = vrcp.f32 %v1235_v42 }
 0x532   :  { %v2790_v47 = vpop.eup %2789 }
 0x533   :  { %v1238_v51 = vmul.f32 %v2790_v47, %v1221_v44  ;;  %v2792_v56 = vpop.eup %2791 }
 0x534   :  { %v1241_v40 = vsub.f32 1.0, %v2792_v56  ;;  %v1243_v63 = vmul.f32 %v2792_v56, %v3266_v13 }
 0x535   :  { %v1239_v53 = vadd.f32 %v1238_v51, %v3103_v52 }
 0x537   :  { %2793 = vtanh.f32 %v1239_v53 }
 0x541   :  { %v2794_v58 = vpop.eup %2793 }
 0x542   :  { %v1242_v60 = vmul.f32 %v2794_v58, %v1241_v40 }
 0x544   :  { %v3314_v1 = vadd.f32 %v1243_v63, %v1242_v60 }
 0x546   :  { %1793 = vst [vmem:[%s3421_s6 + $0x20] sm:$0xff] %v3314_v1  ;;  %1316 = vmatmul.mubr.f32.vlgmr.msra.gmra.mrb[10].mxu0 %v3314_v1  ;;  %2170 = vmatmul.mubr.f32.vlgmr.msra.gmra.mrb[18].mxu1 %v3314_v1 }
 0x547   :  { %2581 = vmatpush1.bf16.msra.mxu0 %v2917_v9  ;;  %2612 = vmatpush3.bf16.msra.mxu1 %v2953_v35 }
 0x548   :  { %2583 = vmatprep.subr.bf16.mxu0 %v2920_v12  ;;  %2613 = vmatprep.subr.bf16.mxu1 %v2853_v34 }
 0x549   :  { %1483 = vmatprep.mubr.f32.mxu0 %v2852_v0  ;;  %2204 = vmatprep.mubr.msk.f32.mxu1 %vm2854_vm2, %v2852_v0 }
 0x54b   :  { %2585 = vmatpush1.bf16.msra.mxu0 %v2930_v18  ;;  %2615 = vmatpush3.bf16.msra.mxu1 %v2967_v45 }
 0x54c   :  { %2587 = vmatprep.subr.bf16.mxu0 %v2933_v19  ;;  %2616 = vmatprep.subr.bf16.mxu1 %v2853_v34 }
 0x54f   :  { %2589 = vmatpush1.bf16.msra.mxu0 %v2941_v25  ;;  %2618 = vmatpush3.bf16.msra.mxu1 %v2984_v55 }
 0x550   :  { %2591 = vmatprep.subr.bf16.mxu0 %v2947_v27  ;;  %2619 = vmatprep.subr.bf16.mxu1 %v2853_v34 }
 0x553   :  { %2593 = vmatpush1.bf16.msra.mxu0 %v2960_v37  ;;  %2621 = vmatpush3.bf16.msra.mxu1 %v3004_v3 }
 0x554   :  { %2595 = vmatprep.subr.bf16.mxu0 %v2963_v39  ;;  %2622 = vmatprep.subr.bf16.mxu1 %v2853_v34 }
 0x557   :  { %2597 = vmatpush1.bf16.msra.mxu0 %v2977_v49  ;;  %2624 = vmatpush3.bf16.msra.mxu1 %v3021_v14 }
 0x558   :  { %2599 = vmatprep.subr.bf16.mxu0 %v2980_v50  ;;  %2625 = vmatprep.subr.bf16.mxu1 %v2853_v34 }
 0x55b   :  { %2601 = vmatpush1.bf16.msra.mxu0 %v2994_v59  ;;  %2627 = vmatpush3.bf16.msra.mxu1 %v3033_v20 }
 0x55c   :  { %2603 = vmatprep.subr.bf16.mxu0 %v3000_v61  ;;  %2628 = vmatprep.subr.bf16.mxu1 %v2853_v34 }
 0x55f   :  { %2605 = vmatpush1.bf16.msra.mxu0 %v3011_v6  ;;  %2630 = vmatpush3.bf16.msra.mxu1 %v3046_v24 }
 0x560   :  { %2607 = vmatprep.subr.bf16.mxu0 %v3017_v10  ;;  %2631 = vmatprep.subr.bf16.mxu1 %v2853_v34 }
 0x563   :  { %2609 = vmatpush1.bf16.msra.mxu0 %v3029_v17  ;;  %2633 = vmatpush3.bf16.msra.mxu1 %v3054_v29 }
 0x564   :  { %2635 = vmatprep.subr.bf16.mxu0 %v2915_v8  ;;  %2666 = vmatprep.subr.bf16.mxu1 %v2853_v34 }
 0x619   :  { %v1317_v52 = vpop.f32.mrb[10].mxu0  ;;  %v1388_v2 = vpop.f32.mrb[18].mxu1 }
 0x61a   :  { %v2711_v4 = vadd.f32 %v3112_v5, %v1317_v52  ;;  %v1319_v23 = vpop.f32.mrb[11].mxu0  ;;  %v2171_v32 = vpop.f32.mrb[19].mxu1  ;;  %v1389_v8 = vadd.f32 %v1388_v2, %v3118_v33 }
 0x61b   :  { %v2713_v41 = vadd.f32 %v3114_v11, %v1319_v23 }
 0x61c   :  { %v1794_v36 = vmul.f32 -1.442695, %v2711_v4 }
 0x61d   :  { %v1795_v54 = vmul.f32 -1.442695, %v2713_v41 }
 0x61e   :  { %2795 = vpow2.f32 %v1794_v36 }
 0x61f   :  { %2797 = vpow2.f32 %v1795_v54 }
 0x628   :  { %v2796_v7 = vpop.eup %2795 }
 0x629   :  { %v1396_v13 = vadd.f32 1.0, %v2796_v7  ;;  %v2798_v43 = vpop.eup %2797 }
 0x62a   :  { %v1403_v15 = vadd.f32 1.0, %v2798_v43 }
 0x62b   :  { %2799 = vrcp.f32 %v1396_v13 }
 0x62c   :  { %2801 = vrcp.f32 %v1403_v15 }
 0x635   :  { %v2800_v16 = vpop.eup %2799 }
 0x636   :  { %v1406_v21 = vmul.f32 %v2800_v16, %v1389_v8  ;;  %v2802_v26 = vpop.eup %2801 }
 0x637   :  { %v1409_v28 = vsub.f32 1.0, %v2802_v26  ;;  %v1411_v46 = vmul.f32 %v2802_v26, %v3314_v1 }
 0x638   :  { %v1407_v22 = vadd.f32 %v1406_v21, %v3101_v48 }
 0x63a   :  { %2803 = vtanh.f32 %v1407_v22 }
 0x644   :  { %v2804_v30 = vpop.eup %2803 }
 0x645   :  { %v1410_v31 = vmul.f32 %v2804_v30, %v1409_v28 }
 0x647   :  { %v1412_v38 = vadd.f32 %v1411_v46, %v1410_v31 }
 0x649   :  { %1796 = vst [vmem:[%s3421_s6 + $0x28] sm:$0xff] %v1412_v38  ;;  %1484 = vmatmul.mubr.f32.vlgmr.msra.gmra.mrb[12].mxu0 %v1412_v38  ;;  %2205 = vmatmul.mubr.f32.vlgmr.msra.gmra.mrb[20].mxu1 %v1412_v38 }
 0x64a   :  { %2637 = vmatpush1.bf16.msra.mxu0 %v2917_v9  ;;  %2668 = vmatpush3.bf16.msra.mxu1 %v2953_v35 }
 0x64b   :  { %2639 = vmatprep.subr.bf16.mxu0 %v2920_v12  ;;  %2669 = vmatprep.subr.bf16.mxu1 %v2853_v34 }
 0x64c   :  { %1651 = vmatprep.mubr.f32.mxu0 %v2852_v0  ;;  %2239 = vmatprep.mubr.msk.f32.mxu1 %vm2854_vm2, %v2852_v0 }
 0x64e   :  { %2641 = vmatpush1.bf16.msra.mxu0 %v2930_v18  ;;  %2671 = vmatpush3.bf16.msra.mxu1 %v2967_v45 }
 0x64f   :  { %2643 = vmatprep.subr.bf16.mxu0 %v2933_v19  ;;  %2672 = vmatprep.subr.bf16.mxu1 %v2853_v34 }
 0x652   :  { %2645 = vmatpush1.bf16.msra.mxu0 %v2941_v25  ;;  %2674 = vmatpush3.bf16.msra.mxu1 %v2984_v55 }
 0x653   :  { %2647 = vmatprep.subr.bf16.mxu0 %v2947_v27  ;;  %2675 = vmatprep.subr.bf16.mxu1 %v2853_v34 }
 0x656   :  { %2649 = vmatpush1.bf16.msra.mxu0 %v2960_v37  ;;  %2677 = vmatpush3.bf16.msra.mxu1 %v3004_v3 }
 0x657   :  { %2651 = vmatprep.subr.bf16.mxu0 %v2963_v39  ;;  %2678 = vmatprep.subr.bf16.mxu1 %v2853_v34 }
 0x65a   :  { %2653 = vmatpush1.bf16.msra.mxu0 %v2977_v49  ;;  %2680 = vmatpush3.bf16.msra.mxu1 %v3021_v14 }
 0x65b   :  { %2655 = vmatprep.subr.bf16.mxu0 %v2980_v50  ;;  %2681 = vmatprep.subr.bf16.mxu1 %v2853_v34 }
 0x65e   :  { %2657 = vmatpush1.bf16.msra.mxu0 %v2994_v59  ;;  %2683 = vmatpush3.bf16.msra.mxu1 %v3033_v20 }
 0x65f   :  { %2659 = vmatprep.subr.bf16.mxu0 %v3000_v61  ;;  %2684 = vmatprep.subr.bf16.mxu1 %v2853_v34 }
 0x662   :  { %2661 = vmatpush1.bf16.msra.mxu0 %v3011_v6  ;;  %2686 = vmatpush3.bf16.msra.mxu1 %v3046_v24 }
 0x663   :  { %2663 = vmatprep.subr.bf16.mxu0 %v3017_v10  ;;  %2687 = vmatprep.subr.bf16.mxu1 %v2853_v34 }
 0x666   :  { %2665 = vmatpush1.bf16.msra.mxu0 %v3029_v17  ;;  %2689 = vmatpush3.bf16.msra.mxu1 %v3054_v29 }
 0x71c   :  { %v1485_v0 = vpop.f32.mrb[12].mxu0  ;;  %v1556_v9 = vpop.f32.mrb[20].mxu1 }
 0x71d   :  { %v2715_v12 = vadd.f32 %v3112_v5, %v1485_v0  ;;  %v1487_v18 = vpop.f32.mrb[13].mxu0  ;;  %v2206_v19 = vpop.f32.mrb[21].mxu1  ;;  %v1557_v49 = vadd.f32 %v1556_v9, %v3118_v33 }
 0x71e   :  { %v2717_v27 = vadd.f32 %v3114_v11, %v1487_v18 }
 0x71f   :  { %v1797_v25 = vmul.f32 -1.442695, %v2715_v12 }
 0x720   :  { %v1798_v35 = vmul.f32 -1.442695, %v2717_v27 }
 0x721   :  { %2805 = vpow2.f32 %v1797_v25 }
 0x722   :  { %2807 = vpow2.f32 %v1798_v35 }
 0x72b   :  { %v2806_v37 = vpop.eup %2805 }
 0x72c   :  { %v1564_v39 = vadd.f32 1.0, %v2806_v37  ;;  %v2808_v34 = vpop.eup %2807 }
 0x72d   :  { %v1571_v45 = vadd.f32 1.0, %v2808_v34 }
 0x72e   :  { %2809 = vrcp.f32 %v1564_v39 }
 0x72f   :  { %2811 = vrcp.f32 %v1571_v45 }
 0x738   :  { %v2810_v50 = vpop.eup %2809 }
 0x739   :  { %v1574_v55 = vmul.f32 %v2810_v50, %v1557_v49  ;;  %v2812_v61 = vpop.eup %2811 }
 0x73a   :  { %v1577_v3 = vsub.f32 1.0, %v2812_v61  ;;  %v1579_v14 = vmul.f32 %v2812_v61, %v1412_v38 }
 0x73b   :  { %v1575_v59 = vadd.f32 %v1574_v55, %v3110_v62 }
 0x73d   :  { %2813 = vtanh.f32 %v1575_v59 }
 0x747   :  { %v2814_v6 = vpop.eup %2813 }
 0x748   :  { %v1578_v10 = vmul.f32 %v2814_v6, %v1577_v3 }
 0x74a   :  { %v1580_v17 = vadd.f32 %v1579_v14, %v1578_v10 }
 0x74c   :  { %1799 = vst [vmem:[%s3421_s6 + $0x30] sm:$0xff] %v1580_v17  ;;  %1652 = vmatmul.mubr.f32.vlgmr.msra.gmra.mrb[14].mxu0 %v1580_v17  ;;  %2240 = vmatmul.mubr.f32.vlgmr.msra.gmra.mrb[22].mxu1 %v1580_v17 }
 0x81f   :  { %v1653_v20 = vpop.f32.mrb[14].mxu0  ;;  %v1724_v24 = vpop.f32.mrb[22].mxu1 }
 0x820   :  { %v2719_v29 = vadd.f32 %v3112_v5, %v1653_v20  ;;  %v1655_v48 = vpop.f32.mrb[15].mxu0  ;;  %v2241_v42 = vpop.f32.mrb[23].mxu1  ;;  %v1725_v58 = vadd.f32 %v1724_v24, %v3118_v33 }
 0x821   :  { %v2721_v44 = vadd.f32 %v3114_v11, %v1655_v48 }
 0x822   :  { %v1800_v62 = vmul.f32 -1.442695, %v2719_v29 }
 0x823   :  { %v1801_v47 = vmul.f32 -1.442695, %v2721_v44 }
 0x824   :  { %2815 = vpow2.f32 %v1800_v62 }
 0x825   :  { %2817 = vpow2.f32 %v1801_v47 }
 0x82e   :  { %v2816_v51 = vpop.eup %2815 }
 0x82f   :  { %v1732_v53 = vadd.f32 1.0, %v2816_v51  ;;  %v2818_v56 = vpop.eup %2817 }
 0x830   :  { %v1739_v40 = vadd.f32 1.0, %v2818_v56 }
 0x831   :  { %2819 = vrcp.f32 %v1732_v53 }
 0x832   :  { %2821 = vrcp.f32 %v1739_v40 }
 0x83b   :  { %v2820_v60 = vpop.eup %2819 }
 0x83c   :  { %v1742_v63 = vmul.f32 %v2820_v60, %v1725_v58  ;;  %v2822_v1 = vpop.eup %2821 }
 0x83d   :  { %v1745_v52 = vsub.f32 1.0, %v2822_v1  ;;  %v1747_v4 = vmul.f32 %v2822_v1, %v1580_v17 }
 0x83e   :  { %v1743_v5 = vadd.f32 %v1742_v63, %v3108_v57 }
 0x840   :  { %2823 = vtanh.f32 %v1743_v5 }
 0x84a   :  { %v2824_v2 = vpop.eup %2823 }
 0x84b   :  { %v1746_v11 = vmul.f32 %v2824_v2, %v1745_v52 }
 0x84d   :  { %v1748_v23 = vadd.f32 %v1747_v4, %v1746_v11 }
 0x84f   :  { %1802 = vst [vmem:[%s3421_s6 + $0x38] sm:$0xff] %v1748_v23  ;;  %1751 = vst [vmem:[%s3422_s7] sm:$0xff] %v1748_v23 }
 0x850   :  { %1760 = vsyncpa [#allocation4], 1 }

// kernel: a_call__.4
= control target key start
LH: loop header
LB: loop body
LE: loop exit
PB: predicated region body
PF: predicated region fallthrough
CT: control target
= control target key end

     0   :  { %13 = vsyncpa [#allocation4], 0  ;;  %s2949_s24 = smov [#allocation3]   ;;  %s3637_s0 = inlined_call_operand.vmem [shape: f32[8,8,128], index: 0, kind: input, shape index: {}]   ;;  %s3638_s1 = inlined_call_operand.vmem [shape: f32[8,128], index: 1, kind: input, shape index: {}]   ;;  %s3639_s2 = inlined_call_operand.hbm [shape: f32[128,384], index: 2, kind: input, shape index: {}]   ;;  %s3640_s3 = inlined_call_operand.vmem [shape: f32[128,384], index: 3, kind: input, shape index: {}]   ;;  %s3641_s4 = inlined_call_operand.vmem [shape: f32[1,384], index: 4, kind: input, shape index: {}]   ;;  %s3642_s5 = inlined_call_operand.vmem [shape: f32[1,384], index: 5, kind: input, shape index: {}]   ;;  %s3643_s6 = inlined_call_operand.vmem [shape: f32[8,8,128], index: 6, kind: output, shape index: {0}]   ;;  %s3644_s7 = inlined_call_operand.vmem [shape: f32[8,128], index: 7, kind: output, shape index: {1}]  }
   0x1   :  { %s23_s25 = sshll.u32 %s2949_s24, 4  ;;  %s2925_s28 = scalar_lea.hbm %s3639_s2, 6144  ;;  %s24_s25 = int_to_ptr.vmem [resolvable:$true] %s23_s25 }
   0x2   :  { %p2926_p0 = scmp.ne.s32.totalorder %s3639_s2, %s2925_s28  ;;  %p2929_p1 = scmp.lt.u32.totalorder %s2925_s28, %s3639_s2 }
   0x4   :  { %p2931_p2 = pnand %p2929_p1, %p2926_p0 }
   0x6   :  { %2934 = shalt.err (!%p2931_p2)
}
   0x7   :  { %s2935_s10 = scalar_lea.vmem %s24_s25, 6144  ;;  %p2940_p4 = scmp.lt.s32.totalorder %s24_s25, %s24_s25 }
   0x8   :  { %p2936_p3 = scmp.ne.s32.totalorder %s24_s25, %s2935_s10  ;;  %p2941_p5 = scmp.lt.s32.totalorder %s2935_s10, %s2935_s10 }
   0xa   :  { %p2942_p6 = por %p2941_p5, %p2940_p4 }
   0xc   :  { %p2943_p7 = pnand %p2942_p6, %p2936_p3 }
   0xe   :  { %2946 = shalt.err (!%p2943_p7)
}
   0xf   :  { %s2950_s11 = smov 384   ;;  %s2951_s12 = smov 24  }
  0x10   :  { %29 = dma.hbm_to_vmem [thread:$0]  %s3639_s2, 6144, %s24_s25, [#allocation4], %s2950_s11, %s2950_s11, %s2951_s12  }
  0x11   :  { %2947 = dma.done.wait [#allocation4], 6144  }
  0x12   :  { %2948 = vsyncadd [#allocation4], 4294961152  ;;  %v2952_v0 = vmov 0.0   ;;  %v48_v1 = vld [vmem:[#allocation3 + $0x8] sm:$0xff]  ;;  %v51_v2 = vld [vmem:[#allocation3 + $0x20] sm:$0xff]  ;;  %vm2954_vm0 = vmmov 0  }
  0x13   :  { %176 = vmatprep.mubr.f32.mxu0 %v2952_v0  ;;  %v47_v3 = vld [vmem:[#allocation3] sm:$0xff]  ;;  %v2279_v4 = vpack.c.bf16 %v51_v2, %v48_v1  ;;  %v50_v5 = vld [vmem:[#allocation3 + $0x18] sm:$0xff]  ;;  %v57_v7 = vld [vmem:[#allocation3 + $0x50] sm:$0xff] }
  0x14   :  { %v54_v6 = vld [vmem:[#allocation3 + $0x38] sm:$0xff]  ;;  %v2281_v8 = vpack.c.bf16 %v50_v5, %v47_v3  ;;  %v53_v10 = vld [vmem:[#allocation3 + $0x30] sm:$0xff]  ;;  %v56_v11 = vld [vmem:[#allocation3 + $0x48] sm:$0xff] }
  0x15   :  { %v2283_v9 = vpack.c.bf16 %v57_v7, %v54_v6  ;;  %v60_v12 = vld [vmem:[#allocation3 + $0x68] sm:$0xff]  ;;  %2280 = vmatprep.subr.bf16.mxu0 %v2279_v4  ;;  %v63_v13 = vld [vmem:[#allocation3 + $0x80] sm:$0xff]  ;;  %v2285_v14 = vpack.c.bf16 %v56_v11, %v53_v10  ;;  %v62_v17 = vld [vmem:[#allocation3 + $0x78] sm:$0xff] }
  0x16   :  { %2282 = vmatpush1.bf16.msra.mxu0 %v2281_v8  ;;  %v2287_v15 = vpack.c.bf16 %v63_v13, %v60_v12  ;;  %v59_v16 = vld [vmem:[#allocation3 + $0x60] sm:$0xff]  ;;  %v66_v18 = vld [vmem:[#allocation3 + $0x98] sm:$0xff]  ;;  %v69_v19 = vld [vmem:[#allocation3 + $0xb0] sm:$0xff] }
  0x17   :  { %2284 = vmatprep.subr.bf16.mxu0 %v2283_v9  ;;  %v2289_v20 = vpack.c.bf16 %v62_v17, %v59_v16  ;;  %v65_v21 = vld [vmem:[#allocation3 + $0x90] sm:$0xff]  ;;  %v2291_v22 = vpack.c.bf16 %v69_v19, %v66_v18  ;;  %v68_v23 = vld [vmem:[#allocation3 + $0xa8] sm:$0xff]  ;;  %v75_v27 = vld [vmem:[#allocation3 + $0xe0] sm:$0xff] }
  0x18   :  { %v49_v24 = vld [vmem:[#allocation3 + $0x10] sm:$0xff]  ;;  %v52_v25 = vld [vmem:[#allocation3 + $0x28] sm:$0xff]  ;;  %v55_v29 = vld [vmem:[#allocation3 + $0x40] sm:$0xff]  ;;  %v2293_v31 = vpack.c.bf16 %v68_v23, %v65_v21 }
  0x19   :  { %v72_v26 = vld [vmem:[#allocation3 + $0xc8] sm:$0xff]  ;;  %v2311_v28 = vpack.c.bf16 %v52_v25, %v49_v24  ;;  %v58_v30 = vld [vmem:[#allocation3 + $0x58] sm:$0xff]  ;;  %v71_v32 = vld [vmem:[#allocation3 + $0xc0] sm:$0xff] }
  0x1a   :  { %2286 = vmatpush1.bf16.msra.mxu0 %v2285_v14  ;;  %v2315_v33 = vpack.c.bf16 %v58_v30, %v55_v29  ;;  %v2295_v34 = vpack.c.bf16 %v75_v27, %v72_v26  ;;  %v74_v35 = vld [vmem:[#allocation3 + $0xd8] sm:$0xff]  ;;  %v61_v37 = vld [vmem:[#allocation3 + $0x70] sm:$0xff]  ;;  %v64_v40 = vld [vmem:[#allocation3 + $0x88] sm:$0xff] }
  0x1b   :  { %2288 = vmatprep.subr.bf16.mxu0 %v2287_v15  ;;  %2312 = vmatprep.subr.bf16.mxu1 %v2311_v28  ;;  %v3011_v36 = vld [vmem:[%s3637_s0] sm:$0xff]  ;;  %v81_v39 = vld [vmem:[#allocation3 + $0x110] sm:$0xff]  ;;  %v2319_v41 = vpack.c.bf16 %v64_v40, %v61_v37  ;;  %v2297_v42 = vpack.c.bf16 %v74_v35, %v71_v32  ;;  %v67_v43 = vld [vmem:[#allocation3 + $0xa0] sm:$0xff]  ;;  %v2953_v40 = vmov 0.0|0.0  }
  0x1c   :  { %2314 = vmatpush3.bf16.msra.mxu1 %v2311_v28  ;;  %v78_v38 = vld [vmem:[#allocation3 + $0xf8] sm:$0xff]  ;;  %1987 = vmatprep.mubr.f32.mxu1 %v3011_v36  ;;  %v77_v46 = vld [vmem:[#allocation3 + $0xf0] sm:$0xff]  ;;  %v80_v47 = vld [vmem:[#allocation3 + $0x108] sm:$0xff] }
  0x1d   :  { %2316 = vmatprep.subr.bf16.mxu1 %v2315_v33  ;;  %v70_v44 = vld [vmem:[#allocation3 + $0xb8] sm:$0xff]  ;;  %v2299_v45 = vpack.c.bf16 %v81_v39, %v78_v38  ;;  %v84_v48 = vld [vmem:[#allocation3 + $0x128] sm:$0xff]  ;;  %v87_v49 = vld [vmem:[#allocation3 + $0x140] sm:$0xff]  ;;  %v2301_v53 = vpack.c.bf16 %v80_v47, %v77_v46 }
  0x1e   :  { %2290 = vmatpush1.bf16.msra.mxu0 %v2289_v20  ;;  %v2323_v50 = vpack.c.bf16 %v70_v44, %v67_v43  ;;  %v73_v51 = vld [vmem:[#allocation3 + $0xd0] sm:$0xff]  ;;  %v76_v52 = vld [vmem:[#allocation3 + $0xe8] sm:$0xff]  ;;  %v2303_v54 = vpack.c.bf16 %v87_v49, %v84_v48  ;;  %v83_v55 = vld [vmem:[#allocation3 + $0x120] sm:$0xff] }
  0x1f   :  { %2292 = vmatprep.subr.bf16.mxu0 %v2291_v22  ;;  %v86_v56 = vld [vmem:[#allocation3 + $0x138] sm:$0xff]  ;;  %v93_v58 = vld [vmem:[#allocation3 + $0x170] sm:$0xff]  ;;  %v2327_v59 = vpack.c.bf16 %v76_v52, %v73_v51  ;;  %v79_v60 = vld [vmem:[#allocation3 + $0x100] sm:$0xff] }
  0x20   :  { %2318 = vmatpush3.bf16.msra.mxu1 %v2315_v33  ;;  %v90_v57 = vld [vmem:[#allocation3 + $0x158] sm:$0xff]  ;;  %v2305_v62 = vpack.c.bf16 %v86_v56, %v83_v55  ;;  %v89_v1 = vld [vmem:[#allocation3 + $0x150] sm:$0xff]  ;;  %v92_v2 = vld [vmem:[#allocation3 + $0x168] sm:$0xff] }
  0x21   :  { %2320 = vmatprep.subr.bf16.mxu1 %v2319_v41  ;;  %v82_v61 = vld [vmem:[#allocation3 + $0x118] sm:$0xff]  ;;  %v2307_v63 = vpack.c.bf16 %v93_v58, %v90_v57  ;;  %v355_v3 = vld [vmem:[%s3640_s3 + $0x8] sm:$0xff]  ;;  %v85_v6 = vld [vmem:[#allocation3 + $0x130] sm:$0xff]  ;;  %v2309_v8 = vpack.c.bf16 %v92_v2, %v89_v1 }
  0x22   :  { %2294 = vmatpush1.bf16.msra.mxu0 %v2293_v31  ;;  %v358_v4 = vld [vmem:[%s3640_s3 + $0x20] sm:$0xff]  ;;  %v2331_v5 = vpack.c.bf16 %v82_v61, %v79_v60  ;;  %v88_v7 = vld [vmem:[#allocation3 + $0x148] sm:$0xff]  ;;  %v357_v11 = vld [vmem:[%s3640_s3 + $0x18] sm:$0xff] }
  0x23   :  { %2296 = vmatprep.subr.bf16.mxu0 %v2295_v34  ;;  %v3020_v9 = vpack.c.bf16 %v358_v4, %v355_v3  ;;  %v354_v10 = vld [vmem:[%s3640_s3] sm:$0xff]  ;;  %v361_v12 = vld [vmem:[%s3640_s3 + $0x38] sm:$0xff]  ;;  %v364_v13 = vld [vmem:[%s3640_s3 + $0x50] sm:$0xff]  ;;  %v2335_v14 = vpack.c.bf16 %v88_v7, %v85_v6 }
  0x24   :  { %2322 = vmatpush3.bf16.msra.mxu1 %v2319_v41  ;;  %v91_v15 = vld [vmem:[#allocation3 + $0x160] sm:$0xff]  ;;  %v94_v16 = vld [vmem:[#allocation3 + $0x178] sm:$0xff]  ;;  %v3034_v17 = vpack.c.bf16 %v357_v11, %v354_v10  ;;  %v3037_v18 = vpack.c.bf16 %v364_v13, %v361_v12  ;;  %v360_v19 = vld [vmem:[%s3640_s3 + $0x30] sm:$0xff] }
  0x25   :  { %2324 = vmatprep.subr.bf16.mxu1 %v2323_v50  ;;  %v363_v20 = vld [vmem:[%s3640_s3 + $0x48] sm:$0xff]  ;;  %v370_v22 = vld [vmem:[%s3640_s3 + $0x80] sm:$0xff]  ;;  %v2339_v23 = vpack.c.bf16 %v94_v16, %v91_v15  ;;  %v369_v28 = vld [vmem:[%s3640_s3 + $0x78] sm:$0xff] }
  0x26   :  { %2298 = vmatpush1.bf16.msra.mxu0 %v2297_v42  ;;  %v367_v21 = vld [vmem:[%s3640_s3 + $0x68] sm:$0xff]  ;;  %v3057_v25 = vpack.c.bf16 %v363_v20, %v360_v19  ;;  %v366_v27 = vld [vmem:[%s3640_s3 + $0x60] sm:$0xff]  ;;  %v373_v29 = vld [vmem:[%s3640_s3 + $0x98] sm:$0xff] }
  0x27   :  { %2300 = vmatprep.subr.bf16.mxu0 %v2299_v45  ;;  %v40_v24 = vld [vmem:[%s3637_s0 + $0x8] sm:$0xff]  ;;  %v3060_v26 = vpack.c.bf16 %v370_v22, %v367_v21  ;;  %v376_v30 = vld [vmem:[%s3640_s3 + $0xb0] sm:$0xff]  ;;  %v3085_v34 = vpack.c.bf16 %v369_v28, %v366_v27  ;;  %v382_v39 = vld [vmem:[%s3640_s3 + $0xe0] sm:$0xff] }
  0x28   :  { %2326 = vmatpush3.bf16.msra.mxu1 %v2323_v50  ;;  %v356_v31 = vld [vmem:[%s3640_s3 + $0x10] sm:$0xff]  ;;  %v359_v32 = vld [vmem:[%s3640_s3 + $0x28] sm:$0xff]  ;;  %v3088_v35 = vpack.c.bf16 %v376_v30, %v373_v29  ;;  %v362_v42 = vld [vmem:[%s3640_s3 + $0x40] sm:$0xff] }
  0x29   :  { %2328 = vmatprep.subr.bf16.mxu1 %v2327_v59  ;;  %v41_v33 = vld [vmem:[%s3637_s0 + $0x10] sm:$0xff]  ;;  %v375_v37 = vld [vmem:[%s3640_s3 + $0xa8] sm:$0xff]  ;;  %v3103_v41 = vpack.c.bf16 %v359_v32, %v356_v31  ;;  %v365_v43 = vld [vmem:[%s3640_s3 + $0x58] sm:$0xff] }
  0x2a   :  { %2302 = vmatpush1.bf16.msra.mxu0 %v2301_v53  ;;  %v379_v38 = vld [vmem:[%s3640_s3 + $0xc8] sm:$0xff]  ;;  %v42_v44 = vld [vmem:[%s3637_s0 + $0x18] sm:$0xff]  ;;  %v378_v47 = vld [vmem:[%s3640_s3 + $0xc0] sm:$0xff]  ;;  %v3134_v51 = vpack.c.bf16 %v365_v43, %v362_v42 }
  0x2b   :  { %2304 = vmatprep.subr.bf16.mxu0 %v2303_v54  ;;  %v3119_v46 = vpack.c.bf16 %v382_v39, %v379_v38  ;;  %v381_v48 = vld [vmem:[%s3640_s3 + $0xd8] sm:$0xff]  ;;  %v388_v50 = vld [vmem:[%s3640_s3 + $0x110] sm:$0xff]  ;;  %v371_v53 = vld [vmem:[%s3640_s3 + $0x88] sm:$0xff] }
  0x2c   :  { %2330 = vmatpush3.bf16.msra.mxu1 %v2327_v59  ;;  %v385_v49 = vld [vmem:[%s3640_s3 + $0xf8] sm:$0xff]  ;;  %v368_v52 = vld [vmem:[%s3640_s3 + $0x70] sm:$0xff]  ;;  %v43_v54 = vld [vmem:[%s3637_s0 + $0x20] sm:$0xff]  ;;  %v3148_v55 = vpack.c.bf16 %v381_v48, %v378_v47 }
  0x2d   :  { %2332 = vmatprep.subr.bf16.mxu1 %v2331_v5  ;;  %v3151_v56 = vpack.c.bf16 %v388_v50, %v385_v49  ;;  %v384_v57 = vld [vmem:[%s3640_s3 + $0xf0] sm:$0xff]  ;;  %v387_v58 = vld [vmem:[%s3640_s3 + $0x108] sm:$0xff]  ;;  %v394_v60 = vld [vmem:[%s3640_s3 + $0x140] sm:$0xff]  ;;  %v3166_v61 = vpack.c.bf16 %v371_v53, %v368_v52 }
  0x2e   :  { %2306 = vmatpush1.bf16.msra.mxu0 %v2305_v62  ;;  %v391_v59 = vld [vmem:[%s3640_s3 + $0x128] sm:$0xff]  ;;  %v374_v62 = vld [vmem:[%s3640_s3 + $0xa0] sm:$0xff]  ;;  %v3180_v2 = vpack.c.bf16 %v387_v58, %v384_v57  ;;  %v45_v3 = vld [vmem:[%s3637_s0 + $0x30] sm:$0xff] }
  0x2f   :  { %2308 = vmatprep.subr.bf16.mxu0 %v2307_v63  ;;  %v377_v63 = vld [vmem:[%s3640_s3 + $0xb8] sm:$0xff]  ;;  %v44_v1 = vld [vmem:[%s3637_s0 + $0x28] sm:$0xff]  ;;  %v3186_v4 = vpack.c.bf16 %v394_v60, %v391_v59  ;;  %v380_v11 = vld [vmem:[%s3640_s3 + $0xd0] sm:$0xff] }
  0x30   :  { %2334 = vmatpush3.bf16.msra.mxu1 %v2331_v5  ;;  %v390_v5 = vld [vmem:[%s3640_s3 + $0x120] sm:$0xff]  ;;  %v393_v6 = vld [vmem:[%s3640_s3 + $0x138] sm:$0xff]  ;;  %v3201_v10 = vpack.c.bf16 %v377_v63, %v374_v62  ;;  %v383_v12 = vld [vmem:[%s3640_s3 + $0xe8] sm:$0xff] }
  0x31   :  { %2336 = vmatprep.subr.bf16.mxu1 %v2335_v14  ;;  %v397_v7 = vld [vmem:[%s3640_s3 + $0x158] sm:$0xff]  ;;  %v3212_v13 = vpack.c.bf16 %v393_v6, %v390_v5  ;;  %v396_v16 = vld [vmem:[%s3640_s3 + $0x150] sm:$0xff]  ;;  %v399_v19 = vld [vmem:[%s3640_s3 + $0x168] sm:$0xff]  ;;  %v3227_v20 = vpack.c.bf16 %v383_v12, %v380_v11 }
  0x32   :  { %2310 = vmatpush1.bf16.msra.mxu0 %v2309_v8  ;;  %v400_v8 = vld [vmem:[%s3640_s3 + $0x170] sm:$0xff]  ;;  %v386_v21 = vld [vmem:[%s3640_s3 + $0x100] sm:$0xff]  ;;  %v389_v22 = vld [vmem:[%s3640_s3 + $0x118] sm:$0xff] }
  0x33   :  { %2344 = vmatprep.subr.bf16.mxu0 %v3020_v9  ;;  %v3218_v15 = vpack.c.bf16 %v400_v8, %v397_v7  ;;  %v392_v27 = vld [vmem:[%s3640_s3 + $0x130] sm:$0xff]  ;;  %v395_v28 = vld [vmem:[%s3640_s3 + $0x148] sm:$0xff]  ;;  %v3258_v29 = vld [vmem:[%s3638_s1] sm:$0xff] }
  0x34   :  { %2338 = vmatpush3.bf16.msra.mxu1 %v2335_v14  ;;  %v46_v14 = vld [vmem:[%s3637_s0 + $0x38] sm:$0xff]  ;;  %v3262_v30 = vpack.c.bf16 %v395_v28, %v392_v27  ;;  %v398_v31 = vld [vmem:[%s3640_s3 + $0x160] sm:$0xff] }
  0x35   :  { %177 = vmatmul.mubr.f32.vlgmr.msra.gmra.mrb[0].mxu0 %v3011_v36  ;;  %2340 = vmatprep.subr.bf16.mxu1 %v2339_v23  ;;  %v372_v36 = vld [vmem:[%s3640_s3 + $0x90] sm:$0xff]  ;;  %v401_v32 = vld [vmem:[%s3640_s3 + $0x178] sm:$0xff]  ;;  %v95_v39 = vld [vmem:[%s3641_s4] sm:$0x7] }
  0x36   :  { %2346 = vmatpush1.bf16.msra.mxu0 %v3034_v17  ;;  %182 = vmatprep.mubr.f32.mxu0 %v2952_v0  ;;  %v3116_v45 = vpack.c.bf16 %v375_v37, %v372_v36  ;;  %v97_v36 = vlaneseq  ;;  %v402_v60 = vld [vmem:[%s3642_s5] sm:$0x7] }
  0x37   :  { %2348 = vmatprep.subr.bf16.mxu0 %v3037_v18 }
  0x38   :  { %2342 = vmatpush3.bf16.msra.mxu1 %v2339_v23  ;;  %v3240_v23 = vpack.c.bf16 %v399_v19, %v396_v16  ;;  %v98_v37 = vshrl.u32 %v97_v36, 7 }
  0x39   :  { %183 = vmatmul.mubr.f32.gmra.mrb[2].mxu0 %v40_v24  ;;  %2375 = vmatprep.subr.bf16.mxu1 %v2953_v40 }
  0x3a   :  { %2350 = vmatpush1.bf16.msra.mxu0 %v3057_v25  ;;  %188 = vmatprep.mubr.f32.mxu0 %v2952_v0  ;;  %v107_v38 = vsub.s32 2, %v98_v37  ;;  %v99_v59 = vsub.s32 0, %v98_v37 }
  0x3b   :  { %2352 = vmatprep.subr.bf16.mxu0 %v3060_v26  ;;  %1988 = vmatmul.mubr.f32.vlgmr.msra.gmra.mrb[0].mxu1 %v40_v24  ;;  %v3244_v24 = vpack.c.bf16 %v389_v22, %v386_v21 }
  0x3c   :  { %2377 = vmatpush3.bf16.msra.mxu1 %v3103_v41  ;;  %1990 = vmatprep.mubr.f32.mxu1 %v41_v33  ;;  %v108_v42 = vrot.slane %v95_v39, %v107_v38  ;;  %v100_v6 = vrot.slane %v95_v39, %v99_v59  ;;  %v411_v7 = vrot.slane %v402_v60, %v99_v59 }
  0x3d   :  { %189 = vmatmul.mubr.f32.gmra.mrb[4].mxu0 %v41_v33  ;;  %2378 = vmatprep.subr.bf16.mxu1 %v2953_v40  ;;  %v3276_v33 = vpack.c.bf16 %v401_v32, %v398_v31 }
  0x3e   :  { %2354 = vmatpush1.bf16.msra.mxu0 %v3085_v34  ;;  %194 = vmatprep.mubr.f32.mxu0 %v2952_v0  ;;  %v3334_v12 = vadd.f32 %v411_v7, %v100_v6 }
  0x3f   :  { %2356 = vmatprep.subr.bf16.mxu0 %v3088_v35  ;;  %1991 = vmatmul.mubr.f32.gmra.mrb[2].mxu1 %v42_v44 }
  0x40   :  { %2380 = vmatpush3.bf16.msra.mxu1 %v3134_v51  ;;  %1993 = vmatprep.mubr.f32.mxu1 %v43_v54 }
  0x41   :  { %195 = vmatmul.mubr.f32.gmra.mrb[6].mxu0 %v42_v44  ;;  %2381 = vmatprep.subr.bf16.mxu1 %v2953_v40 }
  0x42   :  { %2358 = vmatpush1.bf16.msra.mxu0 %v3116_v45  ;;  %200 = vmatprep.mubr.f32.mxu0 %v2952_v0 }
  0x43   :  { %2360 = vmatprep.subr.bf16.mxu0 %v3119_v46  ;;  %1994 = vmatmul.mubr.f32.gmra.mrb[4].mxu1 %v44_v1 }
  0x44   :  { %2383 = vmatpush3.bf16.msra.mxu1 %v3166_v61  ;;  %1996 = vmatprep.mubr.f32.mxu1 %v45_v3 }
  0x45   :  { %201 = vmatmul.mubr.f32.gmra.mrb[8].mxu0 %v43_v54  ;;  %2384 = vmatprep.subr.bf16.mxu1 %v2953_v40 }
  0x46   :  { %2362 = vmatpush1.bf16.msra.mxu0 %v3148_v55  ;;  %206 = vmatprep.mubr.f32.mxu0 %v2952_v0 }
  0x47   :  { %2364 = vmatprep.subr.bf16.mxu0 %v3151_v56  ;;  %1997 = vmatmul.mubr.f32.gmra.mrb[6].mxu1 %v46_v14 }
  0x48   :  { %2386 = vmatpush3.bf16.msra.mxu1 %v3201_v10  ;;  %2031 = vmatprep.mubr.msk.f32.mxu1 %vm2954_vm0, %v2952_v0 }
  0x49   :  { %207 = vmatmul.mubr.f32.gmra.mrb[10].mxu0 %v44_v1  ;;  %2387 = vmatprep.subr.bf16.mxu1 %v2953_v40 }
  0x4a   :  { %2366 = vmatpush1.bf16.msra.mxu0 %v3180_v2  ;;  %212 = vmatprep.mubr.f32.mxu0 %v2952_v0 }
  0x4b   :  { %2368 = vmatprep.subr.bf16.mxu0 %v3186_v4 }
  0x4c   :  { %2389 = vmatpush3.bf16.msra.mxu1 %v3227_v20 }
  0x4d   :  { %213 = vmatmul.mubr.f32.gmra.mrb[12].mxu0 %v45_v3  ;;  %2390 = vmatprep.subr.bf16.mxu1 %v2953_v40  ;;  %v103_v3 = vsub.s32 1, %v98_v37 }
  0x4e   :  { %2370 = vmatpush1.bf16.msra.mxu0 %v3212_v13  ;;  %218 = vmatprep.mubr.f32.mxu0 %v2952_v0 }
  0x4f   :  { %2372 = vmatprep.subr.bf16.mxu0 %v3218_v15  ;;  %v104_v8 = vrot.slane %v95_v39, %v103_v3  ;;  %v415_v11 = vrot.slane %v402_v60, %v103_v3  ;;  %v3340_v39 = vrot.slane %v402_v60, %v107_v38 }
  0x50   :  { %2392 = vmatpush3.bf16.msra.mxu1 %v3244_v24 }
  0x51   :  { %219 = vmatmul.mubr.f32.gmra.mrb[14].mxu0 %v46_v14  ;;  %2393 = vmatprep.subr.bf16.mxu1 %v2953_v40  ;;  %v3336_v16 = vadd.f32 %v415_v11, %v104_v8 }
  0x52   :  { %2374 = vmatpush1.bf16.msra.mxu0 %v3240_v23  ;;  %487 = vmatprep.mubr.f32.mxu0 %v2952_v0 }
  0x53   :  { %2400 = vmatprep.subr.bf16.mxu0 %v3020_v9 }
  0x54   :  { %2395 = vmatpush3.bf16.msra.mxu1 %v3262_v30 }
  0x55   :  { %488 = vmatmul.mubr.f32.vlgmr.msra.gmra.mrb[0].mxu0 %v3258_v29  ;;  %2396 = vmatprep.subr.bf16.mxu1 %v2953_v40 }
  0x56   :  { %2402 = vmatpush1.bf16.msra.mxu0 %v3034_v17  ;;  %654 = vmatprep.mubr.f32.mxu0 %v2952_v0 }
  0x57   :  { %2404 = vmatprep.subr.bf16.mxu0 %v3037_v18 }
  0x58   :  { %2398 = vmatpush3.bf16.msra.mxu1 %v3276_v33 }
  0x59   :  { %2431 = vmatprep.subr.bf16.mxu1 %v2953_v40 }
  0x5a   :  { %2406 = vmatpush1.bf16.msra.mxu0 %v3057_v25 }
  0x5b   :  { %2408 = vmatprep.subr.bf16.mxu0 %v3060_v26  ;;  %2032 = vmatmul.mubr.f32.vlgmr.msra.gmra.mrb[8].mxu1 %v3258_v29 }
  0x5c   :  { %2433 = vmatpush3.bf16.msra.mxu1 %v3103_v41  ;;  %2066 = vmatprep.mubr.msk.f32.mxu1 %vm2954_vm0, %v2952_v0 }
  0x5d   :  { %2434 = vmatprep.subr.bf16.mxu1 %v2953_v40 }
  0x5e   :  { %2410 = vmatpush1.bf16.msra.mxu0 %v3085_v34 }
  0x5f   :  { %2412 = vmatprep.subr.bf16.mxu0 %v3088_v35 }
  0x60   :  { %2436 = vmatpush3.bf16.msra.mxu1 %v3134_v51 }
  0x61   :  { %2437 = vmatprep.subr.bf16.mxu1 %v2953_v40 }
  0x62   :  { %2414 = vmatpush1.bf16.msra.mxu0 %v3116_v45 }
  0x63   :  { %2416 = vmatprep.subr.bf16.mxu0 %v3119_v46 }
  0x64   :  { %2439 = vmatpush3.bf16.msra.mxu1 %v3166_v61 }
  0x65   :  { %2440 = vmatprep.subr.bf16.mxu1 %v2953_v40 }
  0x66   :  { %2418 = vmatpush1.bf16.msra.mxu0 %v3148_v55 }
  0x67   :  { %2420 = vmatprep.subr.bf16.mxu0 %v3151_v56 }
  0x68   :  { %2442 = vmatpush3.bf16.msra.mxu1 %v3201_v10 }
  0x69   :  { %2443 = vmatprep.subr.bf16.mxu1 %v2953_v40 }
  0x6a   :  { %2422 = vmatpush1.bf16.msra.mxu0 %v3180_v2 }
  0x6b   :  { %2424 = vmatprep.subr.bf16.mxu0 %v3186_v4 }
  0x6c   :  { %2445 = vmatpush3.bf16.msra.mxu1 %v3227_v20 }
  0x6d   :  { %2446 = vmatprep.subr.bf16.mxu1 %v2953_v40 }
  0x6e   :  { %2426 = vmatpush1.bf16.msra.mxu0 %v3212_v13 }
  0x6f   :  { %2428 = vmatprep.subr.bf16.mxu0 %v3218_v15 }
  0x70   :  { %2448 = vmatpush3.bf16.msra.mxu1 %v3244_v24 }
  0x71   :  { %2449 = vmatprep.subr.bf16.mxu1 %v2953_v40 }
  0x72   :  { %2430 = vmatpush1.bf16.msra.mxu0 %v3240_v23 }
  0x73   :  { %2456 = vmatprep.subr.bf16.mxu0 %v3020_v9 }
  0x74   :  { %2451 = vmatpush3.bf16.msra.mxu1 %v3262_v30 }
  0x75   :  { %2452 = vmatprep.subr.bf16.mxu1 %v2953_v40 }
  0x78   :  { %2454 = vmatpush3.bf16.msra.mxu1 %v3276_v33 }
  0x79   :  { %2487 = vmatprep.subr.bf16.mxu1 %v2953_v40 }
 0x10e   :  { %v1989_v43 = vpop.f32.mrb[0].mxu1 }
 0x10f   :  { %v3317_v44 = vadd.f32 %v1989_v43, %v108_v42  ;;  %v291_v47 = vpop.f32.mrb[1].mxu1 }
 0x112   :  { %v1992_v48 = vpop.f32.mrb[2].mxu1 }
 0x113   :  { %v3319_v49 = vadd.f32 %v1992_v48, %v108_v42  ;;  %v301_v50 = vpop.f32.mrb[3].mxu1 }
 0x114   :  { %v3321_v52 = vadd.f32 %v301_v50, %v108_v42 }
 0x116   :  { %v1995_v53 = vpop.f32.mrb[4].mxu1 }
 0x117   :  { %v3323_v54 = vadd.f32 %v1995_v53, %v108_v42  ;;  %v311_v57 = vpop.f32.mrb[5].mxu1 }
 0x118   :  { %v3325_v58 = vadd.f32 %v311_v57, %v108_v42  ;;  %v292_v57 = vadd.f32 %v291_v47, %v108_v42 }
 0x11a   :  { %v1998_v62 = vpop.f32.mrb[6].mxu1 }
 0x11b   :  { %v3330_v63 = vadd.f32 %v1998_v62, %v108_v42  ;;  %v321_v1 = vpop.f32.mrb[7].mxu1 }
 0x11c   :  { %v3332_v5 = vadd.f32 %v321_v1, %v108_v42 }
 0x128   :  { %v489_v14 = vpop.f32.mrb[0].mxu0 }
 0x129   :  { %v2792_v19 = vadd.f32 %v3334_v12, %v489_v14  ;;  %v491_v21 = vpop.f32.mrb[1].mxu0 }
 0x12a   :  { %v2794_v27 = vadd.f32 %v3336_v16, %v491_v21 }
 0x12b   :  { %v1772_v22 = vmul.f32 -1.442695, %v2792_v19 }
 0x12c   :  { %v1773_v28 = vmul.f32 -1.442695, %v2794_v27 }
 0x12d   :  { %2845 = vpow2.f32 %v1772_v22 }
 0x12e   :  { %v560_v31 = vpop.f32.mrb[8].mxu1  ;;  %2847 = vpow2.f32 %v1773_v28 }
 0x12f   :  { %v2033_v32 = vpop.f32.mrb[9].mxu1  ;;  %v561_v50 = vadd.f32 %v560_v31, %v3340_v39 }
 0x137   :  { %v2846_v36 = vpop.eup %2845 }
 0x138   :  { %v568_v37 = vadd.f32 1.0, %v2846_v36  ;;  %v2848_v43 = vpop.eup %2847 }
 0x139   :  { %v575_v48 = vadd.f32 1.0, %v2848_v43 }
 0x13a   :  { %2849 = vrcp.f32 %v568_v37 }
 0x13b   :  { %2851 = vrcp.f32 %v575_v48 }
 0x144   :  { %v2850_v53 = vpop.eup %2849 }
 0x145   :  { %v578_v59 = vmul.f32 %v2850_v53, %v561_v50  ;;  %v2852_v1 = vpop.eup %2851 }
 0x146   :  { %v581_v3 = vsub.f32 1.0, %v2852_v1  ;;  %v583_v8 = vmul.f32 %v2852_v1, %v3258_v29 }
 0x147   :  { %v579_v62 = vadd.f32 %v578_v59, %v292_v57 }
 0x149   :  { %2853 = vtanh.f32 %v579_v62 }
 0x153   :  { %v2854_v6 = vpop.eup %2853 }
 0x154   :  { %v582_v7 = vmul.f32 %v2854_v6, %v581_v3 }
 0x156   :  { %v3344_v11 = vadd.f32 %v583_v8, %v582_v7 }
 0x158   :  { %585 = vst [vmem:[%s3643_s6] sm:$0xff] %v3344_v11  ;;  %655 = vmatmul.mubr.f32.vlgmr.msra.gmra.mrb[2].mxu0 %v3344_v11  ;;  %2067 = vmatmul.mubr.f32.vlgmr.msra.gmra.mrb[10].mxu1 %v3344_v11 }
 0x159   :  { %2458 = vmatpush1.bf16.msra.mxu0 %v3034_v17  ;;  %2489 = vmatpush3.bf16.msra.mxu1 %v3103_v41 }
 0x15a   :  { %2460 = vmatprep.subr.bf16.mxu0 %v3037_v18  ;;  %2490 = vmatprep.subr.bf16.mxu1 %v2953_v40 }
 0x15b   :  { %822 = vmatprep.mubr.f32.mxu0 %v2952_v0  ;;  %2101 = vmatprep.mubr.msk.f32.mxu1 %vm2954_vm0, %v2952_v0 }
 0x15d   :  { %2462 = vmatpush1.bf16.msra.mxu0 %v3057_v25  ;;  %2492 = vmatpush3.bf16.msra.mxu1 %v3134_v51 }
 0x15e   :  { %2464 = vmatprep.subr.bf16.mxu0 %v3060_v26  ;;  %2493 = vmatprep.subr.bf16.mxu1 %v2953_v40 }
 0x161   :  { %2466 = vmatpush1.bf16.msra.mxu0 %v3085_v34  ;;  %2495 = vmatpush3.bf16.msra.mxu1 %v3166_v61 }
 0x162   :  { %2468 = vmatprep.subr.bf16.mxu0 %v3088_v35  ;;  %2496 = vmatprep.subr.bf16.mxu1 %v2953_v40 }
 0x165   :  { %2470 = vmatpush1.bf16.msra.mxu0 %v3116_v45  ;;  %2498 = vmatpush3.bf16.msra.mxu1 %v3201_v10 }
 0x166   :  { %2472 = vmatprep.subr.bf16.mxu0 %v3119_v46  ;;  %2499 = vmatprep.subr.bf16.mxu1 %v2953_v40 }
 0x169   :  { %2474 = vmatpush1.bf16.msra.mxu0 %v3148_v55  ;;  %2501 = vmatpush3.bf16.msra.mxu1 %v3227_v20 }
 0x16a   :  { %2476 = vmatprep.subr.bf16.mxu0 %v3151_v56  ;;  %2502 = vmatprep.subr.bf16.mxu1 %v2953_v40 }
 0x16d   :  { %2478 = vmatpush1.bf16.msra.mxu0 %v3180_v2  ;;  %2504 = vmatpush3.bf16.msra.mxu1 %v3244_v24 }
 0x16e   :  { %2480 = vmatprep.subr.bf16.mxu0 %v3186_v4  ;;  %2505 = vmatprep.subr.bf16.mxu1 %v2953_v40 }
 0x171   :  { %2482 = vmatpush1.bf16.msra.mxu0 %v3212_v13  ;;  %2507 = vmatpush3.bf16.msra.mxu1 %v3262_v30 }
 0x172   :  { %2484 = vmatprep.subr.bf16.mxu0 %v3218_v15  ;;  %2508 = vmatprep.subr.bf16.mxu1 %v2953_v40 }
 0x175   :  { %2486 = vmatpush1.bf16.msra.mxu0 %v3240_v23  ;;  %2510 = vmatpush3.bf16.msra.mxu1 %v3276_v33 }
 0x176   :  { %2512 = vmatprep.subr.bf16.mxu0 %v3020_v9  ;;  %2543 = vmatprep.subr.bf16.mxu1 %v2953_v40 }
 0x22b   :  { %v656_v29 = vpop.f32.mrb[2].mxu0  ;;  %v727_v38 = vpop.f32.mrb[10].mxu1 }
 0x22c   :  { %v2796_v42 = vadd.f32 %v3334_v12, %v656_v29  ;;  %v658_v47 = vpop.f32.mrb[3].mxu0  ;;  %v2068_v60 = vpop.f32.mrb[11].mxu1  ;;  %v728_v32 = vadd.f32 %v727_v38, %v3340_v39 }
 0x22d   :  { %v2798_v19 = vadd.f32 %v3336_v16, %v658_v47 }
 0x22e   :  { %v1774_v14 = vmul.f32 -1.442695, %v2796_v42 }
 0x22f   :  { %v1775_v21 = vmul.f32 -1.442695, %v2798_v19 }
 0x230   :  { %2855 = vpow2.f32 %v1774_v14 }
 0x231   :  { %2857 = vpow2.f32 %v1775_v21 }
 0x23a   :  { %v2856_v22 = vpop.eup %2855 }
 0x23b   :  { %v735_v27 = vadd.f32 1.0, %v2856_v22  ;;  %v2858_v28 = vpop.eup %2857 }
 0x23c   :  { %v742_v31 = vadd.f32 1.0, %v2858_v28 }
 0x23d   :  { %2859 = vrcp.f32 %v735_v27 }
 0x23e   :  { %2861 = vrcp.f32 %v742_v31 }
 0x247   :  { %v2860_v36 = vpop.eup %2859 }
 0x248   :  { %v745_v37 = vmul.f32 %v2860_v36, %v728_v32  ;;  %v2862_v48 = vpop.eup %2861 }
 0x249   :  { %v748_v50 = vsub.f32 1.0, %v2862_v48  ;;  %v750_v59 = vmul.f32 %v2862_v48, %v3344_v11 }
 0x24a   :  { %v746_v43 = vadd.f32 %v745_v37, %v3317_v44 }
 0x24c   :  { %2863 = vtanh.f32 %v746_v43 }
 0x256   :  { %v2864_v53 = vpop.eup %2863 }
 0x257   :  { %v749_v57 = vmul.f32 %v2864_v53, %v748_v50 }
 0x259   :  { %v3392_v62 = vadd.f32 %v750_v59, %v749_v57 }
 0x25b   :  { %1776 = vst [vmem:[%s3643_s6 + $0x8] sm:$0xff] %v3392_v62  ;;  %823 = vmatmul.mubr.f32.vlgmr.msra.gmra.mrb[4].mxu0 %v3392_v62  ;;  %2102 = vmatmul.mubr.f32.vlgmr.msra.gmra.mrb[12].mxu1 %v3392_v62 }
 0x25c   :  { %2514 = vmatpush1.bf16.msra.mxu0 %v3034_v17  ;;  %2545 = vmatpush3.bf16.msra.mxu1 %v3103_v41 }
 0x25d   :  { %2516 = vmatprep.subr.bf16.mxu0 %v3037_v18  ;;  %2546 = vmatprep.subr.bf16.mxu1 %v2953_v40 }
 0x25e   :  { %990 = vmatprep.mubr.f32.mxu0 %v2952_v0  ;;  %2136 = vmatprep.mubr.msk.f32.mxu1 %vm2954_vm0, %v2952_v0 }
 0x260   :  { %2518 = vmatpush1.bf16.msra.mxu0 %v3057_v25  ;;  %2548 = vmatpush3.bf16.msra.mxu1 %v3134_v51 }
 0x261   :  { %2520 = vmatprep.subr.bf16.mxu0 %v3060_v26  ;;  %2549 = vmatprep.subr.bf16.mxu1 %v2953_v40 }
 0x264   :  { %2522 = vmatpush1.bf16.msra.mxu0 %v3085_v34  ;;  %2551 = vmatpush3.bf16.msra.mxu1 %v3166_v61 }
 0x265   :  { %2524 = vmatprep.subr.bf16.mxu0 %v3088_v35  ;;  %2552 = vmatprep.subr.bf16.mxu1 %v2953_v40 }
 0x268   :  { %2526 = vmatpush1.bf16.msra.mxu0 %v3116_v45  ;;  %2554 = vmatpush3.bf16.msra.mxu1 %v3201_v10 }
 0x269   :  { %2528 = vmatprep.subr.bf16.mxu0 %v3119_v46  ;;  %2555 = vmatprep.subr.bf16.mxu1 %v2953_v40 }
 0x26c   :  { %2530 = vmatpush1.bf16.msra.mxu0 %v3148_v55  ;;  %2557 = vmatpush3.bf16.msra.mxu1 %v3227_v20 }
 0x26d   :  { %2532 = vmatprep.subr.bf16.mxu0 %v3151_v56  ;;  %2558 = vmatprep.subr.bf16.mxu1 %v2953_v40 }
 0x270   :  { %2534 = vmatpush1.bf16.msra.mxu0 %v3180_v2  ;;  %2560 = vmatpush3.bf16.msra.mxu1 %v3244_v24 }
 0x271   :  { %2536 = vmatprep.subr.bf16.mxu0 %v3186_v4  ;;  %2561 = vmatprep.subr.bf16.mxu1 %v2953_v40 }
 0x274   :  { %2538 = vmatpush1.bf16.msra.mxu0 %v3212_v13  ;;  %2563 = vmatpush3.bf16.msra.mxu1 %v3262_v30 }
 0x275   :  { %2540 = vmatprep.subr.bf16.mxu0 %v3218_v15  ;;  %2564 = vmatprep.subr.bf16.mxu1 %v2953_v40 }
 0x278   :  { %2542 = vmatpush1.bf16.msra.mxu0 %v3240_v23  ;;  %2566 = vmatpush3.bf16.msra.mxu1 %v3276_v33 }
 0x279   :  { %2568 = vmatprep.subr.bf16.mxu0 %v3020_v9  ;;  %2599 = vmatprep.subr.bf16.mxu1 %v2953_v40 }
 0x32e   :  { %v824_v44 = vpop.f32.mrb[4].mxu0  ;;  %v895_v1 = vpop.f32.mrb[12].mxu1 }
 0x32f   :  { %v2800_v3 = vadd.f32 %v3334_v12, %v824_v44  ;;  %v826_v6 = vpop.f32.mrb[5].mxu0  ;;  %v2103_v7 = vpop.f32.mrb[13].mxu1  ;;  %v896_v14 = vadd.f32 %v895_v1, %v3340_v39 }
 0x330   :  { %v2802_v11 = vadd.f32 %v3336_v16, %v826_v6 }
 0x331   :  { %v1777_v8 = vmul.f32 -1.442695, %v2800_v3 }
 0x332   :  { %v1778_v29 = vmul.f32 -1.442695, %v2802_v11 }
 0x333   :  { %2865 = vpow2.f32 %v1777_v8 }
 0x334   :  { %2867 = vpow2.f32 %v1778_v29 }
 0x33d   :  { %v2866_v38 = vpop.eup %2865 }
 0x33e   :  { %v903_v42 = vadd.f32 1.0, %v2866_v38  ;;  %v2868_v47 = vpop.eup %2867 }
 0x33f   :  { %v910_v60 = vadd.f32 1.0, %v2868_v47 }
 0x340   :  { %2869 = vrcp.f32 %v903_v42 }
 0x341   :  { %2871 = vrcp.f32 %v910_v60 }
 0x34a   :  { %v2870_v19 = vpop.eup %2869 }
 0x34b   :  { %v913_v21 = vmul.f32 %v2870_v19, %v896_v14  ;;  %v2872_v27 = vpop.eup %2871 }
 0x34c   :  { %v916_v28 = vsub.f32 1.0, %v2872_v27  ;;  %v918_v36 = vmul.f32 %v2872_v27, %v3392_v62 }
 0x34d   :  { %v914_v22 = vadd.f32 %v913_v21, %v3321_v52 }
 0x34f   :  { %2873 = vtanh.f32 %v914_v22 }
 0x359   :  { %v2874_v31 = vpop.eup %2873 }
 0x35a   :  { %v917_v32 = vmul.f32 %v2874_v31, %v916_v28 }
 0x35c   :  { %v3440_v37 = vadd.f32 %v918_v36, %v917_v32 }
 0x35e   :  { %1779 = vst [vmem:[%s3643_s6 + $0x10] sm:$0xff] %v3440_v37  ;;  %991 = vmatmul.mubr.f32.vlgmr.msra.gmra.mrb[6].mxu0 %v3440_v37  ;;  %2137 = vmatmul.mubr.f32.vlgmr.msra.gmra.mrb[14].mxu1 %v3440_v37 }
 0x35f   :  { %2570 = vmatpush1.bf16.msra.mxu0 %v3034_v17  ;;  %2601 = vmatpush3.bf16.msra.mxu1 %v3103_v41 }
 0x360   :  { %2572 = vmatprep.subr.bf16.mxu0 %v3037_v18  ;;  %2602 = vmatprep.subr.bf16.mxu1 %v2953_v40 }
 0x361   :  { %1158 = vmatprep.mubr.f32.mxu0 %v2952_v0  ;;  %2171 = vmatprep.mubr.msk.f32.mxu1 %vm2954_vm0, %v2952_v0 }
 0x363   :  { %2574 = vmatpush1.bf16.msra.mxu0 %v3057_v25  ;;  %2604 = vmatpush3.bf16.msra.mxu1 %v3134_v51 }
 0x364   :  { %2576 = vmatprep.subr.bf16.mxu0 %v3060_v26  ;;  %2605 = vmatprep.subr.bf16.mxu1 %v2953_v40 }
 0x367   :  { %2578 = vmatpush1.bf16.msra.mxu0 %v3085_v34  ;;  %2607 = vmatpush3.bf16.msra.mxu1 %v3166_v61 }
 0x368   :  { %2580 = vmatprep.subr.bf16.mxu0 %v3088_v35  ;;  %2608 = vmatprep.subr.bf16.mxu1 %v2953_v40 }
 0x36b   :  { %2582 = vmatpush1.bf16.msra.mxu0 %v3116_v45  ;;  %2610 = vmatpush3.bf16.msra.mxu1 %v3201_v10 }
 0x36c   :  { %2584 = vmatprep.subr.bf16.mxu0 %v3119_v46  ;;  %2611 = vmatprep.subr.bf16.mxu1 %v2953_v40 }
 0x36f   :  { %2586 = vmatpush1.bf16.msra.mxu0 %v3148_v55  ;;  %2613 = vmatpush3.bf16.msra.mxu1 %v3227_v20 }
 0x370   :  { %2588 = vmatprep.subr.bf16.mxu0 %v3151_v56  ;;  %2614 = vmatprep.subr.bf16.mxu1 %v2953_v40 }
 0x373   :  { %2590 = vmatpush1.bf16.msra.mxu0 %v3180_v2  ;;  %2616 = vmatpush3.bf16.msra.mxu1 %v3244_v24 }
 0x374   :  { %2592 = vmatprep.subr.bf16.mxu0 %v3186_v4  ;;  %2617 = vmatprep.subr.bf16.mxu1 %v2953_v40 }
 0x377   :  { %2594 = vmatpush1.bf16.msra.mxu0 %v3212_v13  ;;  %2619 = vmatpush3.bf16.msra.mxu1 %v3262_v30 }
 0x378   :  { %2596 = vmatprep.subr.bf16.mxu0 %v3218_v15  ;;  %2620 = vmatprep.subr.bf16.mxu1 %v2953_v40 }
 0x37b   :  { %2598 = vmatpush1.bf16.msra.mxu0 %v3240_v23  ;;  %2622 = vmatpush3.bf16.msra.mxu1 %v3276_v33 }
 0x37c   :  { %2624 = vmatprep.subr.bf16.mxu0 %v3020_v9  ;;  %2655 = vmatprep.subr.bf16.mxu1 %v2953_v40 }
 0x431   :  { %v992_v52 = vpop.f32.mrb[6].mxu0  ;;  %v1063_v43 = vpop.f32.mrb[14].mxu1 }
 0x432   :  { %v2804_v48 = vadd.f32 %v3334_v12, %v992_v52  ;;  %v994_v50 = vpop.f32.mrb[7].mxu0  ;;  %v2138_v53 = vpop.f32.mrb[15].mxu1  ;;  %v1064_v7 = vadd.f32 %v1063_v43, %v3340_v39 }
 0x433   :  { %v2806_v59 = vadd.f32 %v3336_v16, %v994_v50 }
 0x434   :  { %v1780_v57 = vmul.f32 -1.442695, %v2804_v48 }
 0x435   :  { %v1781_v62 = vmul.f32 -1.442695, %v2806_v59 }
 0x436   :  { %2875 = vpow2.f32 %v1780_v57 }
 0x437   :  { %2877 = vpow2.f32 %v1781_v62 }
 0x440   :  { %v2876_v44 = vpop.eup %2875 }
 0x441   :  { %v1071_v1 = vadd.f32 1.0, %v2876_v44  ;;  %v2878_v3 = vpop.eup %2877 }
 0x442   :  { %v1078_v6 = vadd.f32 1.0, %v2878_v3 }
 0x443   :  { %2879 = vrcp.f32 %v1071_v1 }
 0x444   :  { %2881 = vrcp.f32 %v1078_v6 }
 0x44d   :  { %v2880_v8 = vpop.eup %2879 }
 0x44e   :  { %v1081_v11 = vmul.f32 %v2880_v8, %v1064_v7  ;;  %v2882_v38 = vpop.eup %2881 }
 0x44f   :  { %v1084_v42 = vsub.f32 1.0, %v2882_v38  ;;  %v1086_v14 = vmul.f32 %v2882_v38, %v3440_v37 }
 0x450   :  { %v1082_v29 = vadd.f32 %v1081_v11, %v3319_v49 }
 0x452   :  { %2883 = vtanh.f32 %v1082_v29 }
 0x45c   :  { %v2884_v47 = vpop.eup %2883 }
 0x45d   :  { %v1085_v60 = vmul.f32 %v2884_v47, %v1084_v42 }
 0x45f   :  { %v3488_v19 = vadd.f32 %v1086_v14, %v1085_v60 }
 0x461   :  { %1782 = vst [vmem:[%s3643_s6 + $0x18] sm:$0xff] %v3488_v19  ;;  %1159 = vmatmul.mubr.f32.vlgmr.msra.gmra.mrb[8].mxu0 %v3488_v19  ;;  %2172 = vmatmul.mubr.f32.vlgmr.msra.gmra.mrb[16].mxu1 %v3488_v19 }
 0x462   :  { %2626 = vmatpush1.bf16.msra.mxu0 %v3034_v17  ;;  %2657 = vmatpush3.bf16.msra.mxu1 %v3103_v41 }
 0x463   :  { %2628 = vmatprep.subr.bf16.mxu0 %v3037_v18  ;;  %2658 = vmatprep.subr.bf16.mxu1 %v2953_v40 }
 0x464   :  { %1326 = vmatprep.mubr.f32.mxu0 %v2952_v0  ;;  %2206 = vmatprep.mubr.msk.f32.mxu1 %vm2954_vm0, %v2952_v0 }
 0x466   :  { %2630 = vmatpush1.bf16.msra.mxu0 %v3057_v25  ;;  %2660 = vmatpush3.bf16.msra.mxu1 %v3134_v51 }
 0x467   :  { %2632 = vmatprep.subr.bf16.mxu0 %v3060_v26  ;;  %2661 = vmatprep.subr.bf16.mxu1 %v2953_v40 }
 0x46a   :  { %2634 = vmatpush1.bf16.msra.mxu0 %v3085_v34  ;;  %2663 = vmatpush3.bf16.msra.mxu1 %v3166_v61 }
 0x46b   :  { %2636 = vmatprep.subr.bf16.mxu0 %v3088_v35  ;;  %2664 = vmatprep.subr.bf16.mxu1 %v2953_v40 }
 0x46e   :  { %2638 = vmatpush1.bf16.msra.mxu0 %v3116_v45  ;;  %2666 = vmatpush3.bf16.msra.mxu1 %v3201_v10 }
 0x46f   :  { %2640 = vmatprep.subr.bf16.mxu0 %v3119_v46  ;;  %2667 = vmatprep.subr.bf16.mxu1 %v2953_v40 }
 0x472   :  { %2642 = vmatpush1.bf16.msra.mxu0 %v3148_v55  ;;  %2669 = vmatpush3.bf16.msra.mxu1 %v3227_v20 }
 0x473   :  { %2644 = vmatprep.subr.bf16.mxu0 %v3151_v56  ;;  %2670 = vmatprep.subr.bf16.mxu1 %v2953_v40 }
 0x476   :  { %2646 = vmatpush1.bf16.msra.mxu0 %v3180_v2  ;;  %2672 = vmatpush3.bf16.msra.mxu1 %v3244_v24 }
 0x477   :  { %2648 = vmatprep.subr.bf16.mxu0 %v3186_v4  ;;  %2673 = vmatprep.subr.bf16.mxu1 %v2953_v40 }
 0x47a   :  { %2650 = vmatpush1.bf16.msra.mxu0 %v3212_v13  ;;  %2675 = vmatpush3.bf16.msra.mxu1 %v3262_v30 }
 0x47b   :  { %2652 = vmatprep.subr.bf16.mxu0 %v3218_v15  ;;  %2676 = vmatprep.subr.bf16.mxu1 %v2953_v40 }
 0x47e   :  { %2654 = vmatpush1.bf16.msra.mxu0 %v3240_v23  ;;  %2678 = vmatpush3.bf16.msra.mxu1 %v3276_v33 }
 0x47f   :  { %2680 = vmatprep.subr.bf16.mxu0 %v3020_v9  ;;  %2711 = vmatprep.subr.bf16.mxu1 %v2953_v40 }
 0x534   :  { %v1160_v49 = vpop.f32.mrb[8].mxu0  ;;  %v1231_v21 = vpop.f32.mrb[16].mxu1 }
 0x535   :  { %v2808_v22 = vadd.f32 %v3334_v12, %v1160_v49  ;;  %v1162_v27 = vpop.f32.mrb[9].mxu0  ;;  %v2173_v28 = vpop.f32.mrb[17].mxu1  ;;  %v1232_v50 = vadd.f32 %v1231_v21, %v3340_v39 }
 0x536   :  { %v2810_v32 = vadd.f32 %v3336_v16, %v1162_v27 }
 0x537   :  { %v1783_v31 = vmul.f32 -1.442695, %v2808_v22 }
 0x538   :  { %v1784_v36 = vmul.f32 -1.442695, %v2810_v32 }
 0x539   :  { %2885 = vpow2.f32 %v1783_v31 }
 0x53a   :  { %2887 = vpow2.f32 %v1784_v36 }
 0x543   :  { %v2886_v37 = vpop.eup %2885 }
 0x544   :  { %v1239_v52 = vadd.f32 1.0, %v2886_v37  ;;  %v2888_v43 = vpop.eup %2887 }
 0x545   :  { %v1246_v48 = vadd.f32 1.0, %v2888_v43 }
 0x546   :  { %2889 = vrcp.f32 %v1239_v52 }
 0x547   :  { %2891 = vrcp.f32 %v1246_v48 }
 0x550   :  { %v2890_v53 = vpop.eup %2889 }
 0x551   :  { %v1249_v57 = vmul.f32 %v2890_v53, %v1232_v50  ;;  %v2892_v62 = vpop.eup %2891 }
 0x552   :  { %v1252_v44 = vsub.f32 1.0, %v2892_v62  ;;  %v1254_v6 = vmul.f32 %v2892_v62, %v3488_v19 }
 0x553   :  { %v1250_v59 = vadd.f32 %v1249_v57, %v3325_v58 }
 0x555   :  { %2893 = vtanh.f32 %v1250_v59 }
 0x55f   :  { %v2894_v1 = vpop.eup %2893 }
 0x560   :  { %v1253_v3 = vmul.f32 %v2894_v1, %v1252_v44 }
 0x562   :  { %v3536_v7 = vadd.f32 %v1254_v6, %v1253_v3 }
 0x564   :  { %1785 = vst [vmem:[%s3643_s6 + $0x20] sm:$0xff] %v3536_v7  ;;  %1327 = vmatmul.mubr.f32.vlgmr.msra.gmra.mrb[10].mxu0 %v3536_v7  ;;  %2207 = vmatmul.mubr.f32.vlgmr.msra.gmra.mrb[18].mxu1 %v3536_v7 }
 0x565   :  { %2682 = vmatpush1.bf16.msra.mxu0 %v3034_v17  ;;  %2713 = vmatpush3.bf16.msra.mxu1 %v3103_v41 }
 0x566   :  { %2684 = vmatprep.subr.bf16.mxu0 %v3037_v18  ;;  %2714 = vmatprep.subr.bf16.mxu1 %v2953_v40 }
 0x567   :  { %1494 = vmatprep.mubr.f32.mxu0 %v2952_v0  ;;  %2241 = vmatprep.mubr.msk.f32.mxu1 %vm2954_vm0, %v2952_v0 }
 0x569   :  { %2686 = vmatpush1.bf16.msra.mxu0 %v3057_v25  ;;  %2716 = vmatpush3.bf16.msra.mxu1 %v3134_v51 }
 0x56a   :  { %2688 = vmatprep.subr.bf16.mxu0 %v3060_v26  ;;  %2717 = vmatprep.subr.bf16.mxu1 %v2953_v40 }
 0x56d   :  { %2690 = vmatpush1.bf16.msra.mxu0 %v3085_v34  ;;  %2719 = vmatpush3.bf16.msra.mxu1 %v3166_v61 }
 0x56e   :  { %2692 = vmatprep.subr.bf16.mxu0 %v3088_v35  ;;  %2720 = vmatprep.subr.bf16.mxu1 %v2953_v40 }
 0x571   :  { %2694 = vmatpush1.bf16.msra.mxu0 %v3116_v45  ;;  %2722 = vmatpush3.bf16.msra.mxu1 %v3201_v10 }
 0x572   :  { %2696 = vmatprep.subr.bf16.mxu0 %v3119_v46  ;;  %2723 = vmatprep.subr.bf16.mxu1 %v2953_v40 }
 0x575   :  { %2698 = vmatpush1.bf16.msra.mxu0 %v3148_v55  ;;  %2725 = vmatpush3.bf16.msra.mxu1 %v3227_v20 }
 0x576   :  { %2700 = vmatprep.subr.bf16.mxu0 %v3151_v56  ;;  %2726 = vmatprep.subr.bf16.mxu1 %v2953_v40 }
 0x579   :  { %2702 = vmatpush1.bf16.msra.mxu0 %v3180_v2  ;;  %2728 = vmatpush3.bf16.msra.mxu1 %v3244_v24 }
 0x57a   :  { %2704 = vmatprep.subr.bf16.mxu0 %v3186_v4  ;;  %2729 = vmatprep.subr.bf16.mxu1 %v2953_v40 }
 0x57d   :  { %2706 = vmatpush1.bf16.msra.mxu0 %v3212_v13  ;;  %2731 = vmatpush3.bf16.msra.mxu1 %v3262_v30 }
 0x57e   :  { %2708 = vmatprep.subr.bf16.mxu0 %v3218_v15  ;;  %2732 = vmatprep.subr.bf16.mxu1 %v2953_v40 }
 0x581   :  { %2710 = vmatpush1.bf16.msra.mxu0 %v3240_v23  ;;  %2734 = vmatpush3.bf16.msra.mxu1 %v3276_v33 }
 0x582   :  { %2736 = vmatprep.subr.bf16.mxu0 %v3020_v9  ;;  %2767 = vmatprep.subr.bf16.mxu1 %v2953_v40 }
 0x637   :  { %v1328_v58 = vpop.f32.mrb[10].mxu0  ;;  %v1399_v8 = vpop.f32.mrb[18].mxu1 }
 0x638   :  { %v2812_v11 = vadd.f32 %v3334_v12, %v1328_v58  ;;  %v1330_v29 = vpop.f32.mrb[11].mxu0  ;;  %v2208_v38 = vpop.f32.mrb[19].mxu1  ;;  %v1400_v9 = vadd.f32 %v1399_v8, %v3340_v39 }
 0x639   :  { %v2814_v47 = vadd.f32 %v3336_v16, %v1330_v29 }
 0x63a   :  { %v1786_v42 = vmul.f32 -1.442695, %v2812_v11 }
 0x63b   :  { %v1787_v60 = vmul.f32 -1.442695, %v2814_v47 }
 0x63c   :  { %2895 = vpow2.f32 %v1786_v42 }
 0x63d   :  { %2897 = vpow2.f32 %v1787_v60 }
 0x646   :  { %v2896_v14 = vpop.eup %2895 }
 0x647   :  { %v1407_v19 = vadd.f32 1.0, %v2896_v14  ;;  %v2898_v49 = vpop.eup %2897 }
 0x648   :  { %v1414_v21 = vadd.f32 1.0, %v2898_v49 }
 0x649   :  { %2899 = vrcp.f32 %v1407_v19 }
 0x64a   :  { %2901 = vrcp.f32 %v1414_v21 }
 0x653   :  { %v2900_v22 = vpop.eup %2899 }
 0x654   :  { %v1417_v27 = vmul.f32 %v2900_v22, %v1400_v9  ;;  %v2902_v31 = vpop.eup %2901 }
 0x655   :  { %v1420_v32 = vsub.f32 1.0, %v2902_v31  ;;  %v1422_v52 = vmul.f32 %v2902_v31, %v3536_v7 }
 0x656   :  { %v1418_v28 = vadd.f32 %v1417_v27, %v3323_v54 }
 0x658   :  { %2903 = vtanh.f32 %v1418_v28 }
 0x662   :  { %v2904_v36 = vpop.eup %2903 }
 0x663   :  { %v1421_v37 = vmul.f32 %v2904_v36, %v1420_v32 }
 0x665   :  { %v1423_v43 = vadd.f32 %v1422_v52, %v1421_v37 }
 0x667   :  { %1788 = vst [vmem:[%s3643_s6 + $0x28] sm:$0xff] %v1423_v43  ;;  %1495 = vmatmul.mubr.f32.vlgmr.msra.gmra.mrb[12].mxu0 %v1423_v43  ;;  %2242 = vmatmul.mubr.f32.vlgmr.msra.gmra.mrb[20].mxu1 %v1423_v43 }
 0x668   :  { %2738 = vmatpush1.bf16.msra.mxu0 %v3034_v17  ;;  %2769 = vmatpush3.bf16.msra.mxu1 %v3103_v41 }
 0x669   :  { %2740 = vmatprep.subr.bf16.mxu0 %v3037_v18  ;;  %2770 = vmatprep.subr.bf16.mxu1 %v2953_v40 }
 0x66a   :  { %1662 = vmatprep.mubr.f32.mxu0 %v2952_v0  ;;  %2276 = vmatprep.mubr.msk.f32.mxu1 %vm2954_vm0, %v2952_v0 }
 0x66c   :  { %2742 = vmatpush1.bf16.msra.mxu0 %v3057_v25  ;;  %2772 = vmatpush3.bf16.msra.mxu1 %v3134_v51 }
 0x66d   :  { %2744 = vmatprep.subr.bf16.mxu0 %v3060_v26  ;;  %2773 = vmatprep.subr.bf16.mxu1 %v2953_v40 }
 0x670   :  { %2746 = vmatpush1.bf16.msra.mxu0 %v3085_v34  ;;  %2775 = vmatpush3.bf16.msra.mxu1 %v3166_v61 }
 0x671   :  { %2748 = vmatprep.subr.bf16.mxu0 %v3088_v35  ;;  %2776 = vmatprep.subr.bf16.mxu1 %v2953_v40 }
 0x674   :  { %2750 = vmatpush1.bf16.msra.mxu0 %v3116_v45  ;;  %2778 = vmatpush3.bf16.msra.mxu1 %v3201_v10 }
 0x675   :  { %2752 = vmatprep.subr.bf16.mxu0 %v3119_v46  ;;  %2779 = vmatprep.subr.bf16.mxu1 %v2953_v40 }
 0x678   :  { %2754 = vmatpush1.bf16.msra.mxu0 %v3148_v55  ;;  %2781 = vmatpush3.bf16.msra.mxu1 %v3227_v20 }
 0x679   :  { %2756 = vmatprep.subr.bf16.mxu0 %v3151_v56  ;;  %2782 = vmatprep.subr.bf16.mxu1 %v2953_v40 }
 0x67c   :  { %2758 = vmatpush1.bf16.msra.mxu0 %v3180_v2  ;;  %2784 = vmatpush3.bf16.msra.mxu1 %v3244_v24 }
 0x67d   :  { %2760 = vmatprep.subr.bf16.mxu0 %v3186_v4  ;;  %2785 = vmatprep.subr.bf16.mxu1 %v2953_v40 }
 0x680   :  { %2762 = vmatpush1.bf16.msra.mxu0 %v3212_v13  ;;  %2787 = vmatpush3.bf16.msra.mxu1 %v3262_v30 }
 0x681   :  { %2764 = vmatprep.subr.bf16.mxu0 %v3218_v15  ;;  %2788 = vmatprep.subr.bf16.mxu1 %v2953_v40 }
 0x684   :  { %2766 = vmatpush1.bf16.msra.mxu0 %v3240_v23  ;;  %2790 = vmatpush3.bf16.msra.mxu1 %v3276_v33 }
 0x73a   :  { %v1496_v0 = vpop.f32.mrb[12].mxu0  ;;  %v1567_v17 = vpop.f32.mrb[20].mxu1 }
 0x73b   :  { %v2816_v18 = vadd.f32 %v3334_v12, %v1496_v0  ;;  %v1498_v25 = vpop.f32.mrb[13].mxu0  ;;  %v2243_v26 = vpop.f32.mrb[21].mxu1  ;;  %v1568_v55 = vadd.f32 %v1567_v17, %v3340_v39 }
 0x73c   :  { %v2818_v35 = vadd.f32 %v3336_v16, %v1498_v25 }
 0x73d   :  { %v1789_v34 = vmul.f32 -1.442695, %v2816_v18 }
 0x73e   :  { %v1790_v41 = vmul.f32 -1.442695, %v2818_v35 }
 0x73f   :  { %2905 = vpow2.f32 %v1789_v34 }
 0x740   :  { %2907 = vpow2.f32 %v1790_v41 }
 0x749   :  { %v2906_v45 = vpop.eup %2905 }
 0x74a   :  { %v1575_v46 = vadd.f32 1.0, %v2906_v45  ;;  %v2908_v40 = vpop.eup %2907 }
 0x74b   :  { %v1582_v51 = vadd.f32 1.0, %v2908_v40 }
 0x74c   :  { %2909 = vrcp.f32 %v1575_v46 }
 0x74d   :  { %2911 = vrcp.f32 %v1582_v51 }
 0x756   :  { %v2910_v56 = vpop.eup %2909 }
 0x757   :  { %v1585_v61 = vmul.f32 %v2910_v56, %v1568_v55  ;;  %v2912_v4 = vpop.eup %2911 }
 0x758   :  { %v1588_v10 = vsub.f32 1.0, %v2912_v4  ;;  %v1590_v20 = vmul.f32 %v2912_v4, %v1423_v43 }
 0x759   :  { %v1586_v2 = vadd.f32 %v1585_v61, %v3332_v5 }
 0x75b   :  { %2913 = vtanh.f32 %v1586_v2 }
 0x765   :  { %v2914_v13 = vpop.eup %2913 }
 0x766   :  { %v1589_v15 = vmul.f32 %v2914_v13, %v1588_v10 }
 0x768   :  { %v1591_v23 = vadd.f32 %v1590_v20, %v1589_v15 }
 0x76a   :  { %1791 = vst [vmem:[%s3643_s6 + $0x30] sm:$0xff] %v1591_v23  ;;  %1663 = vmatmul.mubr.f32.vlgmr.msra.gmra.mrb[14].mxu0 %v1591_v23  ;;  %2277 = vmatmul.mubr.f32.vlgmr.msra.gmra.mrb[22].mxu1 %v1591_v23 }
 0x83d   :  { %v1664_v24 = vpop.f32.mrb[14].mxu0  ;;  %v1735_v30 = vpop.f32.mrb[22].mxu1 }
 0x83e   :  { %v2820_v33 = vadd.f32 %v3334_v12, %v1664_v24  ;;  %v1666_v54 = vpop.f32.mrb[15].mxu0  ;;  %v2278_v48 = vpop.f32.mrb[23].mxu1  ;;  %v1736_v1 = vadd.f32 %v1735_v30, %v3340_v39 }
 0x83f   :  { %v2822_v50 = vadd.f32 %v3336_v16, %v1666_v54 }
 0x840   :  { %v1792_v5 = vmul.f32 -1.442695, %v2820_v33 }
 0x841   :  { %v1793_v53 = vmul.f32 -1.442695, %v2822_v50 }
 0x842   :  { %2915 = vpow2.f32 %v1792_v5 }
 0x843   :  { %2917 = vpow2.f32 %v1793_v53 }
 0x84c   :  { %v2916_v57 = vpop.eup %2915 }
 0x84d   :  { %v1743_v59 = vadd.f32 1.0, %v2916_v57  ;;  %v2918_v62 = vpop.eup %2917 }
 0x84e   :  { %v1750_v44 = vadd.f32 1.0, %v2918_v62 }
 0x84f   :  { %2919 = vrcp.f32 %v1743_v59 }
 0x850   :  { %2921 = vrcp.f32 %v1750_v44 }
 0x859   :  { %v2920_v3 = vpop.eup %2919 }
 0x85a   :  { %v1753_v6 = vmul.f32 %v2920_v3, %v1736_v1  ;;  %v2922_v7 = vpop.eup %2921 }
 0x85b   :  { %v1756_v58 = vsub.f32 1.0, %v2922_v7  ;;  %v1758_v11 = vmul.f32 %v2922_v7, %v1591_v23 }
 0x85c   :  { %v1754_v12 = vadd.f32 %v1753_v6, %v3330_v63 }
 0x85e   :  { %2923 = vtanh.f32 %v1754_v12 }
 0x868   :  { %v2924_v8 = vpop.eup %2923 }
 0x869   :  { %v1757_v16 = vmul.f32 %v2924_v8, %v1756_v58 }
 0x86b   :  { %v1759_v29 = vadd.f32 %v1758_v11, %v1757_v16 }
 0x86d   :  { %1794 = vst [vmem:[%s3643_s6 + $0x38] sm:$0xff] %v1759_v29  ;;  %1762 = vst [vmem:[%s3644_s7] sm:$0xff] %v1759_v29 }
 0x86e   :  { %1771 = vsyncpa [#allocation4], 1 }

// kernel: a_call__.5
= control target key start
LH: loop header
LB: loop body
LE: loop exit
PB: predicated region body
PF: predicated region fallthrough
CT: control target
= control target key end

     0   :  { %13 = vsyncpa [#allocation5], 0  ;;  %s5854_s27 = smov [#allocation4]   ;;  %s7714_s0 = inlined_call_operand.vmem [shape: f32[8,128], index: 0, kind: input, shape index: {}]   ;;  %s7715_s1 = inlined_call_operand.vmem [shape: f32[2,8,128], index: 1, kind: input, shape index: {}]   ;;  %s7716_s2 = inlined_call_operand.hbm [shape: f32[2,128,384], index: 2, kind: input, shape index: {}]   ;;  %s7717_s3 = inlined_call_operand.vmem [shape: f32[2,128,384], index: 3, kind: input, shape index: {}]   ;;  %s7718_s4 = inlined_call_operand.vmem [shape: f32[2,1,384], index: 4, kind: input, shape index: {}]   ;;  %s7719_s5 = inlined_call_operand.vmem [shape: f32[2,1,384], index: 5, kind: input, shape index: {}]   ;;  %s7720_s6 = inlined_call_operand.vmem [shape: f32[128,128], index: 6, kind: input, shape index: {}]   ;;  %s7721_s7 = inlined_call_operand.vmem [shape: f32[1,128], index: 7, kind: input, shape index: {}]   ;;  %s7722_s8 = inlined_call_operand.vmem [shape: f32[32,128], index: 8, kind: output, shape index: {}]  }
   0x1   :  { %s23_s28 = sshll.u32 %s5854_s27, 4  ;;  %s5830_s9 = scalar_lea.hbm %s7716_s2, 12288  ;;  %s24_s28 = int_to_ptr.vmem [resolvable:$true] %s23_s28 }
   0x2   :  { %p5831_p0 = scmp.ne.s32.totalorder %s7716_s2, %s5830_s9  ;;  %p5834_p1 = scmp.lt.u32.totalorder %s5830_s9, %s7716_s2 }
   0x4   :  { %p5836_p2 = pnand %p5834_p1, %p5831_p0 }
   0x6   :  { %5839 = shalt.err (!%p5836_p2)
}
   0x7   :  { %s5840_s14 = scalar_lea.vmem %s24_s28, 12288  ;;  %p5845_p4 = scmp.lt.s32.totalorder %s24_s28, %s24_s28 }
   0x8   :  { %p5841_p3 = scmp.ne.s32.totalorder %s24_s28, %s5840_s14  ;;  %p5846_p5 = scmp.lt.s32.totalorder %s5840_s14, %s5840_s14 }
   0xa   :  { %p5847_p6 = por %p5846_p5, %p5845_p4 }
   0xc   :  { %p5848_p7 = pnand %p5847_p6, %p5841_p3 }
   0xe   :  { %5851 = shalt.err (!%p5848_p7)
}
   0xf   :  { %s5855_s15 = smov 384   ;;  %s5856_s16 = smov 24  }
  0x10   :  { %29 = dma.hbm_to_vmem [thread:$0]  %s7716_s2, 12288, %s24_s28, [#allocation5], %s5855_s15, %s5855_s15, %s5856_s16  }
  0x11   :  { %5852 = dma.done.wait [#allocation5], 12288  }
  0x12   :  { %5853 = vsyncadd [#allocation5], 4294955008  ;;  %v7723_v0 = vmov 0.0   ;;  %v50_v1 = vld [vmem:[#allocation4 + $0x8] sm:$0xff]  ;;  %v53_v2 = vld [vmem:[#allocation4 + $0x20] sm:$0xff]  ;;  %vm5859_vm0 = vmmov 0  }
  0x13   :  { %178 = vmatprep.mubr.f32.mxu1 %v7723_v0  ;;  %384 = vmatprep.mubr.f32.mxu0 %v7723_v0  ;;  %v49_v3 = vld [vmem:[#allocation4] sm:$0xff]  ;;  %v5919_v4 = vpack.c.bf16 %v53_v2, %v50_v1  ;;  %v52_v5 = vld [vmem:[#allocation4 + $0x18] sm:$0xff]  ;;  %v59_v7 = vld [vmem:[#allocation4 + $0x50] sm:$0xff] }
  0x14   :  { %v56_v6 = vld [vmem:[#allocation4 + $0x38] sm:$0xff]  ;;  %v5921_v8 = vpack.c.bf16 %v52_v5, %v49_v3  ;;  %v256_v10 = vld [vmem:[%s7717_s3 + $0x8] sm:$0xff]  ;;  %v55_v12 = vld [vmem:[#allocation4 + $0x30] sm:$0xff] }
  0x15   :  { %v4772_v9 = vpack.c.bf16 %v59_v7, %v56_v6  ;;  %v259_v11 = vld [vmem:[%s7717_s3 + $0x20] sm:$0xff]  ;;  %4769 = vmatprep.subr.bf16.mxu1 %v5919_v4  ;;  %v58_v14 = vld [vmem:[#allocation4 + $0x48] sm:$0xff]  ;;  %v258_v16 = vld [vmem:[%s7717_s3 + $0x18] sm:$0xff] }
  0x16   :  { %v4824_v13 = vpack.c.bf16 %v259_v11, %v256_v10  ;;  %v255_v15 = vld [vmem:[%s7717_s3] sm:$0xff]  ;;  %4771 = vmatpush1.bf16.msra.mxu1 %v5921_v8  ;;  %v5937_v17 = vpack.c.bf16 %v58_v14, %v55_v12  ;;  %v62_v19 = vld [vmem:[#allocation4 + $0x68] sm:$0xff]  ;;  %v65_v20 = vld [vmem:[#allocation4 + $0x80] sm:$0xff] }
  0x17   :  { %v4826_v18 = vpack.c.bf16 %v258_v16, %v255_v15  ;;  %v262_v21 = vld [vmem:[%s7717_s3 + $0x38] sm:$0xff]  ;;  %4773 = vmatprep.subr.bf16.mxu1 %v4772_v9  ;;  %v5942_v22 = vpack.c.bf16 %v65_v20, %v62_v19  ;;  %v265_v23 = vld [vmem:[%s7717_s3 + $0x50] sm:$0xff]  ;;  %v61_v24 = vld [vmem:[#allocation4 + $0x60] sm:$0xff] }
  0x18   :  { %4825 = vmatprep.subr.bf16.mxu0 %v4824_v13  ;;  %v64_v25 = vld [vmem:[#allocation4 + $0x78] sm:$0xff]  ;;  %v4828_v26 = vpack.c.bf16 %v265_v23, %v262_v21  ;;  %v261_v27 = vld [vmem:[%s7717_s3 + $0x30] sm:$0xff]  ;;  %v264_v28 = vld [vmem:[%s7717_s3 + $0x48] sm:$0xff] }
  0x19   :  { %4827 = vmatpush1.bf16.msra.mxu0 %v4826_v18  ;;  %v68_v29 = vld [vmem:[#allocation4 + $0x98] sm:$0xff]  ;;  %v4830_v30 = vpack.c.bf16 %v264_v28, %v261_v27  ;;  %v71_v31 = vld [vmem:[#allocation4 + $0xb0] sm:$0xff]  ;;  %v268_v32 = vld [vmem:[%s7717_s3 + $0x68] sm:$0xff]  ;;  %v5960_v34 = vpack.c.bf16 %v64_v25, %v61_v24 }
  0x1a   :  { %v271_v33 = vld [vmem:[%s7717_s3 + $0x80] sm:$0xff]  ;;  %4775 = vmatpush1.bf16.msra.mxu1 %v5937_v17  ;;  %4829 = vmatprep.subr.bf16.mxu0 %v4828_v26  ;;  %v67_v36 = vld [vmem:[#allocation4 + $0x90] sm:$0xff]  ;;  %v4780_v38 = vpack.c.bf16 %v71_v31, %v68_v29  ;;  %v70_v39 = vld [vmem:[#allocation4 + $0xa8] sm:$0xff] }
  0x1b   :  { %v4832_v35 = vpack.c.bf16 %v271_v33, %v268_v32  ;;  %v267_v37 = vld [vmem:[%s7717_s3 + $0x60] sm:$0xff]  ;;  %4777 = vmatprep.subr.bf16.mxu1 %v5942_v22  ;;  %v270_v40 = vld [vmem:[%s7717_s3 + $0x78] sm:$0xff]  ;;  %v74_v41 = vld [vmem:[#allocation4 + $0xc8] sm:$0xff]  ;;  %v5982_v49 = vpack.c.bf16 %v70_v39, %v67_v36 }
  0x1c   :  { %v4834_v42 = vpack.c.bf16 %v270_v40, %v267_v37  ;;  %v77_v43 = vld [vmem:[#allocation4 + $0xe0] sm:$0xff]  ;;  %v274_v44 = vld [vmem:[%s7717_s3 + $0x98] sm:$0xff]  ;;  %v277_v45 = vld [vmem:[%s7717_s3 + $0xb0] sm:$0xff] }
  0x1d   :  { %4831 = vmatpush1.bf16.msra.mxu0 %v4830_v30  ;;  %v4836_v46 = vpack.c.bf16 %v277_v45, %v274_v44  ;;  %v273_v47 = vld [vmem:[%s7717_s3 + $0x90] sm:$0xff]  ;;  %v276_v48 = vld [vmem:[%s7717_s3 + $0xa8] sm:$0xff]  ;;  %v5987_v51 = vpack.c.bf16 %v77_v43, %v74_v41  ;;  %v76_v53 = vld [vmem:[#allocation4 + $0xd8] sm:$0xff]  ;;  %v7726_v43 = vmov 0.0|0.0  }
  0x1e   :  { %4833 = vmatprep.subr.bf16.mxu0 %v4832_v35  ;;  %4779 = vmatpush1.bf16.msra.mxu1 %v5960_v34  ;;  %v280_v50 = vld [vmem:[%s7717_s3 + $0xc8] sm:$0xff]  ;;  %v283_v54 = vld [vmem:[%s7717_s3 + $0xe0] sm:$0xff]  ;;  %v4838_v55 = vpack.c.bf16 %v276_v48, %v273_v47  ;;  %v83_v57 = vld [vmem:[#allocation4 + $0x110] sm:$0xff] }
  0x1f   :  { %4781 = vmatprep.subr.bf16.mxu1 %v4780_v38  ;;  %v73_v52 = vld [vmem:[#allocation4 + $0xc0] sm:$0xff]  ;;  %v80_v56 = vld [vmem:[#allocation4 + $0xf8] sm:$0xff]  ;;  %v4840_v58 = vpack.c.bf16 %v283_v54, %v280_v50  ;;  %v282_v60 = vld [vmem:[%s7717_s3 + $0xd8] sm:$0xff] }
  0x20   :  { %v279_v59 = vld [vmem:[%s7717_s3 + $0xc0] sm:$0xff]  ;;  %v5999_v61 = vpack.c.bf16 %v76_v53, %v73_v52  ;;  %v286_v62 = vld [vmem:[%s7717_s3 + $0xf8] sm:$0xff]  ;;  %v289_v63 = vld [vmem:[%s7717_s3 + $0x110] sm:$0xff]  ;;  %v6008_v1 = vpack.c.bf16 %v83_v57, %v80_v56 }
  0x21   :  { %4835 = vmatpush1.bf16.msra.mxu0 %v4834_v42  ;;  %v79_v2 = vld [vmem:[#allocation4 + $0xf0] sm:$0xff]  ;;  %v82_v3 = vld [vmem:[#allocation4 + $0x108] sm:$0xff]  ;;  %v4842_v5 = vpack.c.bf16 %v282_v60, %v279_v59  ;;  %v89_v7 = vld [vmem:[#allocation4 + $0x140] sm:$0xff]  ;;  %v4844_v9 = vpack.c.bf16 %v289_v63, %v286_v62 }
  0x22   :  { %4837 = vmatprep.subr.bf16.mxu0 %v4836_v46  ;;  %4783 = vmatpush1.bf16.msra.mxu1 %v5982_v49  ;;  %v86_v6 = vld [vmem:[#allocation4 + $0x128] sm:$0xff]  ;;  %v288_v11 = vld [vmem:[%s7717_s3 + $0x108] sm:$0xff]  ;;  %v6017_v12 = vpack.c.bf16 %v82_v3, %v79_v2  ;;  %v295_v14 = vld [vmem:[%s7717_s3 + $0x140] sm:$0xff] }
  0x23   :  { %4785 = vmatprep.subr.bf16.mxu1 %v5987_v51  ;;  %v285_v10 = vld [vmem:[%s7717_s3 + $0xf0] sm:$0xff]  ;;  %v292_v13 = vld [vmem:[%s7717_s3 + $0x128] sm:$0xff]  ;;  %v6026_v15 = vpack.c.bf16 %v89_v7, %v86_v6  ;;  %v88_v18 = vld [vmem:[#allocation4 + $0x138] sm:$0xff] }
  0x24   :  { %v85_v16 = vld [vmem:[#allocation4 + $0x120] sm:$0xff]  ;;  %v4846_v19 = vpack.c.bf16 %v288_v11, %v285_v10  ;;  %v92_v20 = vld [vmem:[#allocation4 + $0x158] sm:$0xff]  ;;  %v95_v21 = vld [vmem:[#allocation4 + $0x170] sm:$0xff]  ;;  %v4848_v23 = vpack.c.bf16 %v295_v14, %v292_v13 }
  0x25   :  { %4839 = vmatpush1.bf16.msra.mxu0 %v4838_v55  ;;  %v291_v24 = vld [vmem:[%s7717_s3 + $0x120] sm:$0xff]  ;;  %v294_v25 = vld [vmem:[%s7717_s3 + $0x138] sm:$0xff]  ;;  %v6035_v26 = vpack.c.bf16 %v88_v18, %v85_v16  ;;  %v301_v28 = vld [vmem:[%s7717_s3 + $0x170] sm:$0xff]  ;;  %v6044_v29 = vpack.c.bf16 %v95_v21, %v92_v20 }
  0x26   :  { %4841 = vmatprep.subr.bf16.mxu0 %v4840_v58  ;;  %4787 = vmatpush1.bf16.msra.mxu1 %v5999_v61  ;;  %v298_v27 = vld [vmem:[%s7717_s3 + $0x158] sm:$0xff]  ;;  %v94_v31 = vld [vmem:[#allocation4 + $0x168] sm:$0xff]  ;;  %v4850_v32 = vpack.c.bf16 %v294_v25, %v291_v24  ;;  %v300_v36 = vld [vmem:[%s7717_s3 + $0x168] sm:$0xff] }
  0x27   :  { %4789 = vmatprep.subr.bf16.mxu1 %v6008_v1  ;;  %v91_v30 = vld [vmem:[#allocation4 + $0x150] sm:$0xff]  ;;  %v4852_v33 = vpack.c.bf16 %v301_v28, %v298_v27  ;;  %v297_v35 = vld [vmem:[%s7717_s3 + $0x150] sm:$0xff]  ;;  %v47_v41 = vld [vmem:[%s7714_s0] sm:$0xff] }
  0x28   :  { %v6053_v37 = vpack.c.bf16 %v94_v31, %v91_v30  ;;  %v51_v38 = vld [vmem:[#allocation4 + $0x10] sm:$0xff]  ;;  %v54_v39 = vld [vmem:[#allocation4 + $0x28] sm:$0xff]  ;;  %v4854_v40 = vpack.c.bf16 %v300_v36, %v297_v35  ;;  %v57_v44 = vld [vmem:[#allocation4 + $0x40] sm:$0xff] }
  0x29   :  { %4843 = vmatpush1.bf16.msra.mxu0 %v4842_v5  ;;  %v6060_v42 = vpack.c.bf16 %v54_v39, %v51_v38  ;;  %v60_v45 = vld [vmem:[#allocation4 + $0x58] sm:$0xff]  ;;  %v63_v48 = vld [vmem:[#allocation4 + $0x70] sm:$0xff]  ;;  %v66_v50 = vld [vmem:[#allocation4 + $0x88] sm:$0xff] }
  0x2a   :  { %4845 = vmatprep.subr.bf16.mxu0 %v4844_v9  ;;  %4791 = vmatpush1.bf16.msra.mxu1 %v6017_v12  ;;  %v6066_v46 = vld [vmem:[%s7715_s1] sm:$0xff]  ;;  %v6069_v47 = vpack.c.bf16 %v60_v45, %v57_v44  ;;  %v6077_v52 = vpack.c.bf16 %v66_v50, %v63_v48  ;;  %v69_v53 = vld [vmem:[#allocation4 + $0xa0] sm:$0xff]  ;;  %v75_v56 = vld [vmem:[#allocation4 + $0xd0] sm:$0xff] }
  0x2b   :  { %4793 = vmatprep.subr.bf16.mxu1 %v6026_v15  ;;  %v72_v54 = vld [vmem:[#allocation4 + $0xb8] sm:$0xff]  ;;  %v78_v57 = vld [vmem:[#allocation4 + $0xe8] sm:$0xff]  ;;  %v81_v59 = vld [vmem:[#allocation4 + $0x100] sm:$0xff] }
  0x2c   :  { %v6081_v55 = vpack.c.bf16 %v72_v54, %v69_v53  ;;  %v6085_v58 = vpack.c.bf16 %v78_v57, %v75_v56  ;;  %v84_v60 = vld [vmem:[#allocation4 + $0x118] sm:$0xff]  ;;  %v87_v63 = vld [vmem:[#allocation4 + $0x130] sm:$0xff]  ;;  %v90_v2 = vld [vmem:[#allocation4 + $0x148] sm:$0xff] }
  0x2d   :  { %4847 = vmatpush1.bf16.msra.mxu0 %v4846_v19  ;;  %v6089_v62 = vpack.c.bf16 %v84_v60, %v81_v59  ;;  %v6093_v3 = vpack.c.bf16 %v90_v2, %v87_v63  ;;  %v93_v5 = vld [vmem:[#allocation4 + $0x160] sm:$0xff]  ;;  %v96_v6 = vld [vmem:[#allocation4 + $0x178] sm:$0xff]  ;;  %v257_v9 = vld [vmem:[%s7717_s3 + $0x10] sm:$0xff] }
  0x2e   :  { %4849 = vmatprep.subr.bf16.mxu0 %v4848_v23  ;;  %4795 = vmatpush1.bf16.msra.mxu1 %v6035_v26  ;;  %v6097_v7 = vpack.c.bf16 %v96_v6, %v93_v5  ;;  %v260_v10 = vld [vmem:[%s7717_s3 + $0x28] sm:$0xff]  ;;  %v263_v13 = vld [vmem:[%s7717_s3 + $0x40] sm:$0xff]  ;;  %v266_v14 = vld [vmem:[%s7717_s3 + $0x58] sm:$0xff] }
  0x2f   :  { %4797 = vmatprep.subr.bf16.mxu1 %v6044_v29  ;;  %v6107_v11 = vpack.c.bf16 %v260_v10, %v257_v9  ;;  %v6117_v16 = vpack.c.bf16 %v266_v14, %v263_v13  ;;  %v269_v18 = vld [vmem:[%s7717_s3 + $0x70] sm:$0xff]  ;;  %v272_v19 = vld [vmem:[%s7717_s3 + $0x88] sm:$0xff]  ;;  %v275_v21 = vld [vmem:[%s7717_s3 + $0xa0] sm:$0xff] }
  0x30   :  { %v6129_v20 = vpack.c.bf16 %v272_v19, %v269_v18  ;;  %v278_v23 = vld [vmem:[%s7717_s3 + $0xb8] sm:$0xff]  ;;  %v281_v25 = vld [vmem:[%s7717_s3 + $0xd0] sm:$0xff]  ;;  %v284_v27 = vld [vmem:[%s7717_s3 + $0xe8] sm:$0xff] }
  0x31   :  { %4851 = vmatpush1.bf16.msra.mxu0 %v4850_v32  ;;  %v6139_v24 = vpack.c.bf16 %v278_v23, %v275_v21  ;;  %v6149_v28 = vpack.c.bf16 %v284_v27, %v281_v25  ;;  %v287_v30 = vld [vmem:[%s7717_s3 + $0x100] sm:$0xff]  ;;  %v290_v31 = vld [vmem:[%s7717_s3 + $0x118] sm:$0xff]  ;;  %v296_v35 = vld [vmem:[%s7717_s3 + $0x148] sm:$0xff] }
  0x32   :  { %4853 = vmatprep.subr.bf16.mxu0 %v4852_v33  ;;  %4799 = vmatpush1.bf16.msra.mxu1 %v6053_v37  ;;  %v6159_v32 = vpack.c.bf16 %v290_v31, %v287_v30  ;;  %v293_v33 = vld [vmem:[%s7717_s3 + $0x130] sm:$0xff]  ;;  %v299_v38 = vld [vmem:[%s7717_s3 + $0x160] sm:$0xff]  ;;  %v302_v39 = vld [vmem:[%s7717_s3 + $0x178] sm:$0xff] }
  0x33   :  { %4800 = vmatprep.subr.bf16.mxu1 %v7726_v43  ;;  %v6169_v36 = vpack.c.bf16 %v296_v35, %v293_v33  ;;  %v490_v44 = vld [vmem:[#allocation4 + $0x1a0] sm:$0xff]  ;;  %v489_v50 = vld [vmem:[#allocation4 + $0x198] sm:$0xff]  ;;  %v488_v53 = vld [vmem:[#allocation4 + $0x190] sm:$0xff] }
  0x34   :  { %v486_v45 = vld [vmem:[#allocation4 + $0x180] sm:$0xff]  ;;  %v491_v54 = vld [vmem:[#allocation4 + $0x1a8] sm:$0xff]  ;;  %v493_v59 = vld [vmem:[#allocation4 + $0x1b8] sm:$0xff] }
  0x35   :  { %4855 = vmatpush1.bf16.msra.mxu0 %v4854_v40  ;;  %179 = vmatmul.mubr.f32.vlgmr.msra.gmra.mrb[0].mxu1 %v47_v41  ;;  %v6179_v40 = vpack.c.bf16 %v302_v39, %v299_v38  ;;  %v6189_v56 = vpack.c.bf16 %v489_v50, %v486_v45  ;;  %v6191_v57 = vpack.c.bf16 %v491_v54, %v488_v53  ;;  %v496_v60 = vld [vmem:[#allocation4 + $0x1d0] sm:$0xff]  ;;  %v495_v5 = vld [vmem:[#allocation4 + $0x1c8] sm:$0xff]  ;;  %v494_v6 = vld [vmem:[#allocation4 + $0x1c0] sm:$0xff] }
  0x36   :  { %4802 = vmatpush3.bf16.msra.mxu1 %v6060_v42  ;;  %4202 = vmatprep.mubr.msk.f32.mxu1 %vm5859_vm0, %v7723_v0  ;;  %v492_v63 = vld [vmem:[#allocation4 + $0x1b0] sm:$0xff]  ;;  %v6194_v2 = vpack.c.bf16 %v496_v60, %v493_v59  ;;  %v497_v9 = vld [vmem:[#allocation4 + $0x1d8] sm:$0xff]  ;;  %v499_v14 = vld [vmem:[#allocation4 + $0x1e8] sm:$0xff] }
  0x37   :  { %4803 = vmatprep.subr.bf16.mxu1 %v7726_v43  ;;  %v6198_v10 = vpack.c.bf16 %v495_v5, %v492_v63  ;;  %v6200_v13 = vpack.c.bf16 %v497_v9, %v494_v6  ;;  %v502_v18 = vld [vmem:[#allocation4 + $0x200] sm:$0xff]  ;;  %v501_v23 = vld [vmem:[#allocation4 + $0x1f8] sm:$0xff]  ;;  %v500_v25 = vld [vmem:[#allocation4 + $0x1f0] sm:$0xff] }
  0x38   :  { %385 = vmatmul.mubr.f32.vlgmr.msra.gmra.mrb[0].mxu0 %v6066_v46  ;;  %v498_v19 = vld [vmem:[#allocation4 + $0x1e0] sm:$0xff]  ;;  %v6204_v21 = vpack.c.bf16 %v502_v18, %v499_v14  ;;  %v503_v27 = vld [vmem:[#allocation4 + $0x208] sm:$0xff]  ;;  %v505_v33 = vld [vmem:[#allocation4 + $0x218] sm:$0xff] }
  0x39   :  { %616 = vmatprep.mubr.f32.mxu0 %v7723_v0  ;;  %v6208_v30 = vpack.c.bf16 %v501_v23, %v498_v19  ;;  %v6210_v31 = vpack.c.bf16 %v503_v27, %v500_v25  ;;  %v508_v35 = vld [vmem:[#allocation4 + $0x230] sm:$0xff]  ;;  %v506_v45 = vld [vmem:[#allocation4 + $0x220] sm:$0xff]  ;;  %v509_v50 = vld [vmem:[#allocation4 + $0x238] sm:$0xff] }
  0x3a   :  { %4805 = vmatpush3.bf16.msra.mxu1 %v6069_v47  ;;  %v6217_v38 = vpack.c.bf16 %v508_v35, %v505_v33  ;;  %v504_v39 = vld [vmem:[#allocation4 + $0x210] sm:$0xff]  ;;  %v6222_v53 = vpack.c.bf16 %v509_v50, %v506_v45  ;;  %v511_v54 = vld [vmem:[#allocation4 + $0x248] sm:$0xff]  ;;  %v514_v59 = vld [vmem:[#allocation4 + $0x260] sm:$0xff] }
  0x3b   :  { %4806 = vmatprep.subr.bf16.mxu1 %v7726_v43  ;;  %7780 = vst [vmem:[#allocation7_spill] sm:$0xff] %v6208_v30  ;;  %7781 = vst [vmem:[#allocation8_spill] sm:$0xff] %v6210_v31  ;;  %v6226_v60 = vpack.c.bf16 %v514_v59, %v511_v54  ;;  %v510_v63 = vld [vmem:[#allocation4 + $0x240] sm:$0xff]  ;;  %v513_v5 = vld [vmem:[#allocation4 + $0x258] sm:$0xff] }
  0x3c   :  { %7782 = vst [vmem:[#allocation9_spill] sm:$0xff] %v6217_v38  ;;  %7784 = vst [vmem:[#allocation11_spill] sm:$0xff] %v6222_v53  ;;  %v6228_v6 = vpack.c.bf16 %v513_v5, %v510_v63  ;;  %v512_v9 = vld [vmem:[#allocation4 + $0x250] sm:$0xff]  ;;  %v515_v14 = vld [vmem:[#allocation4 + $0x268] sm:$0xff] }
  0x3d   :  { %7785 = vst [vmem:[#allocation12_spill] sm:$0xff] %v6226_v60  ;;  %v6232_v18 = vpack.c.bf16 %v515_v14, %v512_v9  ;;  %v517_v19 = vld [vmem:[#allocation4 + $0x278] sm:$0xff]  ;;  %v520_v23 = vld [vmem:[#allocation4 + $0x290] sm:$0xff]  ;;  %v519_v33 = vld [vmem:[#allocation4 + $0x288] sm:$0xff] }
  0x3e   :  { %4808 = vmatpush3.bf16.msra.mxu1 %v6077_v52  ;;  %7786 = vst [vmem:[#allocation13_spill] sm:$0xff] %v6228_v6  ;;  %v6236_v25 = vpack.c.bf16 %v520_v23, %v517_v19  ;;  %v516_v27 = vld [vmem:[#allocation4 + $0x270] sm:$0xff]  ;;  %v518_v35 = vld [vmem:[#allocation4 + $0x280] sm:$0xff]  ;;  %v523_v45 = vld [vmem:[#allocation4 + $0x2a8] sm:$0xff] }
  0x3f   :  { %4809 = vmatprep.subr.bf16.mxu1 %v7726_v43  ;;  %7787 = vst [vmem:[#allocation14_spill] sm:$0xff] %v6232_v18  ;;  %v526_v50 = vld [vmem:[#allocation4 + $0x2c0] sm:$0xff]  ;;  %v525_v5 = vld [vmem:[#allocation4 + $0x2b8] sm:$0xff]  ;;  %v524_v9 = vld [vmem:[#allocation4 + $0x2b0] sm:$0xff] }
  0x40   :  { %7788 = vst [vmem:[#allocation15_spill] sm:$0xff] %v6236_v25  ;;  %v6244_v59 = vpack.c.bf16 %v526_v50, %v523_v45  ;;  %v522_v63 = vld [vmem:[#allocation4 + $0x2a0] sm:$0xff]  ;;  %v527_v19 = vld [vmem:[#allocation4 + $0x2c8] sm:$0xff]  ;;  %v529_v23 = vld [vmem:[#allocation4 + $0x2d8] sm:$0xff] }
  0x41   :  { %v6247_v14 = vpack.c.bf16 %v525_v5, %v522_v63  ;;  %v531_v45 = vld [vmem:[#allocation4 + $0x2e8] sm:$0xff]  ;;  %v530_v50 = vld [vmem:[#allocation4 + $0x2e0] sm:$0xff]  ;;  %v3668_v5 = vld [vmem:[%s7717_s3 + $0x1a0] sm:$0xff] }
  0x42   :  { %4811 = vmatpush3.bf16.msra.mxu1 %v6081_v55  ;;  %7791 = vst [vmem:[#allocation18_spill] sm:$0xff] %v6244_v59  ;;  %v3665_v63 = vld [vmem:[%s7717_s3 + $0x188] sm:$0xff] }
  0x43   :  { %4812 = vmatprep.subr.bf16.mxu1 %v7726_v43  ;;  %7792 = vst [vmem:[#allocation19_spill] sm:$0xff] %v6247_v14 }
  0x46   :  { %4814 = vmatpush3.bf16.msra.mxu1 %v6085_v58 }
  0x47   :  { %4815 = vmatprep.subr.bf16.mxu1 %v7726_v43 }
  0x4a   :  { %4817 = vmatpush3.bf16.msra.mxu1 %v6089_v62 }
  0x4b   :  { %4818 = vmatprep.subr.bf16.mxu1 %v7726_v43 }
  0x4e   :  { %4820 = vmatpush3.bf16.msra.mxu1 %v6093_v3 }
  0x4f   :  { %4821 = vmatprep.subr.bf16.mxu1 %v7726_v43 }
  0x52   :  { %4823 = vmatpush3.bf16.msra.mxu1 %v6097_v7 }
  0x53   :  { %4856 = vmatprep.subr.bf16.mxu1 %v7726_v43 }
  0x55   :  { %4203 = vmatmul.mubr.f32.vlgmr.msra.gmra.mrb[2].mxu1 %v47_v41  ;;  %v487_v41 = vld [vmem:[#allocation4 + $0x188] sm:$0xff] }
  0x56   :  { %4858 = vmatpush3.bf16.msra.mxu1 %v6107_v11  ;;  %4237 = vmatprep.mubr.msk.f32.mxu1 %vm5859_vm0, %v7723_v0  ;;  %v6187_v48 = vpack.c.bf16 %v490_v44, %v487_v41  ;;  %v507_v41 = vld [vmem:[#allocation4 + $0x228] sm:$0xff] }
  0x57   :  { %4859 = vmatprep.subr.bf16.mxu1 %v7726_v43  ;;  %v6219_v44 = vpack.c.bf16 %v507_v41, %v504_v39  ;;  %v6238_v39 = vpack.c.bf16 %v519_v33, %v516_v27  ;;  %v521_v41 = vld [vmem:[#allocation4 + $0x298] sm:$0xff]  ;;  %v532_v27 = vld [vmem:[#allocation4 + $0x2f0] sm:$0xff]  ;;  %v6251_v33 = vpack.c.bf16 %v527_v19, %v524_v9 }
  0x58   :  { %4881 = vmatprep.subr.bf16.mxu0 %v6187_v48  ;;  %v6242_v54 = vpack.c.bf16 %v521_v41, %v518_v35  ;;  %v6253_v35 = vpack.c.bf16 %v532_v27, %v529_v23  ;;  %v528_v41 = vld [vmem:[#allocation4 + $0x2d0] sm:$0xff]  ;;  %v6269_v23 = vpack.c.bf16 %v3668_v5, %v3665_v63  ;;  %v99_v27 = vlaneseq  ;;  %v303_v63 = vld [vmem:[%s7719_s5] sm:$0x7] }
  0x59   :  { %4883 = vmatpush1.bf16.msra.mxu0 %v6189_v56  ;;  %7783 = vst [vmem:[#allocation10_spill] sm:$0xff] %v6219_v44  ;;  %7789 = vst [vmem:[#allocation16_spill] sm:$0xff] %v6238_v39  ;;  %v6263_v9 = vpack.c.bf16 %v531_v45, %v528_v41 }
  0x5a   :  { %4861 = vmatpush3.bf16.msra.mxu1 %v6117_v16  ;;  %4885 = vmatprep.subr.bf16.mxu0 %v6194_v2  ;;  %7790 = vst [vmem:[#allocation17_spill] sm:$0xff] %v6242_v54  ;;  %7793 = vst [vmem:[#allocation20_spill] sm:$0xff] %v6251_v33  ;;  %v100_v41 = vshrl.u32 %v99_v27, 7 }
  0x5b   :  { %4862 = vmatprep.subr.bf16.mxu1 %v7726_v43  ;;  %7794 = vst [vmem:[#allocation21_spill] sm:$0xff] %v6253_v35  ;;  %7795 = vst [vmem:[#allocation22_spill] sm:$0xff] %v6263_v9 }
  0x5c   :  { %7797 = vst [vmem:[#allocation24_spill] sm:$0xff] %v6269_v23  ;;  %v6276_v45 = vsub.s32 0, %v100_v41 }
  0x5d   :  { %4887 = vmatpush1.bf16.msra.mxu0 %v6198_v10 }
  0x5e   :  { %4864 = vmatpush3.bf16.msra.mxu1 %v6129_v20  ;;  %4889 = vmatprep.subr.bf16.mxu0 %v6204_v21 }
  0x5f   :  { %4865 = vmatprep.subr.bf16.mxu1 %v7726_v43 }
  0x61   :  { %4891 = vmatpush1.bf16.msra.mxu0 %v6208_v30  ;;  %v6290_v30 = vsub.s32 2, %v100_v41 }
  0x62   :  { %4867 = vmatpush3.bf16.msra.mxu1 %v6139_v24  ;;  %4893 = vmatprep.subr.bf16.mxu0 %v6217_v38 }
  0x63   :  { %4868 = vmatprep.subr.bf16.mxu1 %v7726_v43 }
  0x65   :  { %4895 = vmatpush1.bf16.msra.mxu0 %v6219_v44 }
  0x66   :  { %4870 = vmatpush3.bf16.msra.mxu1 %v6149_v28  ;;  %4897 = vmatprep.subr.bf16.mxu0 %v6226_v60 }
  0x67   :  { %4871 = vmatprep.subr.bf16.mxu1 %v7726_v43 }
  0x69   :  { %4899 = vmatpush1.bf16.msra.mxu0 %v6228_v6 }
  0x6a   :  { %4873 = vmatpush3.bf16.msra.mxu1 %v6159_v32  ;;  %4901 = vmatprep.subr.bf16.mxu0 %v6236_v25 }
  0x6b   :  { %4874 = vmatprep.subr.bf16.mxu1 %v7726_v43 }
  0x6d   :  { %4903 = vmatpush1.bf16.msra.mxu0 %v6238_v39 }
  0x6e   :  { %4876 = vmatpush3.bf16.msra.mxu1 %v6169_v36  ;;  %4905 = vmatprep.subr.bf16.mxu0 %v6244_v59 }
  0x6f   :  { %4877 = vmatprep.subr.bf16.mxu1 %v7726_v43 }
  0x71   :  { %4907 = vmatpush1.bf16.msra.mxu0 %v6247_v14 }
  0x72   :  { %4879 = vmatpush3.bf16.msra.mxu1 %v6179_v40  ;;  %4909 = vmatprep.subr.bf16.mxu0 %v6253_v35 }
  0x73   :  { %4912 = vmatprep.subr.bf16.mxu1 %v7726_v43 }
  0x75   :  { %4238 = vmatmul.mubr.f32.vlgmr.msra.gmra.mrb[4].mxu1 %v6066_v46  ;;  %4911 = vmatpush1.bf16.msra.mxu0 %v6263_v9 }
  0x76   :  { %4272 = vmatprep.mubr.msk.f32.mxu1 %vm5859_vm0, %v7723_v0  ;;  %4914 = vmatpush3.bf16.msra.mxu1 %v6191_v57  ;;  %v533_v0 = vld [vmem:[#allocation4 + $0x2f8] sm:$0xff] }
  0x77   :  { %4915 = vmatprep.subr.bf16.mxu1 %v7726_v43  ;;  %v6267_v19 = vpack.c.bf16 %v533_v0, %v530_v50  ;;  %4937 = vmatprep.subr.bf16.mxu0 %v6269_v23  ;;  %v97_v0 = vld [vmem:[%s7718_s4] sm:$0x7]  ;;  %v6281_v50 = vsub.s32 1, %v100_v41  ;;  %v3671_v41 = vld [vmem:[%s7717_s3 + $0x1b8] sm:$0xff] }
  0x78   :  { %v102_v5 = vrot.slane %v97_v0, %v6276_v45 }
  0x79   :  { %7796 = vst [vmem:[#allocation23_spill] sm:$0xff] %v6267_v19  ;;  %v106_v23 = vrot.slane %v97_v0, %v6281_v50  ;;  %v312_v27 = vrot.slane %v303_v63, %v6281_v50 }
  0x7a   :  { %4917 = vmatpush3.bf16.msra.mxu1 %v6200_v13 }
  0x7b   :  { %4918 = vmatprep.subr.bf16.mxu1 %v7726_v43 }
  0x7e   :  { %4920 = vmatpush3.bf16.msra.mxu1 %v6210_v31 }
  0x7f   :  { %4921 = vmatprep.subr.bf16.mxu1 %v7726_v43 }
  0x82   :  { %4923 = vmatpush3.bf16.msra.mxu1 %v6222_v53 }
  0x83   :  { %4924 = vmatprep.subr.bf16.mxu1 %v7726_v43 }
  0x86   :  { %4926 = vmatpush3.bf16.msra.mxu1 %v6232_v18 }
  0x87   :  { %4927 = vmatprep.subr.bf16.mxu1 %v7726_v43 }
  0x8a   :  { %4929 = vmatpush3.bf16.msra.mxu1 %v6242_v54 }
  0x8b   :  { %4930 = vmatprep.subr.bf16.mxu1 %v7726_v43 }
  0x8e   :  { %4932 = vmatpush3.bf16.msra.mxu1 %v6251_v33 }
  0x8f   :  { %4933 = vmatprep.subr.bf16.mxu1 %v7726_v43 }
  0x92   :  { %4935 = vmatpush3.bf16.msra.mxu1 %v6267_v19 }
  0x93   :  { %4968 = vmatprep.subr.bf16.mxu1 %v7726_v43  ;;  %v308_v43 = vrot.slane %v303_v63, %v6276_v45 }
 0x108   :  { %v180_v19 = vpop.f32.mrb[0].mxu1 }
 0x109   :  { %v181_v9 = vadd.f32 %v180_v19, %v102_v5  ;;  %v182_v35 = vpop.f32.mrb[1].mxu1 }
 0x10a   :  { %v183_v33 = vadd.f32 %v182_v35, %v106_v23  ;;  %v316_v35 = vrot.slane %v303_v63, %v6290_v30 }
 0x10b   :  { %v386_v14 = vpop.f32.mrb[0].mxu0  ;;  %v5697_v59 = vadd.f32 %v308_v43, %v181_v9  ;;  %v110_v43 = vrot.slane %v97_v0, %v6290_v30  ;;  %v3674_v0 = vld [vmem:[%s7717_s3 + $0x1d0] sm:$0xff] }
 0x10c   :  { %v388_v54 = vpop.f32.mrb[1].mxu0  ;;  %v5700_v39 = vadd.f32 %v312_v27, %v183_v33 }
 0x10d   :  { %v5698_v25 = vadd.f32 %v5697_v59, %v386_v14  ;;  %v3666_v14 = vld [vmem:[%s7717_s3 + $0x190] sm:$0xff] }
 0x10e   :  { %v5701_v18 = vadd.f32 %v5700_v39, %v388_v54 }
 0x10f   :  { %v3661_v53 = vmul.f32 -1.442695, %v5698_v25  ;;  %v3667_v25 = vld [vmem:[%s7717_s3 + $0x198] sm:$0xff] }
 0x110   :  { %v3662_v44 = vmul.f32 -1.442695, %v5701_v18 }
 0x111   :  { %5750 = vpow2.f32 %v3661_v53 }
 0x112   :  { %5752 = vpow2.f32 %v3662_v44 }
 0x11b   :  { %v5751_v38 = vpop.eup %5750 }
 0x11c   :  { %v465_v31 = vadd.f32 1.0, %v5751_v38  ;;  %v5753_v19 = vpop.eup %5752 }
 0x11d   :  { %v472_v23 = vadd.f32 1.0, %v5753_v19  ;;  %v3670_v19 = vld [vmem:[%s7717_s3 + $0x1b0] sm:$0xff] }
 0x11e   :  { %5754 = vrcp.f32 %v465_v31  ;;  %v3664_v31 = vld [vmem:[%s7717_s3 + $0x180] sm:$0xff] }
 0x11f   :  { %5756 = vrcp.f32 %v472_v23  ;;  %v6313_v27 = vpack.c.bf16 %v3667_v25, %v3664_v31  ;;  %v3679_v31 = vld [vmem:[%s7717_s3 + $0x1f8] sm:$0xff]  ;;  %v3678_v25 = vld [vmem:[%s7717_s3 + $0x1f0] sm:$0xff] }
 0x128   :  { %v251_v6 = vpop.f32.mrb[2].mxu1  ;;  %v5755_v54 = vpop.eup %5754 }
 0x129   :  { %v4204_v60 = vpop.f32.mrb[3].mxu1  ;;  %v5757_v44 = vpop.eup %5756 }
 0x12a   :  { %v252_v60 = vadd.f32 %v251_v6, %v110_v43  ;;  %v478_v38 = vsub.f32 1.0, %v5757_v44  ;;  %v3669_v6 = vld [vmem:[%s7717_s3 + $0x1a8] sm:$0xff]  ;;  %v480_v5 = vmul.f32 %v5757_v44, %v6066_v46  ;;  %v6322_v43 = vpack.c.bf16 %v3674_v0, %v3671_v41  ;;  %v3672_v46 = vld [vmem:[%s7717_s3 + $0x1c0] sm:$0xff] }
 0x12b   :  { %v7799_v41 = vmov 0.0  }
 0x148   :  { %v457_v33 = vpop.f32.mrb[4].mxu1 }
 0x149   :  { %v458_v59 = vadd.f32 %v457_v33, %v316_v35  ;;  %v4239_v39 = vpop.f32.mrb[5].mxu1  ;;  %v6318_v35 = vpack.c.bf16 %v3669_v6, %v3666_v14  ;;  %v3673_v33 = vld [vmem:[%s7717_s3 + $0x1c8] sm:$0xff]  ;;  %v3683_v6 = vld [vmem:[%s7717_s3 + $0x218] sm:$0xff] }
 0x14a   :  { %v3677_v39 = vld [vmem:[%s7717_s3 + $0x1e8] sm:$0xff] }
 0x14b   :  { %v475_v53 = vmul.f32 %v5755_v54, %v458_v59  ;;  %v3675_v59 = vld [vmem:[%s7717_s3 + $0x1d8] sm:$0xff]  ;;  %v3680_v54 = vld [vmem:[%s7717_s3 + $0x200] sm:$0xff]  ;;  %v3681_v14 = vld [vmem:[%s7717_s3 + $0x208] sm:$0xff] }
 0x14c   :  { %v4944_v44 = vpack.c.bf16 %v3680_v54, %v3677_v39  ;;  %v3689_v39 = vld [vmem:[%s7717_s3 + $0x248] sm:$0xff]  ;;  %v3692_v54 = vld [vmem:[%s7717_s3 + $0x260] sm:$0xff] }
 0x14d   :  { %v476_v18 = vadd.f32 %v475_v53, %v252_v60  ;;  %v6342_v60 = vpack.c.bf16 %v3673_v33, %v3670_v19  ;;  %v3676_v53 = vld [vmem:[%s7717_s3 + $0x1e0] sm:$0xff]  ;;  %v3685_v33 = vld [vmem:[%s7717_s3 + $0x228] sm:$0xff] }
 0x14e   :  { %v4946_v0 = vpack.c.bf16 %v3679_v31, %v3676_v53 }
 0x14f   :  { %5758 = vtanh.f32 %v476_v18  ;;  %v6348_v18 = vpack.c.bf16 %v3675_v59, %v3672_v46  ;;  %v3684_v46 = vld [vmem:[%s7717_s3 + $0x220] sm:$0xff]  ;;  %v3687_v59 = vld [vmem:[%s7717_s3 + $0x238] sm:$0xff] }
 0x150   :  { %v6397_v31 = vpack.c.bf16 %v3687_v59, %v3684_v46 }
 0x159   :  { %v5759_v9 = vpop.eup %5758 }
 0x15a   :  { %v479_v63 = vmul.f32 %v5759_v9, %v478_v38  ;;  %v7798_v38 = vmov 0.0|0.0   ;;  %v3686_v9 = vld [vmem:[%s7717_s3 + $0x230] sm:$0xff] }
 0x15b   :  { %v4948_v19 = vpack.c.bf16 %v3686_v9, %v3683_v6  ;;  %v3690_v6 = vld [vmem:[%s7717_s3 + $0x250] sm:$0xff]  ;;  %v3693_v9 = vld [vmem:[%s7717_s3 + $0x268] sm:$0xff] }
 0x15c   :  { %v6320_v23 = vadd.f32 %v480_v5, %v479_v63  ;;  %v3682_v63 = vld [vmem:[%s7717_s3 + $0x210] sm:$0xff]  ;;  %v6375_v5 = vpack.c.bf16 %v3681_v14, %v3678_v25  ;;  %v4952_v25 = vpack.c.bf16 %v3692_v54, %v3689_v39  ;;  %v3691_v14 = vld [vmem:[%s7717_s3 + $0x258] sm:$0xff]  ;;  %v6419_v46 = vpack.c.bf16 %v3693_v9, %v3690_v6  ;;  %v3697_v39 = vld [vmem:[%s7717_s3 + $0x288] sm:$0xff] }
 0x15d   :  { %v4950_v53 = vpack.c.bf16 %v3685_v33, %v3682_v63  ;;  %v3698_v63 = vld [vmem:[%s7717_s3 + $0x290] sm:$0xff]  ;;  %v3696_v54 = vld [vmem:[%s7717_s3 + $0x280] sm:$0xff] }
 0x15e   :  { %617 = vmatmul.mubr.f32.vlgmr.msra.gmra.mrb[2].mxu0 %v6320_v23  ;;  %4273 = vmatmul.mubr.f32.vlgmr.msra.gmra.mrb[6].mxu1 %v6320_v23  ;;  %v3694_v33 = vld [vmem:[%s7717_s3 + $0x270] sm:$0xff]  ;;  %7800 = vst [vmem:[#allocation25_spill] sm:$0xff] %v6419_v46  ;;  %v3700_v6 = vld [vmem:[%s7717_s3 + $0x2a0] sm:$0xff] }
 0x15f   :  { %4939 = vmatpush1.bf16.msra.mxu0 %v6313_v27  ;;  %4970 = vmatpush3.bf16.msra.mxu1 %v6318_v35 }
 0x160   :  { %4941 = vmatprep.subr.bf16.mxu0 %v6322_v43  ;;  %4971 = vmatprep.subr.bf16.mxu1 %v7798_v38 }
 0x161   :  { %824 = vmatprep.mubr.f32.mxu0 %v7799_v41  ;;  %4307 = vmatprep.mubr.msk.f32.mxu1 %vm5859_vm0, %v7799_v41 }
 0x163   :  { %4943 = vmatpush1.bf16.msra.mxu0 %v6342_v60  ;;  %4973 = vmatpush3.bf16.msra.mxu1 %v6348_v18 }
 0x164   :  { %4945 = vmatprep.subr.bf16.mxu0 %v4944_v44  ;;  %4974 = vmatprep.subr.bf16.mxu1 %v7798_v38  ;;  %v3688_v44 = vld [vmem:[%s7717_s3 + $0x240] sm:$0xff] }
 0x167   :  { %4947 = vmatpush1.bf16.msra.mxu0 %v4946_v0  ;;  %4976 = vmatpush3.bf16.msra.mxu1 %v6375_v5  ;;  %v3695_v0 = vld [vmem:[%s7717_s3 + $0x278] sm:$0xff] }
 0x168   :  { %4949 = vmatprep.subr.bf16.mxu0 %v4948_v19  ;;  %4977 = vmatprep.subr.bf16.mxu1 %v7798_v38  ;;  %v4954_v19 = vpack.c.bf16 %v3691_v14, %v3688_v44  ;;  %v4956_v59 = vpack.c.bf16 %v3698_v63, %v3695_v0  ;;  %v3701_v44 = vld [vmem:[%s7717_s3 + $0x2a8] sm:$0xff]  ;;  %v4958_v14 = vpack.c.bf16 %v3697_v39, %v3694_v33  ;;  %v3703_v63 = vld [vmem:[%s7717_s3 + $0x2b8] sm:$0xff] }
 0x169   :  { %v3705_v33 = vld [vmem:[%s7717_s3 + $0x2c8] sm:$0xff]  ;;  %v3707_v39 = vld [vmem:[%s7717_s3 + $0x2d8] sm:$0xff] }
 0x16b   :  { %4951 = vmatpush1.bf16.msra.mxu0 %v4950_v53  ;;  %4979 = vmatpush3.bf16.msra.mxu1 %v6397_v31  ;;  %v3699_v53 = vld [vmem:[%s7717_s3 + $0x298] sm:$0xff] }
 0x16c   :  { %4953 = vmatprep.subr.bf16.mxu0 %v4952_v25  ;;  %4980 = vmatprep.subr.bf16.mxu1 %v7798_v38  ;;  %v3704_v25 = vld [vmem:[%s7717_s3 + $0x2c0] sm:$0xff]  ;;  %v6441_v9 = vpack.c.bf16 %v3699_v53, %v3696_v54  ;;  %v4962_v54 = vpack.c.bf16 %v3703_v63, %v3700_v6  ;;  %v3706_v53 = vld [vmem:[%s7717_s3 + $0x2d0] sm:$0xff]  ;;  %v3711_v6 = vld [vmem:[%s7717_s3 + $0x2f8] sm:$0xff] }
 0x16d   :  { %v4960_v0 = vpack.c.bf16 %v3704_v25, %v3701_v44 }
 0x16f   :  { %4955 = vmatpush1.bf16.msra.mxu0 %v4954_v19  ;;  %4982 = vmatpush3.bf16.msra.mxu1 %v6419_v46  ;;  %v3702_v19 = vld [vmem:[%s7717_s3 + $0x2b0] sm:$0xff]  ;;  %v3709_v46 = vld [vmem:[%s7717_s3 + $0x2e8] sm:$0xff] }
 0x170   :  { %4957 = vmatprep.subr.bf16.mxu0 %v4956_v59  ;;  %4983 = vmatprep.subr.bf16.mxu1 %v7798_v38  ;;  %v3710_v59 = vld [vmem:[%s7717_s3 + $0x2f0] sm:$0xff]  ;;  %v6463_v44 = vpack.c.bf16 %v3705_v33, %v3702_v19  ;;  %v4966_v63 = vpack.c.bf16 %v3709_v46, %v3706_v53  ;;  %v6482_v19 = vld [vmem:[%s7715_s1 + $0x8] sm:$0xff] }
 0x171   :  { %v4964_v25 = vpack.c.bf16 %v3710_v59, %v3707_v39 }
 0x173   :  { %4959 = vmatpush1.bf16.msra.mxu0 %v4958_v14  ;;  %4985 = vmatpush3.bf16.msra.mxu1 %v6441_v9  ;;  %v3708_v14 = vld [vmem:[%s7717_s3 + $0x2e0] sm:$0xff] }
 0x174   :  { %4961 = vmatprep.subr.bf16.mxu0 %v4960_v0  ;;  %4986 = vmatprep.subr.bf16.mxu1 %v7798_v38  ;;  %v6476_v0 = vpack.c.bf16 %v3711_v6, %v3708_v14 }
 0x177   :  { %4963 = vmatpush1.bf16.msra.mxu0 %v4962_v54  ;;  %4988 = vmatpush3.bf16.msra.mxu1 %v6463_v44 }
 0x178   :  { %4965 = vmatprep.subr.bf16.mxu0 %v4964_v25  ;;  %4989 = vmatprep.subr.bf16.mxu1 %v7798_v38 }
 0x17b   :  { %4967 = vmatpush1.bf16.msra.mxu0 %v4966_v63  ;;  %4991 = vmatpush3.bf16.msra.mxu1 %v6476_v0 }
 0x17c   :  { %4993 = vmatprep.subr.bf16.mxu0 %v5919_v4  ;;  %5024 = vmatprep.subr.bf16.mxu1 %v7798_v38  ;;  %v932_v4 = vld [vmem:[#allocation4 + $0x38] sm:$0xff] }
 0x17e   :  { %825 = vmatmul.mubr.f32.vlgmr.msra.gmra.mrb[2].mxu0 %v6482_v19  ;;  %4308 = vmatmul.mubr.f32.vlgmr.msra.gmra.mrb[8].mxu1 %v6482_v19 }
 0x17f   :  { %4995 = vmatpush1.bf16.msra.mxu0 %v5921_v8  ;;  %5026 = vmatpush3.bf16.msra.mxu1 %v6060_v42  ;;  %v935_v8 = vld [vmem:[#allocation4 + $0x50] sm:$0xff] }
 0x180   :  { %5027 = vmatprep.subr.bf16.mxu1 %v7798_v38  ;;  %1054 = vmatprep.mubr.f32.mxu0 %v7799_v41  ;;  %v6509_v42 = vpack.c.bf16 %v935_v8, %v932_v4 }
 0x181   :  { %4342 = vmatprep.mubr.msk.f32.mxu1 %vm5859_vm0, %v7799_v41 }
 0x182   :  { %4997 = vmatprep.subr.bf16.mxu0 %v6509_v42 }
 0x183   :  { %5029 = vmatpush3.bf16.msra.mxu1 %v6069_v47  ;;  %4999 = vmatpush1.bf16.msra.mxu0 %v5937_v17  ;;  %v944_v47 = vld [vmem:[#allocation4 + $0x98] sm:$0xff]  ;;  %v1132_v17 = vld [vmem:[%s7717_s3 + $0x8] sm:$0xff] }
 0x184   :  { %5030 = vmatprep.subr.bf16.mxu1 %v7798_v38  ;;  %5001 = vmatprep.subr.bf16.mxu0 %v5942_v22  ;;  %v1135_v22 = vld [vmem:[%s7717_s3 + $0x20] sm:$0xff] }
 0x187   :  { %5032 = vmatpush3.bf16.msra.mxu1 %v6077_v52  ;;  %5003 = vmatpush1.bf16.msra.mxu0 %v5960_v34  ;;  %v947_v52 = vld [vmem:[#allocation4 + $0xb0] sm:$0xff]  ;;  %v6533_v34 = vpack.c.bf16 %v1135_v22, %v1132_v17 }
 0x188   :  { %5033 = vmatprep.subr.bf16.mxu1 %v7798_v38 }
 0x18b   :  { %5035 = vmatpush3.bf16.msra.mxu1 %v6081_v55  ;;  %v6515_v55 = vpack.c.bf16 %v947_v52, %v944_v47 }
 0x18c   :  { %5036 = vmatprep.subr.bf16.mxu1 %v7798_v38 }
 0x18d   :  { %5005 = vmatprep.subr.bf16.mxu0 %v6515_v55 }
 0x18e   :  { %5007 = vmatpush1.bf16.msra.mxu0 %v5982_v49 }
 0x18f   :  { %5038 = vmatpush3.bf16.msra.mxu1 %v6085_v58  ;;  %5009 = vmatprep.subr.bf16.mxu0 %v5987_v51 }
 0x190   :  { %5039 = vmatprep.subr.bf16.mxu1 %v7798_v38 }
 0x192   :  { %5011 = vmatpush1.bf16.msra.mxu0 %v5999_v61  ;;  %v3712_v61 = vld [vmem:[%s7719_s5 + $0x3] sm:$0x7] }
 0x193   :  { %5041 = vmatpush3.bf16.msra.mxu1 %v6089_v62  ;;  %5013 = vmatprep.subr.bf16.mxu0 %v6008_v1  ;;  %v3663_v1 = vld [vmem:[%s7718_s4 + $0x3] sm:$0x7]  ;;  %v756_v14 = vrot.slane %v3712_v61, %v6290_v30 }
 0x194   :  { %5042 = vmatprep.subr.bf16.mxu1 %v7798_v38  ;;  %v548_v63 = vrot.slane %v3663_v1, %v6290_v30 }
 0x196   :  { %5015 = vmatpush1.bf16.msra.mxu0 %v6017_v12  ;;  %v540_v12 = vrot.slane %v3663_v1, %v6276_v45 }
 0x197   :  { %5044 = vmatpush3.bf16.msra.mxu1 %v6093_v3  ;;  %5017 = vmatprep.subr.bf16.mxu0 %v6026_v15  ;;  %v748_v15 = vrot.slane %v3712_v61, %v6276_v45 }
 0x198   :  { %5045 = vmatprep.subr.bf16.mxu1 %v7798_v38 }
 0x19a   :  { %5019 = vmatpush1.bf16.msra.mxu0 %v6035_v26  ;;  %v544_v26 = vrot.slane %v3663_v1, %v6281_v50  ;;  %v1138_v1 = vld [vmem:[%s7717_s3 + $0x38] sm:$0xff] }
 0x19b   :  { %5047 = vmatpush3.bf16.msra.mxu1 %v6097_v7  ;;  %5021 = vmatprep.subr.bf16.mxu0 %v6044_v29  ;;  %v752_v29 = vrot.slane %v3712_v61, %v6281_v50  ;;  %v1134_v61 = vld [vmem:[%s7717_s3 + $0x18] sm:$0xff] }
 0x19c   :  { %5080 = vmatprep.subr.bf16.mxu1 %v7798_v38 }
 0x19d   :  { %v5704_v62 = vadd.f32 %v752_v29, %v544_v26 }
 0x19e   :  { %5023 = vmatpush1.bf16.msra.mxu0 %v6053_v37  ;;  %v5702_v37 = vadd.f32 %v748_v15, %v540_v12  ;;  %v1131_v15 = vld [vmem:[%s7717_s3] sm:$0xff] }
 0x19f   :  { %5049 = vmatprep.subr.bf16.mxu0 %v6533_v34 }
 0x231   :  { %v689_v49 = vpop.f32.mrb[6].mxu1 }
 0x232   :  { %v4274_v51 = vpop.f32.mrb[7].mxu1  ;;  %v690_v52 = vadd.f32 %v689_v49, %v548_v63  ;;  %v1141_v49 = vld [vmem:[%s7717_s3 + $0x50] sm:$0xff] }
 0x233   :  { %v1149_v63 = vld [vmem:[%s7717_s3 + $0x90] sm:$0xff] }
 0x251   :  { %v826_v58 = vpop.f32.mrb[2].mxu0  ;;  %v897_v3 = vpop.f32.mrb[8].mxu1 }
 0x252   :  { %v5703_v7 = vadd.f32 %v5702_v37, %v826_v58  ;;  %v828_v46 = vpop.f32.mrb[3].mxu0  ;;  %v4309_v33 = vpop.f32.mrb[9].mxu1  ;;  %v898_v8 = vadd.f32 %v897_v3, %v756_v14  ;;  %v6561_v58 = vpack.c.bf16 %v1134_v61, %v1131_v15  ;;  %v6565_v3 = vpack.c.bf16 %v1141_v49, %v1138_v1  ;;  %v1161_v61 = vld [vmem:[%s7717_s3 + $0xf0] sm:$0xff]  ;;  %v1171_v1 = vld [vmem:[%s7717_s3 + $0x140] sm:$0xff] }
 0x253   :  { %v5705_v59 = vadd.f32 %v5704_v62, %v828_v46  ;;  %v1140_v46 = vld [vmem:[%s7717_s3 + $0x48] sm:$0xff] }
 0x254   :  { %v3713_v39 = vmul.f32 -1.442695, %v5703_v7  ;;  %v1137_v7 = vld [vmem:[%s7717_s3 + $0x30] sm:$0xff]  ;;  %v1144_v33 = vld [vmem:[%s7717_s3 + $0x68] sm:$0xff] }
 0x255   :  { %v3714_v54 = vmul.f32 -1.442695, %v5705_v59 }
 0x256   :  { %5760 = vpow2.f32 %v3713_v39  ;;  %v6583_v39 = vpack.c.bf16 %v1140_v46, %v1137_v7  ;;  %v1170_v7 = vld [vmem:[%s7717_s3 + $0x138] sm:$0xff]  ;;  %v1177_v46 = vld [vmem:[%s7717_s3 + $0x170] sm:$0xff] }
 0x257   :  { %5762 = vpow2.f32 %v3714_v54  ;;  %v1143_v54 = vld [vmem:[%s7717_s3 + $0x60] sm:$0xff] }
 0x260   :  { %v5761_v53 = vpop.eup %5760 }
 0x261   :  { %v905_v25 = vadd.f32 1.0, %v5761_v53  ;;  %v5763_v6 = vpop.eup %5762  ;;  %v1146_v53 = vld [vmem:[%s7717_s3 + $0x78] sm:$0xff] }
 0x262   :  { %v912_v4 = vadd.f32 1.0, %v5763_v6  ;;  %v6606_v14 = vpack.c.bf16 %v1146_v53, %v1143_v54  ;;  %v1173_v54 = vld [vmem:[%s7717_s3 + $0x150] sm:$0xff]  ;;  %v1176_v53 = vld [vmem:[%s7717_s3 + $0x168] sm:$0xff] }
 0x263   :  { %5764 = vrcp.f32 %v905_v25  ;;  %v1153_v25 = vld [vmem:[%s7717_s3 + $0xb0] sm:$0xff] }
 0x264   :  { %5766 = vrcp.f32 %v912_v4  ;;  %v1152_v4 = vld [vmem:[%s7717_s3 + $0xa8] sm:$0xff] }
 0x26d   :  { %v5765_v47 = vpop.eup %5764 }
 0x26e   :  { %v915_v17 = vmul.f32 %v5765_v47, %v898_v8  ;;  %v5767_v51 = vpop.eup %5766  ;;  %v1159_v8 = vld [vmem:[%s7717_s3 + $0xe0] sm:$0xff]  ;;  %v6626_v47 = vpack.c.bf16 %v1152_v4, %v1149_v63  ;;  %v7814_v4 = vld [vmem:[#allocation19_spill] sm:$0xff] }
 0x26f   :  { %v918_v12 = vsub.f32 1.0, %v5767_v51  ;;  %v920_v29 = vmul.f32 %v5767_v51, %v6482_v19  ;;  %v1147_v19 = vld [vmem:[%s7717_s3 + $0x80] sm:$0xff]  ;;  %v1165_v51 = vld [vmem:[%s7717_s3 + $0x110] sm:$0xff] }
 0x270   :  { %v916_v22 = vadd.f32 %v915_v17, %v690_v52  ;;  %v6587_v59 = vpack.c.bf16 %v1147_v19, %v1144_v33  ;;  %v1155_v17 = vld [vmem:[%s7717_s3 + $0xc0] sm:$0xff] }
 0x271   :  { %v7813_v63 = vld [vmem:[#allocation18_spill] sm:$0xff] }
 0x272   :  { %5768 = vtanh.f32 %v916_v22  ;;  %v1158_v22 = vld [vmem:[%s7717_s3 + $0xd8] sm:$0xff] }
 0x27c   :  { %v5769_v26 = vpop.eup %5768 }
 0x27d   :  { %v919_v37 = vmul.f32 %v5769_v26, %v918_v12  ;;  %v6646_v12 = vpack.c.bf16 %v1158_v22, %v1155_v17  ;;  %v1164_v26 = vld [vmem:[%s7717_s3 + $0x108] sm:$0xff]  ;;  %v7817_v17 = vld [vmem:[#allocation22_spill] sm:$0xff] }
 0x27e   :  { %v6666_v49 = vpack.c.bf16 %v1164_v26, %v1161_v61  ;;  %v7818_v22 = vld [vmem:[#allocation23_spill] sm:$0xff]  ;;  %v1179_v26 = vld [vmem:[%s7719_s5] sm:$0x7] }
 0x27f   :  { %v6563_v62 = vadd.f32 %v920_v29, %v919_v37  ;;  %v1167_v37 = vld [vmem:[%s7717_s3 + $0x120] sm:$0xff] }
 0x280   :  { %v6686_v33 = vpack.c.bf16 %v1170_v7, %v1167_v37  ;;  %v1184_v37 = vrot.slane %v1179_v26, %v6276_v45 }
 0x281   :  { %7801 = vst [vmem:[#allocation26_spill] sm:$0xff] %v6563_v62  ;;  %1055 = vmatmul.mubr.f32.vlgmr.msra.gmra.mrb[4].mxu0 %v6563_v62  ;;  %4343 = vmatmul.mubr.f32.vlgmr.msra.gmra.mrb[10].mxu1 %v6563_v62 }
 0x282   :  { %5051 = vmatpush1.bf16.msra.mxu0 %v6561_v58  ;;  %5082 = vmatpush3.bf16.msra.mxu1 %v6107_v11  ;;  %v1150_v11 = vld [vmem:[%s7717_s3 + $0x98] sm:$0xff] }
 0x283   :  { %5053 = vmatprep.subr.bf16.mxu0 %v6565_v3  ;;  %5083 = vmatprep.subr.bf16.mxu1 %v7798_v38  ;;  %v6610_v6 = vpack.c.bf16 %v1153_v25, %v1150_v11  ;;  %v7811_v11 = vld [vmem:[#allocation16_spill] sm:$0xff]  ;;  %v7812_v25 = vld [vmem:[#allocation17_spill] sm:$0xff] }
 0x284   :  { %1260 = vmatprep.mubr.f32.mxu0 %v7799_v41  ;;  %4377 = vmatprep.mubr.msk.f32.mxu1 %vm5859_vm0, %v7799_v41 }
 0x286   :  { %5055 = vmatpush1.bf16.msra.mxu0 %v6583_v39  ;;  %5085 = vmatpush3.bf16.msra.mxu1 %v6117_v16  ;;  %v1156_v16 = vld [vmem:[%s7717_s3 + $0xc8] sm:$0xff] }
 0x287   :  { %5057 = vmatprep.subr.bf16.mxu0 %v6587_v59  ;;  %5086 = vmatprep.subr.bf16.mxu1 %v7798_v38  ;;  %v6630_v52 = vpack.c.bf16 %v1159_v8, %v1156_v16  ;;  %v7815_v16 = vld [vmem:[#allocation20_spill] sm:$0xff]  ;;  %v7816_v8 = vld [vmem:[#allocation21_spill] sm:$0xff] }
 0x28a   :  { %5059 = vmatpush1.bf16.msra.mxu0 %v6606_v14  ;;  %5088 = vmatpush3.bf16.msra.mxu1 %v6129_v20  ;;  %v1162_v20 = vld [vmem:[%s7717_s3 + $0xf8] sm:$0xff] }
 0x28b   :  { %5061 = vmatprep.subr.bf16.mxu0 %v6610_v6  ;;  %5089 = vmatprep.subr.bf16.mxu1 %v7798_v38  ;;  %v6650_v15 = vpack.c.bf16 %v1165_v51, %v1162_v20  ;;  %v7819_v20 = vld [vmem:[#allocation24_spill] sm:$0xff] }
 0x28e   :  { %5063 = vmatpush1.bf16.msra.mxu0 %v6626_v47  ;;  %5091 = vmatpush3.bf16.msra.mxu1 %v6139_v24  ;;  %v1168_v24 = vld [vmem:[%s7717_s3 + $0x128] sm:$0xff] }
 0x28f   :  { %5065 = vmatprep.subr.bf16.mxu0 %v6630_v52  ;;  %5092 = vmatprep.subr.bf16.mxu1 %v7798_v38  ;;  %v6670_v29 = vpack.c.bf16 %v1171_v1, %v1168_v24  ;;  %v973_v24 = vld [vmem:[%s7718_s4] sm:$0x7] }
 0x290   :  { %v978_v1 = vrot.slane %v973_v24, %v6276_v45  ;;  %v982_v7 = vrot.slane %v973_v24, %v6281_v50 }
 0x292   :  { %5067 = vmatpush1.bf16.msra.mxu0 %v6646_v12  ;;  %5094 = vmatpush3.bf16.msra.mxu1 %v6149_v28  ;;  %v1174_v28 = vld [vmem:[%s7717_s3 + $0x158] sm:$0xff] }
 0x293   :  { %5069 = vmatprep.subr.bf16.mxu0 %v6650_v15  ;;  %5095 = vmatprep.subr.bf16.mxu1 %v7798_v38  ;;  %v6690_v19 = vpack.c.bf16 %v1177_v46, %v1174_v28  ;;  %v1188_v28 = vrot.slane %v1179_v26, %v6281_v50  ;;  %v5706_v46 = vadd.f32 %v1184_v37, %v978_v1 }
 0x296   :  { %5071 = vmatpush1.bf16.msra.mxu0 %v6666_v49  ;;  %5097 = vmatpush3.bf16.msra.mxu1 %v6159_v32  ;;  %v6700_v32 = vpack.c.bf16 %v1176_v53, %v1173_v54 }
 0x297   :  { %5073 = vmatprep.subr.bf16.mxu0 %v6670_v29  ;;  %5098 = vmatprep.subr.bf16.mxu1 %v7798_v38 }
 0x29a   :  { %5075 = vmatpush1.bf16.msra.mxu0 %v6686_v33  ;;  %5100 = vmatpush3.bf16.msra.mxu1 %v6169_v36  ;;  %v7802_v36 = vld [vmem:[#allocation7_spill] sm:$0xff] }
 0x29b   :  { %5077 = vmatprep.subr.bf16.mxu0 %v6690_v19  ;;  %5101 = vmatprep.subr.bf16.mxu1 %v7798_v38 }
 0x29e   :  { %5079 = vmatpush1.bf16.msra.mxu0 %v6700_v32  ;;  %5103 = vmatpush3.bf16.msra.mxu1 %v6179_v40  ;;  %v7803_v40 = vld [vmem:[#allocation8_spill] sm:$0xff] }
 0x29f   :  { %5105 = vmatprep.subr.bf16.mxu0 %v6187_v48  ;;  %5136 = vmatprep.subr.bf16.mxu1 %v7798_v38  ;;  %v7804_v48 = vld [vmem:[#allocation9_spill] sm:$0xff] }
 0x2a1   :  { %1261 = vmatmul.mubr.f32.vlgmr.msra.gmra.mrb[4].mxu0 %v6320_v23  ;;  %4378 = vmatmul.mubr.f32.vlgmr.msra.gmra.mrb[12].mxu1 %v6320_v23 }
 0x2a2   :  { %5107 = vmatpush1.bf16.msra.mxu0 %v6189_v56  ;;  %5138 = vmatpush3.bf16.msra.mxu1 %v6191_v57  ;;  %v7805_v56 = vld [vmem:[#allocation10_spill] sm:$0xff]  ;;  %v7806_v57 = vld [vmem:[#allocation11_spill] sm:$0xff] }
 0x2a3   :  { %5109 = vmatprep.subr.bf16.mxu0 %v6194_v2  ;;  %5139 = vmatprep.subr.bf16.mxu1 %v7798_v38  ;;  %v7807_v2 = vld [vmem:[#allocation12_spill] sm:$0xff] }
 0x2a4   :  { %1489 = vmatprep.mubr.f32.mxu0 %v7799_v41  ;;  %4412 = vmatprep.mubr.msk.f32.mxu1 %vm5859_vm0, %v7799_v41 }
 0x2a6   :  { %5111 = vmatpush1.bf16.msra.mxu0 %v6198_v10  ;;  %5141 = vmatpush3.bf16.msra.mxu1 %v6200_v13  ;;  %v7808_v10 = vld [vmem:[#allocation13_spill] sm:$0xff]  ;;  %v7809_v13 = vld [vmem:[#allocation14_spill] sm:$0xff] }
 0x2a7   :  { %5113 = vmatprep.subr.bf16.mxu0 %v6204_v21  ;;  %5142 = vmatprep.subr.bf16.mxu1 %v7798_v38  ;;  %v7810_v21 = vld [vmem:[#allocation15_spill] sm:$0xff] }
 0x2aa   :  { %5115 = vmatpush1.bf16.msra.mxu0 %v7802_v36  ;;  %5144 = vmatpush3.bf16.msra.mxu1 %v7803_v40  ;;  %v5708_v36 = vadd.f32 %v1188_v28, %v982_v7 }
 0x2ab   :  { %5117 = vmatprep.subr.bf16.mxu0 %v7804_v48  ;;  %5145 = vmatprep.subr.bf16.mxu1 %v7798_v38 }
 0x2ae   :  { %5119 = vmatpush1.bf16.msra.mxu0 %v7805_v56  ;;  %5147 = vmatpush3.bf16.msra.mxu1 %v7806_v57 }
 0x2af   :  { %5121 = vmatprep.subr.bf16.mxu0 %v7807_v2  ;;  %5148 = vmatprep.subr.bf16.mxu1 %v7798_v38 }
 0x2b2   :  { %5123 = vmatpush1.bf16.msra.mxu0 %v7808_v10  ;;  %5150 = vmatpush3.bf16.msra.mxu1 %v7809_v13 }
 0x2b3   :  { %5125 = vmatprep.subr.bf16.mxu0 %v7810_v21  ;;  %5151 = vmatprep.subr.bf16.mxu1 %v7798_v38 }
 0x2b6   :  { %5127 = vmatpush1.bf16.msra.mxu0 %v7811_v11  ;;  %5153 = vmatpush3.bf16.msra.mxu1 %v7812_v25  ;;  %v1192_v25 = vrot.slane %v1179_v26, %v6290_v30  ;;  %v3731_v26 = vld [vmem:[%s7717_s3 + $0x1e8] sm:$0xff] }
 0x2b7   :  { %5129 = vmatprep.subr.bf16.mxu0 %v7813_v63  ;;  %5154 = vmatprep.subr.bf16.mxu1 %v7798_v38  ;;  %v986_v63 = vrot.slane %v973_v24, %v6290_v30  ;;  %v3730_v24 = vld [vmem:[%s7717_s3 + $0x1e0] sm:$0xff] }
 0x2ba   :  { %5131 = vmatpush1.bf16.msra.mxu0 %v7814_v4  ;;  %5156 = vmatpush3.bf16.msra.mxu1 %v7815_v16 }
 0x2bb   :  { %5133 = vmatprep.subr.bf16.mxu0 %v7816_v8  ;;  %5157 = vmatprep.subr.bf16.mxu1 %v7798_v38 }
 0x2be   :  { %5135 = vmatpush1.bf16.msra.mxu0 %v7817_v17  ;;  %5159 = vmatpush3.bf16.msra.mxu1 %v7818_v22 }
 0x2bf   :  { %5161 = vmatprep.subr.bf16.mxu0 %v7819_v20  ;;  %5192 = vmatprep.subr.bf16.mxu1 %v7798_v38 }
 0x354   :  { %v1127_v51 = vpop.f32.mrb[10].mxu1 }
 0x355   :  { %v4344_v61 = vpop.f32.mrb[11].mxu1  ;;  %v1128_v17 = vadd.f32 %v1127_v51, %v986_v63  ;;  %v3734_v51 = vld [vmem:[%s7717_s3 + $0x200] sm:$0xff] }
 0x356   :  { %v3758_v63 = vld [vmem:[%s7717_s3 + $0x2c0] sm:$0xff] }
 0x374   :  { %v1262_v54 = vpop.f32.mrb[4].mxu0  ;;  %v1333_v53 = vpop.f32.mrb[12].mxu1 }
 0x375   :  { %v5707_v40 = vadd.f32 %v5706_v46, %v1262_v54  ;;  %v1264_v48 = vpop.f32.mrb[5].mxu0  ;;  %v4379_v56 = vpop.f32.mrb[13].mxu1  ;;  %v1334_v16 = vadd.f32 %v1333_v53, %v1192_v25  ;;  %v3733_v54 = vld [vmem:[%s7717_s3 + $0x1f8] sm:$0xff]  ;;  %v3751_v25 = vld [vmem:[%s7717_s3 + $0x288] sm:$0xff] }
 0x376   :  { %v5709_v2 = vadd.f32 %v5708_v36, %v1264_v48  ;;  %v3736_v36 = vld [vmem:[%s7717_s3 + $0x210] sm:$0xff] }
 0x377   :  { %v3715_v57 = vmul.f32 -1.442695, %v5707_v40  ;;  %v3739_v40 = vld [vmem:[%s7717_s3 + $0x228] sm:$0xff] }
 0x378   :  { %v3716_v10 = vmul.f32 -1.442695, %v5709_v2  ;;  %v6811_v48 = vpack.c.bf16 %v3739_v40, %v3736_v36  ;;  %v3745_v2 = vld [vmem:[%s7717_s3 + $0x258] sm:$0xff] }
 0x379   :  { %5770 = vpow2.f32 %v3715_v57  ;;  %v3742_v57 = vld [vmem:[%s7717_s3 + $0x240] sm:$0xff]  ;;  %v1803_v40 = vld [vmem:[#allocation4 + $0x30] sm:$0xff] }
 0x37a   :  { %5772 = vpow2.f32 %v3716_v10  ;;  %v3752_v10 = vld [vmem:[%s7717_s3 + $0x290] sm:$0xff] }
 0x383   :  { %v5771_v13 = vpop.eup %5770 }
 0x384   :  { %v1341_v21 = vadd.f32 1.0, %v5771_v13  ;;  %v5773_v11 = vpop.eup %5772  ;;  %v6831_v13 = vpack.c.bf16 %v3745_v2, %v3742_v57  ;;  %v1808_v2 = vld [vmem:[#allocation4 + $0x58] sm:$0xff] }
 0x385   :  { %v1348_v4 = vadd.f32 1.0, %v5773_v11  ;;  %v3748_v11 = vld [vmem:[%s7717_s3 + $0x270] sm:$0xff] }
 0x386   :  { %5774 = vrcp.f32 %v1341_v21 }
 0x387   :  { %5776 = vrcp.f32 %v1348_v4  ;;  %v7820_v4 = vld [vmem:[#allocation25_spill] sm:$0xff] }
 0x390   :  { %v5775_v8 = vpop.eup %5774 }
 0x391   :  { %v1351_v22 = vmul.f32 %v5775_v8, %v1334_v16  ;;  %v5777_v61 = vpop.eup %5776  ;;  %v6851_v16 = vpack.c.bf16 %v3751_v25, %v3748_v11  ;;  %v1813_v11 = vld [vmem:[#allocation4 + $0x80] sm:$0xff] }
 0x392   :  { %v1354_v1 = vsub.f32 1.0, %v5777_v61  ;;  %v1356_v28 = vmul.f32 %v5777_v61, %v6320_v23  ;;  %v6772_v23 = vpack.c.bf16 %v3734_v51, %v3731_v26  ;;  %v3764_v61 = vld [vmem:[%s7717_s3 + $0x2f0] sm:$0xff]  ;;  %v1801_v26 = vld [vmem:[#allocation4 + $0x20] sm:$0xff] }
 0x393   :  { %v1352_v20 = vadd.f32 %v1351_v22, %v1128_v17  ;;  %v3754_v17 = vld [vmem:[%s7717_s3 + $0x2a0] sm:$0xff]  ;;  %v3757_v22 = vld [vmem:[%s7717_s3 + $0x2b8] sm:$0xff] }
 0x395   :  { %5778 = vtanh.f32 %v1352_v20  ;;  %v3761_v20 = vld [vmem:[%s7717_s3 + $0x2d8] sm:$0xff] }
 0x39f   :  { %v5779_v37 = vpop.eup %5778 }
 0x3a0   :  { %v1355_v7 = vmul.f32 %v5779_v37, %v1354_v1  ;;  %v6871_v1 = vpack.c.bf16 %v3757_v22, %v3754_v17  ;;  %v6875_v37 = vpack.c.bf16 %v3764_v61, %v3761_v20  ;;  %v1814_v17 = vld [vmem:[#allocation4 + $0x88] sm:$0xff]  ;;  %v1815_v20 = vld [vmem:[#allocation4 + $0x90] sm:$0xff] }
 0x3a1   :  { %v1818_v61 = vld [vmem:[#allocation4 + $0xa8] sm:$0xff] }
 0x3a2   :  { %v6758_v46 = vadd.f32 %v1356_v28, %v1355_v7  ;;  %v3760_v7 = vld [vmem:[%s7717_s3 + $0x2d0] sm:$0xff]  ;;  %v3763_v28 = vld [vmem:[%s7717_s3 + $0x2e8] sm:$0xff] }
 0x3a4   :  { %1490 = vmatmul.mubr.f32.vlgmr.msra.gmra.mrb[6].mxu0 %v6758_v46  ;;  %4413 = vmatmul.mubr.f32.vlgmr.msra.gmra.mrb[14].mxu1 %v6758_v46 }
 0x3a5   :  { %5163 = vmatpush1.bf16.msra.mxu0 %v6313_v27  ;;  %5194 = vmatpush3.bf16.msra.mxu1 %v6318_v35  ;;  %v3737_v27 = vld [vmem:[%s7717_s3 + $0x218] sm:$0xff]  ;;  %v3740_v35 = vld [vmem:[%s7717_s3 + $0x230] sm:$0xff] }
 0x3a6   :  { %5165 = vmatprep.subr.bf16.mxu0 %v6322_v43  ;;  %5195 = vmatprep.subr.bf16.mxu1 %v7798_v38  ;;  %v6791_v43 = vpack.c.bf16 %v3733_v54, %v3730_v24  ;;  %v6795_v53 = vpack.c.bf16 %v3740_v35, %v3737_v27  ;;  %v1797_v24 = vld [vmem:[#allocation4] sm:$0xff]  ;;  %v1800_v54 = vld [vmem:[#allocation4 + $0x18] sm:$0xff]  ;;  %v1799_v27 = vld [vmem:[#allocation4 + $0x10] sm:$0xff] }
 0x3a7   :  { %1695 = vmatprep.mubr.f32.mxu0 %v7799_v41  ;;  %4447 = vmatprep.mubr.msk.f32.mxu1 %vm5859_vm0, %v7799_v41  ;;  %v6899_v35 = vpack.c.bf16 %v1800_v54, %v1797_v24  ;;  %v1822_v24 = vld [vmem:[#allocation4 + $0xc8] sm:$0xff]  ;;  %v1825_v54 = vld [vmem:[#allocation4 + $0xe0] sm:$0xff] }
 0x3a9   :  { %5167 = vmatpush1.bf16.msra.mxu0 %v6342_v60  ;;  %5197 = vmatpush3.bf16.msra.mxu1 %v6348_v18  ;;  %v3743_v60 = vld [vmem:[%s7717_s3 + $0x248] sm:$0xff]  ;;  %v3746_v18 = vld [vmem:[%s7717_s3 + $0x260] sm:$0xff] }
 0x3aa   :  { %5169 = vmatprep.subr.bf16.mxu0 %v6772_v23  ;;  %5198 = vmatprep.subr.bf16.mxu1 %v7798_v38  ;;  %v6815_v56 = vpack.c.bf16 %v3746_v18, %v3743_v60  ;;  %v1806_v60 = vld [vmem:[#allocation4 + $0x48] sm:$0xff]  ;;  %v1805_v18 = vld [vmem:[#allocation4 + $0x40] sm:$0xff] }
 0x3ab   :  { %v6908_v57 = vpack.c.bf16 %v1806_v60, %v1803_v40  ;;  %v1823_v40 = vld [vmem:[#allocation4 + $0xd0] sm:$0xff] }
 0x3ad   :  { %5171 = vmatpush1.bf16.msra.mxu0 %v6791_v43  ;;  %5200 = vmatpush3.bf16.msra.mxu1 %v6375_v5  ;;  %v3749_v5 = vld [vmem:[%s7717_s3 + $0x278] sm:$0xff]  ;;  %7821 = vst [vmem:[#allocation7_spill] sm:$0xff] %v6908_v57 }
 0x3ae   :  { %5173 = vmatprep.subr.bf16.mxu0 %v6795_v53  ;;  %5201 = vmatprep.subr.bf16.mxu1 %v7798_v38  ;;  %v6835_v21 = vpack.c.bf16 %v3752_v10, %v3749_v5  ;;  %v6910_v5 = vpack.c.bf16 %v1808_v2, %v1805_v18  ;;  %v1810_v10 = vld [vmem:[#allocation4 + $0x68] sm:$0xff] }
 0x3af   :  { %v6914_v25 = vpack.c.bf16 %v1813_v11, %v1810_v10  ;;  %v1826_v18 = vld [vmem:[#allocation4 + $0xe8] sm:$0xff]  ;;  %v1828_v10 = vld [vmem:[#allocation4 + $0xf8] sm:$0xff]  ;;  %v1831_v11 = vld [vmem:[#allocation4 + $0x110] sm:$0xff] }
 0x3b0   :  { %v6938_v2 = vpack.c.bf16 %v1826_v18, %v1823_v40  ;;  %v1835_v40 = vld [vmem:[#allocation4 + $0x130] sm:$0xff] }
 0x3b1   :  { %5175 = vmatpush1.bf16.msra.mxu0 %v6811_v48  ;;  %5203 = vmatpush3.bf16.msra.mxu1 %v6397_v31  ;;  %v3755_v31 = vld [vmem:[%s7717_s3 + $0x2a8] sm:$0xff]  ;;  %7822 = vst [vmem:[#allocation8_spill] sm:$0xff] %v6914_v25 }
 0x3b2   :  { %5177 = vmatprep.subr.bf16.mxu0 %v6815_v56  ;;  %5204 = vmatprep.subr.bf16.mxu1 %v7798_v38  ;;  %v6855_v8 = vpack.c.bf16 %v3758_v63, %v3755_v31  ;;  %v1809_v31 = vld [vmem:[#allocation4 + $0x60] sm:$0xff]  ;;  %v1811_v63 = vld [vmem:[#allocation4 + $0x70] sm:$0xff] }
 0x3b3   :  { %v6920_v22 = vpack.c.bf16 %v1814_v17, %v1811_v63  ;;  %v1830_v63 = vld [vmem:[#allocation4 + $0x108] sm:$0xff]  ;;  %v1829_v17 = vld [vmem:[#allocation4 + $0x100] sm:$0xff] }
 0x3b5   :  { %5179 = vmatpush1.bf16.msra.mxu0 %v6831_v13  ;;  %5206 = vmatpush3.bf16.msra.mxu1 %v7820_v4 }
 0x3b6   :  { %5181 = vmatprep.subr.bf16.mxu0 %v6835_v21  ;;  %5207 = vmatprep.subr.bf16.mxu1 %v7798_v38 }
 0x3b9   :  { %5183 = vmatpush1.bf16.msra.mxu0 %v6851_v16  ;;  %5209 = vmatpush3.bf16.msra.mxu1 %v6441_v9  ;;  %v6885_v9 = vpack.c.bf16 %v3763_v28, %v3760_v7  ;;  %v1817_v7 = vld [vmem:[#allocation4 + $0xa0] sm:$0xff]  ;;  %v6926_v28 = vpack.c.bf16 %v1818_v61, %v1815_v20  ;;  %v1832_v61 = vld [vmem:[#allocation4 + $0x118] sm:$0xff] }
 0x3ba   :  { %5185 = vmatprep.subr.bf16.mxu0 %v6855_v8  ;;  %5210 = vmatprep.subr.bf16.mxu1 %v7798_v38 }
 0x3bb   :  { %7824 = vst [vmem:[#allocation10_spill] sm:$0xff] %v6926_v28 }
 0x3bd   :  { %5187 = vmatpush1.bf16.msra.mxu0 %v6871_v1  ;;  %5212 = vmatpush3.bf16.msra.mxu1 %v6463_v44  ;;  %v1798_v44 = vld [vmem:[#allocation4 + $0x8] sm:$0xff] }
 0x3be   :  { %5189 = vmatprep.subr.bf16.mxu0 %v6875_v37  ;;  %5213 = vmatprep.subr.bf16.mxu1 %v7798_v38  ;;  %v6897_v51 = vpack.c.bf16 %v1801_v26, %v1798_v44  ;;  %v1820_v44 = vld [vmem:[#allocation4 + $0xb8] sm:$0xff] }
 0x3bf   :  { %v6928_v26 = vpack.c.bf16 %v1820_v44, %v1817_v7  ;;  %v6948_v7 = vpack.c.bf16 %v1832_v61, %v1829_v17  ;;  %v1834_v44 = vld [vmem:[#allocation4 + $0x128] sm:$0xff]  ;;  %v1839_v61 = vld [vmem:[#allocation4 + $0x150] sm:$0xff] }
 0x3c1   :  { %5191 = vmatpush1.bf16.msra.mxu0 %v6885_v9  ;;  %5215 = vmatpush3.bf16.msra.mxu1 %v6476_v0  ;;  %v1802_v0 = vld [vmem:[#allocation4 + $0x28] sm:$0xff]  ;;  %7829 = vst [vmem:[#allocation15_spill] sm:$0xff] %v6948_v7 }
 0x3c2   :  { %5248 = vmatprep.subr.bf16.mxu1 %v7798_v38  ;;  %5217 = vmatprep.subr.bf16.mxu0 %v6897_v51  ;;  %v6902_v36 = vpack.c.bf16 %v1802_v0, %v1799_v27  ;;  %v6932_v27 = vpack.c.bf16 %v1825_v54, %v1822_v24  ;;  %v1821_v0 = vld [vmem:[#allocation4 + $0xc0] sm:$0xff] }
 0x3c3   :  { %v1837_v24 = vld [vmem:[#allocation4 + $0x140] sm:$0xff] }
 0x3c4   :  { %1696 = vmatmul.mubr.f32.vlgmr.msra.gmra.mrb[6].mxu0 %v6563_v62  ;;  %4448 = vmatmul.mubr.f32.vlgmr.msra.gmra.mrb[16].mxu1 %v6563_v62  ;;  %7825 = vst [vmem:[#allocation11_spill] sm:$0xff] %v6932_v27  ;;  %v6952_v54 = vpack.c.bf16 %v1837_v24, %v1834_v44  ;;  %v1842_v44 = vld [vmem:[#allocation4 + $0x168] sm:$0xff]  ;;  %v1841_v24 = vld [vmem:[#allocation4 + $0x160] sm:$0xff] }
 0x3c5   :  { %1926 = vmatprep.mubr.f32.mxu0 %v7799_v41  ;;  %4482 = vmatprep.mubr.msk.f32.mxu1 %vm5859_vm0, %v7799_v41 }
 0x3c6   :  { %5219 = vmatpush1.bf16.msra.mxu0 %v6899_v35  ;;  %5250 = vmatpush3.bf16.msra.mxu1 %v6902_v36  ;;  %7830 = vst [vmem:[#allocation16_spill] sm:$0xff] %v6952_v54 }
 0x3c7   :  { %5221 = vmatprep.subr.bf16.mxu0 %v6509_v42  ;;  %5251 = vmatprep.subr.bf16.mxu1 %v7798_v38  ;;  %v1812_v42 = vld [vmem:[#allocation4 + $0x78] sm:$0xff] }
 0x3c8   :  { %v6917_v4 = vpack.c.bf16 %v1812_v42, %v1809_v31  ;;  %v6942_v31 = vpack.c.bf16 %v1831_v11, %v1828_v10  ;;  %v1827_v42 = vld [vmem:[#allocation4 + $0xf0] sm:$0xff]  ;;  %v1838_v10 = vld [vmem:[#allocation4 + $0x148] sm:$0xff] }
 0x3c9   :  { %v6945_v20 = vpack.c.bf16 %v1830_v63, %v1827_v42  ;;  %v6958_v11 = vpack.c.bf16 %v1838_v10, %v1835_v40  ;;  %v1840_v42 = vld [vmem:[#allocation4 + $0x158] sm:$0xff]  ;;  %v1843_v63 = vld [vmem:[#allocation4 + $0x170] sm:$0xff] }
 0x3ca   :  { %5223 = vmatpush1.bf16.msra.mxu0 %v6908_v57  ;;  %5253 = vmatpush3.bf16.msra.mxu1 %v6910_v5  ;;  %7823 = vst [vmem:[#allocation9_spill] sm:$0xff] %v6917_v4  ;;  %7827 = vst [vmem:[#allocation13_spill] sm:$0xff] %v6942_v31  ;;  %v6962_v17 = vpack.c.bf16 %v1843_v63, %v1840_v42  ;;  %v3766_v63 = vld [vmem:[%s7719_s5 + $0x3] sm:$0x7] }
 0x3cb   :  { %5254 = vmatprep.subr.bf16.mxu1 %v7798_v38  ;;  %5225 = vmatprep.subr.bf16.mxu0 %v6914_v25  ;;  %7828 = vst [vmem:[#allocation14_spill] sm:$0xff] %v6945_v20  ;;  %7832 = vst [vmem:[#allocation18_spill] sm:$0xff] %v6958_v11 }
 0x3cc   :  { %7833 = vst [vmem:[#allocation19_spill] sm:$0xff] %v6962_v17 }
 0x3ce   :  { %5227 = vmatpush1.bf16.msra.mxu0 %v6917_v4  ;;  %5256 = vmatpush3.bf16.msra.mxu1 %v6920_v22 }
 0x3cf   :  { %5229 = vmatprep.subr.bf16.mxu0 %v6515_v55  ;;  %5257 = vmatprep.subr.bf16.mxu1 %v7798_v38  ;;  %v1824_v55 = vld [vmem:[#allocation4 + $0xd8] sm:$0xff] }
 0x3d0   :  { %v6935_v60 = vpack.c.bf16 %v1824_v55, %v1821_v0  ;;  %v1833_v0 = vld [vmem:[#allocation4 + $0x120] sm:$0xff]  ;;  %v1836_v55 = vld [vmem:[#allocation4 + $0x138] sm:$0xff] }
 0x3d1   :  { %v6955_v18 = vpack.c.bf16 %v1836_v55, %v1833_v0  ;;  %v6965_v0 = vpack.c.bf16 %v1842_v44, %v1839_v61  ;;  %v1844_v55 = vld [vmem:[#allocation4 + $0x178] sm:$0xff] }
 0x3d2   :  { %5231 = vmatpush1.bf16.msra.mxu0 %v6926_v28  ;;  %5259 = vmatpush3.bf16.msra.mxu1 %v6928_v26  ;;  %7826 = vst [vmem:[#allocation12_spill] sm:$0xff] %v6935_v60  ;;  %v6968_v40 = vpack.c.bf16 %v1844_v55, %v1841_v24  ;;  %v3717_v61 = vld [vmem:[%s7718_s4 + $0x3] sm:$0x7]  ;;  %v1619_v24 = vrot.slane %v3766_v63, %v6276_v45 }
 0x3d3   :  { %5260 = vmatprep.subr.bf16.mxu1 %v7798_v38  ;;  %5233 = vmatprep.subr.bf16.mxu0 %v6932_v27  ;;  %7831 = vst [vmem:[#allocation17_spill] sm:$0xff] %v6955_v18  ;;  %7834 = vst [vmem:[#allocation20_spill] sm:$0xff] %v6965_v0  ;;  %v1413_v44 = vrot.slane %v3717_v61, %v6276_v45  ;;  %v1417_v55 = vrot.slane %v3717_v61, %v6281_v50 }
 0x3d4   :  { %7835 = vst [vmem:[#allocation21_spill] sm:$0xff] %v6968_v40 }
 0x3d6   :  { %5235 = vmatpush1.bf16.msra.mxu0 %v6935_v60  ;;  %5262 = vmatpush3.bf16.msra.mxu1 %v6938_v2 }
 0x3d7   :  { %5263 = vmatprep.subr.bf16.mxu1 %v7798_v38  ;;  %5237 = vmatprep.subr.bf16.mxu0 %v6942_v31 }
 0x3da   :  { %5239 = vmatpush1.bf16.msra.mxu0 %v6945_v20  ;;  %5265 = vmatpush3.bf16.msra.mxu1 %v6948_v7 }
 0x3db   :  { %5266 = vmatprep.subr.bf16.mxu1 %v7798_v38  ;;  %5241 = vmatprep.subr.bf16.mxu0 %v6952_v54 }
 0x3de   :  { %5243 = vmatpush1.bf16.msra.mxu0 %v6955_v18  ;;  %5268 = vmatpush3.bf16.msra.mxu1 %v6958_v11  ;;  %v1421_v11 = vrot.slane %v3717_v61, %v6290_v30  ;;  %v2032_v61 = vld [vmem:[%s7717_s3 + $0xe8] sm:$0xff] }
 0x3df   :  { %5269 = vmatprep.subr.bf16.mxu1 %v7798_v38  ;;  %5245 = vmatprep.subr.bf16.mxu0 %v6962_v17 }
 0x3e2   :  { %5247 = vmatpush1.bf16.msra.mxu0 %v6965_v0  ;;  %5271 = vmatpush3.bf16.msra.mxu1 %v6968_v40  ;;  %v5710_v0 = vadd.f32 %v1619_v24, %v1413_v44  ;;  %v1627_v40 = vrot.slane %v3766_v63, %v6290_v30 }
 0x3e3   :  { %5273 = vmatprep.subr.bf16.mxu0 %v6533_v34  ;;  %5304 = vmatprep.subr.bf16.mxu1 %v7798_v38  ;;  %v1623_v34 = vrot.slane %v3766_v63, %v6281_v50  ;;  %v2026_v63 = vld [vmem:[%s7717_s3 + $0xb8] sm:$0xff] }
 0x477   :  { %v1562_v10 = vpop.f32.mrb[14].mxu1 }
 0x478   :  { %v4414_v42 = vpop.f32.mrb[15].mxu1 }
 0x479   :  { %v5712_v42 = vadd.f32 %v1623_v34, %v1417_v55  ;;  %v1563_v55 = vadd.f32 %v1562_v10, %v1421_v11  ;;  %v2014_v11 = vld [vmem:[%s7717_s3 + $0x58] sm:$0xff]  ;;  %v2020_v10 = vld [vmem:[%s7717_s3 + $0x88] sm:$0xff] }
 0x47a   :  { %v2038_v34 = vld [vmem:[%s7717_s3 + $0x118] sm:$0xff] }
 0x497   :  { %v1697_v17 = vpop.f32.mrb[6].mxu0  ;;  %v1768_v18 = vpop.f32.mrb[16].mxu1 }
 0x498   :  { %v5711_v54 = vadd.f32 %v5710_v0, %v1697_v17  ;;  %v1699_v20 = vpop.f32.mrb[7].mxu0  ;;  %v4449_v31 = vpop.f32.mrb[17].mxu1  ;;  %v1769_v24 = vadd.f32 %v1768_v18, %v1627_v40  ;;  %v2011_v18 = vld [vmem:[%s7717_s3 + $0x40] sm:$0xff]  ;;  %v2017_v40 = vld [vmem:[%s7717_s3 + $0x70] sm:$0xff] }
 0x499   :  { %v5713_v27 = vadd.f32 %v5712_v42, %v1699_v20  ;;  %v7007_v0 = vpack.c.bf16 %v2014_v11, %v2011_v18  ;;  %v2044_v42 = vld [vmem:[%s7717_s3 + $0x148] sm:$0xff]  ;;  %v2243_v11 = vld [vmem:[#allocation4 + $0x1d8] sm:$0xff] }
 0x49a   :  { %v3767_v60 = vmul.f32 -1.442695, %v5711_v54 }
 0x49b   :  { %v3768_v28 = vmul.f32 -1.442695, %v5713_v27 }
 0x49c   :  { %5780 = vpow2.f32 %v3767_v60 }
 0x49d   :  { %5782 = vpow2.f32 %v3768_v28 }
 0x4a6   :  { %v5781_v4 = vpop.eup %5780 }
 0x4a7   :  { %v1776_v25 = vadd.f32 1.0, %v5781_v4  ;;  %v5783_v57 = vpop.eup %5782  ;;  %v2005_v4 = vld [vmem:[%s7717_s3 + $0x10] sm:$0xff] }
 0x4a8   :  { %v1783_v44 = vadd.f32 1.0, %v5783_v57 }
 0x4a9   :  { %5784 = vrcp.f32 %v1776_v25  ;;  %v2008_v25 = vld [vmem:[%s7717_s3 + $0x28] sm:$0xff] }
 0x4aa   :  { %5786 = vrcp.f32 %v1783_v44  ;;  %v6993_v54 = vpack.c.bf16 %v2008_v25, %v2005_v4  ;;  %v2050_v44 = vld [vmem:[%s7717_s3 + $0x178] sm:$0xff] }
 0x4ab   :  { %v2242_v4 = vld [vmem:[#allocation4 + $0x1d0] sm:$0xff] }
 0x4b3   :  { %v5785_v7 = vpop.eup %5784 }
 0x4b4   :  { %v1786_v17 = vmul.f32 %v5785_v7, %v1769_v24  ;;  %v5787_v20 = vpop.eup %5786  ;;  %v2232_v24 = vld [vmem:[#allocation4 + $0x180] sm:$0xff] }
 0x4b5   :  { %v1789_v60 = vsub.f32 1.0, %v5787_v20  ;;  %v1791_v57 = vmul.f32 %v5787_v20, %v6563_v62  ;;  %v2273_v62 = vld [vmem:[#allocation4 + $0x2c8] sm:$0xff] }
 0x4b6   :  { %v1787_v31 = vadd.f32 %v1786_v17, %v1563_v55  ;;  %v2235_v55 = vld [vmem:[#allocation4 + $0x198] sm:$0xff] }
 0x4b7   :  { %v7096_v17 = vpack.c.bf16 %v2235_v55, %v2232_v24  ;;  %v2253_v24 = vld [vmem:[#allocation4 + $0x228] sm:$0xff]  ;;  %v2252_v55 = vld [vmem:[#allocation4 + $0x220] sm:$0xff] }
 0x4b8   :  { %5788 = vtanh.f32 %v1787_v31  ;;  %v2237_v31 = vld [vmem:[#allocation4 + $0x1a8] sm:$0xff] }
 0x4c2   :  { %v5789_v28 = vpop.eup %5788 }
 0x4c3   :  { %v1790_v27 = vmul.f32 %v5789_v28, %v1789_v60  ;;  %v2239_v60 = vld [vmem:[#allocation4 + $0x1b8] sm:$0xff]  ;;  %v2238_v28 = vld [vmem:[#allocation4 + $0x1b0] sm:$0xff] }
 0x4c4   :  { %v7103_v25 = vpack.c.bf16 %v2242_v4, %v2239_v60  ;;  %v2257_v4 = vld [vmem:[#allocation4 + $0x248] sm:$0xff] }
 0x4c5   :  { %v6995_v7 = vadd.f32 %v1791_v57, %v1790_v27  ;;  %v2241_v27 = vld [vmem:[#allocation4 + $0x1c8] sm:$0xff]  ;;  %v2240_v57 = vld [vmem:[#allocation4 + $0x1c0] sm:$0xff] }
 0x4c6   :  { %v7106_v18 = vpack.c.bf16 %v2241_v27, %v2238_v28  ;;  %v2260_v28 = vld [vmem:[#allocation4 + $0x260] sm:$0xff] }
 0x4c7   :  { %1927 = vmatmul.mubr.f32.vlgmr.msra.gmra.mrb[8].mxu0 %v6995_v7  ;;  %4483 = vmatmul.mubr.f32.vlgmr.msra.gmra.mrb[18].mxu1 %v6995_v7  ;;  %v7133_v27 = vpack.c.bf16 %v2260_v28, %v2257_v4  ;;  %v2269_v4 = vld [vmem:[#allocation4 + $0x2a8] sm:$0xff]  ;;  %v2272_v28 = vld [vmem:[#allocation4 + $0x2c0] sm:$0xff] }
 0x4c8   :  { %5275 = vmatpush1.bf16.msra.mxu0 %v6561_v58  ;;  %5306 = vmatpush3.bf16.msra.mxu1 %v6993_v54  ;;  %v7022_v58 = vpack.c.bf16 %v2020_v10, %v2017_v40  ;;  %v7109_v40 = vpack.c.bf16 %v2243_v11, %v2240_v57  ;;  %v2245_v10 = vld [vmem:[#allocation4 + $0x1e8] sm:$0xff]  ;;  %v2256_v57 = vld [vmem:[#allocation4 + $0x240] sm:$0xff]  ;;  %v2259_v11 = vld [vmem:[#allocation4 + $0x258] sm:$0xff] }
 0x4c9   :  { %5277 = vmatprep.subr.bf16.mxu0 %v6565_v3  ;;  %5307 = vmatprep.subr.bf16.mxu1 %v7798_v38  ;;  %v2023_v3 = vld [vmem:[%s7717_s3 + $0xa0] sm:$0xff]  ;;  %7841 = vst [vmem:[#allocation28_spill] sm:$0xff] %v7133_v27 }
 0x4ca   :  { %2132 = vmatprep.mubr.f32.mxu0 %v7799_v41  ;;  %4517 = vmatprep.mubr.msk.f32.mxu1 %vm5859_vm0, %v7799_v41 }
 0x4cc   :  { %5279 = vmatpush1.bf16.msra.mxu0 %v6583_v39  ;;  %5309 = vmatpush3.bf16.msra.mxu1 %v7007_v0  ;;  %v7034_v39 = vpack.c.bf16 %v2026_v63, %v2023_v3  ;;  %v2248_v3 = vld [vmem:[#allocation4 + $0x200] sm:$0xff] }
 0x4cd   :  { %5281 = vmatprep.subr.bf16.mxu0 %v6587_v59  ;;  %5310 = vmatprep.subr.bf16.mxu1 %v7798_v38  ;;  %v2029_v59 = vld [vmem:[%s7717_s3 + $0xd0] sm:$0xff]  ;;  %v7113_v63 = vpack.c.bf16 %v2248_v3, %v2245_v10  ;;  %v2258_v10 = vld [vmem:[#allocation4 + $0x250] sm:$0xff]  ;;  %v7136_v3 = vpack.c.bf16 %v2259_v11, %v2256_v57  ;;  %v7151_v11 = vpack.c.bf16 %v2272_v28, %v2269_v4  ;;  %v2276_v28 = vld [vmem:[#allocation4 + $0x2e0] sm:$0xff] }
 0x4ce   :  { %v2277_v4 = vld [vmem:[#allocation4 + $0x2e8] sm:$0xff] }
 0x4cf   :  { %7842 = vst [vmem:[#allocation29_spill] sm:$0xff] %v7136_v3  ;;  %7847 = vst [vmem:[#allocation34_spill] sm:$0xff] %v7151_v11 }
 0x4d0   :  { %5283 = vmatpush1.bf16.msra.mxu0 %v6606_v14  ;;  %5312 = vmatpush3.bf16.msra.mxu1 %v7022_v58  ;;  %v7046_v14 = vpack.c.bf16 %v2032_v61, %v2029_v59  ;;  %v2244_v59 = vld [vmem:[#allocation4 + $0x1e0] sm:$0xff]  ;;  %v2247_v61 = vld [vmem:[#allocation4 + $0x1f8] sm:$0xff] }
 0x4d1   :  { %5285 = vmatprep.subr.bf16.mxu0 %v6610_v6  ;;  %5313 = vmatprep.subr.bf16.mxu1 %v7798_v38  ;;  %v2035_v6 = vld [vmem:[%s7717_s3 + $0x100] sm:$0xff] }
 0x4d4   :  { %5287 = vmatpush1.bf16.msra.mxu0 %v6626_v47  ;;  %5315 = vmatpush3.bf16.msra.mxu1 %v7034_v39  ;;  %v7058_v47 = vpack.c.bf16 %v2038_v34, %v2035_v6  ;;  %v2246_v6 = vld [vmem:[#allocation4 + $0x1f0] sm:$0xff]  ;;  %v7116_v34 = vpack.c.bf16 %v2247_v61, %v2244_v59  ;;  %v2261_v59 = vld [vmem:[#allocation4 + $0x268] sm:$0xff] }
 0x4d5   :  { %5289 = vmatprep.subr.bf16.mxu0 %v6630_v52  ;;  %5316 = vmatprep.subr.bf16.mxu1 %v7798_v38  ;;  %v2041_v52 = vld [vmem:[%s7717_s3 + $0x130] sm:$0xff]  ;;  %v7139_v61 = vpack.c.bf16 %v2261_v59, %v2258_v10  ;;  %v2268_v10 = vld [vmem:[#allocation4 + $0x2a0] sm:$0xff]  ;;  %v2271_v59 = vld [vmem:[#allocation4 + $0x2b8] sm:$0xff] }
 0x4d6   :  { %7836 = vst [vmem:[#allocation22_spill] sm:$0xff] %v7116_v34 }
 0x4d7   :  { %7843 = vst [vmem:[#allocation30_spill] sm:$0xff] %v7139_v61 }
 0x4d8   :  { %5291 = vmatpush1.bf16.msra.mxu0 %v6646_v12  ;;  %5318 = vmatpush3.bf16.msra.mxu1 %v7046_v14  ;;  %v7070_v12 = vpack.c.bf16 %v2044_v42, %v2041_v52  ;;  %v2249_v52 = vld [vmem:[#allocation4 + $0x208] sm:$0xff] }
 0x4d9   :  { %5293 = vmatprep.subr.bf16.mxu0 %v6650_v15  ;;  %5319 = vmatprep.subr.bf16.mxu1 %v7798_v38  ;;  %v2047_v15 = vld [vmem:[%s7717_s3 + $0x160] sm:$0xff]  ;;  %v7119_v42 = vpack.c.bf16 %v2249_v52, %v2246_v6  ;;  %v2266_v52 = vld [vmem:[#allocation4 + $0x290] sm:$0xff] }
 0x4da   :  { %v2263_v6 = vld [vmem:[#allocation4 + $0x278] sm:$0xff] }
 0x4db   :  { %7837 = vst [vmem:[#allocation23_spill] sm:$0xff] %v7119_v42 }
 0x4dc   :  { %5295 = vmatpush1.bf16.msra.mxu0 %v6666_v49  ;;  %5321 = vmatpush3.bf16.msra.mxu1 %v7058_v47  ;;  %v7082_v49 = vpack.c.bf16 %v2050_v44, %v2047_v15  ;;  %v2251_v15 = vld [vmem:[#allocation4 + $0x218] sm:$0xff]  ;;  %v2254_v44 = vld [vmem:[#allocation4 + $0x230] sm:$0xff] }
 0x4dd   :  { %5297 = vmatprep.subr.bf16.mxu0 %v6670_v29  ;;  %5322 = vmatprep.subr.bf16.mxu1 %v7798_v38  ;;  %v2233_v29 = vld [vmem:[#allocation4 + $0x188] sm:$0xff] }
 0x4e0   :  { %5299 = vmatpush1.bf16.msra.mxu0 %v6686_v33  ;;  %5324 = vmatpush3.bf16.msra.mxu1 %v7070_v12  ;;  %v2236_v33 = vld [vmem:[#allocation4 + $0x1a0] sm:$0xff] }
 0x4e1   :  { %5301 = vmatprep.subr.bf16.mxu0 %v6690_v19  ;;  %5325 = vmatprep.subr.bf16.mxu1 %v7798_v38  ;;  %v7094_v19 = vpack.c.bf16 %v2236_v33, %v2233_v29  ;;  %v7123_v29 = vpack.c.bf16 %v2254_v44, %v2251_v15  ;;  %v2250_v33 = vld [vmem:[#allocation4 + $0x210] sm:$0xff]  ;;  %v7143_v15 = vpack.c.bf16 %v2266_v52, %v2263_v6 }
 0x4e2   :  { %v2262_v44 = vld [vmem:[#allocation4 + $0x270] sm:$0xff]  ;;  %v7154_v52 = vpack.c.bf16 %v2271_v59, %v2268_v10  ;;  %v3773_v10 = vld [vmem:[%s7717_s3 + $0x188] sm:$0xff]  ;;  %v3776_v59 = vld [vmem:[%s7717_s3 + $0x1a0] sm:$0xff] }
 0x4e3   :  { %7838 = vst [vmem:[#allocation24_spill] sm:$0xff] %v7123_v29  ;;  %7844 = vst [vmem:[#allocation31_spill] sm:$0xff] %v7143_v15  ;;  %v2270_v6 = vld [vmem:[#allocation4 + $0x2b0] sm:$0xff] }
 0x4e4   :  { %5303 = vmatpush1.bf16.msra.mxu0 %v6700_v32  ;;  %5327 = vmatpush3.bf16.msra.mxu1 %v7082_v49  ;;  %v2234_v32 = vld [vmem:[#allocation4 + $0x190] sm:$0xff]  ;;  %7848 = vst [vmem:[#allocation35_spill] sm:$0xff] %v7154_v52 }
 0x4e5   :  { %5360 = vmatprep.subr.bf16.mxu1 %v7798_v38  ;;  %5329 = vmatprep.subr.bf16.mxu0 %v7094_v19  ;;  %v7099_v20 = vpack.c.bf16 %v2237_v31, %v2234_v32  ;;  %v7126_v32 = vpack.c.bf16 %v2253_v24, %v2250_v33  ;;  %v2255_v31 = vld [vmem:[#allocation4 + $0x238] sm:$0xff]  ;;  %v2265_v33 = vld [vmem:[#allocation4 + $0x288] sm:$0xff]  ;;  %v2264_v24 = vld [vmem:[#allocation4 + $0x280] sm:$0xff] }
 0x4e6   :  { %v7129_v60 = vpack.c.bf16 %v2255_v31, %v2252_v55  ;;  %v7146_v55 = vpack.c.bf16 %v2265_v33, %v2262_v44  ;;  %v2267_v31 = vld [vmem:[#allocation4 + $0x298] sm:$0xff]  ;;  %v2278_v44 = vld [vmem:[#allocation4 + $0x2f0] sm:$0xff]  ;;  %v7158_v33 = vpack.c.bf16 %v2273_v62, %v2270_v6  ;;  %v7176_v6 = vpack.c.bf16 %v3776_v59, %v3773_v10 }
 0x4e7   :  { %2133 = vmatmul.mubr.f32.vlgmr.msra.gmra.mrb[8].mxu0 %v6758_v46  ;;  %4518 = vmatmul.mubr.f32.vlgmr.msra.gmra.mrb[20].mxu1 %v6758_v46  ;;  %7839 = vst [vmem:[#allocation25_spill] sm:$0xff] %v7126_v32  ;;  %v7149_v57 = vpack.c.bf16 %v2267_v31, %v2264_v24  ;;  %v2274_v31 = vld [vmem:[#allocation4 + $0x2d0] sm:$0xff] }
 0x4e8   :  { %2361 = vmatprep.mubr.f32.mxu0 %v7799_v41  ;;  %4552 = vmatprep.mubr.msk.f32.mxu1 %vm5859_vm0, %v7799_v41  ;;  %7840 = vst [vmem:[#allocation27_spill] sm:$0xff] %v7129_v60  ;;  %7845 = vst [vmem:[#allocation32_spill] sm:$0xff] %v7146_v55  ;;  %v7170_v62 = vpack.c.bf16 %v2277_v4, %v2274_v31  ;;  %v2051_v4 = vld [vmem:[%s7719_s5] sm:$0x7] }
 0x4e9   :  { %5331 = vmatpush1.bf16.msra.mxu0 %v7096_v17  ;;  %5362 = vmatpush3.bf16.msra.mxu1 %v7099_v20  ;;  %7846 = vst [vmem:[#allocation33_spill] sm:$0xff] %v7149_v57  ;;  %7849 = vst [vmem:[#allocation36_spill] sm:$0xff] %v7158_v33  ;;  %v2056_v10 = vrot.slane %v2051_v4, %v6276_v45 }
 0x4ea   :  { %5363 = vmatprep.subr.bf16.mxu1 %v7798_v38  ;;  %5333 = vmatprep.subr.bf16.mxu0 %v7103_v25  ;;  %7851 = vst [vmem:[#allocation38_spill] sm:$0xff] %v7170_v62  ;;  %7853 = vst [vmem:[#allocation40_spill] sm:$0xff] %v7176_v6 }
 0x4ed   :  { %5335 = vmatpush1.bf16.msra.mxu0 %v7106_v18  ;;  %5365 = vmatpush3.bf16.msra.mxu1 %v7109_v40 }
 0x4ee   :  { %5366 = vmatprep.subr.bf16.mxu1 %v7798_v38  ;;  %5337 = vmatprep.subr.bf16.mxu0 %v7113_v63 }
 0x4f1   :  { %5339 = vmatpush1.bf16.msra.mxu0 %v7116_v34  ;;  %5368 = vmatpush3.bf16.msra.mxu1 %v7119_v42 }
 0x4f2   :  { %5369 = vmatprep.subr.bf16.mxu1 %v7798_v38  ;;  %5341 = vmatprep.subr.bf16.mxu0 %v7123_v29  ;;  %v2064_v29 = vrot.slane %v2051_v4, %v6290_v30 }
 0x4f5   :  { %5343 = vmatpush1.bf16.msra.mxu0 %v7126_v32  ;;  %5371 = vmatpush3.bf16.msra.mxu1 %v7129_v60 }
 0x4f6   :  { %5372 = vmatprep.subr.bf16.mxu1 %v7798_v38  ;;  %5345 = vmatprep.subr.bf16.mxu0 %v7133_v27 }
 0x4f9   :  { %5347 = vmatpush1.bf16.msra.mxu0 %v7136_v3  ;;  %5374 = vmatpush3.bf16.msra.mxu1 %v7139_v61  ;;  %v2275_v61 = vld [vmem:[#allocation4 + $0x2d8] sm:$0xff] }
 0x4fa   :  { %5375 = vmatprep.subr.bf16.mxu1 %v7798_v38  ;;  %5349 = vmatprep.subr.bf16.mxu0 %v7143_v15  ;;  %v7160_v24 = vpack.c.bf16 %v2278_v44, %v2275_v61  ;;  %v2279_v15 = vld [vmem:[#allocation4 + $0x2f8] sm:$0xff] }
 0x4fb   :  { %v7174_v61 = vpack.c.bf16 %v2279_v15, %v2276_v28  ;;  %v1845_v15 = vld [vmem:[%s7718_s4] sm:$0x7] }
 0x4fc   :  { %7850 = vst [vmem:[#allocation37_spill] sm:$0xff] %v7160_v24  ;;  %v1850_v28 = vrot.slane %v1845_v15, %v6276_v45  ;;  %v1854_v59 = vrot.slane %v1845_v15, %v6281_v50  ;;  %v1858_v42 = vrot.slane %v1845_v15, %v6290_v30 }
 0x4fd   :  { %5351 = vmatpush1.bf16.msra.mxu0 %v7146_v55  ;;  %5377 = vmatpush3.bf16.msra.mxu1 %v7149_v57  ;;  %7852 = vst [vmem:[#allocation39_spill] sm:$0xff] %v7174_v61 }
 0x4fe   :  { %5353 = vmatprep.subr.bf16.mxu0 %v7151_v11  ;;  %5378 = vmatprep.subr.bf16.mxu1 %v7798_v38 }
 0x501   :  { %5355 = vmatpush1.bf16.msra.mxu0 %v7154_v52  ;;  %5380 = vmatpush3.bf16.msra.mxu1 %v7158_v33 }
 0x502   :  { %5357 = vmatprep.subr.bf16.mxu0 %v7160_v24  ;;  %5381 = vmatprep.subr.bf16.mxu1 %v7798_v38 }
 0x505   :  { %5359 = vmatpush1.bf16.msra.mxu0 %v7170_v62  ;;  %5383 = vmatpush3.bf16.msra.mxu1 %v7174_v61  ;;  %v5714_v61 = vadd.f32 %v2056_v10, %v1850_v28 }
 0x506   :  { %5385 = vmatprep.subr.bf16.mxu0 %v7176_v6  ;;  %5416 = vmatprep.subr.bf16.mxu1 %v7798_v38  ;;  %v2060_v6 = vrot.slane %v2051_v4, %v6281_v50 }
 0x59a   :  { %v1999_v44 = vpop.f32.mrb[18].mxu1 }
 0x59b   :  { %v4484_v31 = vpop.f32.mrb[19].mxu1 }
 0x59c   :  { %v5716_v31 = vadd.f32 %v2060_v6, %v1854_v59  ;;  %v2000_v6 = vadd.f32 %v1999_v44, %v1858_v42  ;;  %v3778_v44 = vld [vmem:[%s7717_s3 + $0x1b0] sm:$0xff]  ;;  %v3781_v59 = vld [vmem:[%s7717_s3 + $0x1c8] sm:$0xff] }
 0x5ba   :  { %v2134_v62 = vpop.f32.mrb[8].mxu0  ;;  %v2205_v24 = vpop.f32.mrb[20].mxu1 }
 0x5bb   :  { %v5715_v33 = vadd.f32 %v5714_v61, %v2134_v62  ;;  %v2136_v52 = vpop.f32.mrb[9].mxu0  ;;  %v4519_v11 = vpop.f32.mrb[21].mxu1  ;;  %v2206_v10 = vadd.f32 %v2205_v24, %v2064_v29  ;;  %v3774_v29 = vld [vmem:[%s7717_s3 + $0x190] sm:$0xff] }
 0x5bc   :  { %v5717_v55 = vadd.f32 %v5716_v31, %v2136_v52  ;;  %v3783_v31 = vld [vmem:[%s7717_s3 + $0x1d8] sm:$0xff] }
 0x5bd   :  { %v3769_v57 = vmul.f32 -1.442695, %v5715_v33 }
 0x5be   :  { %v3770_v3 = vmul.f32 -1.442695, %v5717_v55  ;;  %v3782_v55 = vld [vmem:[%s7717_s3 + $0x1d0] sm:$0xff] }
 0x5bf   :  { %5790 = vpow2.f32 %v3769_v57 }
 0x5c0   :  { %5792 = vpow2.f32 %v3770_v3  ;;  %v3772_v3 = vld [vmem:[%s7717_s3 + $0x180] sm:$0xff] }
 0x5c9   :  { %v5791_v27 = vpop.eup %5790 }
 0x5ca   :  { %v2213_v60 = vadd.f32 1.0, %v5791_v27  ;;  %v5793_v32 = vpop.eup %5792 }
 0x5cb   :  { %v2220_v28 = vadd.f32 1.0, %v5793_v32  ;;  %v3779_v32 = vld [vmem:[%s7717_s3 + $0x1b8] sm:$0xff] }
 0x5cc   :  { %5794 = vrcp.f32 %v2213_v60  ;;  %v3775_v60 = vld [vmem:[%s7717_s3 + $0x198] sm:$0xff]  ;;  %v7223_v15 = vpack.c.bf16 %v3782_v55, %v3779_v32  ;;  %v7860_v55 = vld [vmem:[#allocation10_spill] sm:$0xff] }
 0x5cd   :  { %5796 = vrcp.f32 %v2220_v28  ;;  %v7214_v24 = vpack.c.bf16 %v3775_v60, %v3772_v3  ;;  %v7238_v28 = vpack.c.bf16 %v3781_v59, %v3778_v44  ;;  %v3795_v3 = vld [vmem:[%s7717_s3 + $0x238] sm:$0xff]  ;;  %v3801_v60 = vld [vmem:[%s7717_s3 + $0x268] sm:$0xff]  ;;  %v7864_v59 = vld [vmem:[#allocation14_spill] sm:$0xff] }
 0x5ce   :  { %v7863_v44 = vld [vmem:[#allocation13_spill] sm:$0xff] }
 0x5d6   :  { %v5795_v34 = vpop.eup %5794 }
 0x5d7   :  { %v2223_v62 = vmul.f32 %v5795_v34, %v2206_v10  ;;  %v5797_v52 = vpop.eup %5796  ;;  %v3777_v34 = vld [vmem:[%s7717_s3 + $0x1a8] sm:$0xff] }
 0x5d8   :  { %v2226_v27 = vsub.f32 1.0, %v5797_v52  ;;  %v2228_v33 = vmul.f32 %v5797_v52, %v6758_v46  ;;  %v7216_v61 = vpack.c.bf16 %v3777_v34, %v3774_v29  ;;  %v3780_v46 = vld [vmem:[%s7717_s3 + $0x1c0] sm:$0xff]  ;;  %v3807_v29 = vld [vmem:[%s7717_s3 + $0x298] sm:$0xff]  ;;  %v3813_v34 = vld [vmem:[%s7717_s3 + $0x2c8] sm:$0xff] }
 0x5d9   :  { %v2224_v11 = vadd.f32 %v2223_v62, %v2000_v6  ;;  %v7240_v10 = vpack.c.bf16 %v3783_v31, %v3780_v46  ;;  %v3786_v6 = vld [vmem:[%s7717_s3 + $0x1f0] sm:$0xff]  ;;  %v3789_v62 = vld [vmem:[%s7717_s3 + $0x208] sm:$0xff]  ;;  %v3792_v52 = vld [vmem:[%s7717_s3 + $0x220] sm:$0xff] }
 0x5da   :  { %v7865_v46 = vld [vmem:[#allocation16_spill] sm:$0xff]  ;;  %v7866_v31 = vld [vmem:[#allocation17_spill] sm:$0xff] }
 0x5db   :  { %5798 = vtanh.f32 %v2224_v11  ;;  %v7255_v11 = vpack.c.bf16 %v3789_v62, %v3786_v6  ;;  %v7867_v6 = vld [vmem:[#allocation19_spill] sm:$0xff]  ;;  %v7868_v62 = vld [vmem:[#allocation20_spill] sm:$0xff] }
 0x5e5   :  { %v5799_v42 = vpop.eup %5798 }
 0x5e6   :  { %v2227_v57 = vmul.f32 %v5799_v42, %v2226_v27  ;;  %v7267_v27 = vpack.c.bf16 %v3795_v3, %v3792_v52  ;;  %v3819_v42 = vld [vmem:[%s7717_s3 + $0x2f8] sm:$0xff]  ;;  %v2876_v52 = vld [vmem:[%s7717_s3 + $0x8] sm:$0xff]  ;;  %v2879_v3 = vld [vmem:[%s7717_s3 + $0x20] sm:$0xff] }
 0x5e8   :  { %v7221_v4 = vadd.f32 %v2228_v33, %v2227_v57  ;;  %v7861_v57 = vld [vmem:[#allocation11_spill] sm:$0xff]  ;;  %v7862_v33 = vld [vmem:[#allocation12_spill] sm:$0xff] }
 0x5ea   :  { %2362 = vmatmul.mubr.f32.vlgmr.msra.gmra.mrb[10].mxu0 %v7221_v4  ;;  %4553 = vmatmul.mubr.f32.vlgmr.msra.gmra.mrb[22].mxu1 %v7221_v4 }
 0x5eb   :  { %5387 = vmatpush1.bf16.msra.mxu0 %v7214_v24  ;;  %5418 = vmatpush3.bf16.msra.mxu1 %v7216_v61 }
 0x5ec   :  { %5389 = vmatprep.subr.bf16.mxu0 %v7223_v15  ;;  %5419 = vmatprep.subr.bf16.mxu1 %v7798_v38 }
 0x5ed   :  { %2567 = vmatprep.mubr.f32.mxu0 %v7799_v41  ;;  %4587 = vmatprep.mubr.msk.f32.mxu1 %vm5859_vm0, %v7799_v41 }
 0x5ef   :  { %5391 = vmatpush1.bf16.msra.mxu0 %v7238_v28  ;;  %5421 = vmatpush3.bf16.msra.mxu1 %v7240_v10 }
 0x5f0   :  { %5393 = vmatprep.subr.bf16.mxu0 %v6772_v23  ;;  %5422 = vmatprep.subr.bf16.mxu1 %v7798_v38  ;;  %v3798_v23 = vld [vmem:[%s7717_s3 + $0x250] sm:$0xff] }
 0x5f3   :  { %5395 = vmatpush1.bf16.msra.mxu0 %v6791_v43  ;;  %5424 = vmatpush3.bf16.msra.mxu1 %v7255_v11  ;;  %v7279_v43 = vpack.c.bf16 %v3801_v60, %v3798_v23  ;;  %v5496_v23 = vpack.c.bf16 %v2879_v3, %v2876_v52 }
 0x5f4   :  { %5397 = vmatprep.subr.bf16.mxu0 %v6795_v53  ;;  %5425 = vmatprep.subr.bf16.mxu1 %v7798_v38  ;;  %v3804_v53 = vld [vmem:[%s7717_s3 + $0x280] sm:$0xff] }
 0x5f7   :  { %5399 = vmatpush1.bf16.msra.mxu0 %v6811_v48  ;;  %5427 = vmatpush3.bf16.msra.mxu1 %v7267_v27  ;;  %v7291_v48 = vpack.c.bf16 %v3807_v29, %v3804_v53  ;;  %v3820_v29 = vld [vmem:[%s7719_s5 + $0x3] sm:$0x7] }
 0x5f8   :  { %5401 = vmatprep.subr.bf16.mxu0 %v6815_v56  ;;  %5428 = vmatprep.subr.bf16.mxu1 %v7798_v38  ;;  %v3810_v56 = vld [vmem:[%s7717_s3 + $0x2b0] sm:$0xff] }
 0x5fb   :  { %5403 = vmatpush1.bf16.msra.mxu0 %v6831_v13  ;;  %5430 = vmatpush3.bf16.msra.mxu1 %v7279_v43  ;;  %v7303_v13 = vpack.c.bf16 %v3813_v34, %v3810_v56  ;;  %v3771_v56 = vld [vmem:[%s7718_s4 + $0x3] sm:$0x7] }
 0x5fc   :  { %5405 = vmatprep.subr.bf16.mxu0 %v6835_v21  ;;  %5431 = vmatprep.subr.bf16.mxu1 %v7798_v38  ;;  %v3816_v21 = vld [vmem:[%s7717_s3 + $0x2e0] sm:$0xff]  ;;  %v2285_v34 = vrot.slane %v3771_v56, %v6276_v45 }
 0x5ff   :  { %5407 = vmatpush1.bf16.msra.mxu0 %v6851_v16  ;;  %5433 = vmatpush3.bf16.msra.mxu1 %v7291_v48  ;;  %v7315_v16 = vpack.c.bf16 %v3819_v42, %v3816_v21  ;;  %v2491_v21 = vrot.slane %v3820_v29, %v6276_v45  ;;  %v2289_v42 = vrot.slane %v3771_v56, %v6281_v50 }
 0x600   :  { %5409 = vmatprep.subr.bf16.mxu0 %v6855_v8  ;;  %5434 = vmatprep.subr.bf16.mxu1 %v7798_v38  ;;  %v7854_v8 = vld [vmem:[#allocation15_spill] sm:$0xff] }
 0x603   :  { %5411 = vmatpush1.bf16.msra.mxu0 %v6871_v1  ;;  %5436 = vmatpush3.bf16.msra.mxu1 %v7303_v13  ;;  %v7855_v1 = vld [vmem:[#allocation18_spill] sm:$0xff] }
 0x604   :  { %5413 = vmatprep.subr.bf16.mxu0 %v6875_v37  ;;  %5437 = vmatprep.subr.bf16.mxu1 %v7798_v38  ;;  %v7856_v37 = vld [vmem:[#allocation21_spill] sm:$0xff] }
 0x607   :  { %5415 = vmatpush1.bf16.msra.mxu0 %v6885_v9  ;;  %5439 = vmatpush3.bf16.msra.mxu1 %v7315_v16  ;;  %v2676_v9 = vld [vmem:[#allocation4 + $0x38] sm:$0xff] }
 0x608   :  { %5441 = vmatprep.subr.bf16.mxu0 %v6897_v51  ;;  %5472 = vmatprep.subr.bf16.mxu1 %v7798_v38  ;;  %v2679_v51 = vld [vmem:[#allocation4 + $0x50] sm:$0xff] }
 0x60a   :  { %2568 = vmatmul.mubr.f32.vlgmr.msra.gmra.mrb[10].mxu0 %v6995_v7  ;;  %4588 = vmatmul.mubr.f32.vlgmr.msra.gmra.mrb[24].mxu1 %v6995_v7 }
 0x60b   :  { %5443 = vmatpush1.bf16.msra.mxu0 %v6899_v35  ;;  %5474 = vmatpush3.bf16.msra.mxu1 %v6902_v36  ;;  %v5444_v35 = vpack.c.bf16 %v2679_v51, %v2676_v9  ;;  %v7857_v36 = vld [vmem:[#allocation7_spill] sm:$0xff] }
 0x60c   :  { %5475 = vmatprep.subr.bf16.mxu1 %v7798_v38  ;;  %2798 = vmatprep.mubr.f32.mxu0 %v7799_v41 }
 0x60d   :  { %4622 = vmatprep.mubr.msk.f32.mxu1 %vm5859_vm0, %v7799_v41  ;;  %5445 = vmatprep.subr.bf16.mxu0 %v5444_v35 }
 0x60f   :  { %5477 = vmatpush3.bf16.msra.mxu1 %v6910_v5  ;;  %5447 = vmatpush1.bf16.msra.mxu0 %v7857_v36  ;;  %v7858_v5 = vld [vmem:[#allocation8_spill] sm:$0xff] }
 0x610   :  { %5478 = vmatprep.subr.bf16.mxu1 %v7798_v38  ;;  %5449 = vmatprep.subr.bf16.mxu0 %v7858_v5 }
 0x613   :  { %5480 = vmatpush3.bf16.msra.mxu1 %v6920_v22  ;;  %v7859_v22 = vld [vmem:[#allocation9_spill] sm:$0xff] }
 0x614   :  { %5481 = vmatprep.subr.bf16.mxu1 %v7798_v38  ;;  %5451 = vmatpush1.bf16.msra.mxu0 %v7859_v22 }
 0x617   :  { %5483 = vmatpush3.bf16.msra.mxu1 %v6928_v26  ;;  %v2688_v26 = vld [vmem:[#allocation4 + $0x98] sm:$0xff] }
 0x618   :  { %5484 = vmatprep.subr.bf16.mxu1 %v7798_v38 }
 0x61b   :  { %5486 = vmatpush3.bf16.msra.mxu1 %v6938_v2  ;;  %v2691_v2 = vld [vmem:[#allocation4 + $0xb0] sm:$0xff] }
 0x61c   :  { %5487 = vmatprep.subr.bf16.mxu1 %v7798_v38  ;;  %v5452_v32 = vpack.c.bf16 %v2691_v2, %v2688_v26 }
 0x61e   :  { %5453 = vmatprep.subr.bf16.mxu0 %v5452_v32 }
 0x61f   :  { %5489 = vmatpush3.bf16.msra.mxu1 %v7854_v8  ;;  %5455 = vmatpush1.bf16.msra.mxu0 %v7860_v55  ;;  %v2495_v8 = vrot.slane %v3820_v29, %v6281_v50 }
 0x620   :  { %5490 = vmatprep.subr.bf16.mxu1 %v7798_v38  ;;  %5457 = vmatprep.subr.bf16.mxu0 %v7861_v57 }
 0x621   :  { %v5720_v51 = vadd.f32 %v2495_v8, %v2289_v42 }
 0x623   :  { %5492 = vmatpush3.bf16.msra.mxu1 %v7855_v1  ;;  %5459 = vmatpush1.bf16.msra.mxu0 %v7862_v33  ;;  %v5718_v1 = vadd.f32 %v2491_v21, %v2285_v34  ;;  %v2499_v33 = vrot.slane %v3820_v29, %v6290_v30  ;;  %v2878_v29 = vld [vmem:[%s7717_s3 + $0x18] sm:$0xff] }
 0x624   :  { %5493 = vmatprep.subr.bf16.mxu1 %v7798_v38  ;;  %5461 = vmatprep.subr.bf16.mxu0 %v7863_v44  ;;  %v2293_v44 = vrot.slane %v3771_v56, %v6290_v30  ;;  %v2882_v56 = vld [vmem:[%s7717_s3 + $0x38] sm:$0xff] }
 0x627   :  { %5495 = vmatpush3.bf16.msra.mxu1 %v7856_v37  ;;  %5463 = vmatpush1.bf16.msra.mxu0 %v7864_v59 }
 0x628   :  { %5528 = vmatprep.subr.bf16.mxu1 %v7798_v38  ;;  %5465 = vmatprep.subr.bf16.mxu0 %v7865_v46 }
 0x62b   :  { %5467 = vmatpush1.bf16.msra.mxu0 %v7866_v31 }
 0x62c   :  { %5469 = vmatprep.subr.bf16.mxu0 %v7867_v6 }
 0x62f   :  { %5471 = vmatpush1.bf16.msra.mxu0 %v7868_v62 }
 0x630   :  { %5497 = vmatprep.subr.bf16.mxu0 %v5496_v23 }
 0x6bd   :  { %v2434_v60 = vpop.f32.mrb[22].mxu1 }
 0x6be   :  { %v4554_v53 = vpop.f32.mrb[23].mxu1  ;;  %v2435_v6 = vadd.f32 %v2434_v60, %v2293_v44  ;;  %v2885_v60 = vld [vmem:[%s7717_s3 + $0x50] sm:$0xff]  ;;  %v2896_v44 = vld [vmem:[%s7717_s3 + $0xa8] sm:$0xff] }
 0x6bf   :  { %v2875_v53 = vld [vmem:[%s7717_s3] sm:$0xff] }
 0x6c0   :  { %v5498_v8 = vpack.c.bf16 %v2878_v29, %v2875_v53  ;;  %v2905_v53 = vld [vmem:[%s7717_s3 + $0xf0] sm:$0xff]  ;;  %v2908_v29 = vld [vmem:[%s7717_s3 + $0x108] sm:$0xff] }
 0x6dd   :  { %v2569_v37 = vpop.f32.mrb[10].mxu0  ;;  %v2640_v9 = vpop.f32.mrb[24].mxu1 }
 0x6de   :  { %v5719_v35 = vadd.f32 %v5718_v1, %v2569_v37  ;;  %v2571_v36 = vpop.f32.mrb[11].mxu0  ;;  %v4589_v5 = vpop.f32.mrb[25].mxu1  ;;  %v2641_v46 = vadd.f32 %v2640_v9, %v2499_v33  ;;  %v5500_v37 = vpack.c.bf16 %v2885_v60, %v2882_v56  ;;  %v2881_v9 = vld [vmem:[%s7717_s3 + $0x30] sm:$0xff]  ;;  %v5518_v56 = vpack.c.bf16 %v2908_v29, %v2905_v53 }
 0x6df   :  { %v5721_v26 = vadd.f32 %v5720_v51, %v2571_v36  ;;  %v2884_v51 = vld [vmem:[%s7717_s3 + $0x48] sm:$0xff]  ;;  %v2891_v36 = vld [vmem:[%s7717_s3 + $0x80] sm:$0xff]  ;;  %v2893_v33 = vld [vmem:[%s7717_s3 + $0x90] sm:$0xff] }
 0x6e0   :  { %v3821_v22 = vmul.f32 -1.442695, %v5719_v35  ;;  %v2888_v35 = vld [vmem:[%s7717_s3 + $0x68] sm:$0xff]  ;;  %v5502_v5 = vpack.c.bf16 %v2884_v51, %v2881_v9  ;;  %v2917_v51 = vld [vmem:[%s7717_s3 + $0x150] sm:$0xff] }
 0x6e1   :  { %v3822_v2 = vmul.f32 -1.442695, %v5721_v26  ;;  %v2887_v26 = vld [vmem:[%s7717_s3 + $0x60] sm:$0xff] }
 0x6e2   :  { %5800 = vpow2.f32 %v3821_v22  ;;  %v5504_v22 = vpack.c.bf16 %v2891_v36, %v2888_v35  ;;  %v2920_v35 = vld [vmem:[%s7717_s3 + $0x168] sm:$0xff] }
 0x6e3   :  { %5802 = vpow2.f32 %v3822_v2  ;;  %v2890_v2 = vld [vmem:[%s7717_s3 + $0x78] sm:$0xff]  ;;  %v5526_v36 = vpack.c.bf16 %v2920_v35, %v2917_v51 }
 0x6ec   :  { %v5801_v32 = vpop.eup %5800 }
 0x6ed   :  { %v2648_v55 = vadd.f32 1.0, %v5801_v32  ;;  %v5803_v57 = vpop.eup %5802  ;;  %v2894_v32 = vld [vmem:[%s7717_s3 + $0x98] sm:$0xff] }
 0x6ee   :  { %v2655_v59 = vadd.f32 1.0, %v5803_v57 }
 0x6ef   :  { %5804 = vrcp.f32 %v2648_v55  ;;  %v5506_v55 = vpack.c.bf16 %v2890_v2, %v2887_v26  ;;  %v7881_v26 = vld [vmem:[#allocation35_spill] sm:$0xff]  ;;  %v7882_v2 = vld [vmem:[#allocation36_spill] sm:$0xff] }
 0x6f0   :  { %5806 = vrcp.f32 %v2655_v59  ;;  %v2900_v59 = vld [vmem:[%s7717_s3 + $0xc8] sm:$0xff] }
 0x6f9   :  { %v5805_v31 = vpop.eup %5804 }
 0x6fa   :  { %v2658_v62 = vmul.f32 %v5805_v31, %v2641_v46  ;;  %v5807_v3 = vpop.eup %5806  ;;  %v5510_v46 = vpack.c.bf16 %v2896_v44, %v2893_v33 }
 0x6fb   :  { %v2661_v23 = vsub.f32 1.0, %v5807_v3  ;;  %v2663_v42 = vmul.f32 %v5807_v3, %v6995_v7 }
 0x6fc   :  { %v2659_v52 = vadd.f32 %v2658_v62, %v2435_v6  ;;  %v2899_v6 = vld [vmem:[%s7717_s3 + $0xc0] sm:$0xff]  ;;  %v2902_v62 = vld [vmem:[%s7717_s3 + $0xd8] sm:$0xff] }
 0x6fd   :  { %v5514_v3 = vpack.c.bf16 %v2902_v62, %v2899_v6 }
 0x6fe   :  { %5808 = vtanh.f32 %v2659_v52  ;;  %v2906_v52 = vld [vmem:[%s7717_s3 + $0xf8] sm:$0xff] }
 0x708   :  { %v5809_v34 = vpop.eup %5808 }
 0x709   :  { %v2662_v21 = vmul.f32 %v5809_v34, %v2661_v23  ;;  %v2912_v34 = vld [vmem:[%s7717_s3 + $0x128] sm:$0xff] }
 0x70b   :  { %v7388_v1 = vadd.f32 %v2663_v42, %v2662_v21  ;;  %v2911_v21 = vld [vmem:[%s7717_s3 + $0x120] sm:$0xff]  ;;  %v2914_v42 = vld [vmem:[%s7717_s3 + $0x138] sm:$0xff] }
 0x70d   :  { %2799 = vmatmul.mubr.f32.vlgmr.msra.gmra.mrb[12].mxu0 %v7388_v1  ;;  %4623 = vmatmul.mubr.f32.vlgmr.msra.gmra.mrb[26].mxu1 %v7388_v1 }
 0x70e   :  { %5499 = vmatpush1.bf16.msra.mxu0 %v5498_v8  ;;  %5530 = vmatpush3.bf16.msra.mxu1 %v6993_v54  ;;  %v2897_v54 = vld [vmem:[%s7717_s3 + $0xb0] sm:$0xff]  ;;  %v2918_v8 = vld [vmem:[%s7717_s3 + $0x158] sm:$0xff] }
 0x70f   :  { %5501 = vmatprep.subr.bf16.mxu0 %v5500_v37  ;;  %5531 = vmatprep.subr.bf16.mxu1 %v7798_v38  ;;  %v5508_v57 = vpack.c.bf16 %v2897_v54, %v2894_v32  ;;  %v5522_v37 = vpack.c.bf16 %v2914_v42, %v2911_v21  ;;  %v7883_v32 = vld [vmem:[#allocation37_spill] sm:$0xff]  ;;  %v7884_v54 = vld [vmem:[#allocation38_spill] sm:$0xff] }
 0x710   :  { %3004 = vmatprep.mubr.f32.mxu0 %v7799_v41  ;;  %4657 = vmatprep.mubr.msk.f32.mxu1 %vm5859_vm0, %v7799_v41 }
 0x712   :  { %5503 = vmatpush1.bf16.msra.mxu0 %v5502_v5  ;;  %5533 = vmatpush3.bf16.msra.mxu1 %v7007_v0  ;;  %v2903_v0 = vld [vmem:[%s7717_s3 + $0xe0] sm:$0xff]  ;;  %v7879_v5 = vld [vmem:[#allocation33_spill] sm:$0xff] }
 0x713   :  { %5505 = vmatprep.subr.bf16.mxu0 %v5504_v22  ;;  %5534 = vmatprep.subr.bf16.mxu1 %v7798_v38  ;;  %v5512_v31 = vpack.c.bf16 %v2903_v0, %v2900_v59  ;;  %v7880_v22 = vld [vmem:[#allocation34_spill] sm:$0xff] }
 0x714   :  { %v2923_v59 = vld [vmem:[%s7719_s5] sm:$0x7] }
 0x715   :  { %v2717_v0 = vld [vmem:[%s7718_s4] sm:$0x7]  ;;  %v2932_v62 = vrot.slane %v2923_v59, %v6281_v50 }
 0x716   :  { %5507 = vmatpush1.bf16.msra.mxu0 %v5506_v55  ;;  %5536 = vmatpush3.bf16.msra.mxu1 %v7022_v58  ;;  %v2909_v58 = vld [vmem:[%s7717_s3 + $0x110] sm:$0xff]  ;;  %v7885_v55 = vld [vmem:[#allocation39_spill] sm:$0xff]  ;;  %v2726_v6 = vrot.slane %v2717_v0, %v6281_v50 }
 0x717   :  { %5509 = vmatprep.subr.bf16.mxu0 %v5508_v57  ;;  %5537 = vmatprep.subr.bf16.mxu1 %v7798_v38  ;;  %v5516_v23 = vpack.c.bf16 %v2909_v58, %v2906_v52  ;;  %v7886_v57 = vld [vmem:[#allocation40_spill] sm:$0xff] }
 0x71a   :  { %5511 = vmatpush1.bf16.msra.mxu0 %v5510_v46  ;;  %5539 = vmatpush3.bf16.msra.mxu1 %v7034_v39  ;;  %v2915_v39 = vld [vmem:[%s7717_s3 + $0x140] sm:$0xff]  ;;  %v2722_v46 = vrot.slane %v2717_v0, %v6276_v45 }
 0x71b   :  { %5513 = vmatprep.subr.bf16.mxu0 %v5512_v31  ;;  %5540 = vmatprep.subr.bf16.mxu1 %v7798_v38  ;;  %v5520_v60 = vpack.c.bf16 %v2915_v39, %v2912_v34  ;;  %v2928_v31 = vrot.slane %v2923_v59, %v6276_v45 }
 0x71d   :  { %v5722_v52 = vadd.f32 %v2928_v31, %v2722_v46  ;;  %v3859_v46 = vld [vmem:[%s7717_s3 + $0x288] sm:$0xff] }
 0x71e   :  { %5515 = vmatpush1.bf16.msra.mxu0 %v5514_v3  ;;  %5542 = vmatpush3.bf16.msra.mxu1 %v7046_v14  ;;  %v2921_v14 = vld [vmem:[%s7717_s3 + $0x170] sm:$0xff]  ;;  %v3863_v31 = vld [vmem:[%s7717_s3 + $0x2a8] sm:$0xff] }
 0x71f   :  { %5517 = vmatprep.subr.bf16.mxu0 %v5516_v23  ;;  %5543 = vmatprep.subr.bf16.mxu1 %v7798_v38  ;;  %v5524_v9 = vpack.c.bf16 %v2921_v14, %v2918_v8  ;;  %v5724_v23 = vadd.f32 %v2932_v62, %v2726_v6  ;;  %v2936_v14 = vrot.slane %v2923_v59, %v6290_v30 }
 0x722   :  { %5519 = vmatpush1.bf16.msra.mxu0 %v5518_v56  ;;  %5545 = vmatpush3.bf16.msra.mxu1 %v7058_v47  ;;  %v7869_v47 = vld [vmem:[#allocation22_spill] sm:$0xff] }
 0x723   :  { %5521 = vmatprep.subr.bf16.mxu0 %v5520_v60  ;;  %5546 = vmatprep.subr.bf16.mxu1 %v7798_v38 }
 0x726   :  { %5523 = vmatpush1.bf16.msra.mxu0 %v5522_v37  ;;  %5548 = vmatpush3.bf16.msra.mxu1 %v7070_v12  ;;  %v7870_v12 = vld [vmem:[#allocation23_spill] sm:$0xff]  ;;  %v2730_v37 = vrot.slane %v2717_v0, %v6290_v30  ;;  %v3856_v0 = vld [vmem:[%s7717_s3 + $0x270] sm:$0xff] }
 0x727   :  { %5525 = vmatprep.subr.bf16.mxu0 %v5524_v9  ;;  %5549 = vmatprep.subr.bf16.mxu1 %v7798_v38  ;;  %v5630_v6 = vpack.c.bf16 %v3859_v46, %v3856_v0 }
 0x72a   :  { %5527 = vmatpush1.bf16.msra.mxu0 %v5526_v36  ;;  %5551 = vmatpush3.bf16.msra.mxu1 %v7082_v49  ;;  %v7871_v49 = vld [vmem:[#allocation24_spill] sm:$0xff] }
 0x72b   :  { %5553 = vmatprep.subr.bf16.mxu0 %v7094_v19  ;;  %5584 = vmatprep.subr.bf16.mxu1 %v7798_v38  ;;  %v7872_v19 = vld [vmem:[#allocation25_spill] sm:$0xff] }
 0x72d   :  { %3005 = vmatmul.mubr.f32.vlgmr.msra.gmra.mrb[12].mxu0 %v7221_v4  ;;  %4658 = vmatmul.mubr.f32.vlgmr.msra.gmra.mrb[28].mxu1 %v7221_v4 }
 0x72e   :  { %5555 = vmatpush1.bf16.msra.mxu0 %v7096_v17  ;;  %5586 = vmatpush3.bf16.msra.mxu1 %v7099_v20  ;;  %v7873_v17 = vld [vmem:[#allocation27_spill] sm:$0xff]  ;;  %v7874_v20 = vld [vmem:[#allocation28_spill] sm:$0xff] }
 0x72f   :  { %5557 = vmatprep.subr.bf16.mxu0 %v7103_v25  ;;  %5587 = vmatprep.subr.bf16.mxu1 %v7798_v38  ;;  %v7875_v25 = vld [vmem:[#allocation29_spill] sm:$0xff] }
 0x730   :  { %3233 = vmatprep.mubr.f32.mxu0 %v7799_v41  ;;  %4692 = vmatprep.mubr.msk.f32.mxu1 %vm5859_vm0, %v7799_v41 }
 0x732   :  { %5559 = vmatpush1.bf16.msra.mxu0 %v7106_v18  ;;  %5589 = vmatpush3.bf16.msra.mxu1 %v7109_v40  ;;  %v7876_v18 = vld [vmem:[#allocation30_spill] sm:$0xff]  ;;  %v7877_v40 = vld [vmem:[#allocation31_spill] sm:$0xff] }
 0x733   :  { %5561 = vmatprep.subr.bf16.mxu0 %v7113_v63  ;;  %5590 = vmatprep.subr.bf16.mxu1 %v7798_v38  ;;  %v7878_v63 = vld [vmem:[#allocation32_spill] sm:$0xff] }
 0x736   :  { %5563 = vmatpush1.bf16.msra.mxu0 %v7869_v47  ;;  %5592 = vmatpush3.bf16.msra.mxu1 %v7870_v12 }
 0x737   :  { %5565 = vmatprep.subr.bf16.mxu0 %v7871_v49  ;;  %5593 = vmatprep.subr.bf16.mxu1 %v7798_v38 }
 0x73a   :  { %5567 = vmatpush1.bf16.msra.mxu0 %v7872_v19  ;;  %5595 = vmatpush3.bf16.msra.mxu1 %v7873_v17 }
 0x73b   :  { %5569 = vmatprep.subr.bf16.mxu0 %v7874_v20  ;;  %5596 = vmatprep.subr.bf16.mxu1 %v7798_v38 }
 0x73e   :  { %5571 = vmatpush1.bf16.msra.mxu0 %v7875_v25  ;;  %5598 = vmatpush3.bf16.msra.mxu1 %v7876_v18 }
 0x73f   :  { %5573 = vmatprep.subr.bf16.mxu0 %v7877_v40  ;;  %5599 = vmatprep.subr.bf16.mxu1 %v7798_v38  ;;  %v3839_v40 = vld [vmem:[%s7717_s3 + $0x1e8] sm:$0xff] }
 0x742   :  { %5575 = vmatpush1.bf16.msra.mxu0 %v7878_v63  ;;  %5601 = vmatpush3.bf16.msra.mxu1 %v7879_v5  ;;  %v3842_v63 = vld [vmem:[%s7717_s3 + $0x200] sm:$0xff] }
 0x743   :  { %5577 = vmatprep.subr.bf16.mxu0 %v7880_v22  ;;  %5602 = vmatprep.subr.bf16.mxu1 %v7798_v38  ;;  %v3838_v5 = vld [vmem:[%s7717_s3 + $0x1e0] sm:$0xff]  ;;  %v3841_v22 = vld [vmem:[%s7717_s3 + $0x1f8] sm:$0xff] }
 0x746   :  { %5579 = vmatpush1.bf16.msra.mxu0 %v7881_v26  ;;  %5604 = vmatpush3.bf16.msra.mxu1 %v7882_v2  ;;  %v3845_v26 = vld [vmem:[%s7717_s3 + $0x218] sm:$0xff]  ;;  %v3844_v2 = vld [vmem:[%s7717_s3 + $0x210] sm:$0xff] }
 0x747   :  { %5581 = vmatprep.subr.bf16.mxu0 %v7883_v32  ;;  %5605 = vmatprep.subr.bf16.mxu1 %v7798_v38  ;;  %v3847_v32 = vld [vmem:[%s7717_s3 + $0x228] sm:$0xff] }
 0x74a   :  { %5583 = vmatpush1.bf16.msra.mxu0 %v7884_v54  ;;  %5607 = vmatpush3.bf16.msra.mxu1 %v7885_v55  ;;  %v3850_v55 = vld [vmem:[%s7717_s3 + $0x240] sm:$0xff] }
 0x74b   :  { %5609 = vmatprep.subr.bf16.mxu0 %v7886_v57  ;;  %5640 = vmatprep.subr.bf16.mxu1 %v7798_v38  ;;  %v3853_v57 = vld [vmem:[%s7717_s3 + $0x258] sm:$0xff] }
 0x7e0   :  { %v2871_v33 = vpop.f32.mrb[26].mxu1 }
 0x7e1   :  { %v4624_v44 = vpop.f32.mrb[27].mxu1  ;;  %v2872_v36 = vadd.f32 %v2871_v33, %v2730_v37  ;;  %v3857_v33 = vld [vmem:[%s7717_s3 + $0x278] sm:$0xff] }
 0x7e2   :  { %v5626_v44 = vpack.c.bf16 %v3853_v57, %v3850_v55 }
 0x800   :  { %v3006_v58 = vpop.f32.mrb[12].mxu0  ;;  %v3077_v3 = vpop.f32.mrb[28].mxu1 }
 0x801   :  { %v5723_v53 = vadd.f32 %v5722_v52, %v3006_v58  ;;  %v3008_v29 = vpop.f32.mrb[13].mxu0  ;;  %v4659_v34 = vpop.f32.mrb[29].mxu1  ;;  %v3078_v51 = vadd.f32 %v3077_v3, %v2936_v14  ;;  %v3862_v52 = vld [vmem:[%s7717_s3 + $0x2a0] sm:$0xff]  ;;  %v3865_v58 = vld [vmem:[%s7717_s3 + $0x2b8] sm:$0xff] }
 0x802   :  { %v5725_v56 = vadd.f32 %v5724_v23, %v3008_v29  ;;  %v3869_v3 = vld [vmem:[%s7717_s3 + $0x2d8] sm:$0xff]  ;;  %v5634_v23 = vpack.c.bf16 %v3865_v58, %v3862_v52  ;;  %v3868_v29 = vld [vmem:[%s7717_s3 + $0x2d0] sm:$0xff]  ;;  %v3871_v34 = vld [vmem:[%s7717_s3 + $0x2e8] sm:$0xff] }
 0x803   :  { %v3823_v39 = vmul.f32 -1.442695, %v5723_v53  ;;  %v7887_v14 = vld [vmem:[#allocation26_spill] sm:$0xff] }
 0x804   :  { %v3824_v60 = vmul.f32 -1.442695, %v5725_v56  ;;  %v5638_v56 = vpack.c.bf16 %v3871_v34, %v3868_v29  ;;  %v3877_v52 = vld [vmem:[%s7721_s7] ss:$0 sm:$0xff] }
 0x805   :  { %5810 = vpow2.f32 %v3823_v39  ;;  %v3544_v39 = vld [vmem:[%s7720_s6] sm:$0xff] }
 0x806   :  { %5812 = vpow2.f32 %v3824_v60 }
 0x80f   :  { %v5811_v21 = vpop.eup %5810 }
 0x810   :  { %v3085_v42 = vadd.f32 1.0, %v5811_v21  ;;  %v5813_v8 = vpop.eup %5812  ;;  %v3546_v21 = vld [vmem:[%s7720_s6 + $0x10] sm:$0xff] }
 0x811   :  { %v3092_v9 = vadd.f32 1.0, %v5813_v8 }
 0x812   :  { %5814 = vrcp.f32 %v3085_v42  ;;  %v3547_v42 = vld [vmem:[%s7720_s6 + $0x18] sm:$0xff] }
 0x813   :  { %5816 = vrcp.f32 %v3092_v9  ;;  %v5668_v8 = vpack.c.bf16 %v3547_v42, %v3546_v21  ;;  %v3551_v9 = vld [vmem:[%s7720_s6 + $0x38] sm:$0xff] }
 0x81c   :  { %v5815_v35 = vpop.eup %5814 }
 0x81d   :  { %v3095_v47 = vmul.f32 %v5815_v35, %v3078_v51  ;;  %v5817_v49 = vpop.eup %5816  ;;  %v3552_v35 = vld [vmem:[%s7720_s6 + $0x40] sm:$0xff] }
 0x81e   :  { %v3098_v19 = vsub.f32 1.0, %v5817_v49  ;;  %v3100_v25 = vmul.f32 %v5817_v49, %v7221_v4  ;;  %v5616_v4 = vpack.c.bf16 %v3842_v63, %v3839_v40  ;;  %v3555_v49 = vld [vmem:[%s7720_s6 + $0x58] sm:$0xff] }
 0x81f   :  { %v3096_v12 = vadd.f32 %v3095_v47, %v2872_v36  ;;  %v3553_v36 = vld [vmem:[%s7720_s6 + $0x48] sm:$0xff]  ;;  %v3559_v40 = vld [vmem:[%s7720_s6 + $0x78] sm:$0xff] }
 0x820   :  { %v5680_v47 = vpack.c.bf16 %v3553_v36, %v3552_v35 }
 0x821   :  { %5818 = vtanh.f32 %v3096_v12  ;;  %v3554_v12 = vld [vmem:[%s7720_s6 + $0x50] sm:$0xff] }
 0x82b   :  { %v5819_v17 = vpop.eup %5818 }
 0x82c   :  { %v3099_v20 = vmul.f32 %v5819_v17, %v3098_v19  ;;  %v5684_v19 = vpack.c.bf16 %v3555_v49, %v3554_v12  ;;  %v3556_v17 = vld [vmem:[%s7720_s6 + $0x60] sm:$0xff] }
 0x82e   :  { %v3101_v18 = vadd.f32 %v3100_v25, %v3099_v20  ;;  %v3557_v20 = vld [vmem:[%s7720_s6 + $0x68] sm:$0xff] }
 0x82f   :  { %v5688_v25 = vpack.c.bf16 %v3557_v20, %v3556_v17 }
 0x830   :  { %3234 = vmatmul.mubr.f32.vlgmr.msra.gmra.mrb[14].mxu0 %v3101_v18  ;;  %4693 = vmatmul.mubr.f32.vlgmr.msra.gmra.mrb[30].mxu1 %v3101_v18  ;;  %v3558_v18 = vld [vmem:[%s7720_s6 + $0x70] sm:$0xff] }
 0x831   :  { %5611 = vmatpush1.bf16.msra.mxu0 %v7214_v24  ;;  %5642 = vmatpush3.bf16.msra.mxu1 %v7216_v61  ;;  %v3848_v24 = vld [vmem:[%s7717_s3 + $0x230] sm:$0xff]  ;;  %v5618_v61 = vpack.c.bf16 %v3841_v22, %v3838_v5  ;;  %v5692_v63 = vpack.c.bf16 %v3559_v40, %v3558_v18  ;;  %v3874_v22 = vld [vmem:[%s7719_s5 + $0x3] sm:$0x7] }
 0x832   :  { %5613 = vmatprep.subr.bf16.mxu0 %v7223_v15  ;;  %5643 = vmatprep.subr.bf16.mxu1 %v7798_v38  ;;  %v5620_v15 = vpack.c.bf16 %v3848_v24, %v3845_v26  ;;  %v3825_v26 = vld [vmem:[%s7718_s4 + $0x3] sm:$0x7]  ;;  %v3371_v0 = vrot.slane %v3874_v22, %v6290_v30 }
 0x833   :  { %3439 = vmatprep.mubr.f32.mxu0 %v7799_v41  ;;  %4727 = vmatprep.mubr.msk.f32.mxu1 %vm5859_vm0, %v7799_v41  ;;  %v3851_v41 = vld [vmem:[%s7717_s3 + $0x248] sm:$0xff]  ;;  %v3157_v24 = vrot.slane %v3825_v26, %v6276_v45 }
 0x835   :  { %5615 = vmatpush1.bf16.msra.mxu0 %v7238_v28  ;;  %5645 = vmatpush3.bf16.msra.mxu1 %v7240_v10  ;;  %v3854_v28 = vld [vmem:[%s7717_s3 + $0x260] sm:$0xff]  ;;  %v5622_v10 = vpack.c.bf16 %v3847_v32, %v3844_v2 }
 0x836   :  { %5617 = vmatprep.subr.bf16.mxu0 %v5616_v4  ;;  %5646 = vmatprep.subr.bf16.mxu1 %v7798_v38  ;;  %v5624_v54 = vpack.c.bf16 %v3854_v28, %v3851_v41 }
 0x839   :  { %5619 = vmatpush1.bf16.msra.mxu0 %v5618_v61  ;;  %5648 = vmatpush3.bf16.msra.mxu1 %v7255_v11  ;;  %v3860_v11 = vld [vmem:[%s7717_s3 + $0x290] sm:$0xff]  ;;  %v3363_v61 = vrot.slane %v3874_v22, %v6276_v45 }
 0x83a   :  { %5621 = vmatprep.subr.bf16.mxu0 %v5620_v15  ;;  %5649 = vmatprep.subr.bf16.mxu1 %v7798_v38  ;;  %v5628_v59 = vpack.c.bf16 %v3860_v11, %v3857_v33  ;;  %v3161_v15 = vrot.slane %v3825_v26, %v6281_v50 }
 0x83b   :  { %v5726_v2 = vadd.f32 %v3363_v61, %v3157_v24 }
 0x83d   :  { %5623 = vmatpush1.bf16.msra.mxu0 %v5622_v10  ;;  %5651 = vmatpush3.bf16.msra.mxu1 %v7267_v27  ;;  %v3866_v27 = vld [vmem:[%s7717_s3 + $0x2c0] sm:$0xff] }
 0x83e   :  { %5625 = vmatprep.subr.bf16.mxu0 %v5624_v54  ;;  %5652 = vmatprep.subr.bf16.mxu1 %v7798_v38  ;;  %v5632_v62 = vpack.c.bf16 %v3866_v27, %v3863_v31 }
 0x841   :  { %5627 = vmatpush1.bf16.msra.mxu0 %v5626_v44  ;;  %5654 = vmatpush3.bf16.msra.mxu1 %v7279_v43  ;;  %v3872_v43 = vld [vmem:[%s7717_s3 + $0x2f0] sm:$0xff] }
 0x842   :  { %5629 = vmatprep.subr.bf16.mxu0 %v5628_v59  ;;  %5655 = vmatprep.subr.bf16.mxu1 %v7798_v38  ;;  %v5636_v53 = vpack.c.bf16 %v3872_v43, %v3869_v3 }
 0x845   :  { %5631 = vmatpush1.bf16.msra.mxu0 %v5630_v6  ;;  %5657 = vmatpush3.bf16.msra.mxu1 %v7291_v48  ;;  %v3545_v48 = vld [vmem:[%s7720_s6 + $0x8] sm:$0xff] }
 0x846   :  { %5633 = vmatprep.subr.bf16.mxu0 %v5632_v62  ;;  %5658 = vmatprep.subr.bf16.mxu1 %v7798_v38  ;;  %v5664_v60 = vpack.c.bf16 %v3545_v48, %v3544_v39 }
 0x849   :  { %5635 = vmatpush1.bf16.msra.mxu0 %v5634_v23  ;;  %5660 = vmatpush3.bf16.msra.mxu1 %v7303_v13  ;;  %v3548_v13 = vld [vmem:[%s7720_s6 + $0x20] sm:$0xff] }
 0x84a   :  { %5637 = vmatprep.subr.bf16.mxu0 %v5636_v53  ;;  %5661 = vmatprep.subr.bf16.mxu1 %v7798_v38  ;;  %v3549_v38 = vld [vmem:[%s7720_s6 + $0x28] sm:$0xff] }
 0x84b   :  { %v5672_v37 = vpack.c.bf16 %v3549_v38, %v3548_v13 }
 0x84d   :  { %5639 = vmatpush1.bf16.msra.mxu0 %v5638_v56  ;;  %5663 = vmatpush3.bf16.msra.mxu1 %v7315_v16  ;;  %v3550_v16 = vld [vmem:[%s7720_s6 + $0x30] sm:$0xff] }
 0x84e   :  { %5665 = vmatprep.subr.bf16.mxu0 %v5664_v60  ;;  %v5676_v51 = vpack.c.bf16 %v3551_v9, %v3550_v16 }
 0x850   :  { %3440 = vmatmul.mubr.f32.vlgmr.msra.gmra.mrb[14].mxu0 %v7388_v1  ;;  %4728 = vmatmul.mubr.f32.vlgmr.msra.gmra.mrb[32].mxu1 %v7388_v1 }
 0x851   :  { %5667 = vmatpush3.bf16.msra.mxu0 %v5664_v60  ;;  %4762 = vmatprep.mubr.f32.mxu0 %v7887_v14 }
 0x852   :  { %5669 = vmatprep.subr.bf16.mxu0 %v5668_v8 }
 0x855   :  { %5671 = vmatpush3.bf16.msra.mxu0 %v5668_v8 }
 0x856   :  { %5673 = vmatprep.subr.bf16.mxu0 %v5672_v37 }
 0x859   :  { %5675 = vmatpush3.bf16.msra.mxu0 %v5672_v37 }
 0x85a   :  { %5677 = vmatprep.subr.bf16.mxu0 %v5676_v51 }
 0x85d   :  { %5679 = vmatpush3.bf16.msra.mxu0 %v5676_v51 }
 0x85e   :  { %5681 = vmatprep.subr.bf16.mxu0 %v5680_v47 }
 0x861   :  { %5683 = vmatpush3.bf16.msra.mxu0 %v5680_v47 }
 0x862   :  { %5685 = vmatprep.subr.bf16.mxu0 %v5684_v19 }
 0x865   :  { %5687 = vmatpush3.bf16.msra.mxu0 %v5684_v19 }
 0x866   :  { %5689 = vmatprep.subr.bf16.mxu0 %v5688_v25 }
 0x869   :  { %5691 = vmatpush3.bf16.msra.mxu0 %v5688_v25 }
 0x86a   :  { %5693 = vmatprep.subr.bf16.mxu0 %v5692_v63 }
 0x86d   :  { %5695 = vmatpush3.bf16.msra.mxu0 %v5692_v63 }
 0x870   :  { %4763 = vmatmul.mubr.f32.vlgmr.msra.gmra.mrb[16].mxu0 %v6995_v7  ;;  %v3367_v7 = vrot.slane %v3874_v22, %v6281_v50  ;;  %v3165_v50 = vrot.slane %v3825_v26, %v6290_v30 }
 0x871   :  { %4765 = vmatprep.mubr.f32.mxu0 %v7388_v1 }
 0x872   :  { %v5728_v28 = vadd.f32 %v3367_v7, %v3161_v15 }
 0x903   :  { %v3306_v4 = vpop.f32.mrb[30].mxu1 }
 0x904   :  { %v4694_v5 = vpop.f32.mrb[31].mxu1  ;;  %v3307_v6 = vadd.f32 %v3306_v4, %v3165_v50 }
 0x923   :  { %v3441_v32 = vpop.f32.mrb[14].mxu0  ;;  %v3512_v41 = vpop.f32.mrb[32].mxu1 }
 0x924   :  { %v5727_v10 = vadd.f32 %v5726_v2, %v3441_v32  ;;  %v3443_v54 = vpop.f32.mrb[15].mxu0  ;;  %v4729_v55 = vpop.f32.mrb[33].mxu1  ;;  %v3513_v31 = vadd.f32 %v3512_v41, %v3371_v0 }
 0x925   :  { %v5729_v33 = vadd.f32 %v5728_v28, %v3443_v54 }
 0x926   :  { %v3875_v57 = vmul.f32 -1.442695, %v5727_v10 }
 0x927   :  { %v3876_v11 = vmul.f32 -1.442695, %v5729_v33 }
 0x928   :  { %5820 = vpow2.f32 %v3875_v57 }
 0x929   :  { %5822 = vpow2.f32 %v3876_v11 }
 0x932   :  { %v5821_v44 = vpop.eup %5820 }
 0x933   :  { %v3520_v59 = vadd.f32 1.0, %v5821_v44  ;;  %v5823_v45 = vpop.eup %5822 }
 0x934   :  { %v3527_v46 = vadd.f32 1.0, %v5823_v45 }
 0x935   :  { %5824 = vrcp.f32 %v3520_v59 }
 0x936   :  { %5826 = vrcp.f32 %v3527_v46 }
 0x93f   :  { %v5825_v27 = vpop.eup %5824 }
 0x940   :  { %v3530_v62 = vmul.f32 %v5825_v27, %v3513_v31  ;;  %v5827_v30 = vpop.eup %5826 }
 0x941   :  { %v3533_v29 = vsub.f32 1.0, %v5827_v30  ;;  %v3535_v48 = vmul.f32 %v5827_v30, %v7388_v1 }
 0x942   :  { %v3531_v58 = vadd.f32 %v3530_v62, %v3307_v6 }
 0x943   :  { %v4764_v3 = vpop.f32.mrb[16].mxu0 }
 0x944   :  { %5828 = vtanh.f32 %v3531_v58  ;;  %v3639_v43 = vadd.f32 %v4764_v3, %v3877_v52  ;;  %v3633_v23 = vpop.f32.mrb[17].mxu0 }
 0x945   :  { %v3634_v53 = vadd.f32 %v3877_v52, %v3633_v23 }
 0x946   :  { %3653 = vst [vmem:[%s7722_s8 + $0x8] sm:$0xff] %v3639_v43 }
 0x947   :  { %3652 = vst [vmem:[%s7722_s8] sm:$0xff] %v3634_v53 }
 0x94e   :  { %v5829_v34 = vpop.eup %5828 }
 0x94f   :  { %v3534_v39 = vmul.f32 %v5829_v34, %v3533_v29 }
 0x951   :  { %v3536_v56 = vadd.f32 %v3535_v48, %v3534_v39 }
 0x953   :  { %4766 = vmatmul.mubr.f32.gmra.mrb[18].mxu0 %v3536_v56 }
 0xa26   :  { %v4767_v60 = vpop.f32.mrb[18].mxu0 }
 0xa27   :  { %v3649_v21 = vadd.f32 %v4767_v60, %v3877_v52  ;;  %v3643_v42 = vpop.f32.mrb[19].mxu0 }
 0xa28   :  { %v3644_v8 = vadd.f32 %v3877_v52, %v3643_v42 }
 0xa29   :  { %3655 = vst [vmem:[%s7722_s8 + $0x18] sm:$0xff] %v3649_v21 }
 0xa2a   :  { %3654 = vst [vmem:[%s7722_s8 + $0x10] sm:$0xff] %v3644_v8 }
 0xa2b   :  { %3660 = vsyncpa [#allocation5], 1 }

</bundles_post_ra>
